<compile_context>
chip_gen: v5e
topology: v5e:2x2
jax: 0.10.0
libtpu: 0.0.40
codegen_flags: <defaults>
</compile_context>

<pallas_src>
import functools

import jax
import jax.numpy as jnp
from jax.experimental import pallas as pl
from jax.experimental.pallas import tpu as pltpu


def _round_up(x, m):
    return ((x + m - 1) // m) * m


# ----------------------------------------------------------------------------
# Pallas kernel: relu(W[q] @ patches + bias)  (+ optional masked BN statistics)
# ----------------------------------------------------------------------------
def _conv_kernel(p_ref, w_ref, b_ref, *rest, with_stats):
    if with_stats:
        mask_ref, o_ref, s1_ref, s2_ref = rest
    else:
        (o_ref,) = rest

    x = p_ref[...].astype(jnp.float32)                    # (K, TM)  bf16 -> f32
    acc = jnp.dot(w_ref[0], x, preferred_element_type=jnp.float32)
    acc = jnp.maximum(acc + b_ref[...], 0.0)               # bias + ReLU, (Cout, TM)
    o_ref[0] = acc.astype(o_ref.dtype)

    if with_stats:
        q = pl.program_id(1)

        @pl.when(q == 0)
        def _():
            s1_ref[...] = jnp.zeros(s1_ref.shape, s1_ref.dtype)
            s2_ref[...] = jnp.zeros(s2_ref.shape, s2_ref.dtype)

        masked = acc * mask_ref[0]                         # zero garbage/pad lanes
        s1_ref[...] += jnp.sum(masked, axis=1, keepdims=True)[None]
        s2_ref[...] += jnp.sum(masked * masked, axis=1, keepdims=True)[None]


def fused_conv_matmul(wstack, patches, bias, *, masks=None,
                      out_dtype=jnp.bfloat16, tile_m=1024):
    """relu(wstack[q] @ patches + bias) for every quarter q in one pallas_call.

    wstack:  (nq, Cout, K) f32   patches: (K, M) bf16   bias: (Cout,) f32
    masks:   optional (nq, 1, M) f32 validity mask -> also return per-tile
             partial (sum, sumsq) of the masked ReLU output.
    Returns (nq, Cout, Mp) activation [, s1 (n_tiles, Cout, 1), s2 (...)].
    """
    nq, Cout, K = wstack.shape
    M = patches.shape[1]

    tile = min(tile_m, _round_up(M, 128))
    n_tiles = -(-M // tile)
    tile = _round_up(-(-M // n_tiles), 128)                # rebalance tiles
    Mp = n_tiles * tile
    if Mp != M:
        patches = jnp.pad(patches, ((0, 0), (0, Mp - M)))

    with_stats = masks is not None

    inputs = [patches,
              wstack.astype(jnp.float32),
              bias.reshape(Cout, 1).astype(jnp.float32)]
    in_specs = [
        pl.BlockSpec((K, tile), lambda i, q: (0, i)),      # resident across q
        pl.BlockSpec((1, Cout, K), lambda i, q: (q, 0, 0)),
        pl.BlockSpec((Cout, 1), lambda i, q: (0, 0)),
    ]
    if with_stats:
        if Mp != M:
            masks = jnp.pad(masks, ((0, 0), (0, 0), (0, Mp - M)))
        inputs.append(masks.astype(jnp.float32))
        in_specs.append(pl.BlockSpec((1, 1, tile), lambda i, q: (q, 0, i)))

    out_shapes = [jax.ShapeDtypeStruct((nq, Cout, Mp), out_dtype)]
    out_specs = [pl.BlockSpec((1, Cout, tile), lambda i, q: (q, 0, i))]
    if with_stats:
        out_shapes += [jax.ShapeDtypeStruct((n_tiles, Cout, 1), jnp.float32)] * 2
        out_specs += [pl.BlockSpec((1, Cout, 1), lambda i, q: (i, 0, 0))] * 2

    flops = 2 * nq * Cout * K * Mp
    bytes_accessed = int(K * Mp * patches.dtype.itemsize
                         + n_tiles * nq * Cout * K * 4
                         + nq * Cout * Mp * jnp.dtype(out_dtype).itemsize)

    kernel = functools.partial(_conv_kernel, with_stats=with_stats)
    single = len(out_shapes) == 1
    return pl.pallas_call(
        kernel,
        out_shape=out_shapes[0] if single else tuple(out_shapes),
        grid_spec=pltpu.PrefetchScalarGridSpec(
            num_scalar_prefetch=0,
            grid=(n_tiles, nq),                            # q innermost
            in_specs=in_specs,
            out_specs=out_specs[0] if single else tuple(out_specs)),
        compiler_params=pltpu.CompilerParams(
            dimension_semantics=("parallel", "arbitrary"),
            vmem_limit_bytes=32 * 1024 * 1024),
        cost_estimate=pl.CostEstimate(flops=flops, transcendentals=0,
                                      bytes_accessed=bytes_accessed),
    )(*inputs)


# ----------------------------------------------------------------------------
# BatchNorm (training-mode batch statistics) -> per-channel (scale, shift)
# ----------------------------------------------------------------------------
def _bn_fold(s1, s2, count, gamma, beta, eps=1e-3):
    s1 = jnp.sum(s1, axis=0).reshape(-1)
    s2 = jnp.sum(s2, axis=0).reshape(-1)
    mean = s1 / count
    var = jnp.maximum(s2 / count - mean * mean, 0.0)       # biased, as in BN.train()
    scale = gamma * jax.lax.rsqrt(var + eps)
    shift = beta - mean * scale
    return scale, shift


# ----------------------------------------------------------------------------
# Layer wrappers (plain-JAX glue around the fused Pallas matmul)
# ----------------------------------------------------------------------------
def conv_transpose2d_relu(x_cf, w_iohw, b, *, in_bn=None, out_bn=None,
                          tile_m=1024):
    """ConvTranspose2d(k=3, stride=2, pad=0) + ReLU [+ batch-stat collection].

    x_cf: (Cin, N, H, W) bf16.  w_iohw: (Cin, Cout, 3, 3) (PyTorch ConvT layout).
    in_bn:  (scale, shift) of the previous layer's BatchNorm, folded exactly
            into this layer's weights + one constant-ones input channel.
    out_bn: (gamma, beta) of this layer's BatchNorm; batch stats of the ReLU
            output are collected in-kernel and returned folded for the next layer.
    Returns (y (Cout, N, 2H+1, 2W+1) bf16, fold-or-None).
    """
    Cin, N, H, W = x_cf.shape
    Cout = w_iohw.shape[1]
    w_iohw = w_iohw.astype(jnp.float32)

    if in_bn is not None:                                  # exact BN fold
        scale, shift = in_bn
        w_ones = jnp.einsum("i,iohw->ohw", shift, w_iohw)[None]
        w_iohw = jnp.concatenate(
            [w_iohw * scale[:, None, None, None], w_ones], axis=0)
        x_cf = jnp.concatenate(
            [x_cf, jnp.ones((1, N, H, W), x_cf.dtype)], axis=0)
        Cin += 1

    Ho, Wo = H + 1, W + 1                                  # uniform quarter size
    M = N * Ho * Wo

    # Single shared 4-tap patch slab for all quarters (bf16, M lane-dense).
    # TODO(synk): gather these shifted views in-kernel to kill this HBM slab.
    xpad = jnp.pad(x_cf, ((0, 0), (0, 0), (1, 1), (1, 1)))
    patches = jnp.concatenate(
        [xpad[:, :, dh:dh + Ho, dw:dw + Wo].reshape(Cin, M)
         for dh in (0, 1) for dw in (0, 1)], axis=0)       # (4*Cin, M)

    # Per-quarter weight matrices; taps a quarter does not use get zeros.
    wq = []
    for rp in (0, 1):
        for cp in (0, 1):
            cols = []
            for dh in (0, 1):
                for dw in (0, 1):
                    if (rp == 0 or dh == 1) and (cp == 0 or dw == 1):
                        kh = 2 - 2 * dh if rp == 0 else 1
                        kw = 2 - 2 * dw if cp == 0 else 1
                        cols.append(w_iohw[:, :, kh, kw].T)  # (Cout, Cin)
                    else:
                        cols.append(jnp.zeros((Cout, Cin), jnp.float32))
            wq.append(jnp.concatenate(cols, axis=1))         # (Cout, 4*Cin)
    wstack = jnp.stack(wq, axis=0)                           # (4, Cout, 4*Cin)

    masks = None
    if out_bn is not None:
        # Validity mask: odd-parity quarters have one garbage row/col (r==H /
        # c==W) that is sliced away below and must not pollute the BN stats.
        qmasks = []
        for rp in (0, 1):
            for cp in (0, 1):
                rv = (jnp.arange(Ho) < (H if rp else Ho)).astype(jnp.float32)
                cv = (jnp.arange(Wo) < (W if cp else Wo)).astype(jnp.float32)
                m2 = rv[:, None] * cv[None, :]
                qmasks.append(jnp.tile(m2[None], (N, 1, 1)).reshape(1, M))
        masks = jnp.stack(qmasks, axis=0)                    # (4, 1, M)

    res = fused_conv_matmul(wstack, patches, b, masks=masks,
                            out_dtype=jnp.bfloat16, tile_m=tile_m)
    out = res[0] if out_bn is not None else res

    Hout, Wout = 2 * H + 1, 2 * W + 1
    # Interleave the 4 parity quarters (lane-dense, each byte written once).
    y = out[:, :, :M].reshape(2, 2, Cout, N, Ho, Wo)
    y = jnp.transpose(y, (2, 3, 4, 0, 5, 1)).reshape(Cout, N, 2 * Ho, 2 * Wo)
    y = y[:, :, :Hout, :Wout]

    fold = None
    if out_bn is not None:
        gamma, beta = out_bn
        fold = _bn_fold(res[1], res[2], float(N * Hout * Wout), gamma, beta)
    return y, fold


def conv2d_same_relu(x_cf, w_oihw, b, *, in_bn=None, tile_m=1024):
    """Conv2d(k=3, stride=1, padding='same') + ReLU, channel-first."""
    Cin, N, H, W = x_cf.shape
    Cout, _, k, _ = w_oihw.shape
    w_oihw = w_oihw.astype(jnp.float32)

    if in_bn is not None:                                  # exact BN fold
        scale, shift = in_bn
        w_ones = jnp.einsum("i,oihw->ohw", shift, w_oihw)[:, None]
        w_oihw = jnp.concatenate(
            [w_oihw * scale[None, :, None, None], w_ones], axis=1)
        x_cf = jnp.concatenate(
            [x_cf, jnp.ones((1, N, H, W), x_cf.dtype)], axis=0)
        Cin += 1

    pad = k // 2
    xpad = jnp.pad(x_cf, ((0, 0), (0, 0), (pad, pad), (pad, pad)))
    M = N * H * W
    taps = [(kh, kw) for kh in range(k) for kw in range(k)]
    patches = jnp.concatenate(
        [xpad[:, :, kh:kh + H, kw:kw + W].reshape(Cin, M) for kh, kw in taps],
        axis=0)                                            # (9*Cin, M)
    wmat = jnp.concatenate([w_oihw[:, :, kh, kw] for kh, kw in taps], axis=1)
    out = fused_conv_matmul(wmat[None], patches, b, masks=None,
                            out_dtype=jnp.float32, tile_m=tile_m)
    return out[0, :, :M].reshape(Cout, N, H, W)


# ----------------------------------------------------------------------------
# Parameters (deterministic, synthetic) and forward pass
# ----------------------------------------------------------------------------
def init_params(key, num_filters, in_ch=3):
    nf = num_filters
    ks = 3

    def conv_t(key, cin, cout):
        k1, k2 = jax.random.split(key)
        w = jax.random.normal(k1, (cin, cout, ks, ks), jnp.float32) * 0.05
        b = jax.random.normal(k2, (cout,), jnp.float32) * 0.05
        return w, b

    def bn(key, c):
        k1, k2 = jax.random.split(key)
        g = 1.0 + 0.1 * jax.random.normal(k1, (c,), jnp.float32)
        be = 0.1 * jax.random.normal(k2, (c,), jnp.float32)
        return g, be

    keys = jax.random.split(key, 9)
    p = {}
    p["w6"], p["b6"] = conv_t(keys[0], 32 * nf, 16 * nf)
    p["g6"], p["be6"] = bn(keys[1], 16 * nf)
    p["w5"], p["b5"] = conv_t(keys[2], 16 * nf, 8 * nf)
    p["w4"], p["b4"] = conv_t(keys[3], 8 * nf, 4 * nf)
    p["g4"], p["be4"] = bn(keys[4], 4 * nf)
    p["w3"], p["b3"] = conv_t(keys[5], 4 * nf, 2 * nf)
    p["w2"], p["b2"] = conv_t(keys[6], 2 * nf, nf)
    p["g2"], p["be2"] = bn(keys[7], nf)
    k1, k2 = jax.random.split(keys[8])
    p["w1"] = jax.random.normal(k1, (in_ch, nf, ks, ks), jnp.float32) * 0.05
    p["b1"] = jax.random.normal(k2, (in_ch,), jnp.float32) * 0.05
    return p


@jax.jit
def feature_decoder_forward(x_nchw, params):
    # public API: NCHW (PyTorch); internal compute is channel-first (C,N,H,W)
    x = jnp.transpose(x_nchw, (1, 0, 2, 3)).astype(jnp.bfloat16)
    x, bn6 = conv_transpose2d_relu(x, params["w6"], params["b6"],
                                   out_bn=(params["g6"], params["be6"]))
    x, _ = conv_transpose2d_relu(x, params["w5"], params["b5"], in_bn=bn6)
    x, bn4 = conv_transpose2d_relu(x, params["w4"], params["b4"],
                                   out_bn=(params["g4"], params["be4"]))
    x, _ = conv_transpose2d_relu(x, params["w3"], params["b3"], in_bn=bn4)
    x, bn2 = conv_transpose2d_relu(x, params["w2"], params["b2"],
                                   out_bn=(params["g2"], params["be2"]))
    x = conv2d_same_relu(x, params["w1"], params["b1"], in_bn=bn2)
    return jnp.transpose(x, (1, 0, 2, 3))                   # back to NCHW, f32


# ----------------------------------------------------------------------------
# Pure-JAX (lax.conv) f32 reference of the PyTorch forward, for validation
# ----------------------------------------------------------------------------
def _reference_forward(x, params, eps=1e-3):
    def conv_t(x, w, b):                      # ConvTranspose2d(k=3, s=2, p=0)
        rhs = jnp.transpose(w, (1, 0, 2, 3))[:, :, ::-1, ::-1]
        y = jax.lax.conv_general_dilated(
            x, rhs, window_strides=(1, 1), padding=((2, 2), (2, 2)),
            lhs_dilation=(2, 2), dimension_numbers=("NCHW", "OIHW", "NCHW"))
        return y + b.reshape(1, -1, 1, 1)

    def bn(x, g, be):                         # training-mode batch statistics
        mean = jnp.mean(x, axis=(0, 2, 3), keepdims=True)
        var = jnp.mean((x - mean) ** 2, axis=(0, 2, 3), keepdims=True)
        return (g.reshape(1, -1, 1, 1) * (x - mean) * jax.lax.rsqrt(var + eps)
                + be.reshape(1, -1, 1, 1))

    relu = jax.nn.relu
    x = bn(relu(conv_t(x, params["w6"], params["b6"])), params["g6"], params["be6"])
    x = relu(conv_t(x, params["w5"], params["b5"]))
    x = bn(relu(conv_t(x, params["w4"], params["b4"])), params["g4"], params["be4"])
    x = relu(conv_t(x, params["w3"], params["b3"]))
    x = bn(relu(conv_t(x, params["w2"], params["b2"])), params["g2"], params["be2"])
    x = jax.lax.conv_general_dilated(
        x, params["w1"], (1, 1), "SAME",
        dimension_numbers=("NCHW", "OIHW", "NCHW"))
    return relu(x + params["b1"].reshape(1, -1, 1, 1))


if __name__ == "__main__":
    num_filters = 2          # small synthetic config (module default is 8)
    batch = 2
    h0 = w0 = 2              # spatial chain: 2 -> 5 -> 11 -> 23 -> 47 -> 95

    key = jax.random.PRNGKey(0)
    kp, kx = jax.random.split(key)
    params = init_params(kp, num_filters, in_ch=3)
    x = jax.random.normal(kx, (batch, 32 * num_filters, h0, w0), jnp.float32)

    out = feature_decoder_forward(x, params)
    out = jax.block_until_ready(out)

    assert out.shape == (batch, 3, 95, 95), out.shape
    assert bool(jnp.all(jnp.isfinite(out)))
    assert bool(jnp.all(out >= 0.0))          # final ReLU

    # validate against an f32 lax.conv reference (bf16 activation storage)
    ref = _reference_forward(x, params)
    err = float(jnp.max(jnp.abs(out.astype(jnp.float32) - ref)))
    scl = float(jnp.max(jnp.abs(ref)))
    assert err <= 0.08 * scl + 1e-2, (err, scl)

    print("KERNEL_OK")
</pallas_src>

<mosaic_0001>
module attributes {stable_mosaic.version = 11 : i64} {
  func.func @_conv_kernel(%arg0: i32, %arg1: i32, %arg2: memref<256x128xbf16, #tpu.memory_space<vmem>>, %arg3: memref<1x32x256xf32, #tpu.memory_space<vmem>>, %arg4: memref<32x1xf32, #tpu.memory_space<vmem>>, %arg5: memref<1x1x128xf32, #tpu.memory_space<vmem>>, %arg6: memref<1x32x128xbf16, #tpu.memory_space<vmem>>, %arg7: memref<1x32x1xf32, #tpu.memory_space<vmem>>, %arg8: memref<1x32x1xf32, #tpu.memory_space<vmem>>) attributes {dimension_semantics = [#tpu.dimension_semantics<parallel>, #tpu.dimension_semantics<arbitrary>], iteration_bounds = array<i64: 1, 4>, scalar_prefetch = 0 : i64, scratch_operands = 0 : i64, tpu.core_type = #tpu.core_type<tc>, window_params = [{transform_indices = @transform_0, window_bounds = array<i64: 256, 128>}, {transform_indices = @transform_1, window_bounds = array<i64: 1, 32, 256>}, {pipeline_mode = #tpu.pipeline_mode<synchronous>, transform_indices = @transform_2, window_bounds = array<i64: 32, 1>}, {transform_indices = @transform_3, window_bounds = array<i64: 1, 1, 128>}, {transform_indices = @transform_4, window_bounds = array<i64: 1, 32, 128>}, {transform_indices = @transform_5, window_bounds = array<i64: 1, 32, 1>}, {transform_indices = @transform_6, window_bounds = array<i64: 1, 32, 1>}]} {
    %c0 = arith.constant 0 : index
    %c0_0 = arith.constant 0 : index
    %0 = vector.load %arg2[%c0, %c0_0] : memref<256x128xbf16, #tpu.memory_space<vmem>>, vector<256x128xbf16>
    %1 = arith.extf %0 : vector<256x128xbf16> to vector<256x128xf32>
    %c0_1 = arith.constant 0 : index
    %c0_2 = arith.constant 0 : index
    %c0_3 = arith.constant 0 : index
    %2 = vector.load %arg3[%c0_1, %c0_2, %c0_3] : memref<1x32x256xf32, #tpu.memory_space<vmem>>, vector<1x32x256xf32>
    %3 = vector.shape_cast %2 : vector<1x32x256xf32> to vector<32x256xf32>
    %cst = arith.constant dense<0.000000e+00> : vector<32x128xf32>
    %4 = tpu.matmul %3, %1, %cst {dimension_numbers = #tpu.dot_dimension_numbers<[1], [0], [0], [1], [0, 0, 1, 1], [], []>} : vector<32x256xf32>, vector<256x128xf32>, vector<32x128xf32> -> vector<32x128xf32>
    %c0_4 = arith.constant 0 : index
    %c0_5 = arith.constant 0 : index
    %5 = vector.load %arg4[%c0_4, %c0_5] : memref<32x1xf32, #tpu.memory_space<vmem>>, vector<32x1xf32>
    %6 = vector.broadcast %5 : vector<32x1xf32> to vector<32x128xf32>
    %7 = arith.addf %4, %6 : vector<32x128xf32>
    %cst_6 = arith.constant 0.000000e+00 : f32
    %8 = vector.broadcast %cst_6 : f32 to vector<32x128xf32>
    %9 = arith.maximumf %7, %8 : vector<32x128xf32>
    %10 = arith.truncf %9 : vector<32x128xf32> to vector<32x128xbf16>
    %c0_7 = arith.constant 0 : index
    %c0_8 = arith.constant 0 : index
    %c0_9 = arith.constant 0 : index
    %11 = vector.load %arg6[%c0_7, %c0_8, %c0_9] : memref<1x32x128xbf16, #tpu.memory_space<vmem>>, vector<1x32x128xbf16>
    %12 = vector.shape_cast %11 : vector<1x32x128xbf16> to vector<32x128xbf16>
    %13 = vector.shape_cast %10 : vector<32x128xbf16> to vector<1x32x128xbf16>
    tpu.vector_store %arg6[%c0_7, %c0_8, %c0_9], %13 {strides = array<i32>} : memref<1x32x128xbf16, #tpu.memory_space<vmem>>, vector<1x32x128xbf16>,
    %c0_i32 = arith.constant 0 : i32
    %14 = arith.cmpi eq, %arg1, %c0_i32 : i32
    %15 = arith.extui %14 : i1 to i32
    %c0_i32_10 = arith.constant 0 : i32
    %16 = arith.cmpi ne, %15, %c0_i32_10 : i32
    scf.if %16 {
      %cst_28 = arith.constant 0.000000e+00 : f32
      %34 = vector.broadcast %cst_28 : f32 to vector<1x32x1xf32>
      %c0_29 = arith.constant 0 : index
      %c0_30 = arith.constant 0 : index
      %c0_31 = arith.constant 0 : index
      %35 = vector.load %arg7[%c0_29, %c0_30, %c0_31] : memref<1x32x1xf32, #tpu.memory_space<vmem>>, vector<1x32x1xf32>
      tpu.vector_store %arg7[%c0_29, %c0_30, %c0_31], %34 {strides = array<i32>} : memref<1x32x1xf32, #tpu.memory_space<vmem>>, vector<1x32x1xf32>,
      %cst_32 = arith.constant 0.000000e+00 : f32
      %36 = vector.broadcast %cst_32 : f32 to vector<1x32x1xf32>
      %c0_33 = arith.constant 0 : index
      %c0_34 = arith.constant 0 : index
      %c0_35 = arith.constant 0 : index
      %37 = vector.load %arg8[%c0_33, %c0_34, %c0_35] : memref<1x32x1xf32, #tpu.memory_space<vmem>>, vector<1x32x1xf32>
      tpu.vector_store %arg8[%c0_33, %c0_34, %c0_35], %36 {strides = array<i32>} : memref<1x32x1xf32, #tpu.memory_space<vmem>>, vector<1x32x1xf32>,
    } else {
    }
    %c0_11 = arith.constant 0 : index
    %c0_12 = arith.constant 0 : index
    %c0_13 = arith.constant 0 : index
    %17 = vector.load %arg5[%c0_11, %c0_12, %c0_13] : memref<1x1x128xf32, #tpu.memory_space<vmem>>, vector<1x1x128xf32>
    %18 = vector.shape_cast %17 : vector<1x1x128xf32> to vector<1x128xf32>
    %19 = vector.broadcast %18 : vector<1x128xf32> to vector<32x128xf32>
    %20 = arith.mulf %9, %19 : vector<32x128xf32>
    %c0_14 = arith.constant 0 : index
    %c0_15 = arith.constant 0 : index
    %c0_16 = arith.constant 0 : index
    %21 = vector.load %arg7[%c0_14, %c0_15, %c0_16] : memref<1x32x1xf32, #tpu.memory_space<vmem>>, vector<1x32x1xf32>
    %cst_17 = arith.constant dense<0.000000e+00> : vector<32xf32>
    %22 = vector.multi_reduction <add>, %20, %cst_17 [1] : vector<32x128xf32> to vector<32xf32>
    %23 = vector.shape_cast %22 : vector<32xf32> to vector<32x1xf32>
    %24 = vector.shape_cast %23 : vector<32x1xf32> to vector<1x32x1xf32>
    %25 = arith.addf %21, %24 : vector<1x32x1xf32>
    %c0_18 = arith.constant 0 : index
    %c0_19 = arith.constant 0 : index
    %c0_20 = arith.constant 0 : index
    %26 = vector.load %arg7[%c0_18, %c0_19, %c0_20] : memref<1x32x1xf32, #tpu.memory_space<vmem>>, vector<1x32x1xf32>
    tpu.vector_store %arg7[%c0_18, %c0_19, %c0_20], %25 {strides = array<i32>} : memref<1x32x1xf32, #tpu.memory_space<vmem>>, vector<1x32x1xf32>,
    %c0_21 = arith.constant 0 : index
    %c0_22 = arith.constant 0 : index
    %c0_23 = arith.constant 0 : index
    %27 = vector.load %arg8[%c0_21, %c0_22, %c0_23] : memref<1x32x1xf32, #tpu.memory_space<vmem>>, vector<1x32x1xf32>
    %28 = arith.mulf %20, %20 : vector<32x128xf32>
    %cst_24 = arith.constant dense<0.000000e+00> : vector<32xf32>
    %29 = vector.multi_reduction <add>, %28, %cst_24 [1] : vector<32x128xf32> to vector<32xf32>
    %30 = vector.shape_cast %29 : vector<32xf32> to vector<32x1xf32>
    %31 = vector.shape_cast %30 : vector<32x1xf32> to vector<1x32x1xf32>
    %32 = arith.addf %27, %31 : vector<1x32x1xf32>
    %c0_25 = arith.constant 0 : index
    %c0_26 = arith.constant 0 : index
    %c0_27 = arith.constant 0 : index
    %33 = vector.load %arg8[%c0_25, %c0_26, %c0_27] : memref<1x32x1xf32, #tpu.memory_space<vmem>>, vector<1x32x1xf32>
    tpu.vector_store %arg8[%c0_25, %c0_26, %c0_27], %32 {strides = array<i32>} : memref<1x32x1xf32, #tpu.memory_space<vmem>>, vector<1x32x1xf32>,
    return
  }
  func.func @transform_0(%arg0: i32, %arg1: i32) -> (i32, i32) {
    %c0_i32 = arith.constant 0 : i32
    %c0_i32_0 = arith.constant 0 : i32
    return %c0_i32, %arg0 : i32, i32
  }
  func.func @transform_1(%arg0: i32, %arg1: i32) -> (i32, i32, i32) {
    %c0_i32 = arith.constant 0 : i32
    %c0_i32_0 = arith.constant 0 : i32
    %c0_i32_1 = arith.constant 0 : i32
    return %arg1, %c0_i32, %c0_i32_0 : i32, i32, i32
  }
  func.func @transform_2(%arg0: i32, %arg1: i32) -> (i32, i32) {
    %c0_i32 = arith.constant 0 : i32
    %c0_i32_0 = arith.constant 0 : i32
    %c0_i32_1 = arith.constant 0 : i32
    return %c0_i32, %c0_i32_0 : i32, i32
  }
  func.func @transform_3(%arg0: i32, %arg1: i32) -> (i32, i32, i32) {
    %c0_i32 = arith.constant 0 : i32
    %c0_i32_0 = arith.constant 0 : i32
    return %arg1, %c0_i32, %arg0 : i32, i32, i32
  }
  func.func @transform_4(%arg0: i32, %arg1: i32) -> (i32, i32, i32) {
    %c0_i32 = arith.constant 0 : i32
    %c0_i32_0 = arith.constant 0 : i32
    return %arg1, %c0_i32, %arg0 : i32, i32, i32
  }
  func.func @transform_5(%arg0: i32, %arg1: i32) -> (i32, i32, i32) {
    %c0_i32 = arith.constant 0 : i32
    %c0_i32_0 = arith.constant 0 : i32
    %c0_i32_1 = arith.constant 0 : i32
    return %arg0, %c0_i32, %c0_i32_0 : i32, i32, i32
  }
  func.func @transform_6(%arg0: i32, %arg1: i32) -> (i32, i32, i32) {
    %c0_i32 = arith.constant 0 : i32
    %c0_i32_0 = arith.constant 0 : i32
    %c0_i32_1 = arith.constant 0 : i32
    return %arg0, %c0_i32, %c0_i32_0 : i32, i32, i32
  }
}

module attributes {stable_mosaic.version = 11 : i64} {
  func.func @_conv_kernel(%arg0: i32, %arg1: i32, %arg2: memref<132x128xbf16, #tpu.memory_space<vmem>>, %arg3: memref<1x16x132xf32, #tpu.memory_space<vmem>>, %arg4: memref<16x1xf32, #tpu.memory_space<vmem>>, %arg5: memref<1x16x128xbf16, #tpu.memory_space<vmem>>) attributes {dimension_semantics = [#tpu.dimension_semantics<parallel>, #tpu.dimension_semantics<arbitrary>], iteration_bounds = array<i64: 1, 4>, scalar_prefetch = 0 : i64, scratch_operands = 0 : i64, tpu.core_type = #tpu.core_type<tc>, window_params = [{transform_indices = @transform_0, window_bounds = array<i64: 132, 128>}, {transform_indices = @transform_1, window_bounds = array<i64: 1, 16, 132>}, {pipeline_mode = #tpu.pipeline_mode<synchronous>, transform_indices = @transform_2, window_bounds = array<i64: 16, 1>}, {transform_indices = @transform_3, window_bounds = array<i64: 1, 16, 128>}]} {
    %c0 = arith.constant 0 : index
    %c0_0 = arith.constant 0 : index
    %0 = vector.load %arg2[%c0, %c0_0] : memref<132x128xbf16, #tpu.memory_space<vmem>>, vector<132x128xbf16>
    %1 = arith.extf %0 : vector<132x128xbf16> to vector<132x128xf32>
    %c0_1 = arith.constant 0 : index
    %c0_2 = arith.constant 0 : index
    %c0_3 = arith.constant 0 : index
    %2 = vector.load %arg3[%c0_1, %c0_2, %c0_3] : memref<1x16x132xf32, #tpu.memory_space<vmem>>, vector<1x16x132xf32>
    %3 = vector.shape_cast %2 : vector<1x16x132xf32> to vector<16x132xf32>
    %cst = arith.constant dense<0.000000e+00> : vector<16x128xf32>
    %4 = tpu.matmul %3, %1, %cst {dimension_numbers = #tpu.dot_dimension_numbers<[1], [0], [0], [1], [0, 0, 1, 1], [], []>} : vector<16x132xf32>, vector<132x128xf32>, vector<16x128xf32> -> vector<16x128xf32>
    %c0_4 = arith.constant 0 : index
    %c0_5 = arith.constant 0 : index
    %5 = vector.load %arg4[%c0_4, %c0_5] : memref<16x1xf32, #tpu.memory_space<vmem>>, vector<16x1xf32>
    %6 = vector.broadcast %5 : vector<16x1xf32> to vector<16x128xf32>
    %7 = arith.addf %4, %6 : vector<16x128xf32>
    %cst_6 = arith.constant 0.000000e+00 : f32
    %8 = vector.broadcast %cst_6 : f32 to vector<16x128xf32>
    %9 = arith.maximumf %7, %8 : vector<16x128xf32>
    %10 = arith.truncf %9 : vector<16x128xf32> to vector<16x128xbf16>
    %c0_7 = arith.constant 0 : index
    %c0_8 = arith.constant 0 : index
    %c0_9 = arith.constant 0 : index
    %11 = vector.load %arg5[%c0_7, %c0_8, %c0_9] : memref<1x16x128xbf16, #tpu.memory_space<vmem>>, vector<1x16x128xbf16>
    %12 = vector.shape_cast %11 : vector<1x16x128xbf16> to vector<16x128xbf16>
    %13 = vector.shape_cast %10 : vector<16x128xbf16> to vector<1x16x128xbf16>
    tpu.vector_store %arg5[%c0_7, %c0_8, %c0_9], %13 {strides = array<i32>} : memref<1x16x128xbf16, #tpu.memory_space<vmem>>, vector<1x16x128xbf16>,
    return
  }
  func.func @transform_0(%arg0: i32, %arg1: i32) -> (i32, i32) {
    %c0_i32 = arith.constant 0 : i32
    %c0_i32_0 = arith.constant 0 : i32
    return %c0_i32, %arg0 : i32, i32
  }
  func.func @transform_1(%arg0: i32, %arg1: i32) -> (i32, i32, i32) {
    %c0_i32 = arith.constant 0 : i32
    %c0_i32_0 = arith.constant 0 : i32
    %c0_i32_1 = arith.constant 0 : i32
    return %arg1, %c0_i32, %c0_i32_0 : i32, i32, i32
  }
  func.func @transform_2(%arg0: i32, %arg1: i32) -> (i32, i32) {
    %c0_i32 = arith.constant 0 : i32
    %c0_i32_0 = arith.constant 0 : i32
    %c0_i32_1 = arith.constant 0 : i32
    return %c0_i32, %c0_i32_0 : i32, i32
  }
  func.func @transform_3(%arg0: i32, %arg1: i32) -> (i32, i32, i32) {
    %c0_i32 = arith.constant 0 : i32
    %c0_i32_0 = arith.constant 0 : i32
    return %arg1, %c0_i32, %arg0 : i32, i32, i32
  }
}

module attributes {stable_mosaic.version = 11 : i64} {
  func.func @_conv_kernel(%arg0: i32, %arg1: i32, %arg2: memref<64x384xbf16, #tpu.memory_space<vmem>>, %arg3: memref<1x8x64xf32, #tpu.memory_space<vmem>>, %arg4: memref<8x1xf32, #tpu.memory_space<vmem>>, %arg5: memref<1x1x384xf32, #tpu.memory_space<vmem>>, %arg6: memref<1x8x384xbf16, #tpu.memory_space<vmem>>, %arg7: memref<1x8x1xf32, #tpu.memory_space<vmem>>, %arg8: memref<1x8x1xf32, #tpu.memory_space<vmem>>) attributes {dimension_semantics = [#tpu.dimension_semantics<parallel>, #tpu.dimension_semantics<arbitrary>], iteration_bounds = array<i64: 1, 4>, scalar_prefetch = 0 : i64, scratch_operands = 0 : i64, tpu.core_type = #tpu.core_type<tc>, window_params = [{transform_indices = @transform_0, window_bounds = array<i64: 64, 384>}, {transform_indices = @transform_1, window_bounds = array<i64: 1, 8, 64>}, {pipeline_mode = #tpu.pipeline_mode<synchronous>, transform_indices = @transform_2, window_bounds = array<i64: 8, 1>}, {transform_indices = @transform_3, window_bounds = array<i64: 1, 1, 384>}, {transform_indices = @transform_4, window_bounds = array<i64: 1, 8, 384>}, {transform_indices = @transform_5, window_bounds = array<i64: 1, 8, 1>}, {transform_indices = @transform_6, window_bounds = array<i64: 1, 8, 1>}]} {
    %c0 = arith.constant 0 : index
    %c0_0 = arith.constant 0 : index
    %0 = vector.load %arg2[%c0, %c0_0] : memref<64x384xbf16, #tpu.memory_space<vmem>>, vector<64x384xbf16>
    %1 = arith.extf %0 : vector<64x384xbf16> to vector<64x384xf32>
    %c0_1 = arith.constant 0 : index
    %c0_2 = arith.constant 0 : index
    %c0_3 = arith.constant 0 : index
    %2 = vector.load %arg3[%c0_1, %c0_2, %c0_3] : memref<1x8x64xf32, #tpu.memory_space<vmem>>, vector<1x8x64xf32>
    %3 = vector.shape_cast %2 : vector<1x8x64xf32> to vector<8x64xf32>
    %cst = arith.constant dense<0.000000e+00> : vector<8x384xf32>
    %4 = tpu.matmul %3, %1, %cst {dimension_numbers = #tpu.dot_dimension_numbers<[1], [0], [0], [1], [0, 0, 1, 1], [], []>} : vector<8x64xf32>, vector<64x384xf32>, vector<8x384xf32> -> vector<8x384xf32>
    %c0_4 = arith.constant 0 : index
    %c0_5 = arith.constant 0 : index
    %5 = vector.load %arg4[%c0_4, %c0_5] : memref<8x1xf32, #tpu.memory_space<vmem>>, vector<8x1xf32>
    %6 = vector.broadcast %5 : vector<8x1xf32> to vector<8x384xf32>
    %7 = arith.addf %4, %6 : vector<8x384xf32>
    %cst_6 = arith.constant 0.000000e+00 : f32
    %8 = vector.broadcast %cst_6 : f32 to vector<8x384xf32>
    %9 = arith.maximumf %7, %8 : vector<8x384xf32>
    %10 = arith.truncf %9 : vector<8x384xf32> to vector<8x384xbf16>
    %c0_7 = arith.constant 0 : index
    %c0_8 = arith.constant 0 : index
    %c0_9 = arith.constant 0 : index
    %11 = vector.load %arg6[%c0_7, %c0_8, %c0_9] : memref<1x8x384xbf16, #tpu.memory_space<vmem>>, vector<1x8x384xbf16>
    %12 = vector.shape_cast %11 : vector<1x8x384xbf16> to vector<8x384xbf16>
    %13 = vector.shape_cast %10 : vector<8x384xbf16> to vector<1x8x384xbf16>
    tpu.vector_store %arg6[%c0_7, %c0_8, %c0_9], %13 {strides = array<i32>} : memref<1x8x384xbf16, #tpu.memory_space<vmem>>, vector<1x8x384xbf16>,
    %c0_i32 = arith.constant 0 : i32
    %14 = arith.cmpi eq, %arg1, %c0_i32 : i32
    %15 = arith.extui %14 : i1 to i32
    %c0_i32_10 = arith.constant 0 : i32
    %16 = arith.cmpi ne, %15, %c0_i32_10 : i32
    scf.if %16 {
      %cst_28 = arith.constant 0.000000e+00 : f32
      %34 = vector.broadcast %cst_28 : f32 to vector<1x8x1xf32>
      %c0_29 = arith.constant 0 : index
      %c0_30 = arith.constant 0 : index
      %c0_31 = arith.constant 0 : index
      %35 = vector.load %arg7[%c0_29, %c0_30, %c0_31] : memref<1x8x1xf32, #tpu.memory_space<vmem>>, vector<1x8x1xf32>
      tpu.vector_store %arg7[%c0_29, %c0_30, %c0_31], %34 {strides = array<i32>} : memref<1x8x1xf32, #tpu.memory_space<vmem>>, vector<1x8x1xf32>,
      %cst_32 = arith.constant 0.000000e+00 : f32
      %36 = vector.broadcast %cst_32 : f32 to vector<1x8x1xf32>
      %c0_33 = arith.constant 0 : index
      %c0_34 = arith.constant 0 : index
      %c0_35 = arith.constant 0 : index
      %37 = vector.load %arg8[%c0_33, %c0_34, %c0_35] : memref<1x8x1xf32, #tpu.memory_space<vmem>>, vector<1x8x1xf32>
      tpu.vector_store %arg8[%c0_33, %c0_34, %c0_35], %36 {strides = array<i32>} : memref<1x8x1xf32, #tpu.memory_space<vmem>>, vector<1x8x1xf32>,
    } else {
    }
    %c0_11 = arith.constant 0 : index
    %c0_12 = arith.constant 0 : index
    %c0_13 = arith.constant 0 : index
    %17 = vector.load %arg5[%c0_11, %c0_12, %c0_13] : memref<1x1x384xf32, #tpu.memory_space<vmem>>, vector<1x1x384xf32>
    %18 = vector.shape_cast %17 : vector<1x1x384xf32> to vector<1x384xf32>
    %19 = vector.broadcast %18 : vector<1x384xf32> to vector<8x384xf32>
    %20 = arith.mulf %9, %19 : vector<8x384xf32>
    %c0_14 = arith.constant 0 : index
    %c0_15 = arith.constant 0 : index
    %c0_16 = arith.constant 0 : index
    %21 = vector.load %arg7[%c0_14, %c0_15, %c0_16] : memref<1x8x1xf32, #tpu.memory_space<vmem>>, vector<1x8x1xf32>
    %cst_17 = arith.constant dense<0.000000e+00> : vector<8xf32>
    %22 = vector.multi_reduction <add>, %20, %cst_17 [1] : vector<8x384xf32> to vector<8xf32>
    %23 = vector.shape_cast %22 : vector<8xf32> to vector<8x1xf32>
    %24 = vector.shape_cast %23 : vector<8x1xf32> to vector<1x8x1xf32>
    %25 = arith.addf %21, %24 : vector<1x8x1xf32>
    %c0_18 = arith.constant 0 : index
    %c0_19 = arith.constant 0 : index
    %c0_20 = arith.constant 0 : index
    %26 = vector.load %arg7[%c0_18, %c0_19, %c0_20] : memref<1x8x1xf32, #tpu.memory_space<vmem>>, vector<1x8x1xf32>
    tpu.vector_store %arg7[%c0_18, %c0_19, %c0_20], %25 {strides = array<i32>} : memref<1x8x1xf32, #tpu.memory_space<vmem>>, vector<1x8x1xf32>,
    %c0_21 = arith.constant 0 : index
    %c0_22 = arith.constant 0 : index
    %c0_23 = arith.constant 0 : index
    %27 = vector.load %arg8[%c0_21, %c0_22, %c0_23] : memref<1x8x1xf32, #tpu.memory_space<vmem>>, vector<1x8x1xf32>
    %28 = arith.mulf %20, %20 : vector<8x384xf32>
    %cst_24 = arith.constant dense<0.000000e+00> : vector<8xf32>
    %29 = vector.multi_reduction <add>, %28, %cst_24 [1] : vector<8x384xf32> to vector<8xf32>
    %30 = vector.shape_cast %29 : vector<8xf32> to vector<8x1xf32>
    %31 = vector.shape_cast %30 : vector<8x1xf32> to vector<1x8x1xf32>
    %32 = arith.addf %27, %31 : vector<1x8x1xf32>
    %c0_25 = arith.constant 0 : index
    %c0_26 = arith.constant 0 : index
    %c0_27 = arith.constant 0 : index
    %33 = vector.load %arg8[%c0_25, %c0_26, %c0_27] : memref<1x8x1xf32, #tpu.memory_space<vmem>>, vector<1x8x1xf32>
    tpu.vector_store %arg8[%c0_25, %c0_26, %c0_27], %32 {strides = array<i32>} : memref<1x8x1xf32, #tpu.memory_space<vmem>>, vector<1x8x1xf32>,
    return
  }
  func.func @transform_0(%arg0: i32, %arg1: i32) -> (i32, i32) {
    %c0_i32 = arith.constant 0 : i32
    %c0_i32_0 = arith.constant 0 : i32
    return %c0_i32, %arg0 : i32, i32
  }
  func.func @transform_1(%arg0: i32, %arg1: i32) -> (i32, i32, i32) {
    %c0_i32 = arith.constant 0 : i32
    %c0_i32_0 = arith.constant 0 : i32
    %c0_i32_1 = arith.constant 0 : i32
    return %arg1, %c0_i32, %c0_i32_0 : i32, i32, i32
  }
  func.func @transform_2(%arg0: i32, %arg1: i32) -> (i32, i32) {
    %c0_i32 = arith.constant 0 : i32
    %c0_i32_0 = arith.constant 0 : i32
    %c0_i32_1 = arith.constant 0 : i32
    return %c0_i32, %c0_i32_0 : i32, i32
  }
  func.func @transform_3(%arg0: i32, %arg1: i32) -> (i32, i32, i32) {
    %c0_i32 = arith.constant 0 : i32
    %c0_i32_0 = arith.constant 0 : i32
    return %arg1, %c0_i32, %arg0 : i32, i32, i32
  }
  func.func @transform_4(%arg0: i32, %arg1: i32) -> (i32, i32, i32) {
    %c0_i32 = arith.constant 0 : i32
    %c0_i32_0 = arith.constant 0 : i32
    return %arg1, %c0_i32, %arg0 : i32, i32, i32
  }
  func.func @transform_5(%arg0: i32, %arg1: i32) -> (i32, i32, i32) {
    %c0_i32 = arith.constant 0 : i32
    %c0_i32_0 = arith.constant 0 : i32
    %c0_i32_1 = arith.constant 0 : i32
    return %arg0, %c0_i32, %c0_i32_0 : i32, i32, i32
  }
  func.func @transform_6(%arg0: i32, %arg1: i32) -> (i32, i32, i32) {
    %c0_i32 = arith.constant 0 : i32
    %c0_i32_0 = arith.constant 0 : i32
    %c0_i32_1 = arith.constant 0 : i32
    return %arg0, %c0_i32, %c0_i32_0 : i32, i32, i32
  }
}

module attributes {stable_mosaic.version = 11 : i64} {
  func.func @_conv_kernel(%arg0: i32, %arg1: i32, %arg2: memref<36x640xbf16, #tpu.memory_space<vmem>>, %arg3: memref<1x4x36xf32, #tpu.memory_space<vmem>>, %arg4: memref<4x1xf32, #tpu.memory_space<vmem>>, %arg5: memref<1x4x640xbf16, #tpu.memory_space<vmem>>) attributes {dimension_semantics = [#tpu.dimension_semantics<parallel>, #tpu.dimension_semantics<arbitrary>], iteration_bounds = array<i64: 2, 4>, scalar_prefetch = 0 : i64, scratch_operands = 0 : i64, tpu.core_type = #tpu.core_type<tc>, window_params = [{transform_indices = @transform_0, window_bounds = array<i64: 36, 640>}, {transform_indices = @transform_1, window_bounds = array<i64: 1, 4, 36>}, {pipeline_mode = #tpu.pipeline_mode<synchronous>, transform_indices = @transform_2, window_bounds = array<i64: 4, 1>}, {transform_indices = @transform_3, window_bounds = array<i64: 1, 4, 640>}]} {
    %c0 = arith.constant 0 : index
    %c0_0 = arith.constant 0 : index
    %0 = vector.load %arg2[%c0, %c0_0] : memref<36x640xbf16, #tpu.memory_space<vmem>>, vector<36x640xbf16>
    %1 = arith.extf %0 : vector<36x640xbf16> to vector<36x640xf32>
    %c0_1 = arith.constant 0 : index
    %c0_2 = arith.constant 0 : index
    %c0_3 = arith.constant 0 : index
    %2 = vector.load %arg3[%c0_1, %c0_2, %c0_3] : memref<1x4x36xf32, #tpu.memory_space<vmem>>, vector<1x4x36xf32>
    %3 = vector.shape_cast %2 : vector<1x4x36xf32> to vector<4x36xf32>
    %cst = arith.constant dense<0.000000e+00> : vector<4x640xf32>
    %4 = tpu.matmul %3, %1, %cst {dimension_numbers = #tpu.dot_dimension_numbers<[1], [0], [0], [1], [0, 0, 1, 1], [], []>} : vector<4x36xf32>, vector<36x640xf32>, vector<4x640xf32> -> vector<4x640xf32>
    %c0_4 = arith.constant 0 : index
    %c0_5 = arith.constant 0 : index
    %5 = vector.load %arg4[%c0_4, %c0_5] : memref<4x1xf32, #tpu.memory_space<vmem>>, vector<4x1xf32>
    %6 = vector.broadcast %5 : vector<4x1xf32> to vector<4x640xf32>
    %7 = arith.addf %4, %6 : vector<4x640xf32>
    %cst_6 = arith.constant 0.000000e+00 : f32
    %8 = vector.broadcast %cst_6 : f32 to vector<4x640xf32>
    %9 = arith.maximumf %7, %8 : vector<4x640xf32>
    %10 = arith.truncf %9 : vector<4x640xf32> to vector<4x640xbf16>
    %c0_7 = arith.constant 0 : index
    %c0_8 = arith.constant 0 : index
    %c0_9 = arith.constant 0 : index
    %11 = vector.load %arg5[%c0_7, %c0_8, %c0_9] : memref<1x4x640xbf16, #tpu.memory_space<vmem>>, vector<1x4x640xbf16>
    %12 = vector.shape_cast %11 : vector<1x4x640xbf16> to vector<4x640xbf16>
    %13 = vector.shape_cast %10 : vector<4x640xbf16> to vector<1x4x640xbf16>
    tpu.vector_store %arg5[%c0_7, %c0_8, %c0_9], %13 {strides = array<i32>} : memref<1x4x640xbf16, #tpu.memory_space<vmem>>, vector<1x4x640xbf16>,
    return
  }
  func.func @transform_0(%arg0: i32, %arg1: i32) -> (i32, i32) {
    %c0_i32 = arith.constant 0 : i32
    %c0_i32_0 = arith.constant 0 : i32
    return %c0_i32, %arg0 : i32, i32
  }
  func.func @transform_1(%arg0: i32, %arg1: i32) -> (i32, i32, i32) {
    %c0_i32 = arith.constant 0 : i32
    %c0_i32_0 = arith.constant 0 : i32
    %c0_i32_1 = arith.constant 0 : i32
    return %arg1, %c0_i32, %c0_i32_0 : i32, i32, i32
  }
  func.func @transform_2(%arg0: i32, %arg1: i32) -> (i32, i32) {
    %c0_i32 = arith.constant 0 : i32
    %c0_i32_0 = arith.constant 0 : i32
    %c0_i32_1 = arith.constant 0 : i32
    return %c0_i32, %c0_i32_0 : i32, i32
  }
  func.func @transform_3(%arg0: i32, %arg1: i32) -> (i32, i32, i32) {
    %c0_i32 = arith.constant 0 : i32
    %c0_i32_0 = arith.constant 0 : i32
    return %arg1, %c0_i32, %arg0 : i32, i32, i32
  }
}

module attributes {stable_mosaic.version = 11 : i64} {
  func.func @_conv_kernel(%arg0: i32, %arg1: i32, %arg2: memref<16x1024xbf16, #tpu.memory_space<vmem>>, %arg3: memref<1x2x16xf32, #tpu.memory_space<vmem>>, %arg4: memref<2x1xf32, #tpu.memory_space<vmem>>, %arg5: memref<1x1x1024xf32, #tpu.memory_space<vmem>>, %arg6: memref<1x2x1024xbf16, #tpu.memory_space<vmem>>, %arg7: memref<1x2x1xf32, #tpu.memory_space<vmem>>, %arg8: memref<1x2x1xf32, #tpu.memory_space<vmem>>) attributes {dimension_semantics = [#tpu.dimension_semantics<parallel>, #tpu.dimension_semantics<arbitrary>], iteration_bounds = array<i64: 5, 4>, scalar_prefetch = 0 : i64, scratch_operands = 0 : i64, tpu.core_type = #tpu.core_type<tc>, window_params = [{transform_indices = @transform_0, window_bounds = array<i64: 16, 1024>}, {transform_indices = @transform_1, window_bounds = array<i64: 1, 2, 16>}, {pipeline_mode = #tpu.pipeline_mode<synchronous>, transform_indices = @transform_2, window_bounds = array<i64: 2, 1>}, {transform_indices = @transform_3, window_bounds = array<i64: 1, 1, 1024>}, {transform_indices = @transform_4, window_bounds = array<i64: 1, 2, 1024>}, {transform_indices = @transform_5, window_bounds = array<i64: 1, 2, 1>}, {transform_indices = @transform_6, window_bounds = array<i64: 1, 2, 1>}]} {
    %c0 = arith.constant 0 : index
    %c0_0 = arith.constant 0 : index
    %0 = vector.load %arg2[%c0, %c0_0] : memref<16x1024xbf16, #tpu.memory_space<vmem>>, vector<16x1024xbf16>
    %1 = arith.extf %0 : vector<16x1024xbf16> to vector<16x1024xf32>
    %c0_1 = arith.constant 0 : index
    %c0_2 = arith.constant 0 : index
    %c0_3 = arith.constant 0 : index
    %2 = vector.load %arg3[%c0_1, %c0_2, %c0_3] : memref<1x2x16xf32, #tpu.memory_space<vmem>>, vector<1x2x16xf32>
    %3 = vector.shape_cast %2 : vector<1x2x16xf32> to vector<2x16xf32>
    %cst = arith.constant dense<0.000000e+00> : vector<2x1024xf32>
    %4 = tpu.matmul %3, %1, %cst {dimension_numbers = #tpu.dot_dimension_numbers<[1], [0], [0], [1], [0, 0, 1, 1], [], []>} : vector<2x16xf32>, vector<16x1024xf32>, vector<2x1024xf32> -> vector<2x1024xf32>
    %c0_4 = arith.constant 0 : index
    %c0_5 = arith.constant 0 : index
    %5 = vector.load %arg4[%c0_4, %c0_5] : memref<2x1xf32, #tpu.memory_space<vmem>>, vector<2x1xf32>
    %6 = vector.broadcast %5 : vector<2x1xf32> to vector<2x1024xf32>
    %7 = arith.addf %4, %6 : vector<2x1024xf32>
    %cst_6 = arith.constant 0.000000e+00 : f32
    %8 = vector.broadcast %cst_6 : f32 to vector<2x1024xf32>
    %9 = arith.maximumf %7, %8 : vector<2x1024xf32>
    %10 = arith.truncf %9 : vector<2x1024xf32> to vector<2x1024xbf16>
    %c0_7 = arith.constant 0 : index
    %c0_8 = arith.constant 0 : index
    %c0_9 = arith.constant 0 : index
    %11 = vector.load %arg6[%c0_7, %c0_8, %c0_9] : memref<1x2x1024xbf16, #tpu.memory_space<vmem>>, vector<1x2x1024xbf16>
    %12 = vector.shape_cast %11 : vector<1x2x1024xbf16> to vector<2x1024xbf16>
    %13 = vector.shape_cast %10 : vector<2x1024xbf16> to vector<1x2x1024xbf16>
    tpu.vector_store %arg6[%c0_7, %c0_8, %c0_9], %13 {strides = array<i32>} : memref<1x2x1024xbf16, #tpu.memory_space<vmem>>, vector<1x2x1024xbf16>,
    %c0_i32 = arith.constant 0 : i32
    %14 = arith.cmpi eq, %arg1, %c0_i32 : i32
    %15 = arith.extui %14 : i1 to i32
    %c0_i32_10 = arith.constant 0 : i32
    %16 = arith.cmpi ne, %15, %c0_i32_10 : i32
    scf.if %16 {
      %cst_28 = arith.constant 0.000000e+00 : f32
      %34 = vector.broadcast %cst_28 : f32 to vector<1x2x1xf32>
      %c0_29 = arith.constant 0 : index
      %c0_30 = arith.constant 0 : index
      %c0_31 = arith.constant 0 : index
      %35 = vector.load %arg7[%c0_29, %c0_30, %c0_31] : memref<1x2x1xf32, #tpu.memory_space<vmem>>, vector<1x2x1xf32>
      tpu.vector_store %arg7[%c0_29, %c0_30, %c0_31], %34 {strides = array<i32>} : memref<1x2x1xf32, #tpu.memory_space<vmem>>, vector<1x2x1xf32>,
      %cst_32 = arith.constant 0.000000e+00 : f32
      %36 = vector.broadcast %cst_32 : f32 to vector<1x2x1xf32>
      %c0_33 = arith.constant 0 : index
      %c0_34 = arith.constant 0 : index
      %c0_35 = arith.constant 0 : index
      %37 = vector.load %arg8[%c0_33, %c0_34, %c0_35] : memref<1x2x1xf32, #tpu.memory_space<vmem>>, vector<1x2x1xf32>
      tpu.vector_store %arg8[%c0_33, %c0_34, %c0_35], %36 {strides = array<i32>} : memref<1x2x1xf32, #tpu.memory_space<vmem>>, vector<1x2x1xf32>,
    } else {
    }
    %c0_11 = arith.constant 0 : index
    %c0_12 = arith.constant 0 : index
    %c0_13 = arith.constant 0 : index
    %17 = vector.load %arg5[%c0_11, %c0_12, %c0_13] : memref<1x1x1024xf32, #tpu.memory_space<vmem>>, vector<1x1x1024xf32>
    %18 = vector.shape_cast %17 : vector<1x1x1024xf32> to vector<1x1024xf32>
    %19 = vector.broadcast %18 : vector<1x1024xf32> to vector<2x1024xf32>
    %20 = arith.mulf %9, %19 : vector<2x1024xf32>
    %c0_14 = arith.constant 0 : index
    %c0_15 = arith.constant 0 : index
    %c0_16 = arith.constant 0 : index
    %21 = vector.load %arg7[%c0_14, %c0_15, %c0_16] : memref<1x2x1xf32, #tpu.memory_space<vmem>>, vector<1x2x1xf32>
    %cst_17 = arith.constant dense<0.000000e+00> : vector<2xf32>
    %22 = vector.multi_reduction <add>, %20, %cst_17 [1] : vector<2x1024xf32> to vector<2xf32>
    %23 = vector.shape_cast %22 : vector<2xf32> to vector<2x1xf32>
    %24 = vector.shape_cast %23 : vector<2x1xf32> to vector<1x2x1xf32>
    %25 = arith.addf %21, %24 : vector<1x2x1xf32>
    %c0_18 = arith.constant 0 : index
    %c0_19 = arith.constant 0 : index
    %c0_20 = arith.constant 0 : index
    %26 = vector.load %arg7[%c0_18, %c0_19, %c0_20] : memref<1x2x1xf32, #tpu.memory_space<vmem>>, vector<1x2x1xf32>
    tpu.vector_store %arg7[%c0_18, %c0_19, %c0_20], %25 {strides = array<i32>} : memref<1x2x1xf32, #tpu.memory_space<vmem>>, vector<1x2x1xf32>,
    %c0_21 = arith.constant 0 : index
    %c0_22 = arith.constant 0 : index
    %c0_23 = arith.constant 0 : index
    %27 = vector.load %arg8[%c0_21, %c0_22, %c0_23] : memref<1x2x1xf32, #tpu.memory_space<vmem>>, vector<1x2x1xf32>
    %28 = arith.mulf %20, %20 : vector<2x1024xf32>
    %cst_24 = arith.constant dense<0.000000e+00> : vector<2xf32>
    %29 = vector.multi_reduction <add>, %28, %cst_24 [1] : vector<2x1024xf32> to vector<2xf32>
    %30 = vector.shape_cast %29 : vector<2xf32> to vector<2x1xf32>
    %31 = vector.shape_cast %30 : vector<2x1xf32> to vector<1x2x1xf32>
    %32 = arith.addf %27, %31 : vector<1x2x1xf32>
    %c0_25 = arith.constant 0 : index
    %c0_26 = arith.constant 0 : index
    %c0_27 = arith.constant 0 : index
    %33 = vector.load %arg8[%c0_25, %c0_26, %c0_27] : memref<1x2x1xf32, #tpu.memory_space<vmem>>, vector<1x2x1xf32>
    tpu.vector_store %arg8[%c0_25, %c0_26, %c0_27], %32 {strides = array<i32>} : memref<1x2x1xf32, #tpu.memory_space<vmem>>, vector<1x2x1xf32>,
    return
  }
  func.func @transform_0(%arg0: i32, %arg1: i32) -> (i32, i32) {
    %c0_i32 = arith.constant 0 : i32
    %c0_i32_0 = arith.constant 0 : i32
    return %c0_i32, %arg0 : i32, i32
  }
  func.func @transform_1(%arg0: i32, %arg1: i32) -> (i32, i32, i32) {
    %c0_i32 = arith.constant 0 : i32
    %c0_i32_0 = arith.constant 0 : i32
    %c0_i32_1 = arith.constant 0 : i32
    return %arg1, %c0_i32, %c0_i32_0 : i32, i32, i32
  }
  func.func @transform_2(%arg0: i32, %arg1: i32) -> (i32, i32) {
    %c0_i32 = arith.constant 0 : i32
    %c0_i32_0 = arith.constant 0 : i32
    %c0_i32_1 = arith.constant 0 : i32
    return %c0_i32, %c0_i32_0 : i32, i32
  }
  func.func @transform_3(%arg0: i32, %arg1: i32) -> (i32, i32, i32) {
    %c0_i32 = arith.constant 0 : i32
    %c0_i32_0 = arith.constant 0 : i32
    return %arg1, %c0_i32, %arg0 : i32, i32, i32
  }
  func.func @transform_4(%arg0: i32, %arg1: i32) -> (i32, i32, i32) {
    %c0_i32 = arith.constant 0 : i32
    %c0_i32_0 = arith.constant 0 : i32
    return %arg1, %c0_i32, %arg0 : i32, i32, i32
  }
  func.func @transform_5(%arg0: i32, %arg1: i32) -> (i32, i32, i32) {
    %c0_i32 = arith.constant 0 : i32
    %c0_i32_0 = arith.constant 0 : i32
    %c0_i32_1 = arith.constant 0 : i32
    return %arg0, %c0_i32, %c0_i32_0 : i32, i32, i32
  }
  func.func @transform_6(%arg0: i32, %arg1: i32) -> (i32, i32, i32) {
    %c0_i32 = arith.constant 0 : i32
    %c0_i32_0 = arith.constant 0 : i32
    %c0_i32_1 = arith.constant 0 : i32
    return %arg0, %c0_i32, %c0_i32_0 : i32, i32, i32
  }
}

module attributes {stable_mosaic.version = 11 : i64} {
  func.func @_conv_kernel(%arg0: i32, %arg1: i32, %arg2: memref<27x1024xbf16, #tpu.memory_space<vmem>>, %arg3: memref<1x3x27xf32, #tpu.memory_space<vmem>>, %arg4: memref<3x1xf32, #tpu.memory_space<vmem>>, %arg5: memref<1x3x1024xf32, #tpu.memory_space<vmem>>) attributes {dimension_semantics = [#tpu.dimension_semantics<parallel>, #tpu.dimension_semantics<arbitrary>], iteration_bounds = array<i64: 18, 1>, scalar_prefetch = 0 : i64, scratch_operands = 0 : i64, tpu.core_type = #tpu.core_type<tc>, window_params = [{transform_indices = @transform_0, window_bounds = array<i64: 27, 1024>}, {transform_indices = @transform_1, window_bounds = array<i64: 1, 3, 27>}, {pipeline_mode = #tpu.pipeline_mode<synchronous>, transform_indices = @transform_2, window_bounds = array<i64: 3, 1>}, {transform_indices = @transform_3, window_bounds = array<i64: 1, 3, 1024>}]} {
    %c0 = arith.constant 0 : index
    %c0_0 = arith.constant 0 : index
    %0 = vector.load %arg2[%c0, %c0_0] : memref<27x1024xbf16, #tpu.memory_space<vmem>>, vector<27x1024xbf16>
    %1 = arith.extf %0 : vector<27x1024xbf16> to vector<27x1024xf32>
    %c0_1 = arith.constant 0 : index
    %c0_2 = arith.constant 0 : index
    %c0_3 = arith.constant 0 : index
    %2 = vector.load %arg3[%c0_1, %c0_2, %c0_3] : memref<1x3x27xf32, #tpu.memory_space<vmem>>, vector<1x3x27xf32>
    %3 = vector.shape_cast %2 : vector<1x3x27xf32> to vector<3x27xf32>
    %cst = arith.constant dense<0.000000e+00> : vector<3x1024xf32>
    %4 = tpu.matmul %3, %1, %cst {dimension_numbers = #tpu.dot_dimension_numbers<[1], [0], [0], [1], [0, 0, 1, 1], [], []>} : vector<3x27xf32>, vector<27x1024xf32>, vector<3x1024xf32> -> vector<3x1024xf32>
    %c0_4 = arith.constant 0 : index
    %c0_5 = arith.constant 0 : index
    %5 = vector.load %arg4[%c0_4, %c0_5] : memref<3x1xf32, #tpu.memory_space<vmem>>, vector<3x1xf32>
    %6 = vector.broadcast %5 : vector<3x1xf32> to vector<3x1024xf32>
    %7 = arith.addf %4, %6 : vector<3x1024xf32>
    %cst_6 = arith.constant 0.000000e+00 : f32
    %8 = vector.broadcast %cst_6 : f32 to vector<3x1024xf32>
    %9 = arith.maximumf %7, %8 : vector<3x1024xf32>
    %c0_7 = arith.constant 0 : index
    %c0_8 = arith.constant 0 : index
    %c0_9 = arith.constant 0 : index
    %10 = vector.load %arg5[%c0_7, %c0_8, %c0_9] : memref<1x3x1024xf32, #tpu.memory_space<vmem>>, vector<1x3x1024xf32>
    %11 = vector.shape_cast %10 : vector<1x3x1024xf32> to vector<3x1024xf32>
    %12 = vector.shape_cast %9 : vector<3x1024xf32> to vector<1x3x1024xf32>
    tpu.vector_store %arg5[%c0_7, %c0_8, %c0_9], %12 {strides = array<i32>} : memref<1x3x1024xf32, #tpu.memory_space<vmem>>, vector<1x3x1024xf32>,
    return
  }
  func.func @transform_0(%arg0: i32, %arg1: i32) -> (i32, i32) {
    %c0_i32 = arith.constant 0 : i32
    %c0_i32_0 = arith.constant 0 : i32
    return %c0_i32, %arg0 : i32, i32
  }
  func.func @transform_1(%arg0: i32, %arg1: i32) -> (i32, i32, i32) {
    %c0_i32 = arith.constant 0 : i32
    %c0_i32_0 = arith.constant 0 : i32
    %c0_i32_1 = arith.constant 0 : i32
    return %arg1, %c0_i32, %c0_i32_0 : i32, i32, i32
  }
  func.func @transform_2(%arg0: i32, %arg1: i32) -> (i32, i32) {
    %c0_i32 = arith.constant 0 : i32
    %c0_i32_0 = arith.constant 0 : i32
    %c0_i32_1 = arith.constant 0 : i32
    return %c0_i32, %c0_i32_0 : i32, i32
  }
  func.func @transform_3(%arg0: i32, %arg1: i32) -> (i32, i32, i32) {
    %c0_i32 = arith.constant 0 : i32
    %c0_i32_0 = arith.constant 0 : i32
    return %arg1, %c0_i32, %arg0 : i32, i32, i32
  }
}

</mosaic_0001>

<bundles_post_ra>
// kernel: tile.50
= control target key start
LH: loop header
LB: loop body
LE: loop exit
PB: predicated region body
PF: predicated region fallthrough
CT: control target
= control target key end

     0   :  { %s28_s0 = inlined_call_operand.vmem [shape: f32[3,3], index: 0, kind: input, shape index: {}]   ;;  %s29_s1 = inlined_call_operand.vmem [shape: f32[2,1,1,3,1,3], index: 1, kind: output, shape index: {}]  }
   0x1   :  { %v4_v0 = vld [vmem:[%s28_s0] sm:$0x7] }
   0x2   :  { %5 = vst [vmem:[%s29_s1] sm:$0xf] %v4_v0 }
   0x3   :  { %8 = vst [vmem:[%s29_s1 + $0x4] sm:$0xf] %v4_v0 }

// kernel: tile.60
= control target key start
LH: loop header
LB: loop body
LE: loop exit
PB: predicated region body
PF: predicated region fallthrough
CT: control target
= control target key end

     0   :  { %vm11_vm0 = vcmask 23552   ;;  %s56_s10 = smov 9   ;;  %s57_s11 = smov 3   ;;  %vm17_vm1 = vcmask 146552   ;;  %vm23_vm2 = vcmask 121952   ;;  %vm29_vm3 = vcmask 97352   ;;  %s79_s0 = inlined_call_operand.vmem [shape: f32[2,1,1,3,1,3], index: 0, kind: input, shape index: {}]   ;;  %s80_s1 = inlined_call_operand.vmem [shape: f32[1,1,18], index: 1, kind: output, shape index: {}]  }
   0x1   :  { %v49_v0 = vld [vmem:[%s79_s0 + $0x4] sm:$0xf]  ;;  %v8_v1 = vld [vmem:[%s79_s0] sm:$0xf]  ;;  %s55_s0 = smov 15   ;;  %s58_s12 = smov 12  }
   0x2   :  { %7 = vst [vmem:[#allocation1 + $0x8] sm:$0xf] %v49_v0  ;;  %s59_s13 = smov 6   ;;  %vm35_vm4 = vcmask 72752   ;;  %vm41_vm5 = vcmask 48152  }
   0x3   :  { %9 = vst [vmem:[#allocation1] sm:$0xf] %v8_v1 }
   0x9   :  { %v14_v2 = vld [vmem:[#allocation1 + $0xa] sm:$0x1]   ;;  %v26_v3 = vld [vmem:[#allocation1 + $0x8] sm:$0x1]   ;;  %v20_v6 = vld [vmem:[#allocation1 + $0x9] sm:$0x1]  }
   0xa   :  { %15 = vrot.lane.b32.xlu0 %v14_v2, %s55_s0  ;;  %27 = vrot.lane.b32.xlu1 %v26_v3, %s56_s10  ;;  %v38_v4 = vld [vmem:[#allocation1 + $0x1] sm:$0x1]   ;;  %v10_v5 = vld [vmem:[#allocation1] sm:$0x1]   ;;  %v32_v7 = vld [vmem:[#allocation1 + $0x2] sm:$0x1]  }
   0xb   :  { %39 = vrot.lane.b32.xlu2 %v38_v4, %s57_s11  ;;  %12 = vst.msk [vmem:[#allocation0] sm:$0x1] %vm11_vm0, %v10_v5  }
  0x12   :  { %21 = vrot.lane.b32.xlu0 %v20_v6, %s58_s12  ;;  %33 = vrot.lane.b32.xlu1 %v32_v7, %s59_s13 }
  0x65   :  { %v40_v8 = vpop.permute.xlu2 %39  }
  0x7c   :  { %v16_v9 = vpop.permute.xlu0 %15   ;;  %v28_v10 = vpop.permute.xlu1 %27  }
  0x7d   :  { %18 = vst.msk [vmem:[#allocation0] sm:$0x1] %vm17_vm1, %v16_v9  }
  0x84   :  { %v22_v11 = vpop.permute.xlu0 %21   ;;  %v34_v12 = vpop.permute.xlu1 %33  }
  0x85   :  { %24 = vst.msk [vmem:[#allocation0] sm:$0x1] %vm23_vm2, %v22_v11  }
  0x86   :  { %30 = vst.msk [vmem:[#allocation0] sm:$0x1] %vm29_vm3, %v28_v10  }
  0x87   :  { %36 = vst.msk [vmem:[#allocation0] sm:$0x1] %vm35_vm4, %v34_v12  }
  0x88   :  { %42 = vst.msk [vmem:[#allocation0] sm:$0x1] %vm41_vm5, %v40_v8  }
  0x8f   :  { %v45_v13 = vld [vmem:[#allocation0] sm:$0x1] }
  0x90   :  { %48 = vst [vmem:[%s80_s1] sm:$0x1] %v45_v13 }

// kernel: feature_decoder_forward.6
= control target key start
LH: loop header
LB: loop body
LE: loop exit
PB: predicated region body
PF: predicated region fallthrough
CT: control target
= control target key end

     0   :  { %s965_s21 = smov 0   ;;  %s967_s22 = smov 0   ;;  %s1166_s0 = inlined_call_operand.vmem [shape: bf16[256,128], index: 0, kind: input, shape index: {}]   ;;  %s1167_s1 = inlined_call_operand.vmem [shape: f32[4,32,256], index: 1, kind: input, shape index: {}]   ;;  %s1168_s2 = inlined_call_operand.vmem [shape: f32[32,1], index: 2, kind: input, shape index: {}]   ;;  %s1169_s3 = inlined_call_operand.vmem [shape: f32[4,1,128], index: 3, kind: input, shape index: {}]   ;;  %s1170_s4 = inlined_call_operand.vmem [shape: bf16[4,32,128], index: 4, kind: output, shape index: {0}]   ;;  %s1171_s5 = inlined_call_operand.vmem [shape: f32[1,32,1], index: 5, kind: output, shape index: {1}]   ;;  %s1172_s6 = inlined_call_operand.vmem [shape: f32[1,32,1], index: 6, kind: output, shape index: {2}]  }
   0x1   :  { %s969_s23 = smov 0  }
   0x2 LB: > { %s26_s24 = sadd.s32 1, %s922_s22  ;;  %p741_p0 = scmp.ge.s32.totalorder %s926_s23, 1  ;;  %s926_s23 = sphi %s969_s23, %s17_s23   ;;  %s922_s22 = sphi %s967_s22, %s1174_s22   ;;  %s918_s21 = sphi %s965_s21, %s1173_s21  }
   0x3   : > { %p27_p1 = scmp.ge.s32.totalorder %s26_s24, 4  ;;  %p253_p2 = scmp.lt.s32.totalorder %s926_s23, 5 }
   0x5   : > { %s1176_s24 = smov (%p27_p1, %s26_s24), 0  ;;  %p254_p3 = pnand %p741_p0, %p253_p2 }
   0x6   : > { %p310_p4 = scmp.lt.s32.totalorder (!%p254_p3), %s918_s21, 3  ;;  %p746_p5 = scmp.ne.s32.totalorder (!%p254_p3), %s918_s21, 0 }
   0x7   : > { %257 = sbr.rel (%p254_p3) target bundleno = 343 (0x157), region = 36 }
   0xc   : > { %v833_v0 = vld [vmem:[%s1166_s0 + $0x38] sm:$0xff]   ;;  %v832_v2 = vld [vmem:[%s1166_s0 + $0x30] sm:$0xff]   ;;  %s999_s9 = scalar_select %p310_p4, %s918_s21, 3  ;;  %v831_v10 = vld [vmem:[%s1166_s0 + $0x28] sm:$0xff]   ;;  %v928_v54 = vmov 0  }
   0xd   : > { %v841_v1 = vld [vmem:[%s1166_s0 + $0x78] sm:$0xff]   ;;  %v784_v3 = vunpack.c.h.bf16 %v833_v0  ;;  %v783_v4 = vunpack.c.l.bf16 %v833_v0  ;;  %v840_v6 = vld [vmem:[%s1166_s0 + $0x70] sm:$0xff]   ;;  %v780_v8 = vunpack.c.h.bf16 %v832_v2  ;;  %v779_v11 = vunpack.c.l.bf16 %v832_v2  ;;  %v839_v12 = vld [vmem:[%s1166_s0 + $0x68] sm:$0xff]   ;;  %902 = vset.pattern.permute.xlu1 %v928_v54  ;;  %901 = vset.pattern.permute.xlu0 %v928_v54 }
   0xe   : > { %v816_v5 = vunpack.c.h.bf16 %v841_v1  ;;  %v815_v7 = vunpack.c.l.bf16 %v841_v1  ;;  %v812_v9 = vunpack.c.h.bf16 %v840_v6  ;;  %s320_s14 = scalar_lea.vmem %s1169_s3, %s999_s9  ;;  %v811_v13 = vunpack.c.l.bf16 %v840_v6  ;;  %v830_v16 = vld [vmem:[%s1166_s0 + $0x20] sm:$0xff]   ;;  %v829_v22 = vld [vmem:[%s1166_s0 + $0x18] sm:$0xff]   ;;  %v828_v28 = vld [vmem:[%s1166_s0 + $0x10] sm:$0xff]   ;;  %s751_s19 = sshll.u32 %s999_s9, 6 }
   0xf   : > { %435 = vmatpush.msra.mxu0 %v784_v3  ;;  %843 = vmatpush.msra.mxu2 %v784_v3  ;;  %v776_v14 = vunpack.c.h.bf16 %v831_v10  ;;  %v808_v15 = vunpack.c.h.bf16 %v839_v12  ;;  %v775_v17 = vunpack.c.l.bf16 %v831_v10  ;;  %v838_v18 = vld [vmem:[%s1166_s0 + $0x60] sm:$0xff]   ;;  %v807_v19 = vunpack.c.l.bf16 %v839_v12  ;;  %v837_v24 = vld [vmem:[%s1166_s0 + $0x58] sm:$0xff]   ;;  %v836_v30 = vld [vmem:[%s1166_s0 + $0x50] sm:$0xff]   ;;  %s1045_s26 = scalar_lea.vmem %s1167_s1, %s751_s19  ;;  %s752_s12 = sshll.u32 %s999_s9, 4 }
  0x10   : > { %464 = vmatpush.msra.mxu1 %v816_v5  ;;  %859 = vmatpush.msra.mxu3 %v816_v5  ;;  %v772_v20 = vunpack.c.h.bf16 %v830_v16  ;;  %v804_v21 = vunpack.c.h.bf16 %v838_v18  ;;  %v771_v23 = vunpack.c.l.bf16 %v830_v16  ;;  %v803_v25 = vunpack.c.l.bf16 %v838_v18  ;;  %v827_v34 = vld [vmem:[%s1166_s0 + $0x8] sm:$0xff]   ;;  %v754_v40 = vld [vmem:[%s1166_s0] sm:$0xff]   ;;  %v413_v52 = vld [vmem:[%s1168_s2 + $0x10] sm:$0xff]  ;;  %s328_s16 = scalar_lea.vmem %s1170_s4, %s752_s12 }
  0x11   : > { %436 = vmatpush.msra.mxu0 %v783_v4  ;;  %844 = vmatpush.msra.mxu2 %v783_v4  ;;  %v768_v26 = vunpack.c.h.bf16 %v829_v22  ;;  %v800_v27 = vunpack.c.h.bf16 %v837_v24  ;;  %v767_v29 = vunpack.c.l.bf16 %v829_v22  ;;  %v799_v31 = vunpack.c.l.bf16 %v837_v24  ;;  %v835_v36 = vld [vmem:[%s1166_s0 + $0x48] sm:$0xff]   ;;  %v834_v42 = vld [vmem:[%s1166_s0 + $0x40] sm:$0xff]   ;;  %v405_v55 = vld [vmem:[%s1045_s26 + $0x10] sm:$0xff] }
  0x12   : > { %465 = vmatpush.msra.mxu1 %v815_v7  ;;  %860 = vmatpush.msra.mxu3 %v815_v7  ;;  %v764_v32 = vunpack.c.h.bf16 %v828_v28  ;;  %v796_v33 = vunpack.c.h.bf16 %v836_v30  ;;  %v763_v35 = vunpack.c.l.bf16 %v828_v28  ;;  %v795_v37 = vunpack.c.l.bf16 %v836_v30  ;;  %v403_v47 = vld [vmem:[%s1045_s26] sm:$0xff]  ;;  %v404_v50 = vld [vmem:[%s1045_s26 + $0x8] sm:$0xff]  ;;  %v409_v56 = vld [vmem:[%s1045_s26 + $0x30] sm:$0xff] }
  0x13   : > { %437 = vmatpush.msra.mxu0 %v780_v8  ;;  %845 = vmatpush.msra.mxu2 %v780_v8  ;;  %v760_v38 = vunpack.c.h.bf16 %v827_v34  ;;  %v792_v39 = vunpack.c.h.bf16 %v835_v36  ;;  %v759_v41 = vunpack.c.l.bf16 %v827_v34  ;;  %v791_v43 = vunpack.c.l.bf16 %v835_v36  ;;  %v407_v48 = vld [vmem:[%s1045_s26 + $0x20] sm:$0xff]  ;;  %v408_v51 = vld [vmem:[%s1045_s26 + $0x28] sm:$0xff]  ;;  %v406_v57 = vld [vmem:[%s1045_s26 + $0x18] sm:$0xff] }
  0x14   : > { %466 = vmatpush.msra.mxu1 %v812_v9  ;;  %861 = vmatpush.msra.mxu3 %v812_v9  ;;  %v756_v44 = vunpack.c.h.bf16 %v754_v40  ;;  %v788_v45 = vunpack.c.h.bf16 %v834_v42  ;;  %v755_v46 = vunpack.c.l.bf16 %v754_v40  ;;  %v787_v49 = vunpack.c.l.bf16 %v834_v42  ;;  %v411_v53 = vld [vmem:[%s1168_s2] sm:$0xff]  ;;  %v410_v58 = vld [vmem:[%s1045_s26 + $0x38] sm:$0xff]  ;;  %v412_v60 = vld [vmem:[%s1168_s2 + $0x8] sm:$0xff] }
  0x15   : > { %438 = vmatpush.msra.mxu0 %v779_v11  ;;  %846 = vmatpush.msra.mxu2 %v779_v11  ;;  %v414_v59 = vld [vmem:[%s1168_s2 + $0x18] sm:$0xff] }
  0x16   : > { %467 = vmatpush.msra.mxu1 %v811_v13  ;;  %862 = vmatpush.msra.mxu3 %v811_v13 }
  0x17   : > { %439 = vmatpush.msra.mxu0 %v776_v14  ;;  %847 = vmatpush.msra.mxu2 %v776_v14 }
  0x18   : > { %468 = vmatpush.msra.mxu1 %v808_v15  ;;  %863 = vmatpush.msra.mxu3 %v808_v15 }
  0x19   : > { %440 = vmatpush.msra.mxu0 %v775_v17  ;;  %848 = vmatpush.msra.mxu2 %v775_v17 }
  0x1a   : > { %469 = vmatpush.msra.mxu1 %v807_v19  ;;  %864 = vmatpush.msra.mxu3 %v807_v19 }
  0x1b   : > { %441 = vmatpush.msra.mxu0 %v772_v20  ;;  %849 = vmatpush.msra.mxu2 %v772_v20 }
  0x1c   : > { %470 = vmatpush.msra.mxu1 %v804_v21  ;;  %865 = vmatpush.msra.mxu3 %v804_v21 }
  0x1d   : > { %442 = vmatpush.msra.mxu0 %v771_v23  ;;  %850 = vmatpush.msra.mxu2 %v771_v23 }
  0x1e   : > { %471 = vmatpush.msra.mxu1 %v803_v25  ;;  %866 = vmatpush.msra.mxu3 %v803_v25 }
  0x1f   : > { %443 = vmatpush.msra.mxu0 %v768_v26  ;;  %851 = vmatpush.msra.mxu2 %v768_v26 }
  0x20   : > { %472 = vmatpush.msra.mxu1 %v800_v27  ;;  %867 = vmatpush.msra.mxu3 %v800_v27 }
  0x21   : > { %444 = vmatpush.msra.mxu0 %v767_v29  ;;  %852 = vmatpush.msra.mxu2 %v767_v29 }
  0x22   : > { %473 = vmatpush.msra.mxu1 %v799_v31  ;;  %868 = vmatpush.msra.mxu3 %v799_v31 }
  0x23   : > { %445 = vmatpush.msra.mxu0 %v764_v32  ;;  %853 = vmatpush.msra.mxu2 %v764_v32 }
  0x24   : > { %474 = vmatpush.msra.mxu1 %v796_v33  ;;  %869 = vmatpush.msra.mxu3 %v796_v33 }
  0x25   : > { %446 = vmatpush.msra.mxu0 %v763_v35  ;;  %854 = vmatpush.msra.mxu2 %v763_v35 }
  0x26   : > { %475 = vmatpush.msra.mxu1 %v795_v37  ;;  %870 = vmatpush.msra.mxu3 %v795_v37 }
  0x27   : > { %447 = vmatpush.msra.mxu0 %v760_v38  ;;  %855 = vmatpush.msra.mxu2 %v760_v38 }
  0x28   : > { %476 = vmatpush.msra.mxu1 %v792_v39  ;;  %871 = vmatpush.msra.mxu3 %v792_v39 }
  0x29   : > { %448 = vmatpush.msra.mxu0 %v759_v41  ;;  %856 = vmatpush.msra.mxu2 %v759_v41 }
  0x2a   : > { %477 = vmatpush.msra.mxu1 %v791_v43  ;;  %872 = vmatpush.msra.mxu3 %v791_v43 }
  0x2b   : > { %449 = vmatpush.msra.mxu0 %v756_v44  ;;  %857 = vmatpush.msra.mxu2 %v756_v44 }
  0x2c   : > { %478 = vmatpush.msra.mxu1 %v788_v45  ;;  %873 = vmatpush.msra.mxu3 %v788_v45 }
  0x2d   : > { %450 = vmatpush.msra.mxu0 %v755_v46  ;;  %858 = vmatpush.msra.mxu2 %v755_v46 }
  0x2e   : > { %451 = vmatmul.f32.vlgmr.msra.gmra.mxu0 %v403_v47  ;;  %457 = vmatmul.f32.vlgmr.msra.gmra.mxu2 %v407_v48 }
  0x2f   : > { %479 = vmatpush.msra.mxu1 %v787_v49  ;;  %874 = vmatpush.msra.mxu3 %v787_v49 }
  0x30   : > { %480 = vmatmul.f32.vlgmr.msra.gmra.mxu1 %v404_v50  ;;  %486 = vmatmul.f32.vlgmr.msra.gmra.mxu3 %v408_v51 }
  0x31   : > { %427 = vperm.xlu1 %902, %v413_v52   ;;  %417 = vperm.xlu0 %901, %v411_v53  }
  0x36   : > { %454 = vmatmul.f32.gmra.mxu0 %v405_v55  ;;  %460 = vmatmul.f32.gmra.mxu2 %v409_v56 }
  0x38   : > { %483 = vmatmul.f32.gmra.mxu1 %v406_v57  ;;  %489 = vmatmul.f32.gmra.mxu3 %v410_v58 }
  0x39   : > { %432 = vperm.xlu1 %902, %v414_v59   ;;  %422 = vperm.xlu0 %901, %v412_v60  }
  0xa3   : > { %v418_v61 = vpop.permute.xlu0 %417  ;;  %v428_v0 = vpop.permute.xlu1 %427 }
  0xab   : > { %v452_v62 = vpop.f32.mrf.mxu0  ;;  %v423_v3 = vpop.permute.xlu0 %422 }
  0xac   : > { %v453_v1 = vadd.f32 %v452_v62, %v418_v61  ;;  %v433_v13 = vpop.permute.xlu1 %432 }
  0xad   : > { %v481_v63 = vpop.f32.mrf.mxu1 }
  0xae   : > { %v482_v6 = vadd.f32 %v481_v63, %v453_v1 }
  0xb0   : > { %v493_v11 = vmax.f32 %v482_v6, 0.0 }
  0xb1   : > { %v458_v2 = vpop.f32.mrf.mxu2 }
  0xb2   : > { %v459_v9 = vadd.f32 %v458_v2, %v428_v0 }
  0xb3   : > { %v455_v4 = vpop.f32.mrf.mxu0  ;;  %v487_v5 = vpop.f32.mrf.mxu3 }
  0xb4   : > { %v456_v7 = vadd.f32 %v455_v4, %v423_v3  ;;  %v488_v15 = vadd.f32 %v487_v5, %v459_v9 }
  0xb5   : > { %v484_v8 = vpop.f32.mrf.mxu1 }
  0xb6   : > { %v485_v10 = vadd.f32 %v484_v8, %v456_v7  ;;  %v495_v20 = vmax.f32 %v488_v15, 0.0 }
  0xb8   : > { %v494_v12 = vmax.f32 %v485_v10, 0.0 }
  0xb9   : > { %v461_v14 = vpop.f32.mrf.mxu2 }
  0xba   : > { %v820_v16 = vpack.c.bf16 %v494_v12, %v493_v11  ;;  %v462_v17 = vadd.f32 %v461_v14, %v433_v13 }
  0xbb   : > { %v490_v18 = vpop.f32.mrf.mxu3 }
  0xbc   : > { %821 = vst [vmem:[%s328_s16] sm:$0xff] %v820_v16   ;;  %v491_v19 = vadd.f32 %v490_v18, %v462_v17 }
  0xbe   : > { %v496_v21 = vmax.f32 %v491_v19, 0.0  ;;  %508 = sbr.rel (%p746_p5) target bundleno = 204 (0xcc), region = 40 }
  0xc0   : > { %v825_v22 = vpack.c.bf16 %v496_v21, %v495_v20 }
  0xc2   : > { %842 = vst [vmem:[%s328_s16 + $0x8] sm:$0xff] %v825_v22  }
  0xc3   : > { %vm509_vm0 = vcmask 7168   ;;  %v929_v23 = vmov 0.0  }
  0xc4   : > { %510 = vst.msk [vmem:[%s1171_s5] sm:$0xff] %vm509_vm0, %v929_v23 }
  0xc5   : > { %511 = vst.msk [vmem:[%s1171_s5 + $0x8] sm:$0xff] %vm509_vm0, %v929_v23 }
  0xc6   : > { %512 = vst.msk [vmem:[%s1171_s5 + $0x10] sm:$0xff] %vm509_vm0, %v929_v23 }
  0xc7   : > { %513 = vst.msk [vmem:[%s1171_s5 + $0x18] sm:$0xff] %vm509_vm0, %v929_v23 }
  0xc8   : > { %514 = vst.msk [vmem:[%s1172_s6] sm:$0xff] %vm509_vm0, %v929_v23 }
  0xc9   : > { %515 = vst.msk [vmem:[%s1172_s6 + $0x8] sm:$0xff] %vm509_vm0, %v929_v23 }
  0xca   : > { %516 = vst.msk [vmem:[%s1172_s6 + $0x10] sm:$0xff] %vm509_vm0, %v929_v23 }
  0xcb   : > { %517 = vst.msk [vmem:[%s1172_s6 + $0x18] sm:$0xff] %vm509_vm0, %v929_v23 }
  0xcc PF: > { %v903_v24 = vld [vmem:[%s320_s14] ss:$0 sm:$0xff]  ;;  %vm542_vm1 = vcmask 7168   ;;  %v527_v43 = vld [vmem:[%s1171_s5 + $0x8] sm:$0xff] }
  0xcd   : > { %v524_v25 = vmul.f32 %v903_v24, %v495_v20  ;;  %v522_v26 = vmul.f32 %v903_v24, %v493_v11  ;;  %v525_v28 = vmul.f32 %v903_v24, %v496_v21  ;;  %v523_v29 = vmul.f32 %v903_v24, %v494_v12  ;;  %v528_v33 = vld [vmem:[%s1171_s5 + $0x10] sm:$0xff]  ;;  %v526_v34 = vld [vmem:[%s1171_s5] sm:$0xff] }
  0xce   : > { %v529_v42 = vld [vmem:[%s1171_s5 + $0x18] sm:$0xff] }
  0xcf   : > { %534 = vadd.xlane.f32.xlu1 %v524_v25  ;;  %530 = vadd.xlane.f32.xlu0 %v522_v26  ;;  %v551_v27 = vmul.f32 %v522_v26, %v522_v26  ;;  %v552_v30 = vmul.f32 %v523_v29, %v523_v29  ;;  %v554_v31 = vmul.f32 %v525_v28, %v525_v28  ;;  %v547_v37 = vld [vmem:[%s1172_s6] sm:$0xff] }
  0xd0   : > { %v553_v32 = vmul.f32 %v524_v25, %v524_v25  ;;  %v548_v46 = vld [vmem:[%s1172_s6 + $0x8] sm:$0xff] }
  0xd1   : > { %555 = vadd.xlane.f32.xlu2 %v551_v27  ;;  %v549_v52 = vld [vmem:[%s1172_s6 + $0x10] sm:$0xff] }
  0xd2   : > { %v550_v51 = vld [vmem:[%s1172_s6 + $0x18] sm:$0xff] }
  0xd7   : > { %536 = vadd.xlane.f32.xlu1 %v525_v28  ;;  %532 = vadd.xlane.f32.xlu0 %v523_v29 }
  0xd9   : > { %557 = vadd.xlane.f32.xlu2 %v552_v30 }
  0xdf   : > { %561 = vadd.xlane.f32.xlu1 %v554_v31  ;;  %559 = vadd.xlane.f32.xlu0 %v553_v32 }
 0x142   : > { %v535_v35 = vpop.xlane.xlu1 %534  ;;  %v531_v36 = vpop.xlane.xlu0 %530 }
 0x143   : > { %v540_v38 = vadd.f32 %v535_v35, %v528_v33  ;;  %v538_v39 = vadd.f32 %v531_v36, %v526_v34 }
 0x144   : > { %v556_v40 = vpop.xlane.xlu2 %555 }
 0x145   : > { %545 = vst.msk [vmem:[%s1171_s5 + $0x10] sm:$0xff] %vm542_vm1, %v540_v38  ;;  %v563_v41 = vadd.f32 %v556_v40, %v547_v37 }
 0x146   : > { %543 = vst.msk [vmem:[%s1171_s5] sm:$0xff] %vm542_vm1, %v538_v39 }
 0x147   : > { %567 = vst.msk [vmem:[%s1172_s6] sm:$0xff] %vm542_vm1, %v563_v41 }
 0x14a   : > { %v537_v44 = vpop.xlane.xlu1 %536  ;;  %v533_v45 = vpop.xlane.xlu0 %532 }
 0x14b   : > { %v541_v47 = vadd.f32 %v537_v44, %v529_v42  ;;  %v539_v48 = vadd.f32 %v533_v45, %v527_v43 }
 0x14c   : > { %v558_v49 = vpop.xlane.xlu2 %557 }
 0x14d   : > { %546 = vst.msk [vmem:[%s1171_s5 + $0x18] sm:$0xff] %vm542_vm1, %v541_v47  ;;  %v564_v50 = vadd.f32 %v558_v49, %v548_v46 }
 0x14e   : > { %544 = vst.msk [vmem:[%s1171_s5 + $0x8] sm:$0xff] %vm542_vm1, %v539_v48 }
 0x14f   : > { %568 = vst.msk [vmem:[%s1172_s6 + $0x8] sm:$0xff] %vm542_vm1, %v564_v50 }
 0x152   : > { %v562_v53 = vpop.xlane.xlu1 %561  ;;  %v560_v54 = vpop.xlane.xlu0 %559 }
 0x153   : > { %v566_v55 = vadd.f32 %v562_v53, %v550_v51  ;;  %v565_v56 = vadd.f32 %v560_v54, %v549_v52 }
 0x155   : > { %570 = vst.msk [vmem:[%s1172_s6 + $0x18] sm:$0xff] %vm542_vm1, %v566_v55 }
 0x156   : > { %569 = vst.msk [vmem:[%s1172_s6 + $0x10] sm:$0xff] %vm542_vm1, %v565_v56 }
 0x157 PF: > { %s17_s23 = sadd.s32 1, %s926_s23   ;;  %s1173_s21 = smov %s922_s22 }
 0x158   : > { %p14_p6 = scmp.ge.s32.totalorder %s17_s23, 6   ;;  %s1174_s22 = smov %s1176_s24 }
 0x15a   :  { %16 = sbr.rel (!%p14_p6) target bundleno = 2 (0x2), region = 100 }

// kernel: feature_decoder_forward.7
= control target key start
LH: loop header
LB: loop body
LE: loop exit
PB: predicated region body
PF: predicated region fallthrough
CT: control target
= control target key end

     0   :  { %s562_s12 = smov 0   ;;  %s564_s13 = smov 0   ;;  %s640_s0 = inlined_call_operand.vmem [shape: bf16[132,128], index: 0, kind: input, shape index: {}]   ;;  %s641_s1 = inlined_call_operand.vmem [shape: f32[4,16,132], index: 1, kind: input, shape index: {}]   ;;  %s642_s2 = inlined_call_operand.vmem [shape: f32[16,1], index: 2, kind: input, shape index: {}]   ;;  %s643_s3 = inlined_call_operand.vmem [shape: bf16[4,16,128], index: 3, kind: output, shape index: {}]  }
   0x1   :  { %s566_s14 = smov 0  }
   0x2 LB: > { %s22_s15 = sadd.s32 1, %s535_s13  ;;  %p419_p0 = scmp.ge.s32.totalorder %s539_s14, 1  ;;  %s539_s14 = sphi %s566_s14, %s13_s14   ;;  %s535_s13 = sphi %s564_s13, %s645_s13   ;;  %s531_s12 = sphi %s562_s12, %s644_s12  }
   0x3   : > { %p23_p1 = scmp.ge.s32.totalorder %s22_s15, 4  ;;  %p160_p2 = scmp.lt.s32.totalorder %s539_s14, 5 }
   0x5   : > { %s647_s15 = smov (%p23_p1, %s22_s15), 0  ;;  %p161_p3 = pnand %p419_p0, %p160_p2 }
   0x6   : > { %p195_p4 = scmp.lt.s32.totalorder (!%p161_p3), %s531_s12, 3 }
   0x7   : > { %164 = sbr.rel (%p161_p3) target bundleno = 187 (0xbb), region = 32 }
   0xc   : > { %v474_v0 = vld [vmem:[%s640_s0 + $0x38] sm:$0xff]   ;;  %v473_v1 = vld [vmem:[%s640_s0 + $0x30] sm:$0xff]   ;;  %v224_v4 = vld [vmem:[%s640_s0 + $0x40] sm:$0x3]  ;;  %s649_s12 = smov (!%p195_p4, %s531_s12), 3  ;;  %vm265_vm0 = vcmask 1043456  }
   0xd   : > { %v462_v2 = vunpack.c.h.bf16 %v474_v0  ;;  %v461_v3 = vunpack.c.l.bf16 %v474_v0  ;;  %v458_v5 = vunpack.c.h.bf16 %v473_v1  ;;  %v472_v6 = vld [vmem:[%s640_s0 + $0x28] sm:$0xff]   ;;  %s429_s24 = sshll.u32 %s649_s12, 5  ;;  %v457_v7 = vunpack.c.l.bf16 %v473_v1  ;;  %v246_v9 = vld [vmem:[%s642_s2] sm:$0xff]  ;;  %v470_v16 = vld [vmem:[%s640_s0 + $0x18] sm:$0xff]   ;;  %s430_s19 = sshll.u32 %s649_s12, 3 }
   0xe   : > { %v241_v8 = vunpack.c.l.bf16 %v224_v4  ;;  %s598_s27 = scalar_lea.vmem %s641_s1, %s429_s24  ;;  %v541_v10 = vmov 0   ;;  %v454_v11 = vunpack.c.h.bf16 %v472_v6  ;;  %vm258_vm1 = vcmask 31744   ;;  %v471_v13 = vld [vmem:[%s640_s0 + $0x20] sm:$0xff]   ;;  %v247_v18 = vld [vmem:[%s642_s2 + $0x8] sm:$0xff]  ;;  %v469_v21 = vld [vmem:[%s640_s0 + $0x10] sm:$0xff]   ;;  %s207_s22 = scalar_lea.vmem %s643_s3, %s430_s19 }
   0xf   : > { %269 = vmatpush.msra.mxu0 %v462_v2  ;;  %475 = vmatpush.msra.mxu2 %v462_v2  ;;  %v243_v12 = vld [vmem:[%s598_s27 + $0x8] sm:$0xff]  ;;  %v453_v14 = vunpack.c.l.bf16 %v472_v6  ;;  %v450_v15 = vunpack.c.h.bf16 %v471_v13  ;;  %v449_v17 = vunpack.c.l.bf16 %v471_v13  ;;  %v446_v19 = vunpack.c.h.bf16 %v470_v16  ;;  %v245_v20 = vld [vmem:[%s598_s27 + $0x18] sm:$0xff]  ;;  %v432_v27 = vld [vmem:[%s640_s0] sm:$0xff]  }
  0x10   : > { %516 = vset.pattern.permute.xlu0 %v541_v10  ;;  %424 = vmatpush.msk.msra.mxu1 %vm265_vm0, %v241_v8  ;;  %v445_v22 = vunpack.c.l.bf16 %v470_v16  ;;  %v442_v23 = vunpack.c.h.bf16 %v469_v21  ;;  %v468_v24 = vld [vmem:[%s640_s0 + $0x8] sm:$0xff]   ;;  %v441_v25 = vunpack.c.l.bf16 %v469_v21  ;;  %v434_v29 = vunpack.c.h.bf16 %v432_v27  ;;  %v242_v31 = vld [vmem:[%s598_s27] sm:$0xff]  ;;  %v244_v32 = vld [vmem:[%s598_s27 + $0x10] sm:$0xff] }
  0x11   : > { %270 = vmatpush.msra.mxu0 %v461_v3  ;;  %476 = vmatpush.msra.mxu2 %v461_v3  ;;  %v438_v26 = vunpack.c.h.bf16 %v468_v24  ;;  %v437_v28 = vunpack.c.l.bf16 %v468_v24  ;;  %v433_v30 = vunpack.c.l.bf16 %v432_v27 }
  0x12   : > { %250 = vperm.xlu0 %516, %v246_v9   ;;  %425 = vmatmul.msk.f32.vlgmr.msra.gmra.mxu1 %vm258_vm1, %v243_v12 }
  0x13   : > { %271 = vmatpush.msra.mxu0 %v458_v5  ;;  %477 = vmatpush.msra.mxu2 %v458_v5 }
  0x15   : > { %272 = vmatpush.msra.mxu0 %v457_v7  ;;  %478 = vmatpush.msra.mxu2 %v457_v7 }
  0x17   : > { %273 = vmatpush.msra.mxu0 %v454_v11  ;;  %479 = vmatpush.msra.mxu2 %v454_v11 }
  0x19   : > { %274 = vmatpush.msra.mxu0 %v453_v14  ;;  %480 = vmatpush.msra.mxu2 %v453_v14 }
  0x1a   : > { %255 = vperm.xlu0 %516, %v247_v18   ;;  %426 = vmatmul.msk.f32.gmra.mxu1 %vm258_vm1, %v245_v20 }
  0x1b   : > { %275 = vmatpush.msra.mxu0 %v450_v15  ;;  %481 = vmatpush.msra.mxu2 %v450_v15 }
  0x1d   : > { %276 = vmatpush.msra.mxu0 %v449_v17  ;;  %482 = vmatpush.msra.mxu2 %v449_v17 }
  0x1f   : > { %277 = vmatpush.msra.mxu0 %v446_v19  ;;  %483 = vmatpush.msra.mxu2 %v446_v19 }
  0x21   : > { %278 = vmatpush.msra.mxu0 %v445_v22  ;;  %484 = vmatpush.msra.mxu2 %v445_v22 }
  0x23   : > { %279 = vmatpush.msra.mxu0 %v442_v23  ;;  %485 = vmatpush.msra.mxu2 %v442_v23 }
  0x25   : > { %280 = vmatpush.msra.mxu0 %v441_v25  ;;  %486 = vmatpush.msra.mxu2 %v441_v25 }
  0x27   : > { %281 = vmatpush.msra.mxu0 %v438_v26  ;;  %487 = vmatpush.msra.mxu2 %v438_v26 }
  0x29   : > { %282 = vmatpush.msra.mxu0 %v437_v28  ;;  %488 = vmatpush.msra.mxu2 %v437_v28 }
  0x2b   : > { %283 = vmatpush.msra.mxu0 %v434_v29  ;;  %489 = vmatpush.msra.mxu2 %v434_v29 }
  0x2d   : > { %284 = vmatpush.msra.mxu0 %v433_v30  ;;  %490 = vmatpush.msra.mxu2 %v433_v30 }
  0x2e   : > { %285 = vmatmul.f32.vlgmr.msra.gmra.mxu0 %v242_v31  ;;  %288 = vmatmul.f32.vlgmr.msra.gmra.mxu2 %v244_v32 }
  0x84   : > { %v251_v33 = vpop.permute.xlu0 %250 }
  0x8c   : > { %v256_v37 = vpop.permute.xlu0 %255 }
  0x8f   : > { %v309_v34 = vpop.f32.mrf.mxu1 }
  0x97   : > { %v312_v39 = vpop.f32.mrf.mxu1 }
  0xab   : > { %v286_v35 = vpop.f32.mrf.mxu0 }
  0xac   : > { %v287_v36 = vadd.f32 %v286_v35, %v251_v33 }
  0xae   : > { %v310_v40 = vadd.f32 %v309_v34, %v287_v36 }
  0xb0   : > { %v315_v43 = vmax.f32 %v310_v40, 0.0 }
  0xb1   : > { %v289_v38 = vpop.f32.mrf.mxu2 }
  0xb2   : > { %v290_v41 = vadd.f32 %v289_v38, %v256_v37 }
  0xb4   : > { %v313_v42 = vadd.f32 %v312_v39, %v290_v41 }
  0xb6   : > { %v316_v44 = vmax.f32 %v313_v42, 0.0 }
  0xb8   : > { %v466_v45 = vpack.c.bf16 %v316_v44, %v315_v43 }
  0xba   : > { %467 = vst [vmem:[%s207_s22] sm:$0xff] %v466_v45  }
  0xbb PF: > { %s13_s14 = sadd.s32 1, %s539_s14   ;;  %s644_s12 = smov %s535_s13 }
  0xbc   : > { %p10_p5 = scmp.ge.s32.totalorder %s13_s14, 6   ;;  %s645_s13 = smov %s647_s15 }
  0xbe   :  { %12 = sbr.rel (!%p10_p5) target bundleno = 2 (0x2), region = 65 }

// kernel: tile.66
= control target key start
LH: loop header
LB: loop body
LE: loop exit
PB: predicated region body
PF: predicated region fallthrough
CT: control target
= control target key end

     0   :  { %s46_s0 = inlined_call_operand.vmem [shape: f32[12,12], index: 0, kind: input, shape index: {}]   ;;  %s47_s1 = inlined_call_operand.vmem [shape: f32[2,1,1,12,1,12], index: 1, kind: output, shape index: {}]  }
   0x1   :  { %v4_v0 = vld [vmem:[%s46_s0] sm:$0xff]  ;;  %v15_v1 = vld [vmem:[%s46_s0 + $0x8] sm:$0xff] }
   0x2   :  { %5 = vst [vmem:[%s47_s1] sm:$0xff] %v4_v0 }
   0x3   :  { %14 = vst [vmem:[%s47_s1 + $0x10] sm:$0xff] %v4_v0 }
   0x4   :  { %16 = vst [vmem:[%s47_s1 + $0x8] sm:$0xff] %v15_v1 }
   0x5   :  { %17 = vst [vmem:[%s47_s1 + $0x18] sm:$0xff] %v15_v1 }

// kernel: tile.76
= control target key start
LH: loop header
LB: loop body
LE: loop exit
PB: predicated region body
PF: predicated region fallthrough
CT: control target
= control target key end

     0   :  { %vm9_vm0 = vcmask 31744   ;;  %s238_s10 = smov 112   ;;  %s239_s13 = smov 124   ;;  %vm13_vm1 = vcmask 64512   ;;  %vm3_vm2 = vcmask 97280   ;;  %vm16_vm3 = vcmask 1048544   ;;  %s362_s0 = inlined_call_operand.vmem [shape: f32[2,1,1,12,1,12], index: 0, kind: input, shape index: {}]   ;;  %s363_s1 = inlined_call_operand.vmem [shape: f32[1,1,288], index: 1, kind: output, shape index: {}]  }
   0x1   :  { %v192_v0 = vld [vmem:[%s362_s0 + $0x18] sm:$0x1]   ;;  %v188_v1 = vld [vmem:[%s362_s0 + $0x19] sm:$0x1]   ;;  %v190_v4 = vld [vmem:[%s362_s0 + $0xa] sm:$0x1]  }
   0x2   :  { %34 = vrot.lane.b32.xlu1 %v192_v0, %s238_s10  ;;  %v189_v2 = vld [vmem:[%s362_s0 + $0x19] sm:$0x1]   ;;  %v191_v5 = vld [vmem:[%s362_s0 + $0xa] sm:$0x1]   ;;  %v194_v6 = vld [vmem:[%s362_s0 + $0x17] sm:$0x1]  }
   0x3   :  { %v10_v3 = vsel %vm9_vm0, %v189_v2, %v188_v1  ;;  %v193_v7 = vld [vmem:[%s362_s0 + $0x9] sm:$0x1]   ;;  %s240_s22 = smov 100   ;;  %v24_v8 = vsel %vm13_vm1, %v191_v5, %v190_v4  ;;  %s241_s23 = smov 108   ;;  %v195_v9 = vld [vmem:[%s362_s0 + $0x8] sm:$0x1]  }
   0x4   :  { %11 = vrot.lane.b32.xlu0 %v10_v3, %s239_s13  ;;  %47 = vrot.lane.b32.xlu2 %v194_v6, %s240_s22  ;;  %s242_s24 = smov 120   ;;  %v197_v10 = vld [vmem:[%s362_s0 + $0x7] sm:$0x1]   ;;  %s243_s29 = smov 96   ;;  %v196_v11 = vld [vmem:[%s362_s0 + $0x16] sm:$0x1]  }
   0x5   :  { %s244_s3 = smov 84   ;;  %s245_s4 = smov 88   ;;  %v198_v12 = vld [vmem:[%s362_s0 + $0x15] sm:$0x1]   ;;  %v200_v13 = vld [vmem:[%s362_s0 + $0x14] sm:$0x1]  }
   0x6   :  { %s246_s9 = smov 76   ;;  %v199_v14 = vld [vmem:[%s362_s0 + $0x6] sm:$0x1]   ;;  %s247_s12 = smov 64   ;;  %v201_v15 = vld [vmem:[%s362_s0 + $0x5] sm:$0x1]  }
   0x7   :  { %s248_s13 = smov 72   ;;  %v203_v16 = vld [vmem:[%s362_s0 + $0x4] sm:$0x1]   ;;  %s249_s18 = smov 60   ;;  %v202_v17 = vld [vmem:[%s362_s0 + $0x13] sm:$0x1]  }
   0x8   :  { %s250_s21 = smov 48   ;;  %s251_s22 = smov 52   ;;  %v204_v18 = vld [vmem:[%s362_s0 + $0x12] sm:$0x1]   ;;  %v206_v19 = vld [vmem:[%s362_s0 + $0x11] sm:$0x1]  }
   0x9   :  { %s252_s27 = smov 40   ;;  %v205_v20 = vld [vmem:[%s362_s0 + $0x3] sm:$0x1]   ;;  %s253_s30 = smov 28   ;;  %v207_v21 = vld [vmem:[%s362_s0 + $0x2] sm:$0x1]  }
   0xa   :  { %41 = vrot.lane.b32.xlu1 %v193_v7, %s241_s23  ;;  %s254_s2 = smov 36   ;;  %v209_v22 = vld [vmem:[%s362_s0 + $0x10] sm:$0x1]   ;;  %s255_s7 = smov 24   ;;  %v208_v23 = vld [vmem:[%s362_s0 + $0x1b] sm:$0x1]  }
   0xb   :  { %s256_s10 = smov 16   ;;  %s257_s11 = smov 20   ;;  %v210_v24 = vld [vmem:[%s362_s0 + $0x1] sm:$0x1]   ;;  %v212_v25 = vld [vmem:[%s362_s0 + $0xb] sm:$0x1]  }
   0xc   :  { %25 = vrot.lane.b32.xlu0 %v24_v8, %s242_s24  ;;  %54 = vrot.lane.b32.xlu2 %v195_v9, %s243_s29  ;;  %s258_s16 = smov 12   ;;  %v211_v26 = vld [vmem:[%s362_s0 + $0x1a] sm:$0x1]   ;;  %s259_s19 = smov 4   ;;  %v2_v27 = vld [vmem:[%s362_s0] sm:$0x1]  }
   0xd   :  { %s260_s20 = smov 8   ;;  %4 = vst.msk [vmem:[#allocation0] sm:$0x1] %vm3_vm2, %v2_v27   ;;  %vm30_vm4 = vcmask 1048512   ;;  %vm36_vm5 = vcmask 1015680   ;;  %vm43_vm6 = vcmask 982880  }
   0xe   :  { %vm56_vm7 = vcmask 884480   ;;  %vm49_vm8 = vcmask 917280   ;;  %vm69_vm9 = vcmask 786080   ;;  %vm62_vm10 = vcmask 818880  }
   0xf   :  { %vm75_vm11 = vcmask 720480   ;;  %vm88_vm12 = vcmask 622080   ;;  %vm82_vm13 = vcmask 687680   ;;  %vm95_vm14 = vcmask 589280  }
  0x10   :  { %vm108_vm15 = vcmask 490880   ;;  %vm127_vm2 = vcmask 326880  }
  0x12   :  { %67 = vrot.lane.b32.xlu1 %v197_v10, %s244_s3 }
  0x14   :  { %60 = vrot.lane.b32.xlu0 %v196_v11, %s245_s4  ;;  %73 = vrot.lane.b32.xlu2 %v198_v12, %s246_s9 }
  0x1a   :  { %86 = vrot.lane.b32.xlu1 %v200_v13, %s247_s12 }
  0x1c   :  { %80 = vrot.lane.b32.xlu0 %v199_v14, %s248_s13  ;;  %93 = vrot.lane.b32.xlu2 %v201_v15, %s249_s18 }
  0x22   :  { %106 = vrot.lane.b32.xlu1 %v203_v16, %s250_s21 }
  0x24   :  { %99 = vrot.lane.b32.xlu0 %v202_v17, %s251_s22  ;;  %112 = vrot.lane.b32.xlu2 %v204_v18, %s252_s27 }
  0x2a   :  { %125 = vrot.lane.b32.xlu1 %v206_v19, %s253_s30 }
  0x2c   :  { %119 = vrot.lane.b32.xlu0 %v205_v20, %s254_s2  ;;  %132 = vrot.lane.b32.xlu2 %v207_v21, %s255_s7 }
  0x32   :  { %145 = vrot.lane.b32.xlu1 %v209_v22, %s256_s10 }
  0x34   :  { %138 = vrot.lane.b32.xlu0 %v208_v23, %s257_s11  ;;  %152 = vrot.lane.b32.xlu2 %v210_v24, %s258_s16 }
  0x3a   :  { %165 = vrot.lane.b32.xlu1 %v212_v25, %s259_s19 }
  0x3c   :  { %158 = vrot.lane.b32.xlu0 %v211_v26, %s260_s20 }
  0x5e   :  { %v48_v28 = vpop.permute.xlu2 %47  }
  0x66   :  { %v55_v29 = vpop.permute.xlu2 %54  }
  0x6e   :  { %v74_v30 = vpop.permute.xlu2 %73  }
  0x74   :  { %v35_v31 = vpop.permute.xlu1 %34  }
  0x76   :  { %v12_v32 = vpop.permute.xlu0 %11   ;;  %v94_v33 = vpop.permute.xlu2 %93  }
  0x77   :  { %15 = vst.msk [vmem:[#allocation0 + $0x10] sm:$0x1] %vm13_vm1, %v12_v32   ;;  %vm114_vm1 = vcmask 425280  }
  0x78   :  { %18 = vst.msk [vmem:[#allocation0 + $0x8] sm:$0x1] %vm16_vm3, %v12_v32   ;;  %vm121_vm3 = vcmask 392480  }
  0x7c   :  { %v42_v34 = vpop.permute.xlu1 %41  }
  0x7e   :  { %v26_v35 = vpop.permute.xlu0 %25   ;;  %v113_v36 = vpop.permute.xlu2 %112  }
  0x7f   :  { %29 = vst.msk [vmem:[#allocation0 + $0x8] sm:$0x1] %vm9_vm0, %v26_v35   ;;  %vm101_vm0 = vcmask 523680  }
  0x80   :  { %31 = vst.msk [vmem:[#allocation0] sm:$0x1] %vm30_vm4, %v26_v35   ;;  %vm134_vm4 = vcmask 294080  }
  0x81   :  { %38 = vst.msk [vmem:[#allocation0 + $0x8] sm:$0x1] %vm36_vm5, %v35_v31   ;;  %vm154_vm5 = vcmask 195680  }
  0x82   :  { %44 = vst.msk [vmem:[#allocation0] sm:$0x1] %vm43_vm6, %v42_v34   ;;  %vm147_vm6 = vcmask 228480  }
  0x83   :  { %57 = vst.msk [vmem:[#allocation0] sm:$0x1] %vm56_vm7, %v55_v29   ;;  %vm140_vm7 = vcmask 261280  }
  0x84   :  { %51 = vst.msk [vmem:[#allocation0 + $0x8] sm:$0x1] %vm49_vm8, %v48_v28   ;;  %v68_v37 = vpop.permute.xlu1 %67   ;;  %vm167_vm8 = vcmask 130080  }
  0x85   :  { %70 = vst.msk [vmem:[#allocation0] sm:$0x1] %vm69_vm9, %v68_v37   ;;  %vm160_vm9 = vcmask 162880  }
  0x86   :  { %v61_v38 = vpop.permute.xlu0 %60   ;;  %v133_v39 = vpop.permute.xlu2 %132  }
  0x87   :  { %64 = vst.msk [vmem:[#allocation0 + $0x8] sm:$0x1] %vm62_vm10, %v61_v38  }
  0x88   :  { %77 = vst.msk [vmem:[#allocation0 + $0x8] sm:$0x1] %vm75_vm11, %v74_v30  }
  0x8c   :  { %v87_v40 = vpop.permute.xlu1 %86  }
  0x8d   :  { %90 = vst.msk [vmem:[#allocation0 + $0x8] sm:$0x1] %vm88_vm12, %v87_v40  }
  0x8e   :  { %v81_v41 = vpop.permute.xlu0 %80   ;;  %v153_v42 = vpop.permute.xlu2 %152  }
  0x8f   :  { %83 = vst.msk [vmem:[#allocation0] sm:$0x1] %vm82_vm13, %v81_v41  }
  0x90   :  { %96 = vst.msk [vmem:[#allocation0] sm:$0x1] %vm95_vm14, %v94_v33  }
  0x94   :  { %v107_v43 = vpop.permute.xlu1 %106  }
  0x95   :  { %109 = vst.msk [vmem:[#allocation0] sm:$0x1] %vm108_vm15, %v107_v43  }
  0x96   :  { %v100_v44 = vpop.permute.xlu0 %99  }
  0x97   :  { %103 = vst.msk [vmem:[#allocation0 + $0x8] sm:$0x1] %vm101_vm0, %v100_v44  }
  0x98   :  { %116 = vst.msk [vmem:[#allocation0 + $0x8] sm:$0x1] %vm114_vm1, %v113_v36  }
  0x9c   :  { %v126_v45 = vpop.permute.xlu1 %125  }
  0x9d   :  { %129 = vst.msk [vmem:[#allocation0 + $0x8] sm:$0x1] %vm127_vm2, %v126_v45  }
  0x9e   :  { %v120_v46 = vpop.permute.xlu0 %119  }
  0x9f   :  { %122 = vst.msk [vmem:[#allocation0] sm:$0x1] %vm121_vm3, %v120_v46  }
  0xa0   :  { %135 = vst.msk [vmem:[#allocation0] sm:$0x1] %vm134_vm4, %v133_v39  }
  0xa1   :  { %155 = vst.msk [vmem:[#allocation0] sm:$0x1] %vm154_vm5, %v153_v42  }
  0xa4   :  { %v146_v47 = vpop.permute.xlu1 %145  }
  0xa5   :  { %149 = vst.msk [vmem:[#allocation0 + $0x8] sm:$0x1] %vm147_vm6, %v146_v47  }
  0xa6   :  { %v139_v48 = vpop.permute.xlu0 %138  }
  0xa7   :  { %142 = vst.msk [vmem:[#allocation0 + $0x10] sm:$0x1] %vm140_vm7, %v139_v48  }
  0xa8   :  { %v172_v49 = vld [vmem:[#allocation0] sm:$0x1] }
  0xa9   :  { %175 = vst [vmem:[%s363_s1] sm:$0x1] %v172_v49 }
  0xac   :  { %v166_v50 = vpop.permute.xlu1 %165  }
  0xad   :  { %169 = vst.msk [vmem:[#allocation0 + $0x8] sm:$0x1] %vm167_vm8, %v166_v50  }
  0xae   :  { %v159_v51 = vpop.permute.xlu0 %158  }
  0xaf   :  { %162 = vst.msk [vmem:[#allocation0 + $0x10] sm:$0x1] %vm160_vm9, %v159_v51  }
  0xb4   :  { %v177_v52 = vld [vmem:[#allocation0 + $0x8] sm:$0x1] }
  0xb5   :  { %213 = vst [vmem:[%s363_s1 + $0x1] sm:$0x1] %v177_v52 }
  0xb6   :  { %v183_v53 = vld [vmem:[#allocation0 + $0x10] sm:$0x1] }
  0xb7   :  { %214 = vst [vmem:[%s363_s1 + $0x2] sm:$0x1] %v183_v53 }

// kernel: feature_decoder_forward.8
= control target key start
LH: loop header
LB: loop body
LE: loop exit
PB: predicated region body
PF: predicated region fallthrough
CT: control target
= control target key end

     0   :  { %s775_s21 = smov 0   ;;  %s777_s22 = smov 0   ;;  %s893_s0 = inlined_call_operand.vmem [shape: bf16[64,384], index: 0, kind: input, shape index: {}]   ;;  %s894_s1 = inlined_call_operand.vmem [shape: f32[4,8,64], index: 1, kind: input, shape index: {}]   ;;  %s895_s2 = inlined_call_operand.vmem [shape: f32[8,1], index: 2, kind: input, shape index: {}]   ;;  %s896_s3 = inlined_call_operand.vmem [shape: f32[4,1,384], index: 3, kind: input, shape index: {}]   ;;  %s897_s4 = inlined_call_operand.vmem [shape: bf16[4,8,384], index: 4, kind: output, shape index: {0}]   ;;  %s898_s5 = inlined_call_operand.vmem [shape: f32[1,8,1], index: 5, kind: output, shape index: {1}]   ;;  %s899_s6 = inlined_call_operand.vmem [shape: f32[1,8,1], index: 6, kind: output, shape index: {2}]  }
   0x1   :  { %s779_s23 = smov 0  }
   0x2 LB: > { %s26_s24 = sadd.s32 1, %s732_s22  ;;  %p674_p0 = scmp.ge.s32.totalorder %s736_s23, 1  ;;  %s736_s23 = sphi %s779_s23, %s17_s23   ;;  %s732_s22 = sphi %s777_s22, %s901_s22   ;;  %s728_s21 = sphi %s775_s21, %s900_s21  }
   0x3   : > { %p27_p1 = scmp.ge.s32.totalorder %s26_s24, 4  ;;  %p257_p2 = scmp.lt.s32.totalorder %s736_s23, 5 }
   0x5   : > { %s903_s24 = smov (%p27_p1, %s26_s24), 0  ;;  %p258_p3 = pnand %p674_p0, %p257_p2 }
   0x6   : > { %p317_p4 = scmp.lt.s32.totalorder (!%p258_p3), %s728_s21, 3  ;;  %p680_p5 = scmp.ne.s32.totalorder (!%p258_p3), %s728_s21, 0 }
   0x7   : > { %261 = sbr.rel (%p258_p3) target bundleno = 308 (0x134), region = 36 }
   0xc   : > { %v363_v0 = vld [vmem:[%s893_s0 + $0x5c] sm:$0xf]  ;;  %v361_v1 = vld [vmem:[%s893_s0 + $0x50] sm:$0xf]  ;;  %v359_v2 = vld [vmem:[%s893_s0 + $0x44] sm:$0xf] }
   0xd   : > { %v387_v3 = vunpack.c.l.bf16 %v363_v0  ;;  %v384_v4 = vunpack.c.l.bf16 %v361_v1  ;;  %v362_v5 = vld [vmem:[%s893_s0 + $0x54] sm:$0xff]  ;;  %v360_v6 = vld [vmem:[%s893_s0 + $0x48] sm:$0xff]  ;;  %v358_v11 = vld [vmem:[%s893_s0 + $0x3c] sm:$0xff]  ;;  %v381_v12 = vunpack.c.l.bf16 %v359_v2  ;;  %s821_s17 = scalar_select %p317_p4, %s728_s21, 3  ;;  %v738_v31 = vmov 0  }
   0xe   : > { %v385_v7 = vunpack.c.l.bf16 %v362_v5  ;;  %v386_v8 = vunpack.c.h.bf16 %v362_v5  ;;  %v357_v9 = vld [vmem:[%s893_s0 + $0x38] sm:$0xf]  ;;  %v382_v10 = vunpack.c.l.bf16 %v360_v6  ;;  %v383_v13 = vunpack.c.h.bf16 %v360_v6  ;;  %v356_v14 = vld [vmem:[%s893_s0 + $0x30] sm:$0xff]  ;;  %v355_v15 = vld [vmem:[%s893_s0 + $0x2c] sm:$0xf]  ;;  %713 = vset.pattern.permute.xlu0 %v738_v31 }
   0xf   : > { %447 = vmatpush.msra.mxu2 %v387_v3  ;;  %v379_v16 = vunpack.c.l.bf16 %v358_v11  ;;  %v380_v17 = vunpack.c.h.bf16 %v358_v11  ;;  %v378_v18 = vunpack.c.l.bf16 %v357_v9  ;;  %v354_v19 = vld [vmem:[%s893_s0 + $0x24] sm:$0xff]  ;;  %s685_s26 = smul.u32 3, %s821_s17  ;;  %v353_v20 = vld [vmem:[%s893_s0 + $0x20] sm:$0xf]  ;;  %v376_v21 = vunpack.c.l.bf16 %v356_v14  ;;  %v352_v24 = vld [vmem:[%s893_s0 + $0x18] sm:$0xff]  ;;  %s675_s14 = sshll.u32 %s821_s17, 3 }
  0x10   : > { %407 = vmatpush.msra.mxu0 %v385_v7  ;;  %427 = vmatpush.msra.mxu1 %v386_v8  ;;  %v377_v22 = vunpack.c.h.bf16 %v356_v14  ;;  %v375_v23 = vunpack.c.l.bf16 %v355_v15  ;;  %v351_v25 = vld [vmem:[%s893_s0 + $0x14] sm:$0xf]  ;;  %v373_v26 = vunpack.c.l.bf16 %v354_v19  ;;  %v374_v27 = vunpack.c.h.bf16 %v354_v19  ;;  %v389_v28 = vld [vmem:[%s895_s2] sm:$0xff]  ;;  %v350_v30 = vld [vmem:[%s893_s0 + $0xc] sm:$0xff]  ;;  %s320_s28 = scalar_lea.vmem %s894_s1, %s675_s14  ;;  %s686_s29 = smul.u32 12, %s821_s17 }
  0x11   : > { %448 = vmatpush.msra.mxu2 %v384_v4  ;;  %s836_s7 = scalar_lea.vmem %s896_s3, %s685_s26  ;;  %v372_v29 = vunpack.c.l.bf16 %v353_v20  ;;  %v349_v32 = vld [vmem:[%s893_s0 + $0x8] sm:$0xf]  ;;  %v370_v33 = vunpack.c.l.bf16 %v352_v24  ;;  %v371_v34 = vunpack.c.h.bf16 %v352_v24  ;;  %v369_v35 = vunpack.c.l.bf16 %v351_v25  ;;  %v348_v36 = vld [vmem:[%s893_s0] sm:$0xff]  ;;  %392 = vperm.xlu0 %713, %v389_v28  }
  0x12   : > { %408 = vmatpush.msra.mxu0 %v382_v10  ;;  %428 = vmatpush.msra.mxu1 %v383_v13  ;;  %v367_v37 = vunpack.c.l.bf16 %v350_v30  ;;  %v368_v38 = vunpack.c.h.bf16 %v350_v30  ;;  %v366_v39 = vunpack.c.l.bf16 %v349_v32  ;;  %v364_v40 = vunpack.c.l.bf16 %v348_v36  ;;  %v388_v41 = vld [vmem:[%s320_s28] sm:$0xff]  ;;  %s338_s9 = scalar_lea.vmem %s897_s4, %s686_s29 }
  0x13   : > { %449 = vmatpush.msra.mxu2 %v381_v12  ;;  %vm395_vm0 = vcmask 523264   ;;  %v365_v42 = vunpack.c.h.bf16 %v348_v36 }
  0x14   : > { %409 = vmatpush.msra.mxu0 %v379_v16  ;;  %429 = vmatpush.msra.mxu1 %v380_v17 }
  0x15   : > { %450 = vmatpush.msra.mxu2 %v378_v18 }
  0x16   : > { %410 = vmatpush.msra.mxu0 %v376_v21  ;;  %430 = vmatpush.msra.mxu1 %v377_v22 }
  0x17   : > { %451 = vmatpush.msra.mxu2 %v375_v23 }
  0x18   : > { %411 = vmatpush.msra.mxu0 %v373_v26  ;;  %431 = vmatpush.msra.mxu1 %v374_v27 }
  0x19   : > { %452 = vmatpush.msra.mxu2 %v372_v29 }
  0x1a   : > { %412 = vmatpush.msra.mxu0 %v370_v33  ;;  %432 = vmatpush.msra.mxu1 %v371_v34 }
  0x1b   : > { %453 = vmatpush.msra.mxu2 %v369_v35 }
  0x1c   : > { %413 = vmatpush.msra.mxu0 %v367_v37  ;;  %433 = vmatpush.msra.mxu1 %v368_v38 }
  0x1d   : > { %454 = vmatpush.msra.mxu2 %v366_v39 }
  0x1e   : > { %679 = vmatmul.msk.f32.vlgmr.msra.gmra.mxu2 %vm395_vm0, %v388_v41  ;;  %414 = vmatpush.msra.mxu0 %v364_v40 }
  0x1f   : > { %434 = vmatpush.msra.mxu1 %v365_v42  ;;  %677 = vmatmul.msk.f32.vlgmr.msra.gmra.mxu0 %vm395_vm0, %v388_v41 }
  0x20   : > { %678 = vmatmul.msk.f32.vlgmr.msra.gmra.mxu1 %vm395_vm0, %v388_v41 }
  0x83   : > { %v393_v43 = vpop.permute.xlu0 %392 }
  0x9c   : > { %v416_v44 = vpop.f32.mrf.mxu0 }
  0x9d   : > { %v417_v45 = vadd.f32 %v416_v44, %v393_v43  ;;  %v436_v46 = vpop.f32.mrf.mxu1 }
  0x9e   : > { %v437_v47 = vadd.f32 %v436_v46, %v393_v43 }
  0x9f   : > { %v459_v48 = vmax.f32 %v417_v45, 0.0 }
  0xa0   : > { %v460_v49 = vmax.f32 %v437_v47, 0.0 }
  0xa1   : > { %v456_v50 = vpop.f32.mrf.mxu2 }
  0xa2   : > { %v462_v51 = vpack.c.bf16 %v460_v49, %v459_v48  ;;  %v457_v52 = vadd.f32 %v456_v50, %v393_v43 }
  0xa4   : > { %v461_v53 = vmax.f32 %v457_v52, 0.0  ;;  %464 = vst [vmem:[%s338_s9] sm:$0xff] %v462_v51  ;;  %469 = sbr.rel (%p680_p5) target bundleno = 172 (0xac), region = 40 }
  0xa6   : > { %v463_v54 = vpack.c.bf16 %v461_v53, %v461_v53 }
  0xa8   : > { %465 = vst [vmem:[%s338_s9 + $0x8] sm:$0xf] %v463_v54 }
  0xa9   : > { %vm470_vm1 = vcmask 7168   ;;  %v739_v55 = vmov 0.0  }
  0xaa   : > { %471 = vst.msk [vmem:[%s898_s5] sm:$0xff] %vm470_vm1, %v739_v55 }
  0xab   : > { %472 = vst.msk [vmem:[%s899_s6] sm:$0xff] %vm470_vm1, %v739_v55 }
  0xac PF: > { %v473_v56 = vld [vmem:[%s836_s7] sm:$0x7]  ;;  %vm490_vm2 = vcmask 7168  }
  0xad   : > { %v475_v57 = vperm.slane %v473_v56, 0  ;;  %v476_v58 = vperm.slane %v473_v56, 1  ;;  %v477_v59 = vperm.slane %v473_v56, 2 }
  0xaf   : > { %v481_v60 = vmul.f32 %v475_v57, %v459_v48  ;;  %v482_v61 = vmul.f32 %v476_v58, %v460_v49  ;;  %v483_v62 = vmul.f32 %v477_v59, %v461_v53 }
  0xb1   : > { %v485_v63 = vadd.f32 %v482_v61, %v481_v60  ;;  %v493_v0 = vmul.f32 %v481_v60, %v481_v60  ;;  %v494_v1 = vmul.f32 %v482_v61, %v482_v61  ;;  %v495_v3 = vmul.f32 %v483_v62, %v483_v62  ;;  %v484_v6 = vld [vmem:[%s898_s5] sm:$0xff] }
  0xb2   : > { %v492_v9 = vld [vmem:[%s899_s6] sm:$0xff] }
  0xb3   : > { %v486_v2 = vadd.f32 %v485_v63, %v483_v62  ;;  %v496_v4 = vadd.f32 %v494_v1, %v493_v0 }
  0xb5   : > { %487 = vadd.xlane.f32.xlu0 %v486_v2  ;;  %v497_v5 = vadd.f32 %v496_v4, %v495_v3 }
  0xbd   : > { %498 = vadd.xlane.f32.xlu0 %v497_v5 }
 0x128   : > { %v488_v7 = vpop.xlane.xlu0 %487 }
 0x129   : > { %v489_v8 = vadd.f32 %v488_v7, %v484_v6 }
 0x12b   : > { %491 = vst.msk [vmem:[%s898_s5] sm:$0xff] %vm490_vm2, %v489_v8 }
 0x130   : > { %v499_v10 = vpop.xlane.xlu0 %498 }
 0x131   : > { %v500_v11 = vadd.f32 %v499_v10, %v492_v9 }
 0x133   : > { %501 = vst.msk [vmem:[%s899_s6] sm:$0xff] %vm490_vm2, %v500_v11 }
 0x134 PF: > { %s17_s23 = sadd.s32 1, %s736_s23   ;;  %s900_s21 = smov %s732_s22 }
 0x135   : > { %p14_p6 = scmp.ge.s32.totalorder %s17_s23, 6   ;;  %s901_s22 = smov %s903_s24 }
 0x137   :  { %16 = sbr.rel (!%p14_p6) target bundleno = 2 (0x2), region = 100 }

// kernel: feature_decoder_forward.9
= control target key start
LH: loop header
LB: loop body
LE: loop exit
PB: predicated region body
PF: predicated region fallthrough
CT: control target
= control target key end

     0   :  { %s743_s12 = smov 0   ;;  %s745_s13 = smov 0   ;;  %s868_s0 = inlined_call_operand.vmem [shape: bf16[36,1280], index: 0, kind: input, shape index: {}]   ;;  %s869_s1 = inlined_call_operand.vmem [shape: f32[4,4,36], index: 1, kind: input, shape index: {}]   ;;  %s870_s2 = inlined_call_operand.vmem [shape: f32[4,1], index: 2, kind: input, shape index: {}]   ;;  %s871_s3 = inlined_call_operand.vmem [shape: bf16[4,4,1280], index: 3, kind: output, shape index: {}]  }
   0x1   :  { %s747_s14 = smov 0   ;;  %s749_s15 = smov 0  }
   0x2   :  { %s751_s16 = smov 0   ;;  %s753_s17 = smov 0  }
   0x3   :  { %s755_s18 = smov 0  }
   0x4 LB: > { %s22_s19 = sadd.s32 1, %s712_s16  ;;  %s25_s20 = sadd.s32 1, %s716_s17  ;;  %s720_s18 = sphi %s755_s18, %s13_s18   ;;  %s716_s17 = sphi %s753_s17, %s877_s17   ;;  %s712_s16 = sphi %s751_s16, %s876_s16   ;;  %s708_s15 = sphi %s749_s15, %s875_s15   ;;  %s704_s14 = sphi %s747_s14, %s874_s14   ;;  %s700_s13 = sphi %s745_s13, %s873_s13   ;;  %s696_s12 = sphi %s743_s12, %s872_s12  }
   0x5   : > { %p23_p0 = scmp.ge.s32.totalorder %s22_s19, 4  ;;  %p39_p1 = scmp.ne.s32.totalorder %s700_s13, %s696_s12 }
   0x6   : > { %p40_p2 = scmp.eq.s32.totalorder %s720_s18, 0  ;;  %s32_s22 = sadd.s32 1, %s700_s13 }
   0x7   : > { %s879_s19 = smov (%p23_p0, %s22_s19), 0  ;;  %s881_s20 = smov (!%p23_p0, %s25_s20), %s716_s17 }
   0x8   : > { %p41_p3 = por %p40_p2, %p39_p1  ;;  %p27_p4 = scmp.ge.s32.totalorder %s881_s20, 2 }
   0x9   : > { %p577_p6 = scmp.ge.s32.totalorder %s720_s18, 8 }
   0xa   : > { %s883_s20 = smov (%p27_p4, %s881_s20), 0 }
   0xb   : > { %s29_s21 = ssub.s32 %s716_s17, %s883_s20  ;;  %143 = sbr.rel (%p577_p6) target bundleno = 36 (0x24), region = 20 }
   0xc   : > { %p30_p5 = scmp.eq.s32.totalorder %s29_s21, 0 }
   0xe   : > { %s792_s23 = scalar_select %p30_p5, %s700_s13, %s32_s22  }
  0x10   : > { %146 = sbr.rel (!%p41_p3) target bundleno = 36 (0x24), region = 24  ;;  %s148_s24 = sand.u32 (%p41_p3), 1, %s700_s13  }
  0x11   : > { %s604_s25 = smul.u32 (%p41_p3), 20, %s716_s17 }
  0x12   : > { %s605_s26 = smul.u32 (%p41_p3), 100, %s148_s24 }
  0x13   : > { %s153_s29 = scalar_lea.vmem (%p41_p3), %s868_s0, %s604_s25 }
  0x14   : > { %v168_v0 = vld [vmem:[%s153_s29] sm:$0xff] (%p41_p3)  ;;  %v170_v1 = vld [vmem:[%s153_s29 + $0x8] sm:$0xff] (%p41_p3)  ;;  %s150_s30 = scalar_lea.vmem (%p41_p3), [#allocation2], %s605_s26  ;;  %v174_v3 = vld [vmem:[%s153_s29 + $0x30] sm:$0xff] (%p41_p3) }
  0x15   : > { %v172_v2 = vld [vmem:[%s153_s29 + $0x28] sm:$0xff]  ;;  %169 = vst [vmem:[%s150_s30] sm:$0xff] %v168_v0  ;;  %v176_v4 = vld [vmem:[%s153_s29 + $0x50] sm:$0xff]  ;;  %v178_v5 = vld [vmem:[%s153_s29 + $0x58] sm:$0xff] }
  0x16   : > { %171 = vst [vmem:[%s150_s30 + $0x8] sm:$0xff] %v170_v1  ;;  %v180_v6 = vld [vmem:[%s153_s29 + $0x78] sm:$0xff]  ;;  %v182_v7 = vld [vmem:[%s153_s29 + $0x80] sm:$0xff]  ;;  %v186_v9 = vld [vmem:[%s153_s29 + $0xa8] sm:$0xff] }
  0x17   : > { %173 = vst [vmem:[%s150_s30 + $0x14] sm:$0xff] %v172_v2  ;;  %v184_v8 = vld [vmem:[%s153_s29 + $0xa0] sm:$0xff]  ;;  %v579_v10 = vld [vmem:[%s153_s29 + $0x10] sm:$0xf]  ;;  %v581_v11 = vld [vmem:[%s153_s29 + $0x38] sm:$0xf] }
  0x18   : > { %175 = vst [vmem:[%s150_s30 + $0x1c] sm:$0xff] %v174_v3  ;;  %v583_v12 = vld [vmem:[%s153_s29 + $0x60] sm:$0xf]  ;;  %v585_v13 = vld [vmem:[%s153_s29 + $0x88] sm:$0xf] }
  0x19   : > { %177 = vst [vmem:[%s150_s30 + $0x28] sm:$0xff] %v176_v4  ;;  %v587_v14 = vld [vmem:[%s153_s29 + $0xb0] sm:$0xf] }
  0x1a   : > { %179 = vst [vmem:[%s150_s30 + $0x30] sm:$0xff] %v178_v5 }
  0x1b   : > { %181 = vst [vmem:[%s150_s30 + $0x3c] sm:$0xff] %v180_v6 }
  0x1c   : > { %183 = vst [vmem:[%s150_s30 + $0x44] sm:$0xff] %v182_v7 }
  0x1d   : > { %185 = vst [vmem:[%s150_s30 + $0x50] sm:$0xff] %v184_v8 }
  0x1e   : > { %187 = vst [vmem:[%s150_s30 + $0x58] sm:$0xff] %v186_v9 }
  0x1f   : > { %580 = vst [vmem:[%s150_s30 + $0x10] sm:$0xf] %v579_v10 }
  0x20   : > { %582 = vst [vmem:[%s150_s30 + $0x24] sm:$0xf] %v581_v11 }
  0x21   : > { %584 = vst [vmem:[%s150_s30 + $0x38] sm:$0xf] %v583_v12 }
  0x22   : > { %586 = vst [vmem:[%s150_s30 + $0x4c] sm:$0xf] %v585_v13 }
  0x23   : > { %588 = vst [vmem:[%s150_s30 + $0x60] sm:$0xf] %v587_v14 }
  0x24 PF: > { %p589_p7 = scmp.ge.s32.totalorder %s720_s18, 1  ;;  %p217_p8 = scmp.lt.s32.totalorder %s720_s18, 9 }
  0x26   : > { %p218_p9 = pnand %p589_p7, %p217_p8 }
  0x27   : > { %s224_s4 = sand.u32 (!%p218_p9), 1, %s696_s12   ;;  %p256_p10 = scmp.lt.s32.totalorder (!%p218_p9), %s704_s14, 3 }
  0x28   : > { %221 = sbr.rel (%p218_p9) target bundleno = 205 (0xcd), region = 54 }
  0x29   : > { %s606_s5 = smul.u32 (!%p218_p9), 100, %s224_s4 }
  0x2a   : > { %s260_s21 = smul.u32 (!%p218_p9), 5, %s708_s15 }
  0x2b   : > { %s807_s8 = scalar_lea.vmem (!%p218_p9), [#allocation2], %s606_s5 }
  0x2c   : > { %p263_p11 = scmp.lt.s32.totalorder (!%p218_p9), %s260_s21, 9 }
  0x2d   : > { %v722_v15 = vmov 0   ;;  %v311_v16 = vld [vmem:[%s870_s2] sm:$0xf]  ;;  %vm321_vm0 = vcmask 1043456   ;;  %v282_v17 = vld [vmem:[%s807_s8 + $0x50] sm:$0x33] }
  0x2e   : > { %665 = vset.pattern.permute.xlu0 %v722_v15  ;;  %v283_v18 = vld [vmem:[%s807_s8 + $0x58] sm:$0x33]  ;;  %s885_s14 = smov (!%p256_p10, %s704_s14), 3  ;;  %v305_v20 = vunpack.c.l.bf16 %v282_v17  ;;  %v306_v21 = vunpack.c.h.bf16 %v282_v17  ;;  %v280_v24 = vld [vmem:[%s807_s8 + $0x44] sm:$0xff]  ;;  %v277_v26 = vld [vmem:[%s807_s8 + $0x30] sm:$0xff]  ;;  %vm317_vm1 = vcmask 293888  }
  0x2f   : > { %314 = vperm.xlu0 %665, %v311_v16   ;;  %v279_v19 = vld [vmem:[%s807_s8 + $0x3c] sm:$0xff]  ;;  %v307_v22 = vunpack.c.l.bf16 %v283_v18  ;;  %v308_v23 = vunpack.c.h.bf16 %v283_v18  ;;  %v276_v25 = vld [vmem:[%s807_s8 + $0x28] sm:$0xff]  ;;  %v302_v29 = vunpack.c.l.bf16 %v280_v24  ;;  %v303_v30 = vunpack.c.h.bf16 %v280_v24  ;;  %v273_v31 = vld [vmem:[%s807_s8 + $0x14] sm:$0xff]  ;;  %s590_s9 = sshll.u32 %s885_s14, 2  ;;  %s607_s22 = smul.u32 10, %s885_s14 }
  0x30   : > { %v300_v27 = vunpack.c.l.bf16 %v279_v19  ;;  %v301_v28 = vunpack.c.h.bf16 %v279_v19  ;;  %592 = vmatpush.msk.msra.mxu0 %vm321_vm0, %v305_v20  ;;  %594 = vmatpush.msk.msra.mxu1 %vm321_vm0, %v306_v21  ;;  %v295_v32 = vunpack.c.l.bf16 %v276_v25  ;;  %v296_v33 = vunpack.c.h.bf16 %v276_v25  ;;  %v274_v34 = vld [vmem:[%s807_s8 + $0x1c] sm:$0xff]  ;;  %v271_v40 = vld [vmem:[%s807_s8 + $0x8] sm:$0xff]  ;;  %s259_s12 = scalar_lea.vmem %s869_s1, %s590_s9  ;;  %v278_v51 = vld [vmem:[%s807_s8 + $0x38] sm:$0xf]  ;;  %s887_s21 = smov (!%p263_p11, %s260_s21), 9 }
  0x31   : > { %596 = vmatpush.msk.msra.mxu2 %vm321_vm0, %v307_v22  ;;  %598 = vmatpush.msk.msra.mxu3 %vm321_vm0, %v308_v23  ;;  %v297_v35 = vunpack.c.l.bf16 %v277_v26  ;;  %v298_v36 = vunpack.c.h.bf16 %v277_v26  ;;  %v270_v37 = vld [vmem:[%s807_s8] sm:$0xff]  ;;  %v290_v38 = vunpack.c.l.bf16 %v273_v31  ;;  %v291_v39 = vunpack.c.h.bf16 %v273_v31  ;;  %v281_v49 = vld [vmem:[%s807_s8 + $0x4c] sm:$0xf]  ;;  %v272_v55 = vld [vmem:[%s807_s8 + $0x10] sm:$0xf]  ;;  %s266_s24 = sadd.s32 %s607_s22, %s887_s21 }
  0x32   : > { %349 = vmatpush.msra.mxu0 %v300_v27  ;;  %369 = vmatpush.msra.mxu1 %v301_v28  ;;  %v292_v41 = vunpack.c.l.bf16 %v274_v34  ;;  %v293_v42 = vunpack.c.h.bf16 %v274_v34  ;;  %v285_v43 = vunpack.c.l.bf16 %v270_v37  ;;  %v286_v44 = vunpack.c.h.bf16 %v270_v37  ;;  %v284_v47 = vld [vmem:[%s807_s8 + $0x60] sm:$0x3]  ;;  %v275_v53 = vld [vmem:[%s807_s8 + $0x24] sm:$0xf]  ;;  %s591_s15 = sshll.u32 %s266_s24, 1 }
  0x33   : > { %389 = vmatpush.msra.mxu2 %v302_v29  ;;  %409 = vmatpush.msra.mxu3 %v303_v30  ;;  %v287_v45 = vunpack.c.l.bf16 %v271_v40  ;;  %v288_v46 = vunpack.c.h.bf16 %v271_v40  ;;  %v310_v48 = vld [vmem:[%s259_s12] sm:$0xf]  ;;  %v309_v50 = vunpack.c.l.bf16 %v284_v47  ;;  %v304_v52 = vunpack.c.l.bf16 %v281_v49  ;;  %s268_s26 = scalar_lea.vmem %s871_s3, %s591_s15 }
  0x34   : > { %350 = vmatpush.msra.mxu0 %v295_v32  ;;  %370 = vmatpush.msra.mxu1 %v296_v33  ;;  %v299_v54 = vunpack.c.l.bf16 %v278_v51  ;;  %v294_v56 = vunpack.c.l.bf16 %v275_v53  ;;  %v289_v57 = vunpack.c.l.bf16 %v272_v55  ;;  %vm452_vm2 = vcmask 1041408  }
  0x35   : > { %390 = vmatpush.msra.mxu2 %v297_v35  ;;  %410 = vmatpush.msra.mxu3 %v298_v36  ;;  %vm456_vm3 = vcmask 1045508  }
  0x36   : > { %351 = vmatpush.msra.mxu0 %v290_v38  ;;  %371 = vmatpush.msra.mxu1 %v291_v39 }
  0x37   : > { %391 = vmatpush.msra.mxu2 %v292_v41  ;;  %411 = vmatpush.msra.mxu3 %v293_v42 }
  0x38   : > { %352 = vmatpush.msra.mxu0 %v285_v43  ;;  %372 = vmatpush.msra.mxu1 %v286_v44 }
  0x39   : > { %392 = vmatpush.msra.mxu2 %v287_v45  ;;  %412 = vmatpush.msra.mxu3 %v288_v46 }
  0x3a   : > { %593 = vmatmul.msk.f32.vlgmr.msra.gmra.mxu0 %vm317_vm1, %v310_v48  ;;  %595 = vmatmul.msk.f32.vlgmr.msra.gmra.mxu1 %vm317_vm1, %v310_v48 }
  0x3b   : > { %597 = vmatmul.msk.f32.vlgmr.msra.gmra.mxu2 %vm317_vm1, %v310_v48  ;;  %599 = vmatmul.msk.f32.vlgmr.msra.gmra.mxu3 %vm317_vm1, %v310_v48 }
  0x3c   : > { %600 = vmatpush.msk.msrb.mxu0 %vm321_vm0, %v309_v50 }
  0x3e   : > { %429 = vmatpush.msrb.mxu0 %v304_v52 }
  0x40   : > { %430 = vmatpush.msrb.mxu0 %v299_v54 }
  0x42   : > { %431 = vmatpush.msrb.mxu0 %v294_v56 }
  0x44   : > { %432 = vmatpush.msrb.mxu0 %v289_v57 }
  0x45   : > { %601 = vmatmul.msk.f32.vlgmr.msrb.gmra.mxu0 %vm317_vm1, %v310_v48 }
  0xa1   : > { %v315_v58 = vpop.permute.xlu0 %314 }
  0xb7   : > { %v354_v59 = vpop.f32.mrf.mxu0  ;;  %v374_v60 = vpop.f32.mrf.mxu1 }
  0xb8   : > { %v355_v61 = vadd.f32 %v354_v59, %v315_v58  ;;  %v375_v62 = vadd.f32 %v374_v60, %v315_v58 }
  0xba   : > { %v437_v63 = vmax.f32 %v355_v61, 0.0  ;;  %v438_v0 = vmax.f32 %v375_v62, 0.0 }
  0xbc   : > { %v442_v3 = vpack.c.bf16 %v438_v0, %v437_v63 }
  0xbe   : > { %v394_v1 = vpop.f32.mrf.mxu2  ;;  %v414_v2 = vpop.f32.mrf.mxu3  ;;  %v448_v9 = vrot.slane %v442_v3, 2 }
  0xbf   : > { %v395_v4 = vadd.f32 %v394_v1, %v315_v58  ;;  %v415_v5 = vadd.f32 %v414_v2, %v315_v58 }
  0xc0   : > { %v455_v15 = vsel %vm452_vm2, %v442_v3, %v448_v9 }
  0xc1   : > { %v439_v6 = vmax.f32 %v395_v4, 0.0  ;;  %v440_v7 = vmax.f32 %v415_v5, 0.0 }
  0xc2   : > { %v434_v8 = vpop.f32.mrf.mxu0 }
  0xc3   : > { %v443_v10 = vpack.c.bf16 %v440_v7, %v439_v6  ;;  %v435_v11 = vadd.f32 %v434_v8, %v315_v58 }
  0xc5   : > { %v449_v12 = vrot.slane %v443_v10, 4  ;;  %v450_v13 = vrot.slane %v443_v10, 6  ;;  %v441_v14 = vmax.f32 %v435_v11, 0.0 }
  0xc7   : > { %v459_v16 = vsel %vm456_vm3, %v449_v12, %v450_v13  ;;  %v444_v17 = vpack.c.bf16 %v441_v14, %v441_v14 }
  0xc8   : > { %v460_v18 = vsel %vm321_vm0, %v455_v15, %v459_v16 }
  0xc9   : > { %v451_v19 = vrot.slane %v444_v17, 2  ;;  %466 = vst [vmem:[%s268_s26] sm:$0xff] %v460_v18 }
  0xcb   : > { %v463_v20 = vsel %vm452_vm2, %v444_v17, %v451_v19 }
  0xcc   : > { %467 = vst [vmem:[%s268_s26 + $0x8] sm:$0x3] %v463_v20 }
  0xcd PF: > { %s13_s18 = sadd.s32 1, %s720_s18   ;;  %s872_s12 = smov %s700_s13 }
  0xce   : > { %p10_p12 = scmp.ge.s32.totalorder %s13_s18, 10   ;;  %s873_s13 = smov %s792_s23 }
  0xcf   : > { %s874_s14 = smov %s712_s16  ;;  %s875_s15 = smov %s716_s17 }
  0xd0   : > { %s876_s16 = smov %s879_s19  ;;  %s877_s17 = smov %s883_s20 }
  0xd1   :  { %12 = sbr.rel (!%p10_p12) target bundleno = 4 (0x4), region = 102 }

// kernel: tile.82
= control target key start
LH: loop header
LB: loop body
LE: loop exit
PB: predicated region body
PF: predicated region fallthrough
CT: control target
= control target key end

     0   :  { %s118_s0 = inlined_call_operand.vmem [shape: f32[48,48], index: 0, kind: input, shape index: {}]   ;;  %s119_s1 = inlined_call_operand.vmem [shape: f32[2,1,1,48,1,48], index: 1, kind: output, shape index: {}]  }
   0x1   :  { %v4_v0 = vld [vmem:[%s118_s0] sm:$0xff]  ;;  %v39_v1 = vld [vmem:[%s118_s0 + $0x8] sm:$0xff]  ;;  %v42_v2 = vld [vmem:[%s118_s0 + $0x10] sm:$0xff] }
   0x2   :  { %5 = vst [vmem:[%s119_s1] sm:$0xff] %v4_v0  ;;  %v45_v3 = vld [vmem:[%s118_s0 + $0x18] sm:$0xff]  ;;  %v48_v4 = vld [vmem:[%s118_s0 + $0x20] sm:$0xff]  ;;  %v51_v5 = vld [vmem:[%s118_s0 + $0x28] sm:$0xff] }
   0x3   :  { %38 = vst [vmem:[%s119_s1 + $0x30] sm:$0xff] %v4_v0 }
   0x4   :  { %40 = vst [vmem:[%s119_s1 + $0x8] sm:$0xff] %v39_v1 }
   0x5   :  { %41 = vst [vmem:[%s119_s1 + $0x38] sm:$0xff] %v39_v1 }
   0x6   :  { %43 = vst [vmem:[%s119_s1 + $0x10] sm:$0xff] %v42_v2 }
   0x7   :  { %44 = vst [vmem:[%s119_s1 + $0x40] sm:$0xff] %v42_v2 }
   0x8   :  { %46 = vst [vmem:[%s119_s1 + $0x18] sm:$0xff] %v45_v3 }
   0x9   :  { %47 = vst [vmem:[%s119_s1 + $0x48] sm:$0xff] %v45_v3 }
   0xa   :  { %49 = vst [vmem:[%s119_s1 + $0x20] sm:$0xff] %v48_v4 }
   0xb   :  { %50 = vst [vmem:[%s119_s1 + $0x50] sm:$0xff] %v48_v4 }
   0xc   :  { %52 = vst [vmem:[%s119_s1 + $0x28] sm:$0xff] %v51_v5 }
   0xd   :  { %53 = vst [vmem:[%s119_s1 + $0x58] sm:$0xff] %v51_v5 }

// kernel: tile.92
= control target key start
LH: loop header
LB: loop body
LE: loop exit
PB: predicated region body
PF: predicated region fallthrough
CT: control target
= control target key end

     0   :  { %vm36_vm0 = vcmask 1043458   ;;  %vm41_vm1 = vcmask 1045508   ;;  %vm46_vm2 = vcmask 1047558   ;;  %vm52_vm3 = vcmask 261120   ;;  %s99_s6 = smov 3  ;;  %s102_s7 = smov 12  ;;  %s1105_s0 = inlined_call_operand.vmem [shape: f32[2,1,1,48,1,48], index: 0, kind: input, shape index: {}]   ;;  %s1106_s1 = inlined_call_operand.vmem [shape: f32[1,1,4608], index: 1, kind: output, shape index: {}]  }
   0x1   :  { %v625_v0 = vld [vmem:[%s1105_s0 + $0xa] ss:$-8 sm:%s99_s6]   ;;  %s107_s12 = smov 48  ;;  %s112_s13 = smov 192  ;;  %vm19_vm4 = vcmask 1044483   ;;  %vm24_vm5 = vcmask 1046533  }
   0x2   :  { %v626_v1 = vld [vmem:[%s1105_s0 + $0x2a] ss:$-8 sm:%s102_s7]   ;;  %s117_s18 = smov 3  ;;  %s120_s19 = smov 12  ;;  %v616_v17 = vld [vmem:[%s1105_s0 + $0x36] sm:$0x80]  }
   0x3   :  { %v105_v2 = vsel %vm36_vm0, %v626_v1, %v625_v0  ;;  %v627_v3 = vld [vmem:[%s1105_s0 + $0x4a] ss:$-8 sm:%s107_s12]   ;;  %s125_s24 = smov 48  ;;  %s130_s25 = smov 192  ;;  %vm28_vm6 = vcmask 1047559   ;;  %vm48_vm7 = vcmask 130048  }
   0x4   :  { %v628_v4 = vld [vmem:[%s1105_s0 + $0x6a] ss:$-8 sm:%s112_s13]   ;;  %v110_v5 = vsel %vm41_vm1, %v627_v3, %v105_v2  ;;  %s17_s30 = smov 24  ;;  %v613_v13 = vld [vmem:[%s1105_s0 + $0x15] ss:$-8 sm:$0x7]  }
   0x5   :  { %v629_v6 = vld [vmem:[%s1105_s0 + $0x2] ss:$24 sm:%s117_s18]   ;;  %v115_v8 = vsel %vm46_vm2, %v628_v4, %v110_v5  ;;  %v614_v14 = vld [vmem:[%s1105_s0 - $0x2b] ss:$24 sm:%s17_s30]   ;;  %s22_s6 = smov 96  ;;  %s31_s9 = smov 3 }
   0x6   :  { %v630_v7 = vld [vmem:[%s1105_s0 + $0x22] ss:$-8 sm:%s120_s19]   ;;  %v20_v16 = vsel %vm19_vm4, %v614_v14, %v613_v13  ;;  %v615_v19 = vld [vmem:[%s1105_s0 + $0x55] ss:$-8 sm:%s22_s6]   ;;  %s34_s14 = smov 12  ;;  %s39_s15 = smov 48 }
   0x7   :  { %v123_v9 = vsel %vm36_vm0, %v630_v7, %v629_v6  ;;  %v631_v10 = vld [vmem:[%s1105_s0 - $0x3e] ss:$24 sm:%s125_s24]   ;;  %v617_v20 = vld [vmem:[%s1105_s0 + $0xd] ss:$-8 sm:%s31_s9]   ;;  %s709_s16 = smov 96   ;;  %v25_v21 = vsel %vm24_vm5, %v615_v19, %v20_v16  ;;  %s44_s19 = smov 192 }
   0x8   :  { %v632_v11 = vld [vmem:[%s1105_s0 + $0x62] ss:$-8 sm:%s130_s25]   ;;  %v128_v12 = vsel %vm41_vm1, %v631_v10, %v123_v9  ;;  %v618_v22 = vld [vmem:[%s1105_s0 + $0x2d] ss:$-8 sm:%s34_s14]   ;;  %v29_v23 = vsel %vm28_vm6, %v616_v17, %v25_v21  ;;  %s156_s24 = smov 3  ;;  %s159_s25 = smov 12 }
   0x9   :  { %v133_v15 = vsel %vm46_vm2, %v632_v11, %v128_v12  ;;  %v37_v24 = vsel %vm36_vm0, %v618_v22, %v617_v20  ;;  %v619_v25 = vld [vmem:[%s1105_s0 + $0x4d] ss:$-8 sm:%s39_s15]   ;;  %v633_v28 = vld [vmem:[%s1105_s0 + $0x4a] ss:$-8 sm:%s156_s24]   ;;  %s164_s30 = smov 3  ;;  %s167_s2 = smov 12 }
   0xa   :  { %v135_v18 = vsel %vm52_vm3, %v133_v15, %v115_v8  ;;  %v620_v26 = vld [vmem:[%s1105_s0 + $0x6d] ss:$-8 sm:%s44_s19]   ;;  %v42_v27 = vsel %vm41_vm1, %v619_v25, %v37_v24  ;;  %v634_v29 = vld [vmem:[%s1105_s0 + $0x6a] ss:$-8 sm:%s159_s25]   ;;  %s77_s7 = smov 3  ;;  %s80_s8 = smov 12 }
   0xb   :  { %136 = vrot.lane.b32.xlu1 %v135_v18, %s709_s16  ;;  %v47_v30 = vsel %vm46_vm2, %v620_v26, %v42_v27  ;;  %v162_v31 = vsel %vm36_vm0, %v634_v29, %v633_v28  ;;  %v635_v32 = vld [vmem:[%s1105_s0 + $0x42] ss:$24 sm:%s164_s30]   ;;  %v621_v36 = vld [vmem:[%s1105_s0 + $0x55] ss:$-8 sm:$0x7]   ;;  %vm74_vm8 = vcmask 1043459  }
   0xc   :  { %v636_v33 = vld [vmem:[%s1105_s0 + $0x62] ss:$-8 sm:%s167_s2]   ;;  %v49_v34 = vsel %vm48_vm7, %v47_v30, %v29_v23  ;;  %v622_v37 = vld [vmem:[%s1105_s0 + $0x5a] sm:$0x8]   ;;  %s710_s13 = smov 112   ;;  %s226_s19 = smov 3 }
   0xd   :  { %v170_v35 = vsel %vm36_vm0, %v636_v33, %v635_v32  ;;  %50 = vrot.lane.b32.xlu0 %v49_v34, %s710_s13  ;;  %v623_v39 = vld [vmem:[%s1105_s0 + $0x4d] ss:$-8 sm:%s77_s7]   ;;  %s229_s20 = smov 12  ;;  %v75_v41 = vsel %vm74_vm8, %v622_v37, %v621_v36  ;;  %s255_s21 = smov 3  ;;  %v640_v56 = vld [vmem:[%s1105_s0 + $0x38] sm:$0x80]  }
   0xe   :  { %v172_v38 = vsel %vm52_vm3, %v170_v35, %v162_v31  ;;  %v624_v40 = vld [vmem:[%s1105_s0 + $0x6d] ss:$-8 sm:%s80_s8]   ;;  %s258_s22 = smov 12  ;;  %v643_v43 = vld [vmem:[%s1105_s0 + $0xc] ss:$-8 sm:%s226_s19]   ;;  %s234_s26 = smov 48 }
   0xf   :  { %v83_v42 = vsel %vm36_vm0, %v624_v40, %v623_v39  ;;  %v644_v44 = vld [vmem:[%s1105_s0 + $0x2c] ss:$-8 sm:%s229_s20]   ;;  %s315_s27 = smov 24  ;;  %s239_s3 = smov 192  ;;  %v658_v2 = vld [vmem:[%s1105_s0 + $0x37] sm:$0x80]  }
  0x10   :  { %v85_v45 = vsel %vm48_vm7, %v83_v42, %v75_v41  ;;  %v647_v46 = vld [vmem:[%s1105_s0 + $0x4c] ss:$-8 sm:%s255_s21]   ;;  %v655_v48 = vld [vmem:[%s1105_s0 + $0x16] ss:$-8 sm:$0x7]   ;;  %v232_v49 = vsel %vm36_vm0, %v644_v44, %v643_v43  ;;  %s320_s10 = smov 96 }
  0x11   :  { %v648_v47 = vld [vmem:[%s1105_s0 + $0x6c] ss:$-8 sm:%s258_s22]   ;;  %v656_v51 = vld [vmem:[%s1105_s0 - $0x2a] ss:$24 sm:%s315_s27]   ;;  %s188_s15 = smov 24  ;;  %s193_s19 = smov 96 }
  0x12   :  { %v645_v50 = vld [vmem:[%s1105_s0 + $0x4c] ss:$-8 sm:%s234_s26]   ;;  %v261_v52 = vsel %vm36_vm0, %v648_v47, %v647_v46  ;;  %v637_v54 = vld [vmem:[%s1105_s0 + $0x17] ss:$-8 sm:$0x7]   ;;  %v318_v58 = vsel %vm19_vm4, %v656_v51, %v655_v48  ;;  %s711_s25 = smov 64  }
  0x13   :  { %173 = vrot.lane.b32.xlu1 %v172_v38, %s709_s16  ;;  %v646_v53 = vld [vmem:[%s1105_s0 + $0x6c] ss:$-8 sm:%s239_s3]   ;;  %v237_v57 = vsel %vm41_vm1, %v645_v50, %v232_v49  ;;  %s298_s28 = smov 3  ;;  %s712_s29 = smov 80   ;;  %v642_v4 = vld [vmem:[%s1105_s0 + $0x5c] sm:$0x8]  }
  0x14   :  { %v638_v55 = vld [vmem:[%s1105_s0 - $0x29] ss:$24 sm:%s188_s15]   ;;  %v657_v59 = vld [vmem:[%s1105_s0 + $0x56] ss:$-8 sm:%s320_s10]   ;;  %v242_v0 = vsel %vm46_vm2, %v646_v53, %v237_v57  ;;  %s270_s30 = smov 3  ;;  %s273_s2 = smov 12 }
  0x15   :  { %86 = vrot.lane.b32.xlu0 %v85_v45, %s710_s13  ;;  %v191_v60 = vsel %vm19_vm4, %v638_v55, %v637_v54  ;;  %v639_v61 = vld [vmem:[%s1105_s0 + $0x57] ss:$-8 sm:%s193_s19]   ;;  %v323_v1 = vsel %vm24_vm5, %v657_v59, %v318_v58  ;;  %s301_s3 = smov 12  ;;  %s382_s8 = smov 3  ;;  %v660_v28 = vld [vmem:[%s1105_s0 + $0x5b] sm:$0x8]  }
  0x16   :  { %v196_v62 = vsel %vm24_vm5, %v639_v61, %v191_v60  ;;  %v641_v3 = vld [vmem:[%s1105_s0 + $0x57] ss:$-8 sm:$0x7]   ;;  %v327_v5 = vsel %vm28_vm6, %v658_v2, %v323_v1  ;;  %s353_s9 = smov 3  ;;  %s356_s10 = smov 12  ;;  %vm4_vm9 = vcmask 1047556  }
  0x17   :  { %v200_v63 = vsel %vm28_vm6, %v640_v56, %v196_v62  ;;  %v649_v6 = vld [vmem:[%s1105_s0 + $0x1] ss:$24 sm:%s270_s30]   ;;  %s278_s15 = smov 48  ;;  %s385_s21 = smov 12  ;;  %v217_v10 = vsel %vm74_vm8, %v642_v4, %v641_v3  ;;  %v665_v11 = vld [vmem:[%s1105_s0 + $0x4b] ss:$-8 sm:%s382_s8]  }
  0x18   :  { %201 = vrot.lane.b32.xlu2 %v200_v63, %s712_s29  ;;  %v650_v7 = vld [vmem:[%s1105_s0 + $0x21] ss:$-8 sm:%s273_s2]   ;;  %s713_s22 = smov 32   ;;  %s366_s7 = smov 192  ;;  %vm6_vm10 = vcmask 392192   ;;  %vm147_vm11 = vcmask 1048320  }
  0x19   :  { %v653_v8 = vld [vmem:[%s1105_s0 + $0x41] ss:$24 sm:%s298_s28]   ;;  %v661_v12 = vld [vmem:[%s1105_s0 + $0xb] ss:$-8 sm:%s353_s9]   ;;  %s361_s28 = smov 48  ;;  %v276_v14 = vsel %vm36_vm0, %v650_v7, %v649_v6  ;;  %s715_s13 = smov 16  }
  0x1a   :  { %v654_v9 = vld [vmem:[%s1105_s0 + $0x61] ss:$-8 sm:%s301_s3]   ;;  %v662_v13 = vld [vmem:[%s1105_s0 + $0x2b] ss:$-8 sm:%s356_s10]   ;;  %s283_s3 = smov 192  ;;  %s714_s10 = smov 48  }
  0x1b   :  { %262 = vrot.lane.b32.xlu1 %v261_v52, %s711_s25  ;;  %v651_v15 = vld [vmem:[%s1105_s0 - $0x3f] ss:$24 sm:%s278_s15]   ;;  %v304_v16 = vsel %vm36_vm0, %v654_v9, %v653_v8  ;;  %v359_v18 = vsel %vm36_vm0, %v662_v13, %v661_v12  ;;  %v659_v27 = vld [vmem:[%s1105_s0 + $0x56] ss:$-8 sm:$0x7]   ;;  %vm203_vm12 = vcmask 1048192  }
  0x1c   :  { %v666_v17 = vld [vmem:[%s1105_s0 + $0x6b] ss:$-8 sm:%s385_s21]   ;;  %v281_v20 = vsel %vm41_vm1, %v651_v15, %v276_v14  ;;  %v652_v21 = vld [vmem:[%s1105_s0 + $0x61] ss:$-8 sm:%s283_s3]   ;;  %v344_v29 = vsel %vm74_vm8, %v660_v28, %v659_v27  ;;  %vm61_vm13 = vcmask 1048448   ;;  %vm245_vm14 = vcmask 916992  }
  0x1d   :  { %243 = vrot.lane.b32.xlu0 %v242_v0, %s711_s25  ;;  %v663_v19 = vld [vmem:[%s1105_s0 + $0x4b] ss:$-8 sm:%s361_s28]   ;;  %v388_v22 = vsel %vm36_vm0, %v666_v17, %v665_v11  ;;  %v286_v25 = vsel %vm46_vm2, %v652_v21, %v281_v20  ;;  %v2_v30 = vld [vmem:[%s1105_s0] ss:$8 sm:$0xf]   ;;  %vm330_vm15 = vcmask 654592  }
  0x1e   :  { %v364_v23 = vsel %vm41_vm1, %v663_v19, %v359_v18  ;;  %v664_v24 = vld [vmem:[%s1105_s0 + $0x6b] ss:$-8 sm:%s366_s7]   ;;  %v3_v31 = vld [vmem:[%s1105_s0] ss:$8 sm:$0xf0]   ;;  %vm289_vm0 = vcmask 785792  }
  0x1f   :  { %v369_v26 = vsel %vm46_vm2, %v664_v24, %v364_v23  ;;  %v5_v33 = vsel %vm4_vm9, %v3_v31, %v2_v30  ;;  %v612_v36 = vld [vmem:[%s1105_s0 + $0x40] ss:$8 sm:$0xf]   ;;  %vm372_vm1 = vcmask 523392  }
  0x20   :  { %218 = vrot.lane.b32.xlu2 %v217_v10, %s712_s29  ;;  %7 = vst.msk [vmem:[#allocation0] ss:$24 sm:$0xf] %vm6_vm10, %v5_v33  }
  0x21   :  { %8 = vst.msk [vmem:[#allocation0] ss:$24 sm:$0xf0] %vm6_vm10, %v5_v33  }
  0x22   :  { %13 = vst.msk [vmem:[#allocation0 + $0xc0] ss:$24 sm:$0xf] %vm6_vm10, %v612_v36  }
  0x23   :  { %328 = vrot.lane.b32.xlu1 %v327_v5, %s713_s22 }
  0x25   :  { %305 = vrot.lane.b32.xlu0 %v304_v16, %s714_s10 }
  0x28   :  { %287 = vrot.lane.b32.xlu2 %v286_v25, %s714_s10 }
  0x2b   :  { %389 = vrot.lane.b32.xlu1 %v388_v22, %s715_s13 }
  0x2d   :  { %370 = vrot.lane.b32.xlu0 %v369_v26, %s715_s13 }
  0x30   :  { %345 = vrot.lane.b32.xlu2 %v344_v29, %s713_s22 }
  0x72   :  { %v202_v32 = vpop.permute.xlu2 %201  }
  0x7a   :  { %v219_v35 = vpop.permute.xlu2 %218  }
  0x7d   :  { %v137_v34 = vpop.permute.xlu1 %136  }
  0x7e   :  { %148 = vst.msk [vmem:[#allocation0] ss:$72 sm:$0x3] %vm147_vm11, %v137_v34  }
  0x7f   :  { %150 = vst.msk [vmem:[#allocation0 + $0x60] ss:$-24 sm:$0xc] %vm147_vm11, %v137_v34   ;;  %v51_v37 = vpop.permute.xlu0 %50  }
  0x80   :  { %152 = vst.msk [vmem:[#allocation0 - $0xc0] ss:$72 sm:$0x30] %vm147_vm11, %v137_v34  }
  0x81   :  { %154 = vst.msk [vmem:[#allocation0 + $0x120] ss:$-24 sm:$0xc0] %vm147_vm11, %v137_v34  }
  0x82   :  { %54 = vst.msk [vmem:[#allocation0 + $0x40] ss:$-24 sm:$0x7] %vm52_vm3, %v51_v37   ;;  %v288_v41 = vpop.permute.xlu2 %287  }
  0x83   :  { %56 = vst.msk [vmem:[#allocation0 - $0x80] ss:$72 sm:$0x18] %vm52_vm3, %v51_v37  }
  0x84   :  { %58 = vst.msk [vmem:[#allocation0 + $0x100] ss:$-24 sm:$0x60] %vm52_vm3, %v51_v37  }
  0x85   :  { %v950_v38 = vpop.permute.xlu1 %173   ;;  %60 = vst.msk [vmem:[#allocation0 + $0xb1] sm:$0x80] %vm52_vm3, %v51_v37  }
  0x86   :  { %205 = vst.msk [vmem:[#allocation0 + $0x40] ss:$-24 sm:$0x7] %vm203_vm12, %v202_v32  }
  0x87   :  { %207 = vst.msk [vmem:[#allocation0 - $0x80] ss:$72 sm:$0x18] %vm203_vm12, %v202_v32   ;;  %v87_v39 = vpop.permute.xlu0 %86  }
  0x88   :  { %209 = vst.msk [vmem:[#allocation0 + $0x100] ss:$-24 sm:$0x60] %vm203_vm12, %v202_v32  }
  0x89   :  { %211 = vst.msk [vmem:[#allocation0 + $0xb1] sm:$0x80] %vm203_vm12, %v202_v32  }
  0x8a   :  { %95 = vst.msk [vmem:[#allocation0 + $0xe0] ss:$-24 sm:$0x3] %vm61_vm13, %v87_v39   ;;  %v346_v53 = vpop.permute.xlu2 %345  }
  0x8b   :  { %97 = vst.msk [vmem:[#allocation0 + $0x140] ss:$-24 sm:$0xc] %vm61_vm13, %v87_v39  }
  0x8c   :  { %63 = vst.msk [vmem:[#allocation0 + $0x20] ss:$-24 sm:$0x3] %vm61_vm13, %v51_v37  }
  0x8d   :  { %v263_v40 = vpop.permute.xlu1 %262   ;;  %65 = vst.msk [vmem:[#allocation0 + $0x80] ss:$-24 sm:$0xc] %vm61_vm13, %v51_v37  }
  0x8e   :  { %67 = vst.msk [vmem:[#allocation0 + $0xe0] ss:$-24 sm:$0x30] %vm61_vm13, %v51_v37  }
  0x8f   :  { %69 = vst.msk [vmem:[#allocation0 + $0x140] ss:$-24 sm:$0xc0] %vm61_vm13, %v51_v37   ;;  %v244_v42 = vpop.permute.xlu0 %243  }
  0x90   :  { %90 = vst.msk [vmem:[#allocation0 + $0x100] ss:$-24 sm:$0x7] %vm52_vm3, %v87_v39  }
  0x91   :  { %92 = vst.msk [vmem:[#allocation0 + $0x115] sm:$0x8] %vm52_vm3, %v87_v39  }
  0x92   :  { %177 = vst.msk [vmem:[#allocation0 + $0xe0] ss:$-24 sm:$0x3] %vm48_vm7, %v950_v38  }
  0x93   :  { %179 = vst.msk [vmem:[#allocation0 + $0x140] ss:$-24 sm:$0xc] %vm48_vm7, %v950_v38  }
  0x94   :  { %266 = vst.msk [vmem:[#allocation0 + $0xe0] ss:$-24 sm:$0x3] %vm245_vm14, %v263_v40  }
  0x95   :  { %v329_v43 = vpop.permute.xlu1 %328   ;;  %268 = vst.msk [vmem:[#allocation0 + $0x140] ss:$-24 sm:$0xc] %vm245_vm14, %v263_v40  }
  0x96   :  { %140 = vst.msk [vmem:[#allocation0 + $0x20] ss:$-24 sm:$0x3] %vm48_vm7, %v137_v34  }
  0x97   :  { %142 = vst.msk [vmem:[#allocation0 + $0x80] ss:$-24 sm:$0xc] %vm48_vm7, %v137_v34   ;;  %v306_v44 = vpop.permute.xlu0 %305  }
  0x98   :  { %144 = vst.msk [vmem:[#allocation0 + $0xe0] ss:$-24 sm:$0x30] %vm48_vm7, %v137_v34  }
  0x99   :  { %146 = vst.msk [vmem:[#allocation0 + $0x140] ss:$-24 sm:$0xc0] %vm48_vm7, %v137_v34  }
  0x9a   :  { %222 = vst.msk [vmem:[#allocation0 + $0x100] ss:$-24 sm:$0x7] %vm203_vm12, %v219_v35  }
  0x9b   :  { %224 = vst.msk [vmem:[#allocation0 + $0x115] sm:$0x8] %vm203_vm12, %v219_v35  }
  0x9c   :  { %247 = vst.msk [vmem:[#allocation0 + $0x20] ss:$-24 sm:$0x3] %vm245_vm14, %v244_v42  }
  0x9d   :  { %249 = vst.msk [vmem:[#allocation0 + $0x80] ss:$-24 sm:$0xc] %vm245_vm14, %v244_v42   ;;  %v390_v48 = vpop.permute.xlu1 %389  }
  0x9e   :  { %251 = vst.msk [vmem:[#allocation0 + $0xe0] ss:$-24 sm:$0x30] %vm245_vm14, %v244_v42  }
  0x9f   :  { %253 = vst.msk [vmem:[#allocation0 + $0x140] ss:$-24 sm:$0xc0] %vm245_vm14, %v244_v42   ;;  %v371_v56 = vpop.permute.xlu0 %370  }
  0xa0   :  { %332 = vst.msk [vmem:[#allocation0 + $0x40] ss:$-24 sm:$0x7] %vm330_vm15, %v329_v43  }
  0xa1   :  { %334 = vst.msk [vmem:[#allocation0 - $0x80] ss:$72 sm:$0x18] %vm330_vm15, %v329_v43  }
  0xa2   :  { %336 = vst.msk [vmem:[#allocation0 + $0x100] ss:$-24 sm:$0x60] %vm330_vm15, %v329_v43  }
  0xa3   :  { %338 = vst.msk [vmem:[#allocation0 + $0xb1] sm:$0x80] %vm330_vm15, %v329_v43  }
  0xa4   :  { %290 = vst.msk [vmem:[#allocation0] ss:$72 sm:$0x3] %vm289_vm0, %v288_v41  }
  0xa5   :  { %292 = vst.msk [vmem:[#allocation0 + $0x60] ss:$-24 sm:$0xc] %vm289_vm0, %v288_v41  }
  0xa6   :  { %294 = vst.msk [vmem:[#allocation0 - $0xc0] ss:$72 sm:$0x30] %vm289_vm0, %v288_v41  }
  0xa7   :  { %v409_v45 = vld [vmem:[#allocation0 + $0x10] sm:$0x1]  ;;  %v427_v46 = vld [vmem:[#allocation0 + $0x28] sm:$0x1]  ;;  %v445_v47 = vld [vmem:[#allocation0 + $0x40] sm:$0x1] }
  0xa8   :  { %668 = vst [vmem:[%s1106_s1 + $0x2] sm:$0x1] %v409_v45  ;;  %v463_v49 = vld [vmem:[#allocation0 + $0x58] sm:$0x1]  ;;  %v517_v52 = vld [vmem:[#allocation0 + $0xa0] sm:$0x1] }
  0xa9   :  { %671 = vst [vmem:[%s1106_s1 + $0x5] sm:$0x1] %v427_v46  ;;  %v481_v50 = vld [vmem:[#allocation0 + $0x70] sm:$0x1]  ;;  %v499_v51 = vld [vmem:[#allocation0 + $0x88] sm:$0x1] }
  0xaa   :  { %674 = vst [vmem:[%s1106_s1 + $0x8] sm:$0x1] %v445_v47  ;;  %v535_v54 = vld [vmem:[#allocation0 + $0xb8] sm:$0x1] }
  0xab   :  { %677 = vst [vmem:[%s1106_s1 + $0xb] sm:$0x1] %v463_v49  ;;  %v398_v55 = vld [vmem:[#allocation0] sm:$0x1]  ;;  %v451_v59 = vld [vmem:[#allocation0 + $0x48] sm:$0x1] }
  0xac   :  { %680 = vst [vmem:[%s1106_s1 + $0xe] sm:$0x1] %v481_v50  ;;  %v415_v57 = vld [vmem:[#allocation0 + $0x18] sm:$0x1]  ;;  %v433_v58 = vld [vmem:[#allocation0 + $0x30] sm:$0x1] }
  0xad   :  { %683 = vst [vmem:[%s1106_s1 + $0x11] sm:$0x1] %v499_v51  ;;  %v469_v60 = vld [vmem:[#allocation0 + $0x60] sm:$0x1]  ;;  %v523_v61 = vld [vmem:[#allocation0 + $0xa8] sm:$0x1] }
  0xae   :  { %686 = vst [vmem:[%s1106_s1 + $0x14] sm:$0x1] %v517_v52 }
  0xaf   :  { %689 = vst [vmem:[%s1106_s1 + $0x17] sm:$0x1] %v535_v54 }
  0xb0   :  { %296 = vst.msk [vmem:[#allocation0 + $0x120] ss:$-24 sm:$0xc0] %vm289_vm0, %v288_v41  }
  0xb1   :  { %401 = vst [vmem:[%s1106_s1] sm:$0x1] %v398_v55 }
  0xb2   :  { %669 = vst [vmem:[%s1106_s1 + $0x3] sm:$0x1] %v415_v57 }
  0xb3   :  { %672 = vst [vmem:[%s1106_s1 + $0x6] sm:$0x1] %v433_v58 }
  0xb4   :  { %675 = vst [vmem:[%s1106_s1 + $0x9] sm:$0x1] %v451_v59 }
  0xb5   :  { %678 = vst [vmem:[%s1106_s1 + $0xc] sm:$0x1] %v469_v60 }
  0xb6   :  { %687 = vst [vmem:[%s1106_s1 + $0x15] sm:$0x1] %v523_v61 }
  0xb7   :  { %v487_v62 = vld [vmem:[#allocation0 + $0x78] sm:$0x1]  ;;  %v505_v63 = vld [vmem:[#allocation0 + $0x90] sm:$0x1]  ;;  %351 = vst.msk [vmem:[#allocation0 + $0x115] sm:$0x8] %vm330_vm15, %v346_v53  }
  0xb8   :  { %681 = vst [vmem:[%s1106_s1 + $0xf] sm:$0x1] %v487_v62 }
  0xb9   :  { %684 = vst [vmem:[%s1106_s1 + $0x12] sm:$0x1] %v505_v63 }
  0xba   :  { %182 = vst.msk [vmem:[#allocation0 + $0xc0] ss:$72 sm:$0x3] %vm147_vm11, %v950_v38  }
  0xbb   :  { %184 = vst.msk [vmem:[#allocation0 + $0x120] ss:$-24 sm:$0xc] %vm147_vm11, %v950_v38  }
  0xbc   :  { %309 = vst.msk [vmem:[#allocation0 + $0xc0] ss:$72 sm:$0x3] %vm289_vm0, %v306_v44  }
  0xbd   :  { %311 = vst.msk [vmem:[#allocation0 + $0x120] ss:$-24 sm:$0xc] %vm289_vm0, %v306_v44  }
  0xbe   :  { %393 = vst.msk [vmem:[#allocation0 + $0xe0] ss:$-24 sm:$0x3] %vm372_vm1, %v390_v48   ;;  %v607_v0 = vld [vmem:[#allocation0 + $0x118] sm:$0x1] }
  0xbf   :  { %395 = vst.msk [vmem:[#allocation0 + $0x140] ss:$-24 sm:$0xc] %vm372_vm1, %v390_v48  }
  0xc0   :  { %349 = vst.msk [vmem:[#allocation0 + $0x100] ss:$-24 sm:$0x7] %vm330_vm15, %v346_v53  }
  0xc1   :  { %701 = vst [vmem:[%s1106_s1 + $0x23] sm:$0x1] %v607_v0 }
  0xc2   :  { %374 = vst.msk [vmem:[#allocation0 + $0x20] ss:$-24 sm:$0x3] %vm372_vm1, %v371_v56  }
  0xc3   :  { %v541_v1 = vld [vmem:[#allocation0 + $0xc0] sm:$0x1]  ;;  %v595_v2 = vld [vmem:[#allocation0 + $0x108] sm:$0x1] }
  0xc4   :  { %690 = vst [vmem:[%s1106_s1 + $0x18] sm:$0x1] %v541_v1  ;;  %v559_v3 = vld [vmem:[#allocation0 + $0xd8] sm:$0x1]  ;;  %v577_v4 = vld [vmem:[#allocation0 + $0xf0] sm:$0x1] }
  0xc5   :  { %693 = vst [vmem:[%s1106_s1 + $0x1b] sm:$0x1] %v559_v3  ;;  %v547_v5 = vld [vmem:[#allocation0 + $0xc8] sm:$0x1]  ;;  %v565_v6 = vld [vmem:[#allocation0 + $0xe0] sm:$0x1] }
  0xc6   :  { %696 = vst [vmem:[%s1106_s1 + $0x1e] sm:$0x1] %v577_v4  ;;  %v583_v7 = vld [vmem:[#allocation0 + $0xf8] sm:$0x1]  ;;  %v601_v8 = vld [vmem:[#allocation0 + $0x110] sm:$0x1] }
  0xc7   :  { %699 = vst [vmem:[%s1106_s1 + $0x21] sm:$0x1] %v595_v2  ;;  %v553_v9 = vld [vmem:[#allocation0 + $0xd0] sm:$0x1]  ;;  %v571_v10 = vld [vmem:[#allocation0 + $0xe8] sm:$0x1] }
  0xc8   :  { %691 = vst [vmem:[%s1106_s1 + $0x19] sm:$0x1] %v547_v5  ;;  %v589_v11 = vld [vmem:[#allocation0 + $0x100] sm:$0x1] }
  0xc9   :  { %694 = vst [vmem:[%s1106_s1 + $0x1c] sm:$0x1] %v565_v6  ;;  %v403_v12 = vld [vmem:[#allocation0 + $0x8] sm:$0x1]  ;;  %v421_v13 = vld [vmem:[#allocation0 + $0x20] sm:$0x1] }
  0xca   :  { %697 = vst [vmem:[%s1106_s1 + $0x1f] sm:$0x1] %v583_v7 }
  0xcb   :  { %700 = vst [vmem:[%s1106_s1 + $0x22] sm:$0x1] %v601_v8 }
  0xcc   :  { %692 = vst [vmem:[%s1106_s1 + $0x1a] sm:$0x1] %v553_v9 }
  0xcd   :  { %695 = vst [vmem:[%s1106_s1 + $0x1d] sm:$0x1] %v571_v10 }
  0xce   :  { %698 = vst [vmem:[%s1106_s1 + $0x20] sm:$0x1] %v589_v11 }
  0xcf   :  { %376 = vst.msk [vmem:[#allocation0 + $0x80] ss:$-24 sm:$0xc] %vm372_vm1, %v371_v56  }
  0xd0   :  { %378 = vst.msk [vmem:[#allocation0 + $0xe0] ss:$-24 sm:$0x30] %vm372_vm1, %v371_v56  }
  0xd1   :  { %380 = vst.msk [vmem:[#allocation0 + $0x140] ss:$-24 sm:$0xc0] %vm372_vm1, %v371_v56  }
  0xd2   :  { %667 = vst [vmem:[%s1106_s1 + $0x1] sm:$0x1] %v403_v12 }
  0xd3   :  { %670 = vst [vmem:[%s1106_s1 + $0x4] sm:$0x1] %v421_v13 }
  0xd6   :  { %v439_v14 = vld [vmem:[#allocation0 + $0x38] sm:$0x1]  ;;  %v457_v15 = vld [vmem:[#allocation0 + $0x50] sm:$0x1] }
  0xd7   :  { %673 = vst [vmem:[%s1106_s1 + $0x7] sm:$0x1] %v439_v14  ;;  %v475_v16 = vld [vmem:[#allocation0 + $0x68] sm:$0x1]  ;;  %v493_v17 = vld [vmem:[#allocation0 + $0x80] sm:$0x1] }
  0xd8   :  { %676 = vst [vmem:[%s1106_s1 + $0xa] sm:$0x1] %v457_v15  ;;  %v511_v18 = vld [vmem:[#allocation0 + $0x98] sm:$0x1]  ;;  %v529_v19 = vld [vmem:[#allocation0 + $0xb0] sm:$0x1] }
  0xd9   :  { %679 = vst [vmem:[%s1106_s1 + $0xd] sm:$0x1] %v475_v16 }
  0xda   :  { %682 = vst [vmem:[%s1106_s1 + $0x10] sm:$0x1] %v493_v17 }
  0xdb   :  { %685 = vst [vmem:[%s1106_s1 + $0x13] sm:$0x1] %v511_v18 }
  0xdc   :  { %688 = vst [vmem:[%s1106_s1 + $0x16] sm:$0x1] %v529_v19 }

// kernel: feature_decoder_forward.10
= control target key start
LH: loop header
LB: loop body
LE: loop exit
PB: predicated region body
PF: predicated region fallthrough
CT: control target
= control target key end

     0   :  { %s1055_s21 = smov 0   ;;  %s1057_s22 = smov 0   ;;  %s1225_s0 = inlined_call_operand.vmem [shape: bf16[16,5120], index: 0, kind: input, shape index: {}]   ;;  %s1226_s1 = inlined_call_operand.vmem [shape: f32[4,2,16], index: 1, kind: input, shape index: {}]   ;;  %s1227_s2 = inlined_call_operand.vmem [shape: f32[2,1], index: 2, kind: input, shape index: {}]   ;;  %s1228_s3 = inlined_call_operand.vmem [shape: f32[4,1,5120], index: 3, kind: input, shape index: {}]   ;;  %s1229_s4 = inlined_call_operand.vmem [shape: bf16[4,2,5120], index: 4, kind: output, shape index: {0}]   ;;  %s1230_s5 = inlined_call_operand.vmem [shape: f32[5,2,1], index: 5, kind: output, shape index: {1}]   ;;  %s1231_s6 = inlined_call_operand.vmem [shape: f32[5,2,1], index: 6, kind: output, shape index: {2}]  }
   0x1   :  { %s1059_s23 = smov 0   ;;  %s1061_s24 = smov 0  }
   0x2   :  { %s1063_s25 = smov 0   ;;  %s1065_s26 = smov 0  }
   0x3   :  { %s1067_s27 = smov 0  }
   0x4 LB: > { %s26_s28 = sadd.s32 1, %s1008_s25  ;;  %s29_s29 = sadd.s32 1, %s1012_s26  ;;  %s1016_s27 = sphi %s1067_s27, %s17_s27   ;;  %s1012_s26 = sphi %s1065_s26, %s1237_s26   ;;  %s1008_s25 = sphi %s1063_s25, %s1236_s25   ;;  %s1004_s24 = sphi %s1061_s24, %s1235_s24   ;;  %s1000_s23 = sphi %s1059_s23, %s1234_s23   ;;  %s996_s22 = sphi %s1057_s22, %s1233_s22   ;;  %s992_s21 = sphi %s1055_s21, %s1232_s21  }
   0x5   : > { %p27_p0 = scmp.ge.s32.totalorder %s26_s28, 4  ;;  %p43_p1 = scmp.ne.s32.totalorder %s996_s22, %s992_s21 }
   0x6   : > { %p44_p2 = scmp.eq.s32.totalorder %s1016_s27, 0  ;;  %s36_s7 = sadd.s32 1, %s996_s22 }
   0x7   : > { %s1239_s28 = smov (%p27_p0, %s26_s28), 0  ;;  %s1241_s29 = smov (!%p27_p0, %s29_s29), %s1012_s26 }
   0x8   : > { %p45_p3 = por %p44_p2, %p43_p1  ;;  %p31_p4 = scmp.ge.s32.totalorder %s1241_s29, 5 }
   0x9   : > { %p879_p6 = scmp.ge.s32.totalorder %s1016_s27, 20 }
   0xa   : > { %s1243_s29 = smov (%p31_p4, %s1241_s29), 0 }
   0xb   : > { %s33_s30 = ssub.s32 %s1012_s26, %s1243_s29  ;;  %227 = sbr.rel (%p879_p6) target bundleno = 28 (0x1c), region = 20 }
   0xc   : > { %p34_p5 = scmp.eq.s32.totalorder %s33_s30, 0 }
   0xe   : > { %s1104_s8 = scalar_select %p34_p5, %s996_s22, %s36_s7  }
  0x10   : > { %230 = sbr.rel (!%p45_p3) target bundleno = 28 (0x1c), region = 24  ;;  %s232_s9 = sand.u32 (%p45_p3), 1, %s996_s22  }
  0x11   : > { %s901_s10 = sshll.u32 (%p45_p3), %s1012_s26, 5  ;;  %s880_s11 = sshll.u32 (%p45_p3), %s232_s9, 6 }
  0x12   : > { %s237_s14 = scalar_lea.vmem (%p45_p3), %s1225_s0, %s901_s10  ;;  %s234_s15 = scalar_lea.vmem (%p45_p3), [#allocation2], %s880_s11 }
  0x13   : > { %v250_v0 = vld [vmem:[%s237_s14] sm:$0xff] (%p45_p3)  ;;  %v252_v1 = vld [vmem:[%s237_s14 + $0x8] sm:$0xff] (%p45_p3)  ;;  %v254_v2 = vld [vmem:[%s237_s14 + $0x10] sm:$0xff] (%p45_p3) }
  0x14   : > { %251 = vst [vmem:[%s234_s15] sm:$0xff] (%p45_p3), %v250_v0  ;;  %v256_v3 = vld [vmem:[%s237_s14 + $0x18] sm:$0xff] (%p45_p3)  ;;  %v258_v4 = vld [vmem:[%s237_s14 + $0xa0] sm:$0xff] (%p45_p3)  ;;  %v260_v5 = vld [vmem:[%s237_s14 + $0xa8] sm:$0xff] (%p45_p3) }
  0x15   : > { %253 = vst [vmem:[%s234_s15 + $0x8] sm:$0xff] %v252_v1  ;;  %v262_v6 = vld [vmem:[%s237_s14 + $0xb0] sm:$0xff]  ;;  %v264_v7 = vld [vmem:[%s237_s14 + $0xb8] sm:$0xff] }
  0x16   : > { %255 = vst [vmem:[%s234_s15 + $0x10] sm:$0xff] %v254_v2 }
  0x17   : > { %257 = vst [vmem:[%s234_s15 + $0x18] sm:$0xff] %v256_v3 }
  0x18   : > { %259 = vst [vmem:[%s234_s15 + $0x20] sm:$0xff] %v258_v4 }
  0x19   : > { %261 = vst [vmem:[%s234_s15 + $0x28] sm:$0xff] %v260_v5 }
  0x1a   : > { %263 = vst [vmem:[%s234_s15 + $0x30] sm:$0xff] %v262_v6 }
  0x1b   : > { %265 = vst [vmem:[%s234_s15 + $0x38] sm:$0xff] %v264_v7 }
  0x1c PF: > { %p883_p7 = scmp.ge.s32.totalorder %s1016_s27, 1  ;;  %p289_p8 = scmp.lt.s32.totalorder %s1016_s27, 21 }
  0x1e   : > { %p290_p9 = pnand %p883_p7, %p289_p8 }
  0x1f   : > { %s296_s16 = sand.u32 (!%p290_p9), 1, %s992_s21   ;;  %p349_p10 = scmp.lt.s32.totalorder (!%p290_p9), %s1000_s23, 3 }
  0x20   : > { %293 = sbr.rel (%p290_p9) target bundleno = 345 (0x159), region = 55  ;;  %s884_s19 = sshll.u32 (!%p290_p9), %s296_s16, 6 }
  0x21   : > { %p371_p11 = scmp.lt.s32.totalorder (!%p290_p9), %s1004_s24, 4  ;;  %s1120_s20 = scalar_lea.vmem (!%p290_p9), [#allocation2], %s884_s19 }
  0x22   : > { %s886_s19 = sshll.u32 (!%p290_p9), %s1004_s24, 3  ;;  %p898_p13 = scmp.ne.s32.totalorder (!%p290_p9), %s1000_s23, 0 }
  0x23   : > { %p356_p12 = scmp.lt.s32.totalorder (!%p290_p9), %s886_s19, 39 }
  0x25   : > { %v404_v8 = vld [vmem:[%s1227_s2] sm:$0x3]  ;;  %v1018_v9 = vmov 0   ;;  %v384_v10 = vld [vmem:[%s1120_s20 + $0x28] sm:$0xff]  ;;  %s1125_s21 = scalar_select %p349_p10, %s1000_s23, 3  ;;  %v386_v12 = vld [vmem:[%s1120_s20 + $0x38] sm:$0xff] }
  0x26   : > { %961 = vset.pattern.permute.xlu0 %v1018_v9  ;;  %v380_v11 = vld [vmem:[%s1120_s20 + $0x8] sm:$0xff]  ;;  %v397_v13 = vunpack.c.l.bf16 %v384_v10  ;;  %v398_v14 = vunpack.c.h.bf16 %v384_v10  ;;  %s372_s30 = scalar_select %p371_p11, %s1004_s24, 4  ;;  %v383_v17 = vld [vmem:[%s1120_s20 + $0x20] sm:$0xff]  ;;  %vm410_vm0 = vcmask 130048   ;;  %v401_v21 = vunpack.c.l.bf16 %v386_v12  ;;  %v382_v23 = vld [vmem:[%s1120_s20 + $0x18] sm:$0xff] }
  0x27   : > { %407 = vperm.xlu0 %961, %v404_v8   ;;  %v389_v15 = vunpack.c.l.bf16 %v380_v11  ;;  %v390_v16 = vunpack.c.h.bf16 %v380_v11  ;;  %v379_v18 = vld [vmem:[%s1120_s20] sm:$0xff]  ;;  %s885_s7 = sshll.u32 %s1125_s21, 1  ;;  %v395_v19 = vunpack.c.l.bf16 %v383_v17  ;;  %v396_v20 = vunpack.c.h.bf16 %v383_v17  ;;  %v385_v27 = vld [vmem:[%s1120_s20 + $0x30] sm:$0xff]  ;;  %s1245_s19 = smov (!%p356_p12, %s886_s19), 39 }
  0x28   : > { %468 = vmatpush.msra.mxu2 %v397_v13  ;;  %488 = vmatpush.msra.mxu3 %v398_v14  ;;  %s352_s11 = scalar_lea.vmem %s1226_s1, %s885_s7  ;;  %v402_v22 = vunpack.c.h.bf16 %v386_v12  ;;  %s888_s12 = sshll.u32 %s372_s30, 1  ;;  %v387_v25 = vunpack.c.l.bf16 %v379_v18  ;;  %v388_v26 = vunpack.c.h.bf16 %v379_v18  ;;  %v393_v28 = vunpack.c.l.bf16 %v382_v23  ;;  %v381_v30 = vld [vmem:[%s1120_s20 + $0x10] sm:$0xff] }
  0x29   : > { %v403_v24 = vld [vmem:[%s352_s11] sm:$0x3]  ;;  %s1139_s15 = scalar_lea.vmem %s1230_s5, %s888_s12  ;;  %s1144_s18 = scalar_lea.vmem %s1231_s6, %s888_s12  ;;  %428 = vmatpush.msra.mxu0 %v395_v19  ;;  %448 = vmatpush.msra.mxu1 %v396_v20  ;;  %v394_v29 = vunpack.c.h.bf16 %v382_v23  ;;  %v399_v31 = vunpack.c.l.bf16 %v385_v27  ;;  %v400_v32 = vunpack.c.h.bf16 %v385_v27  ;;  %v391_v33 = vunpack.c.l.bf16 %v381_v30 }
  0x2a   : > { %469 = vmatpush.msra.mxu2 %v389_v15  ;;  %489 = vmatpush.msra.mxu3 %v390_v16  ;;  %v392_v34 = vunpack.c.h.bf16 %v381_v30  ;;  %s902_s20 = smul.u32 40, %s1125_s21  ;;  %vm601_vm1 = vcmask 1042434   ;;  %vm607_vm2 = vcmask 1044484   ;;  %vm597_vm3 = vcmask 1040384  }
  0x2b   : > { %892 = vmatmul.msk.f32.vlgmr.msra.gmra.mxu2 %vm410_vm0, %v403_v24  ;;  %893 = vmatmul.msk.f32.vlgmr.msra.gmra.mxu3 %vm410_vm0, %v403_v24  ;;  %vm605_vm4 = vcmask 1041408   ;;  %vm611_vm5 = vcmask 1046534   ;;  %vm615_vm6 = vcmask 1045508   ;;  %vm617_vm7 = vcmask 1043456  }
  0x2c   : > { %548 = vmatpush.msrb.mxu2 %v401_v21  ;;  %568 = vmatpush.msrb.mxu3 %v402_v22  ;;  %s1158_s30 = sadd.s32 %s902_s20, %s1245_s19 }
  0x2d   : > { %429 = vmatpush.msra.mxu0 %v387_v25  ;;  %449 = vmatpush.msra.mxu1 %v388_v26  ;;  %s360_s10 = scalar_lea.vmem %s1228_s3, %s1158_s30  ;;  %s369_s11 = scalar_lea.vmem %s1229_s4, %s1158_s30 }
  0x2e   : > { %890 = vmatmul.msk.f32.vlgmr.msra.gmra.mxu0 %vm410_vm0, %v403_v24  ;;  %891 = vmatmul.msk.f32.vlgmr.msra.gmra.mxu1 %vm410_vm0, %v403_v24 }
  0x2f   : > { %549 = vmatpush.msrb.mxu2 %v393_v28  ;;  %569 = vmatpush.msrb.mxu3 %v394_v29 }
  0x30   : > { %508 = vmatpush.msrb.mxu0 %v399_v31  ;;  %528 = vmatpush.msrb.mxu1 %v400_v32 }
  0x32   : > { %509 = vmatpush.msrb.mxu0 %v391_v33  ;;  %529 = vmatpush.msrb.mxu1 %v392_v34 }
  0x33   : > { %896 = vmatmul.msk.f32.vlgmr.msrb.gmra.mxu2 %vm410_vm0, %v403_v24  ;;  %897 = vmatmul.msk.f32.vlgmr.msrb.gmra.mxu3 %vm410_vm0, %v403_v24 }
  0x36   : > { %894 = vmatmul.msk.f32.vlgmr.msrb.gmra.mxu0 %vm410_vm0, %v403_v24  ;;  %895 = vmatmul.msk.f32.vlgmr.msrb.gmra.mxu1 %vm410_vm0, %v403_v24 }
  0x99   : > { %v408_v37 = vpop.permute.xlu0 %407 }
  0xab   : > { %v431_v35 = vpop.f32.mrf.mxu0  ;;  %v451_v36 = vpop.f32.mrf.mxu1 }
  0xac   : > { %v432_v40 = vadd.f32 %v431_v35, %v408_v37  ;;  %v452_v41 = vadd.f32 %v451_v36, %v408_v37 }
  0xae   : > { %v471_v38 = vpop.f32.mrf.mxu2  ;;  %v491_v39 = vpop.f32.mrf.mxu3  ;;  %v574_v46 = vmax.f32 %v432_v40, 0.0  ;;  %v575_v47 = vmax.f32 %v452_v41, 0.0 }
  0xaf   : > { %v472_v42 = vadd.f32 %v471_v38, %v408_v37  ;;  %v492_v43 = vadd.f32 %v491_v39, %v408_v37 }
  0xb0   : > { %v582_v57 = vpack.c.bf16 %v575_v47, %v574_v46 }
  0xb1   : > { %v576_v44 = vmax.f32 %v472_v42, 0.0  ;;  %v577_v45 = vmax.f32 %v492_v43, 0.0 }
  0xb2   : > { %v590_v3 = vrot.slane %v582_v57, 3 }
  0xb3   : > { %v511_v48 = vpop.f32.mrf.mxu0  ;;  %v531_v49 = vpop.f32.mrf.mxu1  ;;  %v583_v52 = vpack.c.bf16 %v577_v45, %v576_v44 }
  0xb4   : > { %v512_v50 = vadd.f32 %v511_v48, %v408_v37  ;;  %v532_v51 = vadd.f32 %v531_v49, %v408_v37  ;;  %v600_v9 = vsel %vm597_vm3, %v582_v57, %v590_v3 }
  0xb5   : > { %v591_v61 = vrot.slane %v583_v52, 6  ;;  %v592_v62 = vrot.slane %v583_v52, 1 }
  0xb6   : > { %v578_v53 = vmax.f32 %v512_v50, 0.0  ;;  %v579_v54 = vmax.f32 %v532_v51, 0.0  ;;  %v551_v55 = vpop.f32.mrf.mxu2  ;;  %v571_v56 = vpop.f32.mrf.mxu3 }
  0xb7   : > { %v552_v58 = vadd.f32 %v551_v55, %v408_v37  ;;  %v1164_v59 = vadd.f32 %v571_v56, %v408_v37  ;;  %v604_v5 = vsel %vm601_vm1, %v591_v61, %v592_v62 }
  0xb8   : > { %v584_v60 = vpack.c.bf16 %v579_v54, %v578_v53  ;;  %v606_v11 = vsel %vm605_vm4, %v600_v9, %v604_v5 }
  0xb9   : > { %v580_v63 = vmax.f32 %v552_v58, 0.0  ;;  %v581_v0 = vmax.f32 %v1164_v59, 0.0 }
  0xba   : > { %v593_v1 = vrot.slane %v584_v60, 4  ;;  %v594_v2 = vrot.slane %v584_v60, 7 }
  0xbb   : > { %v585_v4 = vpack.c.bf16 %v581_v0, %v580_v63 }
  0xbc   : > { %v610_v6 = vsel %vm607_vm2, %v593_v1, %v594_v2 }
  0xbd   : > { %v595_v7 = vrot.slane %v585_v4, 2  ;;  %v596_v8 = vrot.slane %v585_v4, 5 }
  0xbe   : > { %624 = sbr.rel (%p898_p13) target bundleno = 198 (0xc6), region = 63 }
  0xbf   : > { %v614_v10 = vsel %vm611_vm5, %v595_v7, %v596_v8 }
  0xc0   : > { %v616_v12 = vsel %vm615_vm6, %v610_v6, %v614_v10 }
  0xc1   : > { %v618_v13 = vsel %vm617_vm7, %v606_v11, %v616_v12 }
  0xc2   : > { %620 = vst [vmem:[%s369_s11] sm:$0xff] %v618_v13 }
  0xc3   : > { %vm625_vm8 = vcmask 1024   ;;  %v1019_v14 = vmov 0.0  }
  0xc4   : > { %626 = vst.msk [vmem:[%s1139_s15] sm:$0x3] %vm625_vm8, %v1019_v14 }
  0xc5   : > { %627 = vst.msk [vmem:[%s1144_s18] sm:$0x3] %vm625_vm8, %v1019_v14 }
  0xc6 PF: > { %v628_v15 = vld [vmem:[%s360_s10] sm:$0xff]  ;;  %vm673_vm9 = vcmask 1024  }
  0xc7   : > { %v630_v16 = vperm.slane %v628_v15, 0  ;;  %v631_v17 = vperm.slane %v628_v15, 1  ;;  %v632_v18 = vperm.slane %v628_v15, 2  ;;  %v633_v19 = vperm.slane %v628_v15, 3 }
  0xc8   : > { %v634_v20 = vperm.slane %v628_v15, 4  ;;  %v635_v21 = vperm.slane %v628_v15, 5  ;;  %v636_v26 = vperm.slane %v628_v15, 6  ;;  %v637_v31 = vperm.slane %v628_v15, 7 }
  0xc9   : > { %v646_v22 = vmul.f32 %v630_v16, %v574_v46  ;;  %v647_v23 = vmul.f32 %v631_v17, %v575_v47  ;;  %v648_v24 = vmul.f32 %v632_v18, %v576_v44  ;;  %v649_v25 = vmul.f32 %v633_v19, %v577_v45 }
  0xca   : > { %v650_v27 = vmul.f32 %v634_v20, %v578_v53  ;;  %v651_v32 = vmul.f32 %v635_v21, %v579_v54  ;;  %v652_v38 = vmul.f32 %v636_v26, %v580_v63  ;;  %v653_v48 = vmul.f32 %v637_v31, %v581_v0 }
  0xcb   : > { %v655_v28 = vsel %vm605_vm4, %v646_v22, 0.0  ;;  %v656_v29 = vsel %vm605_vm4, %v647_v23, 0.0  ;;  %v658_v30 = vsel %vm605_vm4, %v648_v24, 0.0  ;;  %v660_v34 = vsel %vm605_vm4, %v649_v25, 0.0  ;;  %v654_v6 = vld [vmem:[%s1139_s15] sm:$0x3] }
  0xcc   : > { %v657_v33 = vadd.f32 %v656_v29, %v655_v28  ;;  %v676_v35 = vmul.f32 %v646_v22, %v646_v22  ;;  %v677_v36 = vmul.f32 %v647_v23, %v647_v23  ;;  %v678_v37 = vmul.f32 %v648_v24, %v648_v24  ;;  %v675_v9 = vld [vmem:[%s1144_s18] sm:$0x3] }
  0xcd   : > { %v679_v40 = vmul.f32 %v649_v25, %v649_v25  ;;  %v662_v41 = vsel %vm605_vm4, %v650_v27, 0.0  ;;  %v680_v42 = vmul.f32 %v650_v27, %v650_v27  ;;  %v664_v49 = vsel %vm605_vm4, %v651_v32, 0.0 }
  0xce   : > { %v659_v39 = vadd.f32 %v658_v30, %v657_v33  ;;  %v684_v43 = vsel %vm605_vm4, %v676_v35, 0.0  ;;  %v685_v44 = vsel %vm605_vm4, %v677_v36, 0.0  ;;  %v687_v47 = vsel %vm605_vm4, %v678_v37, 0.0 }
  0xcf   : > { %v686_v46 = vadd.f32 %v685_v44, %v684_v43  ;;  %v681_v50 = vmul.f32 %v651_v32, %v651_v32  ;;  %v689_v51 = vsel %vm605_vm4, %v679_v40, 0.0  ;;  %v666_v54 = vsel %vm605_vm4, %v652_v38, 0.0 }
  0xd0   : > { %v661_v45 = vadd.f32 %v660_v34, %v659_v39  ;;  %v682_v55 = vmul.f32 %v652_v38, %v652_v38  ;;  %v691_v56 = vsel %vm605_vm4, %v680_v42, 0.0  ;;  %v668_v60 = vsel %vm605_vm4, %v653_v48, 0.0 }
  0xd1   : > { %v688_v53 = vadd.f32 %v687_v47, %v686_v46  ;;  %v693_v59 = vsel %vm605_vm4, %v681_v50, 0.0  ;;  %v683_v63 = vmul.f32 %v653_v48, %v653_v48 }
  0xd2   : > { %v663_v52 = vadd.f32 %v662_v41, %v661_v45  ;;  %v695_v0 = vsel %vm605_vm4, %v682_v55, 0.0 }
  0xd3   : > { %v690_v58 = vadd.f32 %v689_v51, %v688_v53  ;;  %v697_v4 = vsel %vm605_vm4, %v683_v63, 0.0 }
  0xd4   : > { %v665_v57 = vadd.f32 %v664_v49, %v663_v52 }
  0xd5   : > { %v692_v62 = vadd.f32 %v691_v56, %v690_v58 }
  0xd6   : > { %v667_v61 = vadd.f32 %v666_v54, %v665_v57 }
  0xd7   : > { %v694_v2 = vadd.f32 %v693_v59, %v692_v62 }
  0xd8   : > { %v669_v1 = vadd.f32 %v668_v60, %v667_v61 }
  0xd9   : > { %v696_v3 = vadd.f32 %v695_v0, %v694_v2 }
  0xda   : > { %670 = vadd.xlane.f32.xlu0 %v669_v1 }
  0xdb   : > { %v698_v5 = vadd.f32 %v697_v4, %v696_v3 }
  0xe2   : > { %699 = vadd.xlane.f32.xlu0 %v698_v5 }
 0x14d   : > { %v671_v7 = vpop.xlane.xlu0 %670 }
 0x14e   : > { %v672_v8 = vadd.f32 %v671_v7, %v654_v6 }
 0x150   : > { %674 = vst.msk [vmem:[%s1139_s15] sm:$0x3] %vm673_vm9, %v672_v8 }
 0x155   : > { %v700_v10 = vpop.xlane.xlu0 %699 }
 0x156   : > { %v701_v11 = vadd.f32 %v700_v10, %v675_v9 }
 0x158   : > { %702 = vst.msk [vmem:[%s1144_s18] sm:$0x3] %vm673_vm9, %v701_v11 }
 0x159 PF: > { %s17_s27 = sadd.s32 1, %s1016_s27   ;;  %s1232_s21 = smov %s996_s22 }
 0x15a   : > { %p14_p0 = scmp.ge.s32.totalorder %s17_s27, 22   ;;  %s1233_s22 = smov %s1104_s8 }
 0x15b   : > { %s1234_s23 = smov %s1008_s25  ;;  %s1235_s24 = smov %s1012_s26 }
 0x15c   : > { %s1236_s25 = smov %s1239_s28  ;;  %s1237_s26 = smov %s1243_s29 }
 0x15d   :  { %16 = sbr.rel (!%p14_p0) target bundleno = 4 (0x4), region = 128 }

// kernel: feature_decoder_forward.11
= control target key start
LH: loop header
LB: loop body
LE: loop exit
PB: predicated region body
PF: predicated region fallthrough
CT: control target
= control target key end

     0   :  { %s775_s12 = smov 0   ;;  %s777_s13 = smov 0   ;;  %s902_s0 = inlined_call_operand.vmem [shape: bf16[27,18432], index: 0, kind: input, shape index: {}]   ;;  %s903_s1 = inlined_call_operand.vmem [shape: f32[1,3,27], index: 1, kind: input, shape index: {}]   ;;  %s904_s2 = inlined_call_operand.vmem [shape: f32[3,1], index: 2, kind: input, shape index: {}]   ;;  %s905_s3 = inlined_call_operand.vmem [shape: f32[1,3,18432], index: 3, kind: output, shape index: {}]  }
   0x1   :  { %s779_s14 = smov 0   ;;  %s781_s15 = smov 0  }
   0x2   :  { %s783_s16 = smov 0  }
   0x3 LB: > { %s25_s17 = sadd.s32 1, %s748_s15  ;;  %p39_p1 = scmp.ne.s32.totalorder %s740_s13, %s736_s12  ;;  %s752_s16 = sphi %s783_s16, %s13_s16   ;;  %s748_s15 = sphi %s781_s15, %s909_s15   ;;  %s744_s14 = sphi %s779_s14, %s908_s14   ;;  %s740_s13 = sphi %s777_s13, %s907_s13   ;;  %s736_s12 = sphi %s775_s12, %s906_s12  }
   0x4   : > { %p27_p0 = scmp.ge.s32.totalorder %s25_s17, 18  ;;  %p40_p2 = scmp.eq.s32.totalorder %s752_s16, 0 }
   0x5   : > { %s32_s19 = sadd.s32 1, %s740_s13  ;;  %p645_p5 = scmp.ge.s32.totalorder %s752_s16, 18 }
   0x6   : > { %s911_s17 = smov (%p27_p0, %s25_s17), 0  ;;  %p41_p3 = por %p40_p2, %p39_p1 }
   0x7   : > { %s29_s18 = ssub.s32 %s748_s15, %s911_s17  ;;  %150 = sbr.rel (%p645_p5) target bundleno = 32 (0x20), region = 24 }
   0x8   : > { %p30_p4 = scmp.eq.s32.totalorder %s29_s18, 0 }
   0xa   : > { %s810_s20 = scalar_select %p30_p4, %s740_s13, %s32_s19  }
   0xc   : > { %153 = sbr.rel (!%p41_p3) target bundleno = 32 (0x20), region = 28  ;;  %s155_s21 = sand.u32 (%p41_p3), 1, %s740_s13  }
   0xd   : > { %s671_s22 = sshll.u32 (%p41_p3), %s748_s15, 5  ;;  %s646_s23 = sshll.u32 (%p41_p3), %s155_s21, 7 }
   0xe   : > { %s818_s26 = scalar_lea.vmem (%p41_p3), %s902_s0, %s671_s22  ;;  %s157_s27 = scalar_lea.vmem (%p41_p3), [#allocation2], %s646_s23 }
   0xf   : > { %v173_v0 = vld [vmem:[%s818_s26] sm:$0xff] (%p41_p3)  ;;  %v175_v1 = vld [vmem:[%s818_s26 + $0x8] sm:$0xff] (%p41_p3)  ;;  %v177_v2 = vld [vmem:[%s818_s26 + $0x10] sm:$0xff] (%p41_p3) }
  0x10   : > { %174 = vst [vmem:[%s157_s27] sm:$0xff] (%p41_p3), %v173_v0  ;;  %v179_v3 = vld [vmem:[%s818_s26 + $0x18] sm:$0xff] (%p41_p3)  ;;  %v181_v4 = vld [vmem:[%s818_s26 + $0x240] sm:$0xff] (%p41_p3)  ;;  %v183_v5 = vld [vmem:[%s818_s26 + $0x248] sm:$0xff] (%p41_p3) }
  0x11   : > { %176 = vst [vmem:[%s157_s27 + $0x8] sm:$0xff] %v175_v1  ;;  %v185_v6 = vld [vmem:[%s818_s26 + $0x250] sm:$0xff]  ;;  %v187_v7 = vld [vmem:[%s818_s26 + $0x258] sm:$0xff]  ;;  %v189_v8 = vld [vmem:[%s818_s26 + $0x480] sm:$0xff] }
  0x12   : > { %178 = vst [vmem:[%s157_s27 + $0x10] sm:$0xff] %v177_v2  ;;  %v191_v9 = vld [vmem:[%s818_s26 + $0x488] sm:$0xff]  ;;  %v193_v10 = vld [vmem:[%s818_s26 + $0x490] sm:$0xff]  ;;  %v195_v11 = vld [vmem:[%s818_s26 + $0x498] sm:$0xff] }
  0x13   : > { %180 = vst [vmem:[%s157_s27 + $0x18] sm:$0xff] %v179_v3  ;;  %v197_v12 = vld [vmem:[%s818_s26 + $0x6c0] sm:$0xff]  ;;  %v199_v13 = vld [vmem:[%s818_s26 + $0x6c8] sm:$0xff]  ;;  %v201_v14 = vld [vmem:[%s818_s26 + $0x6d0] sm:$0xff] }
  0x14   : > { %182 = vst [vmem:[%s157_s27 + $0x20] sm:$0xff] %v181_v4  ;;  %v203_v15 = vld [vmem:[%s818_s26 + $0x6d8] sm:$0xff] }
  0x15   : > { %184 = vst [vmem:[%s157_s27 + $0x28] sm:$0xff] %v183_v5 }
  0x16   : > { %186 = vst [vmem:[%s157_s27 + $0x30] sm:$0xff] %v185_v6 }
  0x17   : > { %188 = vst [vmem:[%s157_s27 + $0x38] sm:$0xff] %v187_v7 }
  0x18   : > { %190 = vst [vmem:[%s157_s27 + $0x40] sm:$0xff] %v189_v8 }
  0x19   : > { %192 = vst [vmem:[%s157_s27 + $0x48] sm:$0xff] %v191_v9 }
  0x1a   : > { %194 = vst [vmem:[%s157_s27 + $0x50] sm:$0xff] %v193_v10 }
  0x1b   : > { %196 = vst [vmem:[%s157_s27 + $0x58] sm:$0xff] %v195_v11 }
  0x1c   : > { %198 = vst [vmem:[%s157_s27 + $0x60] sm:$0xff] %v197_v12 }
  0x1d   : > { %200 = vst [vmem:[%s157_s27 + $0x68] sm:$0xff] %v199_v13 }
  0x1e   : > { %202 = vst [vmem:[%s157_s27 + $0x70] sm:$0xff] %v201_v14 }
  0x1f   : > { %204 = vst [vmem:[%s157_s27 + $0x78] sm:$0xff] %v203_v15 }
  0x20 PF: > { %p649_p6 = scmp.ge.s32.totalorder %s752_s16, 1  ;;  %p209_p7 = scmp.lt.s32.totalorder %s752_s16, 19 }
  0x22   : > { %p210_p8 = pnand %p649_p6, %p209_p7 }
  0x23   : > { %s216_s28 = sand.u32 (!%p210_p8), 1, %s736_s12   ;;  %s651_s8 = sshll.u32 (!%p210_p8), %s744_s14, 3 }
  0x24   : > { %213 = sbr.rel (%p210_p8) target bundleno = 199 (0xc7), region = 51  ;;  %s650_s29 = sshll.u32 (!%p210_p8), %s216_s28, 7 }
  0x25   : > { %s842_s5 = scalar_lea.vmem (!%p210_p8), [#allocation2], %s650_s29  ;;  %p255_p9 = scmp.lt.s32.totalorder (!%p210_p8), %s651_s8, 143 }
  0x29   : > { %v754_v16 = vmov 0   ;;  %v311_v17 = vld [vmem:[%s904_s2] sm:$0x7]  ;;  %v275_v18 = vld [vmem:[%s842_s5 + $0x68] sm:$0x33]  ;;  %vm321_vm0 = vcmask 1042432  }
  0x2a   : > { %713 = vset.pattern.permute.xlu0 %v754_v16  ;;  %v271_v19 = vld [vmem:[%s842_s5 + $0x48] sm:$0xff]  ;;  %v274_v20 = vld [vmem:[%s842_s5 + $0x60] sm:$0x33]  ;;  %v304_v21 = vunpack.c.l.bf16 %v275_v18  ;;  %v305_v22 = vunpack.c.h.bf16 %v275_v18  ;;  %v277_v34 = vld [vmem:[%s842_s5 + $0x78] sm:$0x33]  ;;  %vm317_vm1 = vcmask 220160  }
  0x2b   : > { %314 = vperm.xlu0 %713, %v311_v17   ;;  %v296_v23 = vunpack.c.l.bf16 %v271_v19  ;;  %v297_v24 = vunpack.c.h.bf16 %v271_v19  ;;  %v267_v25 = vld [vmem:[%s842_s5 + $0x28] sm:$0xff]  ;;  %v270_v26 = vld [vmem:[%s842_s5 + $0x40] sm:$0xff]  ;;  %v303_v27 = vunpack.c.h.bf16 %v274_v20  ;;  %v302_v28 = vunpack.c.l.bf16 %v274_v20  ;;  %v273_v41 = vld [vmem:[%s842_s5 + $0x58] sm:$0xff]  ;;  %s913_s8 = smov (!%p255_p9, %s651_s8), 143 }
  0x2c   : > { %v263_v29 = vld [vmem:[%s842_s5 + $0x8] sm:$0xff]  ;;  %v266_v30 = vld [vmem:[%s842_s5 + $0x20] sm:$0xff]  ;;  %657 = vmatpush.msk.msra.mxu2 %vm321_vm0, %v304_v21  ;;  %659 = vmatpush.msk.msra.mxu3 %vm321_vm0, %v305_v22  ;;  %v288_v31 = vunpack.c.l.bf16 %v267_v25  ;;  %v289_v32 = vunpack.c.h.bf16 %v267_v25  ;;  %v295_v33 = vunpack.c.h.bf16 %v270_v26  ;;  %v294_v35 = vunpack.c.l.bf16 %v270_v26  ;;  %v269_v46 = vld [vmem:[%s842_s5 + $0x38] sm:$0xff]  ;;  %s652_s9 = sshll.u32 %s913_s8, 2 }
  0x2d   : > { %655 = vmatpush.msk.msra.mxu1 %vm321_vm0, %v303_v27  ;;  %653 = vmatpush.msk.msra.mxu0 %vm321_vm0, %v302_v28  ;;  %v287_v36 = vunpack.c.h.bf16 %v266_v30  ;;  %v280_v37 = vunpack.c.l.bf16 %v263_v29  ;;  %v281_v38 = vunpack.c.h.bf16 %v263_v29  ;;  %v286_v39 = vunpack.c.l.bf16 %v266_v30  ;;  %v262_v40 = vld [vmem:[%s842_s5] sm:$0xff]  ;;  %v276_v48 = vld [vmem:[%s842_s5 + $0x70] sm:$0x33]  ;;  %v265_v51 = vld [vmem:[%s842_s5 + $0x18] sm:$0xff]  ;;  %s260_s12 = scalar_lea.vmem %s905_s3, %s652_s9 }
  0x2e   : > { %399 = vmatpush.msra.mxu2 %v296_v23  ;;  %419 = vmatpush.msra.mxu3 %v297_v24  ;;  %v310_v42 = vld [vmem:[%s903_s1] sm:$0x7]  ;;  %v309_v43 = vunpack.c.h.bf16 %v277_v34  ;;  %v308_v44 = vunpack.c.l.bf16 %v277_v34  ;;  %v279_v45 = vunpack.c.h.bf16 %v262_v40  ;;  %v278_v47 = vunpack.c.l.bf16 %v262_v40  ;;  %v272_v52 = vld [vmem:[%s842_s5 + $0x50] sm:$0xff] }
  0x2f   : > { %379 = vmatpush.msra.mxu1 %v295_v33  ;;  %359 = vmatpush.msra.mxu0 %v294_v35  ;;  %v301_v49 = vunpack.c.h.bf16 %v273_v41  ;;  %v300_v50 = vunpack.c.l.bf16 %v273_v41  ;;  %v293_v53 = vunpack.c.h.bf16 %v269_v46  ;;  %v307_v54 = vunpack.c.h.bf16 %v276_v48  ;;  %v268_v59 = vld [vmem:[%s842_s5 + $0x30] sm:$0xff] }
  0x30   : > { %400 = vmatpush.msra.mxu2 %v288_v31  ;;  %420 = vmatpush.msra.mxu3 %v289_v32  ;;  %v292_v55 = vunpack.c.l.bf16 %v269_v46  ;;  %v306_v56 = vunpack.c.l.bf16 %v276_v48  ;;  %v285_v57 = vunpack.c.h.bf16 %v265_v51  ;;  %v299_v58 = vunpack.c.h.bf16 %v272_v52  ;;  %v264_v62 = vld [vmem:[%s842_s5 + $0x10] sm:$0xff] }
  0x31   : > { %380 = vmatpush.msra.mxu1 %v287_v36  ;;  %360 = vmatpush.msra.mxu0 %v286_v39  ;;  %v284_v60 = vunpack.c.l.bf16 %v265_v51  ;;  %v298_v61 = vunpack.c.l.bf16 %v272_v52  ;;  %v291_v63 = vunpack.c.h.bf16 %v268_v59  ;;  %v290_v0 = vunpack.c.l.bf16 %v268_v59 }
  0x32   : > { %401 = vmatpush.msra.mxu2 %v280_v37  ;;  %421 = vmatpush.msra.mxu3 %v281_v38  ;;  %v283_v1 = vunpack.c.h.bf16 %v264_v62  ;;  %v282_v2 = vunpack.c.l.bf16 %v264_v62  ;;  %vm526_vm2 = vcmask 1043456  }
  0x33   : > { %658 = vmatmul.msk.f32.vlgmr.msra.gmra.mxu2 %vm317_vm1, %v310_v42  ;;  %660 = vmatmul.msk.f32.vlgmr.msra.gmra.mxu3 %vm317_vm1, %v310_v42 }
  0x34   : > { %667 = vmatpush.msk.msrb.mxu3 %vm321_vm0, %v309_v43  ;;  %665 = vmatpush.msk.msrb.mxu2 %vm321_vm0, %v308_v44 }
  0x35   : > { %381 = vmatpush.msra.mxu1 %v279_v45  ;;  %361 = vmatpush.msra.mxu0 %v278_v47 }
  0x36   : > { %499 = vmatpush.msrb.mxu3 %v301_v49  ;;  %479 = vmatpush.msrb.mxu2 %v300_v50 }
  0x37   : > { %656 = vmatmul.msk.f32.vlgmr.msra.gmra.mxu1 %vm317_vm1, %v310_v42  ;;  %654 = vmatmul.msk.f32.vlgmr.msra.gmra.mxu0 %vm317_vm1, %v310_v42 }
  0x38   : > { %500 = vmatpush.msrb.mxu3 %v293_v53  ;;  %663 = vmatpush.msk.msrb.mxu1 %vm321_vm0, %v307_v54 }
  0x39   : > { %480 = vmatpush.msrb.mxu2 %v292_v55  ;;  %661 = vmatpush.msk.msrb.mxu0 %vm321_vm0, %v306_v56 }
  0x3a   : > { %501 = vmatpush.msrb.mxu3 %v285_v57  ;;  %459 = vmatpush.msrb.mxu1 %v299_v58 }
  0x3b   : > { %481 = vmatpush.msrb.mxu2 %v284_v60  ;;  %668 = vmatmul.msk.f32.vlgmr.msrb.gmra.mxu3 %vm317_vm1, %v310_v42 }
  0x3c   : > { %666 = vmatmul.msk.f32.vlgmr.msrb.gmra.mxu2 %vm317_vm1, %v310_v42  ;;  %439 = vmatpush.msrb.mxu0 %v298_v61 }
  0x3d   : > { %460 = vmatpush.msrb.mxu1 %v291_v63 }
  0x3e   : > { %440 = vmatpush.msrb.mxu0 %v290_v0 }
  0x3f   : > { %461 = vmatpush.msrb.mxu1 %v283_v1 }
  0x40   : > { %664 = vmatmul.msk.f32.vlgmr.msrb.gmra.mxu1 %vm317_vm1, %v310_v42  ;;  %441 = vmatpush.msrb.mxu0 %v282_v2 }
  0x41   : > { %662 = vmatmul.msk.f32.vlgmr.msrb.gmra.mxu0 %vm317_vm1, %v310_v42 }
  0x9d   : > { %v315_v3 = vpop.permute.xlu0 %314 }
  0xb4   : > { %v383_v4 = vpop.f32.mrf.mxu1  ;;  %v363_v5 = vpop.f32.mrf.mxu0 }
  0xb5   : > { %v364_v6 = vadd.f32 %v363_v5, %v315_v3  ;;  %v384_v7 = vadd.f32 %v383_v4, %v315_v3 }
  0xb6   : > { %v403_v8 = vpop.f32.mrf.mxu2  ;;  %v423_v9 = vpop.f32.mrf.mxu3 }
  0xb7   : > { %v506_v10 = vmax.f32 %v364_v6, 0.0  ;;  %v507_v11 = vmax.f32 %v384_v7, 0.0  ;;  %v404_v12 = vadd.f32 %v403_v8, %v315_v3  ;;  %v424_v13 = vadd.f32 %v423_v9, %v315_v3 }
  0xb9   : > { %v522_v14 = vrot.slane %v507_v11, 4  ;;  %v508_v15 = vmax.f32 %v404_v12, 0.0  ;;  %v509_v16 = vmax.f32 %v424_v13, 0.0 }
  0xbb   : > { %v527_v17 = vsel %vm526_vm2, %v506_v10, %v522_v14  ;;  %v523_v18 = vrot.slane %v509_v16, 4 }
  0xbc   : > { %535 = vst [vmem:[%s260_s12] sm:$0x77] %v527_v17 }
  0xbd   : > { %v528_v19 = vsel %vm526_vm2, %v508_v15, %v523_v18  ;;  %v463_v20 = vpop.f32.mrf.mxu1 }
  0xbe   : > { %536 = vst [vmem:[%s260_s12 + $0x8] sm:$0x77] %v528_v19  ;;  %v464_v21 = vadd.f32 %v463_v20, %v315_v3  ;;  %v443_v22 = vpop.f32.mrf.mxu0  ;;  %v503_v23 = vpop.f32.mrf.mxu3 }
  0xbf   : > { %v444_v24 = vadd.f32 %v443_v22, %v315_v3  ;;  %v483_v25 = vpop.f32.mrf.mxu2  ;;  %v504_v26 = vadd.f32 %v503_v23, %v315_v3 }
  0xc0   : > { %v511_v27 = vmax.f32 %v464_v21, 0.0  ;;  %v484_v28 = vadd.f32 %v483_v25, %v315_v3 }
  0xc1   : > { %v510_v29 = vmax.f32 %v444_v24, 0.0  ;;  %v513_v30 = vmax.f32 %v504_v26, 0.0 }
  0xc2   : > { %v524_v31 = vrot.slane %v511_v27, 4  ;;  %v512_v32 = vmax.f32 %v484_v28, 0.0 }
  0xc3   : > { %v525_v33 = vrot.slane %v513_v30, 4 }
  0xc4   : > { %v529_v34 = vsel %vm526_vm2, %v510_v29, %v524_v31 }
  0xc5   : > { %537 = vst [vmem:[%s260_s12 + $0x10] sm:$0x77] %v529_v34  ;;  %v530_v35 = vsel %vm526_vm2, %v512_v32, %v525_v33 }
  0xc6   : > { %538 = vst [vmem:[%s260_s12 + $0x18] sm:$0x77] %v530_v35 }
  0xc7 PF: > { %s13_s16 = sadd.s32 1, %s752_s16   ;;  %s906_s12 = smov %s740_s13 }
  0xc8   : > { %p10_p10 = scmp.ge.s32.totalorder %s13_s16, 20   ;;  %s907_s13 = smov %s810_s20 }
  0xc9   : > { %s908_s14 = smov %s748_s15  ;;  %s909_s15 = smov %s911_s17 }
  0xca   :  { %12 = sbr.rel (!%p10_p10) target bundleno = 3 (0x3), region = 93 }

// kernel: squeeze.109
= control target key start
LH: loop header
LB: loop body
LE: loop exit
PB: predicated region body
PF: predicated region fallthrough
CT: control target
= control target key end

     0   :  { %s587_s24 = smov 3  ;;  %s590_s25 = smov 12  ;;  %vm592_vm0 = vcmask 1043458   ;;  %vm597_vm1 = vcmask 1045508   ;;  %vm9060_vm2 = vcmask 277504   ;;  %vm9062_vm3 = vcmask 285696   ;;  %s9058_s0 = inlined_call_operand.vmem [shape: f32[1,3,18050], index: 0, kind: input, shape index: {}]   ;;  %s9059_s1 = inlined_call_operand.vmem [shape: f32[3,2,95,95], index: 1, kind: output, shape index: {}]  }
   0x1   :  { %v4288_v0 = vld [vmem:[%s9058_s0 + $0xb8] sm:$0xf]  ;;  %v4265_v1 = vld [vmem:[%s9058_s0 + $0x114] sm:$0xf]  ;;  %v4311_v3 = vld [vmem:[%s9058_s0 + $0x5c] sm:$0xf] }
   0x2   :  { %387 = vst [vmem:[#allocation0 + $0x170] sm:$0xf] %v4288_v0  ;;  %v4216_v2 = vld [vmem:[%s9058_s0 + $0x1d8] sm:$0xf]  ;;  %v4242_v4 = vld [vmem:[%s9058_s0 + $0x170] sm:$0xf] }
   0x3   :  { %295 = vst [vmem:[#allocation0 + $0x228] sm:$0xf] %v4265_v1  ;;  %v4268_v5 = vld [vmem:[%s9058_s0 + $0x108] sm:$0xf]  ;;  %v4245_v6 = vld [vmem:[%s9058_s0 + $0x164] sm:$0xf] }
   0x4   :  { %99 = vst [vmem:[#allocation0 + $0x3b0] sm:$0xf] %v4216_v2  ;;  %v4199_v7 = vld [vmem:[%s9058_s0 + $0x21c] sm:$0xf]  ;;  %v4294_v8 = vld [vmem:[%s9058_s0 + $0xa0] sm:$0xf] }
   0x5   :  { %479 = vst [vmem:[#allocation0 + $0xb8] sm:$0xf] %v4311_v3  ;;  %v4271_v9 = vld [vmem:[%s9058_s0 + $0xfc] sm:$0xf]  ;;  %s595_s28 = smov 48  ;;  %s5129_s29 = smov 126  }
   0x6   :  { %203 = vst [vmem:[#allocation0 + $0x2e0] sm:$0xf] %v4242_v4  ;;  %v4219_v12 = vld [vmem:[%s9058_s0 + $0x1cc] sm:$0xf]  ;;  %s5130_s3 = smov 125   ;;  %s642_s12 = smov 3 }
   0x7   :  { %307 = vst [vmem:[#allocation0 + $0x210] sm:$0xf] %v4268_v5  ;;  %v4314_v13 = vld [vmem:[%s9058_s0 + $0x50] sm:$0xf]  ;;  %v4225_v18 = vld [vmem:[%s9058_s0 + $0x1b4] sm:$0xf] }
   0x8   :  { %215 = vst [vmem:[#allocation0 + $0x2c8] sm:$0xf] %v4245_v6  ;;  %v4320_v20 = vld [vmem:[%s9058_s0 + $0x38] sm:$0xf]  ;;  %v4202_v22 = vld [vmem:[%s9058_s0 + $0x210] sm:$0xf] }
   0x9   :  { %v609_v10 = vld [vmem:[#allocation0 + $0x170] sm:$0x7]   ;;  %31 = vst [vmem:[#allocation0 + $0x438] sm:$0xf] %v4199_v7  ;;  %s5131_s13 = smov 127   ;;  %s645_s14 = smov 12 }
   0xa   :  { %610 = vrot.lane.b32.xlu0 %v609_v10, %s5129_s29  ;;  %v620_v11 = vld [vmem:[#allocation0 + $0x228] sm:$0x7]   ;;  %411 = vst [vmem:[#allocation0 + $0x140] sm:$0xf] %v4294_v8  ;;  %s650_s15 = smov 48  ;;  %s5132_s16 = smov 124  }
   0xb   :  { %621 = vrot.lane.b32.xlu1 %v620_v11, %s5130_s3  ;;  %319 = vst [vmem:[#allocation0 + $0x1f8] sm:$0xf] %v4271_v9  ;;  %v4297_v23 = vld [vmem:[%s9058_s0 + $0x94] sm:$0xf]  ;;  %v4196_v24 = vld [vmem:[%s9058_s0 + $0x228] sm:$0xf] }
   0xc   :  { %v588_v14 = vld [vmem:[#allocation0 + $0x3b0] ss:$-760 sm:%s587_s24]   ;;  %v591_v15 = vld [vmem:[#allocation0 + $0x9a1] ss:$-760 sm:%s590_s25]   ;;  %v596_v16 = vld [vmem:[#allocation0 + $0xf92] ss:$-760 sm:%s595_s28]  }
   0xd   :  { %v593_v17 = vsel %vm592_vm0, %v591_v15, %v588_v14  ;;  %111 = vst [vmem:[#allocation0 + $0x398] sm:$0xf] %v4219_v12  ;;  %v631_v21 = vld [vmem:[#allocation0 + $0x2e0] sm:$0x7]   ;;  %s730_s21 = smov 3  ;;  %s733_s24 = smov 12 }
   0xe   :  { %491 = vst [vmem:[#allocation0 + $0xa0] sm:$0xf] %v4314_v13  ;;  %v598_v19 = vsel %vm597_vm1, %v596_v16, %v593_v17  ;;  %v4291_v25 = vld [vmem:[%s9058_s0 + $0xac] sm:$0xf]  ;;  %v686_v31 = vld [vmem:[#allocation0 + $0x210] sm:$0x7]  }
   0xf   :  { %135 = vst [vmem:[#allocation0 + $0x368] sm:$0xf] %v4225_v18  ;;  %v4251_v30 = vld [vmem:[%s9058_s0 + $0x14c] sm:$0xf]  ;;  %v697_v32 = vld [vmem:[#allocation0 + $0x2c8] sm:$0x7]  }
  0x10   :  { %515 = vst [vmem:[#allocation0 + $0x70] sm:$0xf] %v4320_v20  ;;  %s738_s27 = smov 48  ;;  %s5133_s28 = smov 123   ;;  %v4228_v35 = vld [vmem:[%s9058_s0 + $0x1a8] sm:$0xf] }
  0x11   :  { %43 = vst [vmem:[#allocation0 + $0x420] sm:$0xf] %v4202_v22  ;;  %v731_v34 = vld [vmem:[#allocation0 + $0x140] ss:$760 sm:%s730_s21]   ;;  %v734_v36 = vld [vmem:[#allocation0 - $0x4af] ss:$760 sm:%s733_s24]  }
  0x12   :  { %599 = vrot.lane.b32.xlu0 %v598_v19, %s5131_s13  ;;  %423 = vst [vmem:[#allocation0 + $0x128] sm:$0xf] %v4297_v23  ;;  %v4323_v37 = vld [vmem:[%s9058_s0 + $0x2c] sm:$0xf]  ;;  %s5134_s4 = smov 121   ;;  %s774_s5 = smov 3  ;;  %v736_v40 = vsel %vm592_vm0, %v734_v36, %v731_v34 }
  0x13   :  { %632 = vrot.lane.b32.xlu1 %v631_v21, %s5132_s16  ;;  %19 = vst [vmem:[#allocation0 + $0x450] sm:$0xf] %v4196_v24  ;;  %v4222_v38 = vld [vmem:[%s9058_s0 + $0x1c0] sm:$0xf]  ;;  %s5135_s8 = smov 120   ;;  %s777_s9 = smov 12 }
  0x14   :  { %399 = vst [vmem:[#allocation0 + $0x158] sm:$0xf] %v4291_v25  ;;  %v739_v39 = vld [vmem:[#allocation0 - $0xa9e] ss:$760 sm:%s738_s27]   ;;  %s664_s10 = smov 3  ;;  %s667_s11 = smov 12 }
  0x15   :  { %v643_v26 = vld [vmem:[#allocation0 + $0xa0] ss:$760 sm:%s642_s12]   ;;  %v646_v27 = vld [vmem:[#allocation0 - $0x54f] ss:$760 sm:%s645_s14]   ;;  %v651_v28 = vld [vmem:[#allocation0 - $0xb3e] ss:$760 sm:%s650_s15]   ;;  %v741_v45 = vsel %vm597_vm1, %v739_v39, %v736_v40 }
  0x16   :  { %v648_v29 = vsel %vm592_vm0, %v646_v27, %v643_v26  ;;  %239 = vst [vmem:[#allocation0 + $0x298] sm:$0xf] %v4251_v30  ;;  %s672_s12 = smov 48  ;;  %v4317_v41 = vld [vmem:[%s9058_s0 + $0x44] sm:$0xf]  ;;  %s5340_s15 = smov 48 }
  0x17   :  { %v653_v33 = vsel %vm597_vm1, %v651_v28, %v648_v29  ;;  %147 = vst [vmem:[#allocation0 + $0x350] sm:$0xf] %v4228_v35  ;;  %s796_s16 = smov 3  ;;  %v4277_v42 = vld [vmem:[%s9058_s0 + $0xe4] sm:$0xf]  ;;  %s799_s19 = smov 12 }
  0x18   :  { %654 = vrot.lane.b32.xlu2 %v653_v33, %s5133_s28  ;;  %527 = vst [vmem:[#allocation0 + $0x58] sm:$0xf] %v4323_v37  ;;  %v752_v43 = vld [vmem:[#allocation0 + $0x1f8] sm:$0x7]   ;;  %v4254_v44 = vld [vmem:[%s9058_s0 + $0x140] sm:$0xf] }
  0x19   :  { %123 = vst [vmem:[#allocation0 + $0x380] sm:$0xf] %v4222_v38  ;;  %v775_v46 = vld [vmem:[#allocation0 + $0x70] ss:$760 sm:%s774_s5]   ;;  %v778_v47 = vld [vmem:[#allocation0 - $0x57f] ss:$760 sm:%s777_s9]  }
  0x1a   :  { %687 = vrot.lane.b32.xlu0 %v686_v31, %s5134_s4  ;;  %503 = vst [vmem:[#allocation0 + $0x88] sm:$0xf] %v4317_v41  ;;  %v797_v51 = vld [vmem:[#allocation0 + $0x128] ss:$760 sm:%s796_s16]   ;;  %s804_s22 = smov 48  ;;  %s708_s23 = smov 3  ;;  %v780_v59 = vsel %vm592_vm0, %v778_v47, %v775_v46 }
  0x1b   :  { %698 = vrot.lane.b32.xlu1 %v697_v32, %s5135_s8  ;;  %v665_v48 = vld [vmem:[#allocation0 + $0x158] ss:$760 sm:%s664_s10]   ;;  %v668_v49 = vld [vmem:[#allocation0 - $0x497] ss:$760 sm:%s667_s11]   ;;  %v673_v50 = vld [vmem:[#allocation0 - $0xa86] ss:$760 sm:%s672_s12]  }
  0x1c   :  { %v670_v52 = vsel %vm592_vm0, %v668_v49, %v665_v48  ;;  %343 = vst [vmem:[#allocation0 + $0x1c8] sm:$0xf] %v4277_v42  ;;  %v4248_v54 = vld [vmem:[%s9058_s0 + $0x158] sm:$0xf]  ;;  %s5136_s28 = smov 118   ;;  %s5137_s29 = smov 122  }
  0x1d   :  { %v675_v53 = vsel %vm597_vm1, %v673_v50, %v670_v52  ;;  %251 = vst [vmem:[#allocation0 + $0x280] sm:$0xf] %v4254_v44  ;;  %v4208_v55 = vld [vmem:[%s9058_s0 + $0x1f8] sm:$0xf]  ;;  %s711_s30 = smov 12  ;;  %s716_s2 = smov 48 }
  0x1e   :  { %v800_v56 = vld [vmem:[#allocation0 - $0x4c7] ss:$760 sm:%s799_s19]   ;;  %227 = vst [vmem:[#allocation0 + $0x2b0] sm:$0xf] %v4248_v54  ;;  %s5138_s3 = smov 117   ;;  %s840_s8 = smov 3 }
  0x1f   :  { %v783_v57 = vld [vmem:[#allocation0 - $0xb6e] ss:$760 sm:%s5340_s15]   ;;  %v4303_v58 = vld [vmem:[%s9058_s0 + $0x7c] sm:$0xf]  ;;  %67 = vst [vmem:[#allocation0 + $0x3f0] sm:$0xf] %v4208_v55  ;;  %v802_v62 = vsel %vm592_vm0, %v800_v56, %v797_v51 }
  0x20   :  { %676 = vrot.lane.b32.xlu2 %v675_v53, %s5137_s29  ;;  %v805_v60 = vld [vmem:[#allocation0 - $0xab6] ss:$760 sm:%s804_s22]   ;;  %447 = vst [vmem:[#allocation0 + $0xf8] sm:$0xf] %v4303_v58  ;;  %v785_v4 = vsel %vm597_vm1, %v783_v57, %v780_v59  ;;  %s843_s11 = smov 12  ;;  %s848_s16 = smov 48 }
  0x21   :  { %v4280_v61 = vld [vmem:[%s9058_s0 + $0xd8] sm:$0xf]  ;;  %v4274_v3 = vld [vmem:[%s9058_s0 + $0xf0] sm:$0xf]  ;;  %v807_v7 = vsel %vm597_vm1, %v805_v60, %v802_v62  ;;  %v4329_v8 = vld [vmem:[%s9058_s0 + $0x14] sm:$0xf] }
  0x22   :  { %742 = vrot.lane.b32.xlu0 %v741_v45, %s5136_s28  ;;  %v709_v63 = vld [vmem:[#allocation0 + $0x88] ss:$760 sm:%s708_s23]   ;;  %v712_v0 = vld [vmem:[#allocation0 - $0x567] ss:$760 sm:%s711_s30]   ;;  %v717_v1 = vld [vmem:[#allocation0 - $0xb56] ss:$760 sm:%s716_s2]  }
  0x23   :  { %753 = vrot.lane.b32.xlu1 %v752_v43, %s5138_s3  ;;  %v714_v2 = vsel %vm592_vm0, %v712_v0, %v709_v63  ;;  %355 = vst [vmem:[#allocation0 + $0x1b0] sm:$0xf] %v4280_v61  ;;  %v4234_v6 = vld [vmem:[%s9058_s0 + $0x190] sm:$0xf]  ;;  %s5139_s17 = smov 115   ;;  %s5140_s18 = smov 119  }
  0x24   :  { %v719_v5 = vsel %vm597_vm1, %v717_v1, %v714_v2  ;;  %331 = vst [vmem:[#allocation0 + $0x1e0] sm:$0xf] %v4274_v3  ;;  %v841_v9 = vld [vmem:[#allocation0 + $0x58] ss:$760 sm:%s840_s8]   ;;  %v844_v10 = vld [vmem:[#allocation0 - $0x597] ss:$760 sm:%s843_s11]  }
  0x25   :  { %171 = vst [vmem:[#allocation0 + $0x320] sm:$0xf] %v4234_v6  ;;  %v4211_v11 = vld [vmem:[%s9058_s0 + $0x1ec] sm:$0xf]  ;;  %s5141_s21 = smov 114   ;;  %v846_v14 = vsel %vm592_vm0, %v844_v10, %v841_v9  ;;  %s5142_s3 = smov 112  }
  0x26   :  { %551 = vst [vmem:[#allocation0 + $0x28] sm:$0xf] %v4329_v8  ;;  %v4306_v12 = vld [vmem:[%s9058_s0 + $0x70] sm:$0xf]  ;;  %v4205_v13 = vld [vmem:[%s9058_s0 + $0x204] sm:$0xf] }
  0x27   :  { %79 = vst [vmem:[#allocation0 + $0x3d8] sm:$0xf] %v4211_v11  ;;  %v849_v15 = vld [vmem:[#allocation0 - $0xb86] ss:$760 sm:%s848_s16]   ;;  %v4237_v21 = vld [vmem:[%s9058_s0 + $0x184] sm:$0xf] }
  0x28   :  { %720 = vrot.lane.b32.xlu2 %v719_v5, %s5140_s18  ;;  %459 = vst [vmem:[#allocation0 + $0xe0] sm:$0xf] %v4306_v12  ;;  %v829_v16 = vld [vmem:[#allocation0 + $0x298] sm:$0x7]   ;;  %v4300_v17 = vld [vmem:[%s9058_s0 + $0x88] sm:$0xf]  ;;  %v851_v19 = vsel %vm597_vm1, %v849_v15, %v846_v14 }
  0x29   :  { %55 = vst [vmem:[#allocation0 + $0x408] sm:$0xf] %v4205_v13  ;;  %v763_v18 = vld [vmem:[#allocation0 + $0x2b0] sm:$0x7]   ;;  %v4260_v20 = vld [vmem:[%s9058_s0 + $0x128] sm:$0xf] }
  0x2a   :  { %786 = vrot.lane.b32.xlu0 %v785_v4, %s5139_s17  ;;  %435 = vst [vmem:[#allocation0 + $0x110] sm:$0xf] %v4300_v17  ;;  %s5143_s4 = smov 116   ;;  %v4332_v22 = vld [vmem:[%s9058_s0 + $0x8] sm:$0xf]  ;;  %s5144_s7 = smov 111  }
  0x2b   :  { %808 = vrot.lane.b32.xlu1 %v807_v7, %s5141_s21  ;;  %275 = vst [vmem:[#allocation0 + $0x250] sm:$0xf] %v4260_v20  ;;  %s928_s8 = smov 3  ;;  %s931_s9 = smov 12  ;;  %v4231_v23 = vld [vmem:[%s9058_s0 + $0x19c] sm:$0xf] }
  0x2c   :  { %183 = vst [vmem:[#allocation0 + $0x308] sm:$0xf] %v4237_v21  ;;  %v4326_v24 = vld [vmem:[%s9058_s0 + $0x20] sm:$0xf]  ;;  %v884_v25 = vld [vmem:[#allocation0 + $0x1c8] sm:$0x7]  }
  0x2d   :  { %563 = vst [vmem:[#allocation0 + $0x10] sm:$0xf] %v4332_v22  ;;  %v895_v26 = vld [vmem:[#allocation0 + $0x280] sm:$0x7]   ;;  %s862_s14 = smov 3  ;;  %s865_s15 = smov 12 }
  0x2e   :  { %v929_v27 = vld [vmem:[#allocation0 + $0xf8] ss:$760 sm:%s928_s8]   ;;  %v932_v28 = vld [vmem:[#allocation0 - $0x4f7] ss:$760 sm:%s931_s9]   ;;  %159 = vst [vmem:[#allocation0 + $0x338] sm:$0xf] %v4231_v23 }
  0x2f   :  { %v818_v29 = vld [vmem:[#allocation0 + $0x1e0] sm:$0x7]   ;;  %s936_s18 = smov 48  ;;  %s870_s19 = smov 48  ;;  %539 = vst [vmem:[#allocation0 + $0x40] sm:$0xf] %v4326_v24  ;;  %v934_v37 = vsel %vm592_vm0, %v932_v28, %v929_v27 }
  0x30   :  { %764 = vrot.lane.b32.xlu2 %v763_v18, %s5143_s4  ;;  %v4286_v30 = vld [vmem:[%s9058_s0 + $0xc0] sm:$0xf]  ;;  %v4263_v31 = vld [vmem:[%s9058_s0 + $0x11c] sm:$0xf]  ;;  %s5145_s22 = smov 109   ;;  %s5146_s23 = smov 113  }
  0x31   :  { %v863_v32 = vld [vmem:[#allocation0 + $0x110] ss:$760 sm:%s862_s14]   ;;  %v866_v33 = vld [vmem:[#allocation0 - $0x4df] ss:$760 sm:%s865_s15]   ;;  %379 = vst [vmem:[#allocation0 + $0x180] sm:$0xf] %v4286_v30 }
  0x32   :  { %830 = vrot.lane.b32.xlu0 %v829_v16, %s5142_s3  ;;  %287 = vst [vmem:[#allocation0 + $0x238] sm:$0xf] %v4263_v31  ;;  %v4257_v34 = vld [vmem:[%s9058_s0 + $0x134] sm:$0xf]  ;;  %s5147_s28 = smov 108   ;;  %s972_s2 = smov 3  ;;  %v868_v39 = vsel %vm592_vm0, %v866_v33, %v863_v32 }
  0x33   :  { %852 = vrot.lane.b32.xlu1 %v851_v19, %s5144_s7  ;;  %v4217_v35 = vld [vmem:[%s9058_s0 + $0x1d4] sm:$0xf]  ;;  %263 = vst [vmem:[#allocation0 + $0x268] sm:$0xf] %v4257_v34  ;;  %v4312_v36 = vld [vmem:[%s9058_s0 + $0x58] sm:$0xf] }
  0x34   :  { %v937_v38 = vld [vmem:[#allocation0 - $0xae6] ss:$760 sm:%s936_s18]   ;;  %s975_s3 = smov 12  ;;  %s5425_s4 = smov 48  ;;  %103 = vst [vmem:[#allocation0 + $0x3a8] sm:$0xf] %v4217_v35 }
  0x35   :  { %v871_v40 = vld [vmem:[#allocation0 - $0xace] ss:$760 sm:%s870_s19]   ;;  %s994_s5 = smov 3  ;;  %s906_s6 = smov 3  ;;  %483 = vst [vmem:[#allocation0 + $0xb0] sm:$0xf] %v4312_v36  ;;  %v939_v41 = vsel %vm597_vm1, %v937_v38, %v934_v37 }
  0x36   :  { %s909_s7 = smov 12  ;;  %v950_v42 = vld [vmem:[#allocation0 + $0x1b0] sm:$0x7]   ;;  %s997_s8 = smov 12  ;;  %v873_v44 = vsel %vm597_vm1, %v871_v40, %v868_v39  ;;  %v4283_v49 = vld [vmem:[%s9058_s0 + $0xcc] sm:$0xf] }
  0x37   :  { %v973_v43 = vld [vmem:[#allocation0 + $0x28] ss:$760 sm:%s972_s2]   ;;  %v976_v45 = vld [vmem:[#allocation0 - $0x5c7] ss:$760 sm:%s975_s3]   ;;  %s1002_s9 = smov 48  ;;  %s914_s10 = smov 48 }
  0x38   :  { %819 = vrot.lane.b32.xlu2 %v818_v29, %s5146_s23  ;;  %v995_v46 = vld [vmem:[#allocation0 + $0xe0] ss:$760 sm:%s994_s5]   ;;  %v910_v48 = vld [vmem:[#allocation0 - $0x5af] ss:$760 sm:%s909_s7]   ;;  %s5148_s13 = smov 106   ;;  %s5149_s14 = smov 110   ;;  %v978_v54 = vsel %vm592_vm0, %v976_v45, %v973_v43 }
  0x39   :  { %v907_v47 = vld [vmem:[#allocation0 + $0x40] ss:$760 sm:%s906_s6]   ;;  %v998_v50 = vld [vmem:[#allocation0 - $0x50f] ss:$760 sm:%s997_s8]   ;;  %367 = vst [vmem:[#allocation0 + $0x198] sm:$0xf] %v4283_v49 }
  0x3a   :  { %885 = vrot.lane.b32.xlu0 %v884_v25, %s5145_s22  ;;  %v4193_v51 = vld [vmem:[%s9058_s0 + $0x234] sm:$0xf]  ;;  %s5150_s17 = smov 105   ;;  %v4194_v52 = vld [vmem:[%s9058_s0 + $0x230] sm:$0xf]  ;;  %v912_v56 = vsel %vm592_vm0, %v910_v48, %v907_v47  ;;  %v1000_v58 = vsel %vm592_vm0, %v998_v50, %v995_v46  ;;  %s1038_s22 = smov 3 }
  0x3b   :  { %896 = vrot.lane.b32.xlu1 %v895_v26, %s5147_s28  ;;  %7 = vst [vmem:[#allocation0 + $0x468] sm:$0xf] %v4193_v51  ;;  %v4289_v53 = vld [vmem:[%s9058_s0 + $0xb4] sm:$0xf]  ;;  %v981_v55 = vld [vmem:[#allocation0 - $0xbb6] ss:$760 sm:%s5425_s4]  }
  0x3c   :  { %v915_v57 = vld [vmem:[#allocation0 - $0xb9e] ss:$760 sm:%s914_s10]   ;;  %11 = vst [vmem:[#allocation0 + $0x460] sm:$0xf] %v4194_v52  ;;  %v4243_v60 = vld [vmem:[%s9058_s0 + $0x16c] sm:$0xf]  ;;  %v983_v61 = vsel %vm597_vm1, %v981_v55, %v978_v54 }
  0x3d   :  { %v1003_v59 = vld [vmem:[#allocation0 - $0xafe] ss:$760 sm:%s1002_s9]   ;;  %391 = vst [vmem:[#allocation0 + $0x168] sm:$0xf] %v4289_v53  ;;  %s1041_s25 = smov 12  ;;  %v917_v62 = vsel %vm597_vm1, %v915_v57, %v912_v56  ;;  %s1046_s30 = smov 48 }
  0x3e   :  { %207 = vst [vmem:[#allocation0 + $0x2d8] sm:$0xf] %v4243_v60  ;;  %v1005_v63 = vsel %vm597_vm1, %v1003_v59, %v1000_v58  ;;  %v4214_v0 = vld [vmem:[%s9058_s0 + $0x1e0] sm:$0xf]  ;;  %v4309_v1 = vld [vmem:[%s9058_s0 + $0x64] sm:$0xf] }
  0x3f   :  { %91 = vst [vmem:[#allocation0 + $0x3c0] sm:$0xf] %v4214_v0  ;;  %s5151_s2 = smov 103   ;;  %v1039_v2 = vld [vmem:[#allocation0 + $0x10] ss:$760 sm:%s1038_s22]   ;;  %s5152_s3 = smov 107  }
  0x40   :  { %874 = vrot.lane.b32.xlu2 %v873_v44, %s5149_s14  ;;  %v1042_v3 = vld [vmem:[#allocation0 - $0x5df] ss:$760 sm:%s1041_s25]   ;;  %471 = vst [vmem:[#allocation0 + $0xc8] sm:$0xf] %v4309_v1  ;;  %s5153_s4 = smov 102   ;;  %s1115_s9 = smov 3 }
  0x41   :  { %v4220_v4 = vld [vmem:[%s9058_s0 + $0x1c8] sm:$0xf]  ;;  %v4315_v5 = vld [vmem:[%s9058_s0 + $0x4c] sm:$0xf]  ;;  %v1044_v6 = vsel %vm592_vm0, %v1042_v3, %v1039_v2  ;;  %v1027_v8 = vld [vmem:[#allocation0 + $0x250] sm:$0x7]  }
  0x42   :  { %940 = vrot.lane.b32.xlu0 %v939_v41, %s5148_s13  ;;  %115 = vst [vmem:[#allocation0 + $0x390] sm:$0xf] %v4220_v4  ;;  %v1047_v7 = vld [vmem:[#allocation0 - $0xbce] ss:$760 sm:%s1046_s30]   ;;  %s1118_s10 = smov 12  ;;  %s5464_s11 = smov 48 }
  0x43   :  { %951 = vrot.lane.b32.xlu1 %v950_v42, %s5150_s17  ;;  %495 = vst [vmem:[#allocation0 + $0x98] sm:$0xf] %v4315_v5  ;;  %v961_v9 = vld [vmem:[#allocation0 + $0x268] sm:$0x7]   ;;  %v1049_v10 = vsel %vm597_vm1, %v1047_v7, %v1044_v6  ;;  %s1128_s12 = smov 3  ;;  %s1131_s13 = smov 12 }
  0x44   :  { %s5467_s14 = smov 48  ;;  %s5154_s15 = smov 100   ;;  %v4269_v11 = vld [vmem:[%s9058_s0 + $0x104] sm:$0xf]  ;;  %v4240_v12 = vld [vmem:[%s9058_s0 + $0x178] sm:$0xf] }
  0x45   :  { %s5155_s16 = smov 104   ;;  %s1172_s17 = smov 3  ;;  %311 = vst [vmem:[#allocation0 + $0x208] sm:$0xf] %v4269_v11  ;;  %v4246_v13 = vld [vmem:[%s9058_s0 + $0x160] sm:$0xf] }
  0x46   :  { %s1175_s18 = smov 12  ;;  %s5156_s23 = smov 99   ;;  %v1116_v14 = vld [vmem:[#allocation0 + $0xb0] ss:$760 sm:%s1115_s9]   ;;  %v1119_v15 = vld [vmem:[#allocation0 - $0x53f] ss:$760 sm:%s1118_s10]  }
  0x47   :  { %s1159_s24 = smov 3  ;;  %s1162_s25 = smov 12  ;;  %v1129_v16 = vld [vmem:[#allocation0 + $0xb8] ss:$760 sm:%s1128_s12]   ;;  %v1132_v17 = vld [vmem:[#allocation0 - $0x537] ss:$760 sm:%s1131_s13]   ;;  %v1121_v29 = vsel %vm592_vm0, %v1119_v15, %v1116_v14 }
  0x48   :  { %918 = vrot.lane.b32.xlu2 %v917_v62, %s5152_s3  ;;  %s1167_s28 = smov 48  ;;  %s1180_s29 = smov 48  ;;  %195 = vst [vmem:[#allocation0 + $0x2f0] sm:$0xf] %v4240_v12  ;;  %v1082_v18 = vld [vmem:[#allocation0 + $0x180] sm:$0x7]   ;;  %v1134_v30 = vsel %vm592_vm0, %v1132_v17, %v1129_v16 }
  0x49   :  { %v1016_v19 = vld [vmem:[#allocation0 + $0x198] sm:$0x7]   ;;  %s1060_s30 = smov 3  ;;  %219 = vst [vmem:[#allocation0 + $0x2c0] sm:$0xf] %v4246_v13  ;;  %s1068_s7 = smov 48 }
  0x4a   :  { %984 = vrot.lane.b32.xlu0 %v983_v61, %s5151_s2  ;;  %v1173_v20 = vld [vmem:[#allocation0 + $0x170] ss:$760 sm:%s1172_s17]   ;;  %v1176_v21 = vld [vmem:[#allocation0 - $0x47f] ss:$760 sm:%s1175_s18]   ;;  %s1063_s2 = smov 12  ;;  %s5157_s8 = smov 97  }
  0x4b   :  { %1006 = vrot.lane.b32.xlu1 %v1005_v63, %s5153_s4  ;;  %v4200_v22 = vld [vmem:[%s9058_s0 + $0x218] sm:$0xf]  ;;  %v4295_v23 = vld [vmem:[%s9058_s0 + $0x9c] sm:$0xf]  ;;  %s5158_s9 = smov 101   ;;  %v1178_v35 = vsel %vm592_vm0, %v1176_v21, %v1173_v20  ;;  %s1247_s10 = smov 3 }
  0x4c   :  { %v1137_v24 = vld [vmem:[#allocation0 - $0xb26] ss:$760 sm:%s5467_s14]   ;;  %v1160_v25 = vld [vmem:[#allocation0 + $0x168] ss:$760 sm:%s1159_s24]   ;;  %v1163_v26 = vld [vmem:[#allocation0 - $0x487] ss:$760 sm:%s1162_s25]  }
  0x4d   :  { %35 = vst [vmem:[#allocation0 + $0x430] sm:$0xf] %v4200_v22  ;;  %v1093_v27 = vld [vmem:[#allocation0 + $0x238] sm:$0x7]   ;;  %v1165_v33 = vsel %vm592_vm0, %v1163_v26, %v1160_v25  ;;  %s5159_s12 = smov 96   ;;  %v1139_v41 = vsel %vm597_vm1, %v1137_v24, %v1134_v30  ;;  %s1250_s19 = smov 12 }
  0x4e   :  { %v1124_v28 = vld [vmem:[#allocation0 - $0xb2e] ss:$760 sm:%s5464_s11]   ;;  %415 = vst [vmem:[#allocation0 + $0x138] sm:$0xf] %v4295_v23  ;;  %v1061_v31 = vld [vmem:[#allocation0 + $0xc8] ss:$760 sm:%s1060_s30]  }
  0x4f   :  { %v1064_v32 = vld [vmem:[#allocation0 - $0x527] ss:$760 sm:%s1063_s2]   ;;  %v1168_v34 = vld [vmem:[#allocation0 - $0xa76] ss:$760 sm:%s1167_s28]   ;;  %s1260_s11 = smov 3  ;;  %v1126_v40 = vsel %vm597_vm1, %v1124_v28, %v1121_v29  ;;  %s1263_s20 = smov 12 }
  0x50   :  { %962 = vrot.lane.b32.xlu2 %v961_v9, %s5155_s16  ;;  %v1181_v36 = vld [vmem:[#allocation0 - $0xa6e] ss:$760 sm:%s1180_s29]   ;;  %v1066_v42 = vsel %vm592_vm0, %v1064_v32, %v1061_v31  ;;  %v1170_v44 = vsel %vm597_vm1, %v1168_v34, %v1165_v33  ;;  %v1261_v46 = vld [vmem:[#allocation0 + $0xa0] ss:$760 sm:%s1260_s11]   ;;  %s1255_s21 = smov 48  ;;  %s1268_s22 = smov 48  ;;  %v1141_v48 = vsel %vm9060_vm2, %v1139_v41, %v1126_v40 }
  0x51   :  { %v4266_v37 = vld [vmem:[%s9058_s0 + $0x110] sm:$0xf]  ;;  %v4272_v38 = vld [vmem:[%s9058_s0 + $0xf8] sm:$0xf]  ;;  %v1183_v45 = vsel %vm597_vm1, %v1181_v36, %v1178_v35  ;;  %v4321_v47 = vld [vmem:[%s9058_s0 + $0x34] sm:$0xf] }
  0x52   :  { %1028 = vrot.lane.b32.xlu0 %v1027_v8, %s5154_s15  ;;  %v4226_v39 = vld [vmem:[%s9058_s0 + $0x1b0] sm:$0xf]  ;;  %299 = vst [vmem:[#allocation0 + $0x220] sm:$0xf] %v4266_v37  ;;  %v1185_v53 = vsel %vm9062_vm3, %v1183_v45, %v1170_v44  ;;  %s5160_s25 = smov 94   ;;  %s5161_s26 = smov 98  }
  0x53   :  { %1050 = vrot.lane.b32.xlu1 %v1049_v10, %s5156_s23  ;;  %v1069_v43 = vld [vmem:[#allocation0 - $0xb16] ss:$760 sm:%s1068_s7]   ;;  %323 = vst [vmem:[#allocation0 + $0x1f0] sm:$0xf] %v4272_v38  ;;  %v1248_v50 = vld [vmem:[#allocation0 + $0x98] ss:$760 sm:%s1247_s10]  }
  0x54   :  { %139 = vst [vmem:[#allocation0 + $0x360] sm:$0xf] %v4226_v39  ;;  %v1071_v49 = vsel %vm597_vm1, %v1069_v43, %v1066_v42  ;;  %v1251_v51 = vld [vmem:[#allocation0 - $0x557] ss:$760 sm:%s1250_s19]   ;;  %v1269_v54 = vld [vmem:[#allocation0 - $0xb3e] ss:$760 sm:%s1268_s22]  }
  0x55   :  { %v1264_v52 = vld [vmem:[#allocation0 - $0x54f] ss:$760 sm:%s1263_s20]   ;;  %519 = vst [vmem:[#allocation0 + $0x68] sm:$0xf] %v4321_v47  ;;  %v1253_v56 = vsel %vm592_vm0, %v1251_v51, %v1248_v50  ;;  %v1256_v57 = vld [vmem:[#allocation0 - $0xb46] ss:$760 sm:%s1255_s21]  }
  0x56   :  { %v1227_v55 = vld [vmem:[#allocation0 + $0x2e0] sm:$0x7]   ;;  %v1266_v58 = vsel %vm592_vm0, %v1264_v52, %v1261_v46  ;;  %v4197_v59 = vld [vmem:[%s9058_s0 + $0x224] sm:$0xf]  ;;  %s5162_s29 = smov 93   ;;  %s5515_s30 = smov 3  ;;  %v1258_v62 = vsel %vm597_vm1, %v1256_v57, %v1253_v56 }
  0x57   :  { %v1225_v60 = vld [vmem:[#allocation0 + $0x2d8] sm:$0x7]   ;;  %23 = vst [vmem:[#allocation0 + $0x448] sm:$0xf] %v4197_v59  ;;  %vm9063_vm4 = vcmask 302080   ;;  %vm9065_vm5 = vcmask 310272   ;;  %v1271_v63 = vsel %vm597_vm1, %v1269_v54, %v1266_v58 }
  0x58   :  { %1017 = vrot.lane.b32.xlu2 %v1016_v19, %s5158_s9  ;;  %s5517_s2 = smov 12  ;;  %s5519_s3 = smov 48  ;;  %v4292_v61 = vld [vmem:[%s9058_s0 + $0xa8] sm:$0xf]  ;;  %v4203_v0 = vld [vmem:[%s9058_s0 + $0x20c] sm:$0xf]  ;;  %v1229_v2 = vsel %vm9063_vm4, %v1227_v55, %v1225_v60  ;;  %v1273_v4 = vsel %vm9065_vm5, %v1271_v63, %v1258_v62 }
  0x59   :  { %s5526_s6 = smov 3  ;;  %s5528_s7 = smov 12  ;;  %403 = vst [vmem:[#allocation0 + $0x150] sm:$0xf] %v4292_v61  ;;  %v4298_v1 = vld [vmem:[%s9058_s0 + $0x90] sm:$0xf] }
  0x5a   :  { %1083 = vrot.lane.b32.xlu0 %v1082_v18, %s5157_s8  ;;  %s5533_s10 = smov 48  ;;  %47 = vst [vmem:[#allocation0 + $0x418] sm:$0xf] %v4203_v0  ;;  %v1104_v3 = vld [vmem:[#allocation0 + $0x2f0] sm:$0x7]   ;;  %s5540_s13 = smov 3 }
  0x5b   :  { %1094 = vrot.lane.b32.xlu1 %v1093_v27, %s5159_s12  ;;  %s5542_s14 = smov 12  ;;  %vm9066_vm6 = vcmask 326656   ;;  %vm9068_vm7 = vcmask 334848   ;;  %s5544_s15 = smov 48  ;;  %427 = vst [vmem:[#allocation0 + $0x120] sm:$0xf] %v4298_v1 }
  0x5c   :  { %s5546_s16 = smov 3  ;;  %s5163_s17 = smov 91   ;;  %v1335_v5 = vld [vmem:[#allocation0 + $0x208] sm:$0x7]   ;;  %v1337_v6 = vld [vmem:[#allocation0 + $0x210] sm:$0x7]  }
  0x5d   :  { %s5164_s18 = smov 95   ;;  %s1304_s19 = smov 3  ;;  %v4252_v7 = vld [vmem:[%s9058_s0 + $0x148] sm:$0xf]  ;;  %v1357_v8 = vld [vmem:[#allocation0 + $0x2c0] sm:$0x7]   ;;  %v1339_v21 = vsel %vm9066_vm6, %v1337_v6, %v1335_v5 }
  0x5e   :  { %s1307_s20 = smov 12  ;;  %s5165_s23 = smov 90   ;;  %v1359_v9 = vld [vmem:[#allocation0 + $0x2c8] sm:$0x7]   ;;  %243 = vst [vmem:[#allocation0 + $0x290] sm:$0xf] %v4252_v7 }
  0x5f   :  { %s1291_s24 = smov 3  ;;  %v1424_v10 = vld [vmem:[#allocation0 + $0x138] ss:$760 sm:%s5515_s30]   ;;  %v1427_v11 = vld [vmem:[#allocation0 - $0x4b7] ss:$760 sm:%s5517_s2]   ;;  %vm9061_vm8 = vcmask 293888   ;;  %v1361_v25 = vsel %vm9068_vm7, %v1359_v9, %v1357_v8 }
  0x60   :  { %1072 = vrot.lane.b32.xlu2 %v1071_v49, %s5161_s26  ;;  %v1437_v12 = vld [vmem:[#allocation0 + $0x140] ss:$760 sm:%s5526_s6]   ;;  %v1440_v13 = vld [vmem:[#allocation0 - $0x4af] ss:$760 sm:%s5528_s7]   ;;  %s5555_s26 = smov 12  ;;  %s1299_s27 = smov 48  ;;  %v1429_v28 = vsel %vm592_vm0, %v1427_v11, %v1424_v10 }
  0x61   :  { %v1203_v14 = vld [vmem:[#allocation0 + $0x220] sm:$0x7]   ;;  %v1205_v15 = vld [vmem:[#allocation0 + $0x228] sm:$0x7]   ;;  %s1312_s28 = smov 48  ;;  %s5563_s2 = smov 48  ;;  %v1442_v29 = vsel %vm592_vm0, %v1440_v13, %v1437_v12 }
  0x62   :  { %1142 = vrot.lane.b32.xlu0 %v1141_v48, %s5160_s25  ;;  %s1294_s25 = smov 12  ;;  %v1305_v16 = vld [vmem:[#allocation0 + $0x158] ss:$760 sm:%s1304_s19]   ;;  %v1308_v17 = vld [vmem:[#allocation0 - $0x497] ss:$760 sm:%s1307_s20]   ;;  %v1207_v23 = vsel %vm9061_vm8, %v1205_v15, %v1203_v14  ;;  %s5572_s6 = smov 12 }
  0x63   :  { %1186 = vrot.lane.b32.xlu1 %v1185_v53, %s5162_s29  ;;  %v1292_v18 = vld [vmem:[#allocation0 + $0x150] ss:$760 sm:%s1291_s24]   ;;  %v1295_v19 = vld [vmem:[#allocation0 - $0x49f] ss:$760 sm:%s1294_s25]   ;;  %v4223_v20 = vld [vmem:[%s9058_s0 + $0x1bc] sm:$0xf]  ;;  %v1310_v32 = vsel %vm592_vm0, %v1308_v17, %v1305_v16 }
  0x64   :  { %v1445_v22 = vld [vmem:[#allocation0 - $0xa9e] ss:$760 sm:%s5533_s10]   ;;  %127 = vst [vmem:[#allocation0 + $0x378] sm:$0xf] %v4223_v20  ;;  %v1297_v30 = vsel %vm592_vm0, %v1295_v19, %v1292_v18  ;;  %s1392_s7 = smov 3  ;;  %s1395_s8 = smov 12 }
  0x65   :  { %v4318_v24 = vld [vmem:[%s9058_s0 + $0x40] sm:$0xf]  ;;  %s5166_s9 = smov 88   ;;  %vm9069_vm9 = vcmask 351232   ;;  %vm9102_vm10 = vcmask 777216   ;;  %s5167_s10 = smov 92   ;;  %v1447_v39 = vsel %vm597_vm1, %v1445_v22, %v1442_v29 }
  0x66   :  { %v1432_v26 = vld [vmem:[#allocation0 - $0xaa6] ss:$760 sm:%s5519_s3]   ;;  %s5570_s3 = smov 3  ;;  %507 = vst [vmem:[#allocation0 + $0x80] sm:$0xf] %v4318_v24  ;;  %vm9071_vm11 = vcmask 359424  }
  0x67   :  { %v1313_v27 = vld [vmem:[#allocation0 - $0xa86] ss:$760 sm:%s1312_s28]   ;;  %s1568_s11 = smov 3  ;;  %s1571_s12 = smov 12  ;;  %v1525_v36 = vld [vmem:[#allocation0 + $0x70] ss:$760 sm:%s5546_s16]   ;;  %v1434_v38 = vsel %vm597_vm1, %v1432_v26, %v1429_v28 }
  0x68   :  { %1105 = vrot.lane.b32.xlu2 %v1104_v3, %s5164_s18  ;;  %v1300_v31 = vld [vmem:[#allocation0 - $0xa8e] ss:$760 sm:%s1299_s27]   ;;  %v1528_v37 = vld [vmem:[#allocation0 - $0x57f] ss:$760 sm:%s5555_s26]   ;;  %vm9064_vm12 = vcmask 318464   ;;  %s5584_s19 = smov 48  ;;  %v1315_v43 = vsel %vm597_vm1, %v1313_v27, %v1310_v32  ;;  %v1449_v51 = vsel %vm9069_vm9, %v1447_v39, %v1434_v38 }
  0x69   :  { %v1467_v34 = vld [vmem:[#allocation0 + $0x1f0] sm:$0x7]   ;;  %v1469_v35 = vld [vmem:[#allocation0 + $0x1f8] sm:$0x7]   ;;  %s1576_s20 = smov 48  ;;  %v1302_v42 = vsel %vm597_vm1, %v1300_v31, %v1297_v30  ;;  %s1379_s21 = smov 3  ;;  %v1530_v57 = vsel %vm592_vm0, %v1528_v37, %v1525_v36 }
  0x6a   :  { %1230 = vrot.lane.b32.xlu0 %v1229_v2, %s5163_s17  ;;  %s5168_s17 = smov 87   ;;  %v1512_v40 = vld [vmem:[#allocation0 + $0x68] ss:$760 sm:%s5540_s13]   ;;  %v1515_v41 = vld [vmem:[#allocation0 - $0x587] ss:$760 sm:%s5542_s14]   ;;  %s1382_s24 = smov 12  ;;  %v1317_v53 = vsel %vm9064_vm12, %v1315_v43, %v1302_v42  ;;  %v1471_v56 = vsel %vm9071_vm11, %v1469_v35, %v1467_v34 }
  0x6b   :  { %1274 = vrot.lane.b32.xlu1 %v1273_v4, %s5165_s23  ;;  %v1393_v44 = vld [vmem:[#allocation0 + $0x88] ss:$760 sm:%s1392_s7]   ;;  %v1396_v45 = vld [vmem:[#allocation0 - $0x567] ss:$760 sm:%s1395_s8]   ;;  %v4229_v48 = vld [vmem:[%s9058_s0 + $0x1a4] sm:$0xf]  ;;  %v1517_v61 = vsel %vm592_vm0, %v1515_v41, %v1512_v40 }
  0x6c   :  { %v1569_v46 = vld [vmem:[#allocation0 + $0x128] ss:$760 sm:%s1568_s11]   ;;  %v1572_v47 = vld [vmem:[#allocation0 - $0x4c7] ss:$760 sm:%s1571_s12]   ;;  %v1533_v49 = vld [vmem:[#allocation0 - $0xb6e] ss:$760 sm:%s5563_s2]   ;;  %v1398_v1 = vsel %vm592_vm0, %v1396_v45, %v1393_v44 }
  0x6d   :  { %s1387_s27 = smov 48  ;;  %s1400_s28 = smov 48  ;;  %151 = vst [vmem:[#allocation0 + $0x348] sm:$0xf] %v4229_v48  ;;  %v4324_v50 = vld [vmem:[%s9058_s0 + $0x28] sm:$0xf]  ;;  %v1574_v4 = vsel %vm592_vm0, %v1572_v47, %v1569_v46  ;;  %v1535_v7 = vsel %vm597_vm1, %v1533_v49, %v1530_v57 }
  0x6e   :  { %v1520_v52 = vld [vmem:[#allocation0 - $0xb76] ss:$760 sm:%s5544_s15]   ;;  %v1556_v54 = vld [vmem:[#allocation0 + $0x120] ss:$760 sm:%s5570_s3]   ;;  %v1559_v55 = vld [vmem:[#allocation0 - $0x4cf] ss:$760 sm:%s5572_s6]  }
  0x6f   :  { %531 = vst [vmem:[#allocation0 + $0x50] sm:$0xf] %v4324_v50  ;;  %v1577_v58 = vld [vmem:[#allocation0 - $0xab6] ss:$760 sm:%s1576_s20]   ;;  %v1380_v59 = vld [vmem:[#allocation0 + $0x80] ss:$760 sm:%s1379_s21]   ;;  %v1561_v3 = vsel %vm592_vm0, %v1559_v55, %v1556_v54  ;;  %v1522_v9 = vsel %vm597_vm1, %v1520_v52, %v1517_v61 }
  0x70   :  { %1208 = vrot.lane.b32.xlu2 %v1207_v23, %s5167_s10  ;;  %v1383_v60 = vld [vmem:[#allocation0 - $0x56f] ss:$760 sm:%s1382_s24]   ;;  %v1564_v62 = vld [vmem:[#allocation0 - $0xabe] ss:$760 sm:%s5584_s19]   ;;  %s5169_s15 = smov 85   ;;  %s5170_s2 = smov 89   ;;  %v1579_v15 = vsel %vm597_vm1, %v1577_v58, %v1574_v4 }
  0x71   :  { %v1385_v63 = vsel %vm592_vm0, %v1383_v60, %v1380_v59  ;;  %v1388_v0 = vld [vmem:[#allocation0 - $0xb5e] ss:$760 sm:%s1387_s27]   ;;  %s1656_s4 = smov 3  ;;  %v4249_v6 = vld [vmem:[%s9058_s0 + $0x154] sm:$0xf]  ;;  %s5171_s8 = smov 84   ;;  %v1566_v14 = vsel %vm597_vm1, %v1564_v62, %v1561_v3 }
  0x72   :  { %1340 = vrot.lane.b32.xlu0 %v1339_v21, %s5166_s9  ;;  %v655_v33 = vpop.permute.xlu2 %654   ;;  %v1401_v2 = vld [vmem:[#allocation0 - $0xb56] ss:$760 sm:%s1400_s28]   ;;  %vm9072_vm13 = vcmask 375808   ;;  %s1659_s9 = smov 12  ;;  %v1390_v11 = vsel %vm597_vm1, %v1388_v0, %v1385_v63  ;;  %vm9067_vm14 = vcmask 343040   ;;  %s1643_s10 = smov 3 }
  0x73   :  { %1362 = vrot.lane.b32.xlu1 %v1361_v25, %s5168_s17  ;;  %4351 = vst.msk [vmem:[%s9059_s1 + $0x1b] ss:$129 sm:$0x3] %vm9102_vm10, %v655_v33   ;;  %v4278_v5 = vld [vmem:[%s9058_s0 + $0xe0] sm:$0xf]  ;;  %v1403_v12 = vsel %vm597_vm1, %v1401_v2, %v1398_v1  ;;  %s1646_s11 = smov 12  ;;  %v1537_v18 = vsel %vm9072_vm13, %v1535_v7, %v1522_v9 }
  0x74   :  { %4352 = vst.msk [vmem:[%s9059_s1 - $0x27] ss:$129 sm:$0xc] %vm9102_vm10, %v655_v33   ;;  %vm9074_vm15 = vcmask 384000   ;;  %v1657_v16 = vld [vmem:[#allocation0 + $0x58] ss:$760 sm:%s1656_s4]   ;;  %v1405_v19 = vsel %vm9067_vm14, %v1403_v12, %v1390_v11 }
  0x75   :  { %4353 = vst.msk [vmem:[%s9059_s1 - $0x69] ss:$129 sm:$0x30] %vm9102_vm10, %v655_v33   ;;  %s1651_s19 = smov 48  ;;  %v1660_v17 = vld [vmem:[#allocation0 - $0x597] ss:$760 sm:%s1659_s9]   ;;  %v1581_v22 = vsel %vm9074_vm15, %v1579_v15, %v1566_v14 }
  0x76   :  { %347 = vst [vmem:[#allocation0 + $0x1c0] sm:$0xf] %v4278_v5  ;;  %s1664_s20 = smov 48  ;;  %v1644_v20 = vld [vmem:[#allocation0 + $0x50] ss:$760 sm:%s1643_s10]   ;;  %s5172_s25 = smov 82   ;;  %v1662_v28 = vsel %vm592_vm0, %v1660_v17, %v1657_v16 }
  0x77   :  { %231 = vst [vmem:[#allocation0 + $0x2a8] sm:$0xf] %v4249_v6  ;;  %v1647_v21 = vld [vmem:[#allocation0 - $0x59f] ss:$760 sm:%s1646_s11]   ;;  %v1665_v23 = vld [vmem:[#allocation0 - $0xb86] ss:$760 sm:%s1664_s20]  }
  0x78   :  { %1318 = vrot.lane.b32.xlu2 %v1317_v53, %s5170_s2  ;;  %v1621_v24 = vld [vmem:[#allocation0 + $0x290] sm:$0x7]   ;;  %v1623_v25 = vld [vmem:[#allocation0 + $0x298] sm:$0x7]   ;;  %s5173_s28 = smov 86   ;;  %v1649_v26 = vsel %vm592_vm0, %v1647_v21, %v1644_v20  ;;  %s5174_s29 = smov 81   ;;  %v1667_v35 = vsel %vm597_vm1, %v1665_v23, %v1662_v28 }
  0x79   :  { %v1652_v27 = vld [vmem:[#allocation0 - $0xb8e] ss:$760 sm:%s1651_s19]   ;;  %vm9075_vm2 = vcmask 400384   ;;  %vm9070_vm8 = vcmask 367616   ;;  %vm9077_vm3 = vcmask 408576   ;;  %s5175_s16 = smov 79  }
  0x7a   :  { %1450 = vrot.lane.b32.xlu0 %v1449_v51, %s5169_s15  ;;  %v5628_v10 = vpop.permute.xlu2 %676   ;;  %v1491_v29 = vld [vmem:[#allocation0 + $0x2b0] sm:$0x7]   ;;  %v1654_v34 = vsel %vm597_vm1, %v1652_v27, %v1649_v26  ;;  %v1625_v36 = vsel %vm9075_vm2, %v1623_v25, %v1621_v24  ;;  %s5176_s20 = smov 83   ;;  %s5177_s21 = smov 78   ;;  %v1733_v39 = vld [vmem:[#allocation0 + $0x1c8] sm:$0x7]  }
  0x7b   :  { %1472 = vrot.lane.b32.xlu1 %v1471_v56, %s5171_s8  ;;  %4354 = vst.msk [vmem:[%s9059_s1 + $0x3a] ss:$129 sm:$0x3] %vm9102_vm10, %v5628_v10   ;;  %v1669_v38 = vsel %vm9077_vm3, %v1667_v35, %v1654_v34  ;;  %vm9078_vm4 = vcmask 424960   ;;  %s5178_s5 = smov 76   ;;  %s1832_s24 = smov 3 }
  0x7c   :  { %v611_v8 = vpop.permute.xlu0 %610   ;;  %4355 = vst.msk [vmem:[%s9059_s1 - $0x8] ss:$129 sm:$0xc] %vm9102_vm10, %v5628_v10   ;;  %v4255_v47 = vld [vmem:[%s9058_s0 + $0x13c] sm:$0xf]  ;;  %s1840_s26 = smov 48 }
  0x7d   :  { %4342 = vst.msk [vmem:[%s9059_s1 + $0x3e] sm:$0x1] %vm9102_vm10, %v611_v8   ;;  %v622_v13 = vpop.permute.xlu1 %621   ;;  %v1731_v41 = vld [vmem:[#allocation0 + $0x1c0] sm:$0x7]   ;;  %v4209_v49 = vld [vmem:[%s9058_s0 + $0x1f4] sm:$0xf] }
  0x7e   :  { %4343 = vst.msk [vmem:[%s9059_s1 + $0xfd] sm:$0x2] %vm9102_vm10, %v611_v8   ;;  %v1489_v32 = vld [vmem:[#allocation0 + $0x2a8] sm:$0x7]   ;;  %v1735_v44 = vsel %vm9078_vm4, %v1733_v39, %v1731_v41  ;;  %v4304_v50 = vld [vmem:[%s9058_s0 + $0x78] sm:$0xf] }
  0x7f   :  { %4344 = vst.msk [vmem:[%s9059_s1 + $0x1bc] sm:$0x4] %vm9102_vm10, %v611_v8   ;;  %v1493_v37 = vsel %vm9070_vm8, %v1491_v29, %v1489_v32  ;;  %v1833_v51 = vld [vmem:[#allocation0 + $0xf8] ss:$760 sm:%s1832_s24]   ;;  %vm9080_vm12 = vcmask 433152   ;;  %s1819_s15 = smov 3 }
  0x80   :  { %4345 = vst.msk [vmem:[%s9059_s1 + $0x5d] sm:$0x1] %vm9102_vm10, %v622_v13   ;;  %1406 = vrot.lane.b32.xlu2 %v1405_v19, %s5173_s28  ;;  %v1755_v54 = vld [vmem:[#allocation0 + $0x280] sm:$0x7]   ;;  %s1827_s3 = smov 48  ;;  %vm9081_vm5 = vcmask 449536  }
  0x81   :  { %4346 = vst.msk [vmem:[%s9059_s1 + $0x11c] sm:$0x2] %vm9102_vm10, %v622_v13   ;;  %v1841_v57 = vld [vmem:[#allocation0 - $0xae6] ss:$760 sm:%s1840_s26]   ;;  %s5179_s12 = smov 75   ;;  %s5180_s26 = smov 73  }
  0x82   :  { %1538 = vrot.lane.b32.xlu0 %v1537_v18, %s5172_s25  ;;  %4347 = vst.msk [vmem:[%s9059_s1 + $0x1db] sm:$0x4] %vm9102_vm10, %v622_v13   ;;  %v721_v31 = vpop.permute.xlu2 %720   ;;  %s1835_s25 = smov 12  ;;  %v4275_v2 = vld [vmem:[%s9058_s0 + $0xec] sm:$0xf]  ;;  %s1923_s30 = smov 12 }
  0x83   :  { %1582 = vrot.lane.b32.xlu1 %v1581_v22, %s5174_s29  ;;  %4356 = vst.msk [vmem:[%s9059_s1 - $0x4a] ss:$129 sm:$0x30] %vm9102_vm10, %v5628_v10   ;;  %v1836_v52 = vld [vmem:[#allocation0 - $0x4f7] ss:$760 sm:%s1835_s25]   ;;  %s1920_s29 = smov 3 }
  0x84   :  { %v600_v30 = vpop.permute.xlu0 %599   ;;  %4363 = vst.msk [vmem:[%s9059_s1 + $0x17] ss:$129 sm:$0x3] %vm9102_vm10, %v721_v31   ;;  %v1838_v56 = vsel %vm592_vm0, %v1836_v52, %v1833_v51  ;;  %v4281_v4 = vld [vmem:[%s9058_s0 + $0xd4] sm:$0xf]  ;;  %s1910_s2 = smov 12 }
  0x85   :  { %4339 = vst.msk [vmem:[%s9059_s1 + $0xa0] ss:$-129 sm:$0x3] %vm9102_vm10, %v600_v30   ;;  %v633_v33 = vpop.permute.xlu1 %632   ;;  %v1843_v63 = vsel %vm597_vm1, %v1841_v57, %v1838_v56  ;;  %v4235_v6 = vld [vmem:[%s9058_s0 + $0x18c] sm:$0xf]  ;;  %s1915_s4 = smov 48 }
  0x86   :  { %4340 = vst.msk [vmem:[%s9059_s1 + $0x262] ss:$-129 sm:$0xc] %vm9102_vm10, %v600_v30   ;;  %v4330_v8 = vld [vmem:[%s9058_s0 + $0x10] sm:$0xf]  ;;  %vm9073_vm6 = vcmask 392192  }
  0x87   :  { %4341 = vst.msk [vmem:[%s9059_s1 + $0x424] ss:$-129 sm:$0x30] %vm9102_vm10, %v600_v30   ;;  %v1921_v10 = vld [vmem:[#allocation0 + $0x28] ss:$760 sm:%s1920_s29]   ;;  %vm9083_vm14 = vcmask 457728  }
  0x88   :  { %4348 = vst.msk [vmem:[%s9059_s1 + $0x7d] sm:$0x1] %vm9102_vm10, %v633_v33   ;;  %1494 = vrot.lane.b32.xlu2 %v1493_v37, %s5176_s20  ;;  %v1924_v11 = vld [vmem:[#allocation0 - $0x5c7] ss:$760 sm:%s1923_s30]   ;;  %s5181_s18 = smov 80   ;;  %vm9084_vm7 = vcmask 474112  }
  0x89   :  { %4349 = vst.msk [vmem:[%s9059_s1 + $0x13c] sm:$0x2] %vm9102_vm10, %v633_v33   ;;  %v1601_v12 = vld [vmem:[#allocation0 + $0x1e0] sm:$0x7]   ;;  %v1865_v13 = vld [vmem:[#allocation0 + $0x1b0] sm:$0x7]   ;;  %v1926_v15 = vsel %vm592_vm0, %v1924_v11, %v1921_v10 }
  0x8a   :  { %1626 = vrot.lane.b32.xlu0 %v1625_v36, %s5175_s16  ;;  %4350 = vst.msk [vmem:[%s9059_s1 + $0x1fb] sm:$0x4] %vm9102_vm10, %v633_v33   ;;  %v765_v42 = vpop.permute.xlu2 %764   ;;  %s5182_s13 = smov 72   ;;  %v4206_v26 = vld [vmem:[%s9058_s0 + $0x200] sm:$0xf]  ;;  %s5866_s24 = smov 3 }
  0x8b   :  { %1670 = vrot.lane.b32.xlu1 %v1669_v38, %s5177_s21  ;;  %4364 = vst.msk [vmem:[%s9059_s1 - $0x2b] ss:$129 sm:$0xc] %vm9102_vm10, %v721_v31   ;;  %v4301_v28 = vld [vmem:[%s9058_s0 + $0x84] sm:$0xf]  ;;  %s5876_s29 = smov 12 }
  0x8c   :  { %v688_v40 = vpop.permute.xlu0 %687   ;;  %4365 = vst.msk [vmem:[%s9059_s1 - $0x6d] ss:$129 sm:$0x30] %vm9102_vm10, %v721_v31   ;;  %s5878_s30 = smov 48  ;;  %v4212_v32 = vld [vmem:[%s9058_s0 + $0x1e8] sm:$0xf] }
  0x8d   :  { %4357 = vst.msk [vmem:[%s9059_s1 + $0x59] sm:$0x1] %vm9102_vm10, %v688_v40   ;;  %v699_v43 = vpop.permute.xlu1 %698   ;;  %s5183_s7 = smov 70   ;;  %s1708_s8 = smov 48  ;;  %v4307_v33 = vld [vmem:[%s9058_s0 + $0x6c] sm:$0xf] }
  0x8e   :  { %4358 = vst.msk [vmem:[%s9059_s1 + $0x118] sm:$0x2] %vm9102_vm10, %v688_v40   ;;  %s1964_s11 = smov 3  ;;  %v4261_v34 = vld [vmem:[%s9058_s0 + $0x124] sm:$0xf]  ;;  %s1972_s19 = smov 48 }
  0x8f   :  { %4359 = vst.msk [vmem:[%s9059_s1 + $0x1d7] sm:$0x4] %vm9102_vm10, %v688_v40   ;;  %v1965_v38 = vld [vmem:[#allocation0 + $0xe0] ss:$760 sm:%s1964_s11]   ;;  %v1709_v41 = vld [vmem:[#allocation0 - $0xace] ss:$760 sm:%s1708_s8]  }
  0x90   :  { %4360 = vst.msk [vmem:[%s9059_s1 + $0x79] sm:$0x1] %vm9102_vm10, %v699_v43   ;;  %s1954_s20 = smov 12  ;;  %vm9076_vm9 = vcmask 416768   ;;  %s1959_s21 = smov 48  ;;  %vm9086_vm8 = vcmask 482304  }
  0x91   :  { %4361 = vst.msk [vmem:[%s9059_s1 + $0x138] sm:$0x2] %vm9102_vm10, %v699_v43   ;;  %vm9087_vm11 = vcmask 498688   ;;  %s5186_s8 = smov 69   ;;  %s5960_s17 = smov 3  ;;  %vm9079_vm13 = vcmask 441344  }
  0x92   :  { %1736 = vrot.lane.b32.xlu0 %v1735_v44, %s5178_s5  ;;  %4362 = vst.msk [vmem:[%s9059_s1 + $0x1f7] sm:$0x4] %vm9102_vm10, %v699_v43   ;;  %v5744_v46 = vpop.permute.xlu2 %819   ;;  %s1822_s5 = smov 12  ;;  %v1973_v43 = vld [vmem:[#allocation0 - $0xafe] ss:$760 sm:%s1972_s19]   ;;  %s5962_s16 = smov 12 }
  0x93   :  { %255 = vst [vmem:[#allocation0 + $0x278] sm:$0xf] %v4255_v47  ;;  %s1783_s22 = smov 48  ;;  %s1796_s23 = smov 48  ;;  %vm9090_vm15 = vcmask 523264   ;;  %vm9082_vm2 = vcmask 465920  }
  0x94   :  { %v743_v45 = vpop.permute.xlu0 %742   ;;  %71 = vst [vmem:[#allocation0 + $0x3e8] sm:$0xf] %v4209_v49  ;;  %v2019_v49 = vld [vmem:[#allocation0 + $0x250] sm:$0x7]   ;;  %s2055_s27 = smov 12  ;;  %s2193_s6 = smov 3 }
  0x95   :  { %4366 = vst.msk [vmem:[%s9059_s1 + $0x36] ss:$129 sm:$0x3] %vm9102_vm10, %v743_v45   ;;  %v754_v48 = vpop.permute.xlu1 %753   ;;  %v1797_v10 = vld [vmem:[#allocation0 - $0xb9e] ss:$760 sm:%s1796_s23]   ;;  %s5189_s23 = smov 66  }
  0x96   :  { %4367 = vst.msk [vmem:[%s9059_s1 - $0xc] ss:$129 sm:$0xc] %vm9102_vm10, %v743_v45   ;;  %s2196_s10 = smov 12  ;;  %vm9093_vm3 = vcmask 547840   ;;  %s5191_s25 = smov 63  }
  0x97   :  { %4368 = vst.msk [vmem:[%s9059_s1 - $0x4e] ss:$129 sm:$0x30] %vm9102_vm10, %v743_v45   ;;  %s2253_s9 = smov 12  ;;  %vm9085_vm4 = vcmask 490496   ;;  %s2245_s14 = smov 48 }
  0x98   :  { %451 = vst [vmem:[#allocation0 + $0xf0] sm:$0xf] %v4304_v50  ;;  %s6187_s11 = smov 48  ;;  %s2099_s19 = smov 12 }
  0x99   :  { %4369 = vst.msk [vmem:[%s9059_s1 + $0x55] sm:$0x1] %vm9102_vm10, %v754_v48   ;;  %s2346_s28 = smov 48 }
  0x9a   :  { %4370 = vst.msk [vmem:[%s9059_s1 + $0x114] sm:$0x2] %vm9102_vm10, %v754_v48   ;;  %v1753_v58 = vld [vmem:[#allocation0 + $0x278] sm:$0x7]   ;;  %v5794_v0 = vpop.permute.xlu2 %874  }
  0x9b   :  { %4371 = vst.msk [vmem:[%s9059_s1 + $0x1d3] sm:$0x4] %vm9102_vm10, %v754_v48   ;;  %v1757_v59 = vsel %vm9080_vm12, %v1755_v54, %v1753_v58  ;;  %vm9097_vm12 = vcmask 572416  }
  0x9c   :  { %v787_v53 = vpop.permute.xlu0 %786   ;;  %4372 = vst.msk [vmem:[%s9059_s1 + $0x75] sm:$0x1] %vm9102_vm10, %v765_v42   ;;  %1758 = vrot.lane.b32.xlu1 %v1757_v59, %s5179_s12  ;;  %s1967_s12 = smov 12 }
  0x9d   :  { %v809_v55 = vpop.permute.xlu1 %808   ;;  %4373 = vst.msk [vmem:[%s9059_s1 + $0x134] sm:$0x2] %vm9102_vm10, %v765_v42   ;;  %v1968_v39 = vld [vmem:[#allocation0 - $0x50f] ss:$760 sm:%s1967_s12]   ;;  %s2258_s12 = smov 48 }
  0x9e   :  { %4374 = vst.msk [vmem:[%s9059_s1 + $0x1f3] sm:$0x4] %vm9102_vm10, %v765_v42   ;;  %v1970_v42 = vsel %vm592_vm0, %v1968_v39, %v1965_v38  ;;  %v1887_v39 = vld [vmem:[#allocation0 + $0x268] sm:$0x7]  }
  0x9f   :  { %v1820_v60 = vld [vmem:[#allocation0 + $0xf0] ss:$760 sm:%s1819_s15]   ;;  %v1823_v61 = vld [vmem:[#allocation0 - $0x4ff] ss:$760 sm:%s1822_s5]   ;;  %v1828_v62 = vld [vmem:[#allocation0 - $0xaee] ss:$760 sm:%s1827_s3]   ;;  %v1975_v54 = vsel %vm597_vm1, %v1973_v43, %v1970_v42 }
  0xa0   :  { %v1825_v1 = vsel %vm592_vm0, %v1823_v61, %v1820_v60  ;;  %4375 = vst.msk [vmem:[%s9059_s1 + $0x13] ss:$129 sm:$0x3] %vm9102_vm10, %v787_v53   ;;  %s1907_s15 = smov 3  ;;  %s1928_s5 = smov 48 }
  0xa1   :  { %v1830_v3 = vsel %vm597_vm1, %v1828_v62, %v1825_v1  ;;  %4376 = vst.msk [vmem:[%s9059_s1 - $0x2f] ss:$129 sm:$0xc] %vm9102_vm10, %v787_v53   ;;  %v1929_v16 = vld [vmem:[#allocation0 - $0xbb6] ss:$760 sm:%s1928_s5]   ;;  %s1703_s5 = smov 12 }
  0xa2   :  { %v1845_v5 = vsel %vm9081_vm5, %v1843_v63, %v1830_v3  ;;  %4377 = vst.msk [vmem:[%s9059_s1 - $0x71] ss:$129 sm:$0x30] %vm9102_vm10, %v787_v53   ;;  %v1931_v24 = vsel %vm597_vm1, %v1929_v16, %v1926_v15  ;;  %v5882_v30 = vpop.permute.xlu2 %918   ;;  %v1704_v37 = vld [vmem:[#allocation0 - $0x4df] ss:$760 sm:%s1703_s5]   ;;  %s2047_s3 = smov 48 }
  0xa3   :  { %1846 = vrot.lane.b32.xlu0 %v1845_v5, %s5180_s26  ;;  %335 = vst [vmem:[#allocation0 + $0x1d8] sm:$0xf] %v4275_v2  ;;  %v4232_v61 = vld [vmem:[%s9058_s0 + $0x198] sm:$0xf]  ;;  %v4327_v62 = vld [vmem:[%s9058_s0 + $0x1c] sm:$0xf] }
  0xa4   :  { %v831_v7 = vpop.permute.xlu0 %830   ;;  %359 = vst [vmem:[#allocation0 + $0x1a8] sm:$0xf] %v4281_v4  ;;  %v4238_v1 = vld [vmem:[%s9058_s0 + $0x180] sm:$0xf]  ;;  %v4333_v3 = vld [vmem:[%s9058_s0 + $0x4] sm:$0xf] }
  0xa5   :  { %v5823_v9 = vpop.permute.xlu1 %852   ;;  %175 = vst [vmem:[#allocation0 + $0x318] sm:$0xf] %v4235_v6  ;;  %v4287_v4 = vld [vmem:[%s9058_s0 + $0xbc] sm:$0xf]  ;;  %s2206_s5 = smov 3  ;;  %vm9088_vm5 = vcmask 515072  }
  0xa6   :  { %555 = vst [vmem:[#allocation0 + $0x20] sm:$0xf] %v4330_v8  ;;  %v2056_v8 = vld [vmem:[#allocation0 - $0x5df] ss:$760 sm:%s2055_s27]   ;;  %s5193_s27 = smov 68   ;;  %s6452_s26 = smov 12 }
  0xa7   :  { %4378 = vst.msk [vmem:[%s9059_s1 + $0x32] ss:$129 sm:$0x3] %vm9102_vm10, %v809_v55  }
  0xa8   :  { %4379 = vst.msk [vmem:[%s9059_s1 - $0x10] ss:$129 sm:$0xc] %vm9102_vm10, %v809_v55  }
  0xa9   :  { %4380 = vst.msk [vmem:[%s9059_s1 - $0x52] ss:$129 sm:$0x30] %vm9102_vm10, %v809_v55  }
  0xaa   :  { %v1599_v14 = vld [vmem:[#allocation0 + $0x1d8] sm:$0x7]   ;;  %4381 = vst.msk [vmem:[%s9059_s1 + $0x51] sm:$0x1] %vm9102_vm10, %v5744_v46  }
  0xab   :  { %v1603_v18 = vsel %vm9073_vm6, %v1601_v12, %v1599_v14  ;;  %v1863_v19 = vld [vmem:[#allocation0 + $0x1a8] sm:$0x7]   ;;  %4382 = vst.msk [vmem:[%s9059_s1 + $0x110] sm:$0x2] %vm9102_vm10, %v5744_v46   ;;  %vm9089_vm6 = vcmask 506880  }
  0xac   :  { %v5843_v17 = vpop.permute.xlu0 %885   ;;  %1604 = vrot.lane.b32.xlu2 %v1603_v18, %s5181_s18  ;;  %v1867_v20 = vsel %vm9083_vm14, %v1865_v13, %v1863_v19  ;;  %4383 = vst.msk [vmem:[%s9059_s1 + $0x1cf] sm:$0x4] %vm9102_vm10, %v5744_v46   ;;  %s1951_s18 = smov 3  ;;  %v2129_v18 = vld [vmem:[#allocation0 + $0x180] sm:$0x7]   ;;  %vm9099_vm14 = vcmask 596992  }
  0xad   :  { %1868 = vrot.lane.b32.xlu1 %v1867_v20, %s5182_s13  ;;  %v1908_v21 = vld [vmem:[#allocation0 + $0x20] ss:$760 sm:%s1907_s15]   ;;  %v1911_v22 = vld [vmem:[#allocation0 - $0x5cf] ss:$760 sm:%s1910_s2]   ;;  %v1916_v23 = vld [vmem:[#allocation0 - $0xbbe] ss:$760 sm:%s1915_s4]   ;;  %v5880_v29 = vpop.permute.xlu1 %896  }
  0xae   :  { %v1913_v25 = vsel %vm592_vm0, %v1911_v22, %v1908_v21  ;;  %4384 = vst.msk [vmem:[%s9059_s1 + $0x71] sm:$0x1] %vm9102_vm10, %v831_v7   ;;  %s1700_s4 = smov 3  ;;  %s1791_s13 = smov 12 }
  0xaf   :  { %v1918_v27 = vsel %vm597_vm1, %v1916_v23, %v1913_v25  ;;  %4385 = vst.msk [vmem:[%s9059_s1 + $0x130] sm:$0x2] %vm9102_vm10, %v831_v7   ;;  %v1701_v36 = vld [vmem:[#allocation0 + $0x110] ss:$760 sm:%s1700_s4]   ;;  %s5185_s4 = smov 67   ;;  %s2039_s15 = smov 3 }
  0xb0   :  { %v1933_v31 = vsel %vm9084_vm7, %v1931_v24, %v1918_v27  ;;  %4386 = vst.msk [vmem:[%s9059_s1 + $0x1ef] sm:$0x4] %vm9102_vm10, %v831_v7   ;;  %v1706_v40 = vsel %vm592_vm0, %v1704_v37, %v1701_v36  ;;  %v1792_v6 = vld [vmem:[#allocation0 - $0x5af] ss:$760 sm:%s1791_s13]   ;;  %s2042_s2 = smov 12  ;;  %vm9091_vm7 = vcmask 539648  }
  0xb1   :  { %1934 = vrot.lane.b32.xlu0 %v1933_v31, %s5183_s7  ;;  %59 = vst [vmem:[#allocation0 + $0x400] sm:$0xf] %v4206_v26  ;;  %v1711_v47 = vsel %vm597_vm1, %v1709_v41, %v1706_v40  ;;  %v4313_v36 = vld [vmem:[%s9058_s0 + $0x54] sm:$0xf]  ;;  %s2214_s7 = smov 48  ;;  %s2734_s13 = smov 3 }
  0xb2   :  { %439 = vst [vmem:[#allocation0 + $0x108] sm:$0xf] %v4301_v28  ;;  %v2207_v37 = vld [vmem:[#allocation0 + $0xb0] ss:$760 sm:%s2206_s5]   ;;  %v2215_v43 = vld [vmem:[#allocation0 - $0xb2e] ss:$760 sm:%s2214_s7]  }
  0xb3   :  { %83 = vst [vmem:[#allocation0 + $0x3d0] sm:$0xf] %v4212_v32  ;;  %v2151_v40 = vld [vmem:[#allocation0 + $0x238] sm:$0x7]   ;;  %s5192_s7 = smov 61   ;;  %s6174_s5 = smov 3 }
  0xb4   :  { %v5898_v35 = vpop.permute.xlu0 %940   ;;  %463 = vst [vmem:[#allocation0 + $0xd8] sm:$0xf] %v4307_v33  ;;  %v4258_v33 = vld [vmem:[%s9058_s0 + $0x130] sm:$0xf] }
  0xb5   :  { %279 = vst [vmem:[#allocation0 + $0x248] sm:$0xf] %v4261_v34  ;;  %v5964_v63 = vpop.permute.xlu1 %951   ;;  %v4264_v34 = vld [vmem:[%s9058_s0 + $0x118] sm:$0xf] }
  0xb6   :  { %4387 = vst.msk [vmem:[%s9059_s1 + $0xf] ss:$129 sm:$0x3] %vm9102_vm10, %v5823_v9  }
  0xb7   :  { %4388 = vst.msk [vmem:[%s9059_s1 - $0x33] ss:$129 sm:$0xc] %vm9102_vm10, %v5823_v9  }
  0xb8   :  { %4389 = vst.msk [vmem:[%s9059_s1 - $0x75] ss:$129 sm:$0x30] %vm9102_vm10, %v5823_v9  }
  0xb9   :  { %v1688_v44 = vld [vmem:[#allocation0 + $0x108] ss:$760 sm:%s5866_s24]   ;;  %v1691_v45 = vld [vmem:[#allocation0 - $0x4e7] ss:$760 sm:%s5876_s29]   ;;  %v1696_v46 = vld [vmem:[#allocation0 - $0xad6] ss:$760 sm:%s5878_s30]  }
  0xba   :  { %v1693_v48 = vsel %vm592_vm0, %v1691_v45, %v1688_v44  ;;  %4390 = vst.msk [vmem:[%s9059_s1 + $0x2e] ss:$129 sm:$0x3] %vm9102_vm10, %v5794_v0   ;;  %s5184_s30 = smov 77   ;;  %s2052_s24 = smov 3 }
  0xbb   :  { %v1698_v50 = vsel %vm597_vm1, %v1696_v46, %v1693_v48  ;;  %v1952_v51 = vld [vmem:[#allocation0 + $0xd8] ss:$760 sm:%s1951_s18]   ;;  %v1955_v52 = vld [vmem:[#allocation0 - $0x517] ss:$760 sm:%s1954_s20]   ;;  %v1960_v53 = vld [vmem:[#allocation0 - $0xb06] ss:$760 sm:%s1959_s21]  }
  0xbc   :  { %v1713_v55 = vsel %vm9076_vm9, %v1711_v47, %v1698_v50  ;;  %v1957_v56 = vsel %vm592_vm0, %v1955_v52, %v1952_v51  ;;  %v2017_v57 = vld [vmem:[#allocation0 + $0x248] sm:$0x7]   ;;  %4391 = vst.msk [vmem:[%s9059_s1 - $0x14] ss:$129 sm:$0xc] %vm9102_vm10, %v5794_v0   ;;  %s1788_s20 = smov 3  ;;  %v5976_v2 = vpop.permute.xlu0 %984  }
  0xbd   :  { %1714 = vrot.lane.b32.xlu2 %v1713_v55, %s5184_s30  ;;  %v1962_v58 = vsel %vm597_vm1, %v1960_v53, %v1957_v56  ;;  %v2021_v59 = vsel %vm9087_vm11, %v2019_v49, %v2017_v57  ;;  %4392 = vst.msk [vmem:[%s9059_s1 - $0x56] ss:$129 sm:$0x30] %vm9102_vm10, %v5794_v0   ;;  %v5966_v0 = vpop.permute.xlu2 %962   ;;  %v1789_v5 = vld [vmem:[#allocation0 + $0x40] ss:$760 sm:%s1788_s20]   ;;  %s2060_s30 = smov 48  ;;  %v6019_v27 = vpop.permute.xlu1 %1006  }
  0xbe   :  { %v1977_v60 = vsel %vm9086_vm8, %v1975_v54, %v1962_v58  ;;  %2022 = vrot.lane.b32.xlu0 %v2021_v59, %s5185_s4  ;;  %4393 = vst.msk [vmem:[%s9059_s1 + $0x4d] sm:$0x1] %vm9102_vm10, %v5843_v17   ;;  %v2053_v7 = vld [vmem:[#allocation0 + $0x10] ss:$760 sm:%s2052_s24]   ;;  %v1794_v9 = vsel %vm592_vm0, %v1792_v6, %v1789_v5  ;;  %v2061_v12 = vld [vmem:[#allocation0 - $0xbce] ss:$760 sm:%s2060_s30]  }
  0xbf   :  { %1978 = vrot.lane.b32.xlu1 %v1977_v60, %s5186_s8  ;;  %4394 = vst.msk [vmem:[%s9059_s1 + $0x10c] sm:$0x2] %vm9102_vm10, %v5843_v17   ;;  %v2058_v11 = vsel %vm592_vm0, %v2056_v8, %v2053_v7  ;;  %v1799_v16 = vsel %vm597_vm1, %v1797_v10, %v1794_v9  ;;  %s5188_s20 = smov 64   ;;  %vm9092_vm9 = vcmask 531456   ;;  %s5190_s21 = smov 71   ;;  %vm1144_vm8 = vcmask 769024  }
  0xc0   :  { %4395 = vst.msk [vmem:[%s9059_s1 + $0x1cb] sm:$0x4] %vm9102_vm10, %v5843_v17   ;;  %v2063_v23 = vsel %vm597_vm1, %v2061_v12, %v2058_v11  ;;  %v4284_v54 = vld [vmem:[%s9058_s0 + $0xc8] sm:$0xf]  ;;  %v4195_v57 = vld [vmem:[%s9058_s0 + $0x22c] sm:$0xf] }
  0xc1   :  { %163 = vst [vmem:[#allocation0 + $0x330] sm:$0xf] %v4232_v61  ;;  %v4290_v59 = vld [vmem:[%s9058_s0 + $0xb0] sm:$0xf]  ;;  %s2250_s8 = smov 3  ;;  %s2096_s18 = smov 3 }
  0xc2   :  { %543 = vst [vmem:[#allocation0 + $0x38] sm:$0xf] %v4327_v62  ;;  %v4244_v60 = vld [vmem:[%s9058_s0 + $0x168] sm:$0xf]  ;;  %s2328_s29 = smov 12  ;;  %s2501_s4 = smov 3 }
  0xc3   :  { %187 = vst [vmem:[#allocation0 + $0x300] sm:$0xf] %v4238_v1  ;;  %v2251_v61 = vld [vmem:[#allocation0 + $0x168] ss:$760 sm:%s2250_s8]   ;;  %v2254_v62 = vld [vmem:[#allocation0 - $0x487] ss:$760 sm:%s2253_s9]  }
  0xc4   :  { %567 = vst [vmem:[#allocation0 + $0x8] sm:$0xf] %v4333_v3  ;;  %v2259_v1 = vld [vmem:[#allocation0 - $0xa76] ss:$760 sm:%s2258_s12]   ;;  %s5195_s12 = smov 60   ;;  %vm9104_vm11 = vcmask 621568  }
  0xc5   :  { %383 = vst [vmem:[#allocation0 + $0x178] sm:$0xf] %v4287_v4  ;;  %v6021_v28 = vpop.permute.xlu2 %1017   ;;  %v6094_v51 = vpop.permute.xlu1 %1050   ;;  %v2305_v4 = vld [vmem:[#allocation0 + $0x2d8] sm:$0x7]   ;;  %s5202_s30 = smov 59   ;;  %s5207_s9 = smov 48  }
  0xc6   :  { %4396 = vst.msk [vmem:[%s9059_s1 + $0x6d] sm:$0x1] %vm9102_vm10, %v5880_v29   ;;  %s6618_s24 = smov 48  ;;  %s3322_s8 = smov 48 }
  0xc7   :  { %4397 = vst.msk [vmem:[%s9059_s1 + $0x12c] sm:$0x2] %vm9102_vm10, %v5880_v29  }
  0xc8   :  { %4398 = vst.msk [vmem:[%s9059_s1 + $0x1eb] sm:$0x4] %vm9102_vm10, %v5880_v29  }
  0xc9   :  { %v1776_v13 = vld [vmem:[#allocation0 + $0x38] ss:$760 sm:%s5960_s17]   ;;  %v1779_v14 = vld [vmem:[#allocation0 - $0x5b7] ss:$760 sm:%s5962_s16]   ;;  %v1784_v15 = vld [vmem:[#allocation0 - $0xba6] ss:$760 sm:%s1783_s22]  }
  0xca   :  { %v1781_v17 = vsel %vm592_vm0, %v1779_v14, %v1776_v13  ;;  %4399 = vst.msk [vmem:[%s9059_s1 + $0xb] ss:$129 sm:$0x3] %vm9102_vm10, %v5882_v30   ;;  %s5187_s16 = smov 74   ;;  %s2201_s17 = smov 48 }
  0xcb   :  { %v1786_v19 = vsel %vm597_vm1, %v1784_v15, %v1781_v17  ;;  %v2040_v20 = vld [vmem:[#allocation0 + $0x8] ss:$760 sm:%s2039_s15]   ;;  %v2043_v21 = vld [vmem:[#allocation0 - $0x5e7] ss:$760 sm:%s2042_s2]   ;;  %v2048_v22 = vld [vmem:[#allocation0 - $0xbd6] ss:$760 sm:%s2047_s3]  }
  0xcc   :  { %v1801_v24 = vsel %vm9079_vm13, %v1799_v16, %v1786_v19  ;;  %v2045_v25 = vsel %vm592_vm0, %v2043_v21, %v2040_v20  ;;  %v2127_v26 = vld [vmem:[#allocation0 + $0x178] sm:$0x7]   ;;  %4400 = vst.msk [vmem:[%s9059_s1 - $0x37] ss:$129 sm:$0xc] %vm9102_vm10, %v5882_v30   ;;  %s2209_s3 = smov 12 }
  0xcd   :  { %1802 = vrot.lane.b32.xlu2 %v1801_v24, %s5187_s16  ;;  %v2050_v29 = vsel %vm597_vm1, %v2048_v22, %v2045_v25  ;;  %v2131_v31 = vsel %vm9090_vm15, %v2129_v18, %v2127_v26  ;;  %4401 = vst.msk [vmem:[%s9059_s1 - $0x79] ss:$129 sm:$0x30] %vm9102_vm10, %v5882_v30   ;;  %v6030_v30 = vpop.permute.xlu0 %1028   ;;  %v2210_v38 = vld [vmem:[#allocation0 - $0x53f] ss:$760 sm:%s2209_s3]   ;;  %v6096_v52 = vpop.permute.xlu2 %1072   ;;  %s2240_s16 = smov 12 }
  0xce   :  { %v2065_v32 = vsel %vm9089_vm6, %v2063_v23, %v2050_v29  ;;  %2132 = vrot.lane.b32.xlu0 %v2131_v31, %s5188_s20  ;;  %4402 = vst.msk [vmem:[%s9059_s1 + $0x2a] ss:$129 sm:$0x3] %vm9102_vm10, %v5898_v35   ;;  %v2212_v42 = vsel %vm592_vm0, %v2210_v38, %v2207_v37  ;;  %vm9096_vm13 = vcmask 556032   ;;  %v4215_v13 = vld [vmem:[%s9058_s0 + $0x1dc] sm:$0xf]  ;;  %v6189_v16 = vpop.permute.xlu1 %1094  }
  0xcf   :  { %2066 = vrot.lane.b32.xlu1 %v2065_v32, %s5189_s23  ;;  %4403 = vst.msk [vmem:[%s9059_s1 - $0x18] ss:$129 sm:$0xc] %vm9102_vm10, %v5898_v35   ;;  %v2217_v50 = vsel %vm597_vm1, %v2215_v43, %v2212_v42  ;;  %s5194_s3 = smov 58   ;;  %v4310_v15 = vld [vmem:[%s9058_s0 + $0x60] sm:$0xf] }
  0xd0   :  { %4404 = vst.msk [vmem:[%s9059_s1 - $0x5a] ss:$129 sm:$0x30] %vm9102_vm10, %v5898_v35   ;;  %v4218_v35 = vld [vmem:[%s9058_s0 + $0x1d0] sm:$0xf]  ;;  %s2338_s23 = smov 3 }
  0xd1   :  { %267 = vst [vmem:[#allocation0 + $0x260] sm:$0xf] %v4258_v33  ;;  %v4221_v18 = vld [vmem:[%s9058_s0 + $0x1c4] sm:$0xf]  ;;  %v4316_v20 = vld [vmem:[%s9058_s0 + $0x48] sm:$0xf] }
  0xd2   :  { %291 = vst [vmem:[#allocation0 + $0x230] sm:$0xf] %v4264_v34  ;;  %v4270_v21 = vld [vmem:[%s9058_s0 + $0x100] sm:$0xf]  ;;  %s2333_s2 = smov 48  ;;  %s2514_s15 = smov 3 }
  0xd3   :  { %107 = vst [vmem:[#allocation0 + $0x3a0] sm:$0xf] %v4218_v35  ;;  %v2097_v22 = vld [vmem:[#allocation0 + $0xc8] ss:$760 sm:%s2096_s18]   ;;  %v2100_v23 = vld [vmem:[#allocation0 - $0x527] ss:$760 sm:%s2099_s19]  }
  0xd4   :  { %487 = vst [vmem:[#allocation0 + $0xa8] sm:$0xf] %v4313_v36  ;;  %v2339_v24 = vld [vmem:[#allocation0 + $0x98] ss:$760 sm:%s2338_s23]   ;;  %v2102_v26 = vsel %vm592_vm0, %v2100_v23, %v2097_v22  ;;  %v2347_v29 = vld [vmem:[#allocation0 - $0xb46] ss:$760 sm:%s2346_s28]  }
  0xd5   :  { %4405 = vst.msk [vmem:[%s9059_s1 + $0x49] sm:$0x1] %vm9102_vm10, %v5964_v63   ;;  %v6107_v55 = vpop.permute.xlu0 %1083   ;;  %v6191_v17 = vpop.permute.xlu2 %1105   ;;  %v2415_v35 = vld [vmem:[#allocation0 + $0x208] sm:$0x7]   ;;  %s5199_s20 = smov 62   ;;  %s5201_s28 = smov 52  }
  0xd6   :  { %4406 = vst.msk [vmem:[%s9059_s1 + $0x108] sm:$0x2] %vm9102_vm10, %v5964_v63   ;;  %s6362_s18 = smov 3  ;;  %s2610_s19 = smov 48  ;;  %vm1217_vm6 = vcmask 777952   ;;  %vm9095_vm15 = vcmask 564224  }
  0xd7   :  { %4407 = vst.msk [vmem:[%s9059_s1 + $0x1c7] sm:$0x4] %vm9102_vm10, %v5964_v63   ;;  %v1997_v63 = vld [vmem:[#allocation0 + $0x198] sm:$0x7]   ;;  %s2597_s23 = smov 48  ;;  %s2654_s22 = smov 48 }
  0xd8   :  { %v1885_v41 = vld [vmem:[#allocation0 + $0x260] sm:$0x7]   ;;  %4408 = vst.msk [vmem:[%s9059_s1 + $0x69] sm:$0x1] %vm9102_vm10, %v5966_v0  }
  0xd9   :  { %v1889_v44 = vsel %vm9082_vm2, %v1887_v39, %v1885_v41  ;;  %v2149_v45 = vld [vmem:[#allocation0 + $0x230] sm:$0x7]   ;;  %4409 = vst.msk [vmem:[%s9059_s1 + $0x128] sm:$0x2] %vm9102_vm10, %v5966_v0   ;;  %vm9098_vm2 = vcmask 580608  }
  0xda   :  { %1890 = vrot.lane.b32.xlu2 %v1889_v44, %s5190_s21  ;;  %v2153_v46 = vsel %vm9092_vm9, %v2151_v40, %v2149_v45  ;;  %4410 = vst.msk [vmem:[%s9059_s1 + $0x1e7] sm:$0x4] %vm9102_vm10, %v5966_v0   ;;  %v2256_v0 = vsel %vm592_vm0, %v2254_v62, %v2251_v61  ;;  %s5200_s21 = smov 54   ;;  %vm9094_vm9 = vcmask 760832  }
  0xdb   :  { %2154 = vrot.lane.b32.xlu1 %v2153_v46, %s5191_s25  ;;  %v2194_v47 = vld [vmem:[#allocation0 + $0xa8] ss:$760 sm:%s2193_s6]   ;;  %v2197_v48 = vld [vmem:[#allocation0 - $0x547] ss:$760 sm:%s2196_s10]   ;;  %v2202_v49 = vld [vmem:[#allocation0 - $0xb36] ss:$760 sm:%s2201_s17]   ;;  %v2261_v8 = vsel %vm597_vm1, %v2259_v1, %v2256_v0 }
  0xdc   :  { %v2199_v53 = vsel %vm592_vm0, %v2197_v48, %v2194_v47  ;;  %4411 = vst.msk [vmem:[%s9059_s1 + $0x7] ss:$129 sm:$0x3] %vm9102_vm10, %v5976_v2   ;;  %s2237_s17 = smov 3  ;;  %s6185_s10 = smov 12 }
  0xdd   :  { %v2204_v56 = vsel %vm597_vm1, %v2202_v49, %v2199_v53  ;;  %4412 = vst.msk [vmem:[%s9059_s1 - $0x3b] ss:$129 sm:$0xc] %vm9102_vm10, %v5976_v2   ;;  %v6201_v19 = vpop.permute.xlu0 %1142   ;;  %s2341_s25 = smov 12  ;;  %v4241_v47 = vld [vmem:[%s9058_s0 + $0x174] sm:$0xf] }
  0xde   :  { %v2219_v58 = vsel %vm9093_vm3, %v2217_v50, %v2204_v56  ;;  %4413 = vst.msk [vmem:[%s9059_s1 - $0x7d] ss:$129 sm:$0x30] %vm9102_vm10, %v5976_v2   ;;  %v2342_v25 = vld [vmem:[#allocation0 - $0x557] ss:$760 sm:%s2341_s25]   ;;  %v6277_v50 = vpop.permute.xlu2 %1208   ;;  %vm1628_vm3 = vcmask 646144  }
  0xdf   :  { %2220 = vrot.lane.b32.xlu0 %v2219_v58, %s5192_s7  ;;  %371 = vst [vmem:[#allocation0 + $0x190] sm:$0xf] %v4284_v54  ;;  %v4247_v48 = vld [vmem:[%s9058_s0 + $0x15c] sm:$0xf]  ;;  %v4201_v49 = vld [vmem:[%s9058_s0 + $0x214] sm:$0xf] }
  0xe0   :  { %15 = vst [vmem:[#allocation0 + $0x458] sm:$0xf] %v4195_v57  ;;  %v2515_v54 = vld [vmem:[#allocation0 + $0x138] ss:$760 sm:%s2514_s15]   ;;  %s6450_s25 = smov 3  ;;  %s2382_s15 = smov 3 }
  0xe1   :  { %395 = vst [vmem:[#allocation0 + $0x160] sm:$0xf] %v4290_v59  ;;  %v2173_v56 = vld [vmem:[#allocation0 + $0x2f0] sm:$0x7]   ;;  %v2437_v57 = vld [vmem:[#allocation0 + $0x2c0] sm:$0x7]  }
  0xe2   :  { %211 = vst [vmem:[#allocation0 + $0x2d0] sm:$0xf] %v4244_v60  ;;  %s2385_s7 = smov 12  ;;  %s2768_s6 = smov 12 }
  0xe3   :  { %4414 = vst.msk [vmem:[%s9059_s1 + $0x26] ss:$129 sm:$0x3] %vm9102_vm10, %v6019_v27  }
  0xe4   :  { %4415 = vst.msk [vmem:[%s9059_s1 - $0x1c] ss:$129 sm:$0xc] %vm9102_vm10, %v6019_v27  }
  0xe5   :  { %4416 = vst.msk [vmem:[%s9059_s1 - $0x5e] ss:$129 sm:$0x30] %vm9102_vm10, %v6019_v27   ;;  %v6284_v53 = vpop.permute.xlu0 %1230  }
  0xe6   :  { %v1995_v2 = vld [vmem:[#allocation0 + $0x190] sm:$0x7]   ;;  %4417 = vst.msk [vmem:[%s9059_s1 + $0x45] sm:$0x1] %vm9102_vm10, %v6021_v28  }
  0xe7   :  { %v1999_v3 = vsel %vm9085_vm4, %v1997_v63, %v1995_v2  ;;  %4418 = vst.msk [vmem:[%s9059_s1 + $0x104] sm:$0x2] %vm9102_vm10, %v6021_v28   ;;  %vm9103_vm4 = vcmask 605184  }
  0xe8   :  { %2000 = vrot.lane.b32.xlu2 %v1999_v3, %s5193_s27  ;;  %v2238_v5 = vld [vmem:[#allocation0 + $0x160] ss:$760 sm:%s2237_s17]   ;;  %v2241_v6 = vld [vmem:[#allocation0 - $0x48f] ss:$760 sm:%s2240_s16]   ;;  %v2246_v7 = vld [vmem:[#allocation0 - $0xa7e] ss:$760 sm:%s2245_s14]  }
  0xe9   :  { %v2243_v9 = vsel %vm592_vm0, %v2241_v6, %v2238_v5  ;;  %v2303_v10 = vld [vmem:[#allocation0 + $0x2d0] sm:$0x7]   ;;  %4419 = vst.msk [vmem:[%s9059_s1 + $0x1c3] sm:$0x4] %vm9102_vm10, %v6021_v28   ;;  %s2104_s14 = smov 48  ;;  %s2325_s27 = smov 3  ;;  %v2344_v28 = vsel %vm592_vm0, %v2342_v25, %v2339_v24 }
  0xea   :  { %v2248_v11 = vsel %vm597_vm1, %v2246_v7, %v2243_v9  ;;  %v2307_v12 = vsel %vm9097_vm12, %v2305_v4, %v2303_v10  ;;  %4420 = vst.msk [vmem:[%s9059_s1 + $0x65] sm:$0x1] %vm9102_vm10, %v6030_v30   ;;  %v2105_v27 = vld [vmem:[#allocation0 - $0xb16] ss:$760 sm:%s2104_s14]   ;;  %v2349_v40 = vsel %vm597_vm1, %v2347_v29, %v2344_v28  ;;  %s5197_s16 = smov 55   ;;  %s5198_s14 = smov 57  }
  0xeb   :  { %v2263_v14 = vsel %vm9096_vm13, %v2261_v8, %v2248_v11  ;;  %2308 = vrot.lane.b32.xlu0 %v2307_v12, %s5194_s3  ;;  %4421 = vst.msk [vmem:[%s9059_s1 + $0x124] sm:$0x2] %vm9102_vm10, %v6030_v30   ;;  %v2107_v33 = vsel %vm597_vm1, %v2105_v27, %v2102_v26  ;;  %s2522_s3 = smov 48  ;;  %v4267_v7 = vld [vmem:[%s9058_s0 + $0x10c] sm:$0xf]  ;;  %s2602_s17 = smov 3 }
  0xec   :  { %2264 = vrot.lane.b32.xlu1 %v2263_v14, %s5195_s12  ;;  %4422 = vst.msk [vmem:[%s9059_s1 + $0x1e3] sm:$0x4] %vm9102_vm10, %v6030_v30   ;;  %v2523_v60 = vld [vmem:[#allocation0 - $0xaa6] ss:$760 sm:%s2522_s3]   ;;  %v4273_v8 = vld [vmem:[%s9058_s0 + $0xf4] sm:$0xf]  ;;  %v6374_v14 = vpop.permute.xlu2 %1318  }
  0xed   :  { %95 = vst [vmem:[#allocation0 + $0x3b8] sm:$0xf] %v4215_v13  ;;  %v4227_v9 = vld [vmem:[%s9058_s0 + $0x1ac] sm:$0xf]  ;;  %v4322_v10 = vld [vmem:[%s9058_s0 + $0x30] sm:$0xf]  ;;  %v6395_v22 = vpop.permute.xlu0 %1340  }
  0xee   :  { %475 = vst [vmem:[#allocation0 + $0xc0] sm:$0xf] %v4310_v15  ;;  %v2603_v11 = vld [vmem:[#allocation0 + $0x68] ss:$760 sm:%s2602_s17]   ;;  %s6477_s12 = smov 3  ;;  %vm9101_vm13 = vcmask 588800  }
  0xef   :  { %119 = vst [vmem:[#allocation0 + $0x388] sm:$0xf] %v4221_v18  ;;  %v2283_v13 = vld [vmem:[#allocation0 + $0x220] sm:$0x7]   ;;  %vm1606_vm12 = vcmask 654336   ;;  %s2470_s3 = smov 3 }
  0xf0   :  { %499 = vst [vmem:[#allocation0 + $0x90] sm:$0xf] %v4316_v20  ;;  %s2773_s17 = smov 48 }
  0xf1   :  { %315 = vst [vmem:[#allocation0 + $0x200] sm:$0xf] %v4270_v21 }
  0xf2   :  { %4423 = vst.msk [vmem:[%s9059_s1 + $0x3] ss:$129 sm:$0x3] %vm9102_vm10, %v6094_v51  }
  0xf3   :  { %4424 = vst.msk [vmem:[%s9059_s1 - $0x3f] ss:$129 sm:$0xc] %vm9102_vm10, %v6094_v51  }
  0xf4   :  { %4425 = vst.msk [vmem:[%s9059_s1 - $0x81] ss:$129 sm:$0x30] %vm9102_vm10, %v6094_v51   ;;  %v6279_v51 = vpop.permute.xlu1 %1186  }
  0xf5   :  { %v2084_v31 = vld [vmem:[#allocation0 + $0xc0] ss:$760 sm:%s6174_s5]   ;;  %v2087_v30 = vld [vmem:[#allocation0 - $0x52f] ss:$760 sm:%s6185_s10]   ;;  %v2092_v32 = vld [vmem:[#allocation0 - $0xb1e] ss:$760 sm:%s6187_s11]  }
  0xf6   :  { %v2089_v34 = vsel %vm592_vm0, %v2087_v30, %v2084_v31  ;;  %4426 = vst.msk [vmem:[%s9059_s1 + $0x22] ss:$129 sm:$0x3] %vm9102_vm10, %v6096_v52   ;;  %s5196_s11 = smov 65   ;;  %s2504_s5 = smov 12 }
  0xf7   :  { %v2094_v36 = vsel %vm597_vm1, %v2092_v32, %v2089_v34  ;;  %v2326_v37 = vld [vmem:[#allocation0 + $0x90] ss:$760 sm:%s2325_s27]   ;;  %v2329_v38 = vld [vmem:[#allocation0 - $0x55f] ss:$760 sm:%s2328_s29]   ;;  %v2334_v39 = vld [vmem:[#allocation0 - $0xb4e] ss:$760 sm:%s2333_s2]  }
  0xf8   :  { %v2109_v41 = vsel %vm9088_vm5, %v2107_v33, %v2094_v36  ;;  %v2331_v42 = vsel %vm592_vm0, %v2329_v38, %v2326_v37  ;;  %v2413_v43 = vld [vmem:[#allocation0 + $0x200] sm:$0x7]   ;;  %4427 = vst.msk [vmem:[%s9059_s1 - $0x20] ss:$129 sm:$0xc] %vm9102_vm10, %v6096_v52   ;;  %s2517_s2 = smov 12 }
  0xf9   :  { %2110 = vrot.lane.b32.xlu2 %v2109_v41, %s5196_s11  ;;  %v2336_v44 = vsel %vm597_vm1, %v2334_v39, %v2331_v42  ;;  %v2417_v45 = vsel %vm9099_vm14, %v2415_v35, %v2413_v43  ;;  %4428 = vst.msk [vmem:[%s9059_s1 - $0x62] ss:$129 sm:$0x30] %vm9102_vm10, %v6096_v52   ;;  %v4296_v52 = vld [vmem:[%s9058_s0 + $0x98] sm:$0xf]  ;;  %s2509_s10 = smov 48 }
  0xfa   :  { %v2351_v46 = vsel %vm9098_vm2, %v2349_v40, %v2336_v44  ;;  %2418 = vrot.lane.b32.xlu0 %v2417_v45, %s5197_s16  ;;  %4429 = vst.msk [vmem:[%s9059_s1 + $0x41] sm:$0x1] %vm9102_vm10, %v6107_v55   ;;  %vm1151_vm5 = vcmask 777968   ;;  %s2605_s16 = smov 12  ;;  %v4198_v30 = vld [vmem:[%s9058_s0 + $0x220] sm:$0xf]  ;;  %v6504_v44 = vpop.permute.xlu2 %1406  }
  0xfb   :  { %2352 = vrot.lane.b32.xlu1 %v2351_v46, %s5198_s14  ;;  %4430 = vst.msk [vmem:[%s9059_s1 + $0x100] sm:$0x2] %vm9102_vm10, %v6107_v55   ;;  %v2606_v12 = vld [vmem:[#allocation0 - $0x587] ss:$760 sm:%s2605_s16]   ;;  %s2592_s14 = smov 12  ;;  %vm1540_vm2 = vcmask 670720  }
  0xfc   :  { %4431 = vst.msk [vmem:[%s9059_s1 + $0x1bf] sm:$0x4] %vm9102_vm10, %v6107_v55   ;;  %v2518_v55 = vld [vmem:[#allocation0 - $0x4b7] ss:$760 sm:%s2517_s2]   ;;  %v6376_v15 = vpop.permute.xlu1 %1274   ;;  %v2608_v18 = vsel %vm592_vm0, %v2606_v12, %v2603_v11  ;;  %v4293_v32 = vld [vmem:[%s9058_s0 + $0xa4] sm:$0xf] }
  0xfd   :  { %199 = vst [vmem:[#allocation0 + $0x2e8] sm:$0xf] %v4241_v47  ;;  %v2520_v59 = vsel %vm592_vm0, %v2518_v55, %v2515_v54  ;;  %v4204_v33 = vld [vmem:[%s9058_s0 + $0x208] sm:$0xf]  ;;  %v4299_v34 = vld [vmem:[%s9058_s0 + $0x8c] sm:$0xf] }
  0xfe   :  { %223 = vst [vmem:[#allocation0 + $0x2b8] sm:$0xf] %v4247_v48  ;;  %v2525_v3 = vsel %vm597_vm1, %v2523_v60, %v2520_v59  ;;  %v2383_v35 = vld [vmem:[#allocation0 + $0x150] ss:$760 sm:%s2382_s15]   ;;  %v4253_v36 = vld [vmem:[%s9058_s0 + $0x144] sm:$0xf] }
  0xff   :  { %39 = vst [vmem:[#allocation0 + $0x428] sm:$0xf] %v4201_v49  ;;  %v2386_v37 = vld [vmem:[#allocation0 - $0x49f] ss:$760 sm:%s2385_s7]   ;;  %v2655_v42 = vld [vmem:[#allocation0 - $0xabe] ss:$760 sm:%s2654_s22]  }
 0x100   :  { %419 = vst [vmem:[#allocation0 + $0x130] sm:$0xf] %v4296_v52  ;;  %v2388_v40 = vsel %vm592_vm0, %v2386_v37, %v2383_v35  ;;  %vm9100_vm14 = vcmask 736256   ;;  %s5206_s7 = smov 46   ;;  %s6581_s29 = smov 3 }
 0x101   :  { %4432 = vst.msk [vmem:[%s9059_s1 + $0x61] sm:$0x1] %vm9102_vm10, %v6189_v16   ;;  %s6583_s15 = smov 12  ;;  %s2742_s27 = smov 48  ;;  %v4210_v35 = vld [vmem:[%s9058_s0 + $0x1f0] sm:$0xf] }
 0x102   :  { %4433 = vst.msk [vmem:[%s9059_s1 + $0x120] sm:$0x2] %vm9102_vm10, %v6189_v16   ;;  %v2743_v11 = vld [vmem:[#allocation0 - $0xb8e] ss:$760 sm:%s2742_s27]   ;;  %s2910_s16 = smov 3  ;;  %s5213_s11 = smov 40  }
 0x103   :  { %4434 = vst.msk [vmem:[%s9059_s1 + $0x1df] sm:$0x4] %vm9102_vm10, %v6189_v16   ;;  %v2547_v16 = vld [vmem:[#allocation0 + $0x1f0] sm:$0x7]   ;;  %s3037_s22 = smov 48  ;;  %s2869_s27 = smov 12 }
 0x104   :  { %v2171_v58 = vld [vmem:[#allocation0 + $0x2e8] sm:$0x7]   ;;  %4435 = vst.msk [vmem:[%s9059_s1 + $0x80] sm:$0x1] %vm9102_vm10, %v6191_v17   ;;  %v6506_v45 = vpop.permute.xlu1 %1362   ;;  %s3578_s2 = smov 3 }
 0x105   :  { %v2175_v61 = vsel %vm9091_vm7, %v2173_v56, %v2171_v58  ;;  %v2435_v62 = vld [vmem:[#allocation0 + $0x2b8] sm:$0x7]   ;;  %4436 = vst.msk [vmem:[%s9059_s1 + $0x13f] sm:$0x2] %vm9102_vm10, %v6191_v17   ;;  %vm1716_vm7 = vcmask 629760  }
 0x106   :  { %2176 = vrot.lane.b32.xlu2 %v2175_v61, %s5199_s20  ;;  %v2439_v63 = vsel %vm9103_vm4, %v2437_v57, %v2435_v62  ;;  %4437 = vst.msk [vmem:[%s9059_s1 + $0x1fe] sm:$0x4] %vm9102_vm10, %v6191_v17   ;;  %v6522_v57 = vpop.permute.xlu0 %1450   ;;  %vm1760_vm10 = vcmask 613376   ;;  %vm1496_vm4 = vcmask 678912   ;;  %v2911_v37 = vld [vmem:[#allocation0 + $0xf0] ss:$760 sm:%s2910_s16]  }
 0x107   :  { %2440 = vrot.lane.b32.xlu1 %v2439_v63, %s5200_s21  ;;  %v2502_v0 = vld [vmem:[#allocation0 + $0x130] ss:$760 sm:%s2501_s4]   ;;  %v2505_v1 = vld [vmem:[#allocation0 - $0x4bf] ss:$760 sm:%s2504_s5]   ;;  %v2510_v2 = vld [vmem:[#allocation0 - $0xaae] ss:$760 sm:%s2509_s10]  }
 0x108   :  { %v2507_v4 = vsel %vm592_vm0, %v2505_v1, %v2502_v0  ;;  %4438 = vst.msk [vmem:[%s9059_s1 + $0x1e] ss:$129 sm:$0x3] %vm1144_vm8, %v6201_v19   ;;  %s5203_s4 = smov 51   ;;  %s5204_s10 = smov 49  }
 0x109   :  { %v2512_v5 = vsel %vm597_vm1, %v2510_v2, %v2507_v4  ;;  %4439 = vst.msk [vmem:[%s9059_s1 - $0x24] ss:$129 sm:$0xc] %vm1144_vm8, %v6201_v19   ;;  %s2390_s5 = smov 48  ;;  %s2641_s21 = smov 48 }
 0x10a   :  { %v2527_v6 = vsel %vm9104_vm11, %v2525_v3, %v2512_v5  ;;  %4440 = vst.msk [vmem:[%s9059_s1 - $0x66] ss:$129 sm:$0x30] %vm1144_vm8, %v6201_v19   ;;  %v2391_v41 = vld [vmem:[#allocation0 - $0xa8e] ss:$760 sm:%s2390_s5]   ;;  %vm1452_vm11 = vcmask 695296  }
 0x10b   :  { %2528 = vrot.lane.b32.xlu0 %v2527_v6, %s5201_s28  ;;  %4441 = vst.msk [vmem:[%s9059_s1 + $0x1e] ss:$129 sm:$0x3] %vm1151_vm5, %v6201_v19   ;;  %v2393_v49 = vsel %vm597_vm1, %v2391_v41, %v2388_v40  ;;  %v4224_v0 = vld [vmem:[%s9058_s0 + $0x1b8] sm:$0xf]  ;;  %s2985_s16 = smov 3 }
 0x10c   :  { %4442 = vst.msk [vmem:[%s9059_s1 - $0x24] ss:$129 sm:$0xc] %vm1151_vm5, %v6201_v19   ;;  %v4319_v1 = vld [vmem:[%s9058_s0 + $0x3c] sm:$0xf]  ;;  %s2988_s20 = smov 12 }
 0x10d   :  { %4443 = vst.msk [vmem:[%s9059_s1 - $0x66] ss:$129 sm:$0x30] %vm1151_vm5, %v6201_v19   ;;  %vm9105_vm5 = vcmask 752640   ;;  %v2611_v19 = vld [vmem:[#allocation0 - $0xb76] ss:$760 sm:%s2610_s19]  }
 0x10e   :  { %303 = vst [vmem:[#allocation0 + $0x218] sm:$0xf] %v4267_v7  ;;  %v2613_v27 = vsel %vm597_vm1, %v2611_v19, %v2608_v18  ;;  %s2649_s19 = smov 12  ;;  %v4230_v2 = vld [vmem:[%s9058_s0 + $0x1a0] sm:$0xf]  ;;  %s5214_s28 = smov 47  }
 0x10f   :  { %327 = vst [vmem:[#allocation0 + $0x1e8] sm:$0xf] %v4273_v8  ;;  %v2650_v39 = vld [vmem:[#allocation0 - $0x4cf] ss:$760 sm:%s2649_s19]   ;;  %v4325_v3 = vld [vmem:[%s9058_s0 + $0x24] sm:$0xf] }
 0x110   :  { %143 = vst [vmem:[#allocation0 + $0x358] sm:$0xf] %v4227_v9  ;;  %v2471_v4 = vld [vmem:[#allocation0 + $0x80] ss:$760 sm:%s2470_s3]   ;;  %v4279_v5 = vld [vmem:[%s9058_s0 + $0xdc] sm:$0xf] }
 0x111   :  { %523 = vst [vmem:[#allocation0 + $0x60] sm:$0xf] %v4322_v10  ;;  %v2735_v7 = vld [vmem:[#allocation0 + $0x50] ss:$760 sm:%s2734_s13]   ;;  %s2918_s19 = smov 48  ;;  %s5211_s3 = smov 50  }
 0x112   :  { %4450 = vst.msk [vmem:[%s9059_s1 + $0x5c] sm:$0x1] %vm9105_vm5, %v6277_v50   ;;  %s2993_s13 = smov 48  ;;  %s3682_s5 = smov 12 }
 0x113   :  { %4451 = vst.msk [vmem:[%s9059_s1 + $0x11b] sm:$0x2] %vm9105_vm5, %v6277_v50  }
 0x114   :  { %4452 = vst.msk [vmem:[%s9059_s1 + $0x1da] sm:$0x4] %vm9105_vm5, %v6277_v50   ;;  %vm1364_vm5 = vcmask 711680  }
 0x115   :  { %v2281_v17 = vld [vmem:[#allocation0 + $0x218] sm:$0x7]   ;;  %4453 = vst.msk [vmem:[%s9059_s1 + $0x5c] sm:$0x1] %vm1217_vm6, %v6277_v50  }
 0x116   :  { %v2285_v20 = vsel %vm9095_vm15, %v2283_v13, %v2281_v17  ;;  %v2545_v21 = vld [vmem:[#allocation0 + $0x1e8] sm:$0x7]   ;;  %4454 = vst.msk [vmem:[%s9059_s1 + $0x11b] sm:$0x2] %vm1217_vm6, %v6277_v50   ;;  %vm1327_vm15 = vcmask 777928   ;;  %v6637_v13 = vpop.permute.xlu2 %1494  }
 0x117   :  { %2286 = vrot.lane.b32.xlu2 %v2285_v20, %s5202_s30  ;;  %v2549_v23 = vsel %vm1716_vm7, %v2547_v16, %v2545_v21  ;;  %4455 = vst.msk [vmem:[%s9059_s1 + $0x1da] sm:$0x4] %vm1217_vm6, %v6277_v50   ;;  %vm1195_vm6 = vcmask 777960   ;;  %s6461_s30 = smov 48  ;;  %v2811_v20 = vld [vmem:[#allocation0 + $0x1c0] sm:$0x7]   ;;  %v6651_v21 = vpop.permute.xlu0 %1538  }
 0x118   :  { %2550 = vrot.lane.b32.xlu1 %v2549_v23, %s5203_s4  ;;  %v2590_v24 = vld [vmem:[#allocation0 + $0x60] ss:$760 sm:%s6362_s18]   ;;  %v2593_v25 = vld [vmem:[#allocation0 - $0x58f] ss:$760 sm:%s2592_s14]   ;;  %v2598_v26 = vld [vmem:[#allocation0 - $0xb7e] ss:$760 sm:%s2597_s23]  }
 0x119   :  { %v2595_v28 = vsel %vm592_vm0, %v2593_v25, %v2590_v24  ;;  %4444 = vst.msk [vmem:[%s9059_s1 + $0x3d] ss:$129 sm:$0x3] %vm9094_vm9, %v6279_v51   ;;  %s2646_s18 = smov 3  ;;  %s6485_s14 = smov 12 }
 0x11a   :  { %v2600_v29 = vsel %vm597_vm1, %v2598_v26, %v2595_v28  ;;  %4445 = vst.msk [vmem:[%s9059_s1 - $0x5] ss:$129 sm:$0xc] %vm9094_vm9, %v6279_v51   ;;  %v2647_v38 = vld [vmem:[#allocation0 + $0x120] ss:$760 sm:%s2646_s18]   ;;  %s5205_s4 = smov 56  }
 0x11b   :  { %v2615_v31 = vsel %vm1628_vm3, %v2613_v27, %v2600_v29  ;;  %4446 = vst.msk [vmem:[%s9059_s1 - $0x47] ss:$129 sm:$0x30] %vm9094_vm9, %v6279_v51   ;;  %vm1232_vm9 = vcmask 744448   ;;  %v2652_v43 = vsel %vm592_vm0, %v2650_v39, %v2647_v38  ;;  %s6608_s18 = smov 3  ;;  %s6616_s23 = smov 12 }
 0x11c   :  { %2616 = vrot.lane.b32.xlu0 %v2615_v31, %s5204_s10  ;;  %4447 = vst.msk [vmem:[%s9059_s1 + $0x3d] ss:$129 sm:$0x3] %vm1195_vm6, %v6279_v51   ;;  %v2657_v56 = vsel %vm597_vm1, %v2655_v42, %v2652_v43  ;;  %s2478_s10 = smov 48  ;;  %v2569_v39 = vld [vmem:[#allocation0 + $0x2a8] sm:$0x7]  }
 0x11d   :  { %4448 = vst.msk [vmem:[%s9059_s1 - $0x5] ss:$129 sm:$0xc] %vm1195_vm6, %v6279_v51   ;;  %v2479_v10 = vld [vmem:[#allocation0 - $0xb5e] ss:$760 sm:%s2478_s10]   ;;  %s3001_s10 = smov 12 }
 0x11e   :  { %4449 = vst.msk [vmem:[%s9059_s1 - $0x47] ss:$129 sm:$0x30] %vm1195_vm6, %v6279_v51   ;;  %vm1239_vm6 = vcmask 777944   ;;  %v2701_v51 = vld [vmem:[#allocation0 + $0x290] sm:$0x7]   ;;  %v6749_v40 = vpop.permute.xlu2 %1604  }
 0x11f   :  { %4456 = vst.msk [vmem:[%s9059_s1 + $0x7c] sm:$0x1] %vm1232_vm9, %v6284_v53   ;;  %v2833_v42 = vld [vmem:[#allocation0 + $0x278] sm:$0x7]  }
 0x120   :  { %4457 = vst.msk [vmem:[%s9059_s1 + $0x13b] sm:$0x2] %vm1232_vm9, %v6284_v53  }
 0x121   :  { %4458 = vst.msk [vmem:[%s9059_s1 + $0x1fa] sm:$0x4] %vm1232_vm9, %v6284_v53  }
 0x122   :  { %4459 = vst.msk [vmem:[%s9059_s1 + $0x7c] sm:$0x1] %vm1239_vm6, %v6284_v53  }
 0x123   :  { %4460 = vst.msk [vmem:[%s9059_s1 + $0x13b] sm:$0x2] %vm1239_vm6, %v6284_v53  }
 0x124   :  { %4461 = vst.msk [vmem:[%s9059_s1 + $0x1fa] sm:$0x4] %vm1239_vm6, %v6284_v53   ;;  %vm1320_vm6 = vcmask 728064  }
 0x125   :  { %27 = vst [vmem:[#allocation0 + $0x440] sm:$0xf] %v4198_v30 }
 0x126   :  { %407 = vst [vmem:[#allocation0 + $0x148] sm:$0xf] %v4293_v32 }
 0x127   :  { %51 = vst [vmem:[#allocation0 + $0x410] sm:$0xf] %v4204_v33  ;;  %v4250_v33 = vld [vmem:[%s9058_s0 + $0x150] sm:$0xf] }
 0x128   :  { %431 = vst [vmem:[#allocation0 + $0x118] sm:$0xf] %v4299_v34  ;;  %v4256_v34 = vld [vmem:[%s9058_s0 + $0x138] sm:$0xf] }
 0x129   :  { %247 = vst [vmem:[#allocation0 + $0x288] sm:$0xf] %v4253_v36  ;;  %v4305_v36 = vld [vmem:[%s9058_s0 + $0x74] sm:$0xf] }
 0x12a   :  { %4468 = vst.msk [vmem:[%s9059_s1 + $0x39] ss:$129 sm:$0x3] %vm1320_vm6, %v6374_v14  }
 0x12b   :  { %4469 = vst.msk [vmem:[%s9059_s1 - $0x9] ss:$129 sm:$0xc] %vm1320_vm6, %v6374_v14  }
 0x12c   :  { %4470 = vst.msk [vmem:[%s9059_s1 - $0x4b] ss:$129 sm:$0x30] %vm1320_vm6, %v6374_v14  }
 0x12d   :  { %v2370_v46 = vld [vmem:[#allocation0 + $0x148] ss:$760 sm:%s6450_s25]   ;;  %v2373_v47 = vld [vmem:[#allocation0 - $0x4a7] ss:$760 sm:%s6452_s26]   ;;  %v2378_v48 = vld [vmem:[#allocation0 - $0xa96] ss:$760 sm:%s6461_s30]  }
 0x12e   :  { %v2375_v50 = vsel %vm592_vm0, %v2373_v47, %v2370_v46  ;;  %4471 = vst.msk [vmem:[%s9059_s1 + $0x39] ss:$129 sm:$0x3] %vm1327_vm15, %v6374_v14   ;;  %v6764_v46 = vpop.permute.xlu0 %1626   ;;  %s5215_s30 = smov 39   ;;  %s6947_s26 = smov 3 }
 0x12f   :  { %v2380_v52 = vsel %vm597_vm1, %v2378_v48, %v2375_v50  ;;  %v2634_v53 = vld [vmem:[#allocation0 + $0x118] ss:$760 sm:%s6477_s12]   ;;  %v2637_v54 = vld [vmem:[#allocation0 - $0x4d7] ss:$760 sm:%s6485_s14]   ;;  %v2642_v55 = vld [vmem:[#allocation0 - $0xac6] ss:$760 sm:%s2641_s21]  }
 0x130   :  { %v2395_v58 = vsel %vm9101_vm13, %v2393_v49, %v2380_v52  ;;  %v2639_v59 = vsel %vm592_vm0, %v2637_v54, %v2634_v53  ;;  %v2699_v60 = vld [vmem:[#allocation0 + $0x288] sm:$0x7]   ;;  %4472 = vst.msk [vmem:[%s9059_s1 - $0x9] ss:$129 sm:$0xc] %vm1327_vm15, %v6374_v14   ;;  %s2737_s14 = smov 12 }
 0x131   :  { %2396 = vrot.lane.b32.xlu2 %v2395_v58, %s5205_s4  ;;  %v2644_v61 = vsel %vm597_vm1, %v2642_v55, %v2639_v59  ;;  %v2703_v62 = vsel %vm1540_vm2, %v2701_v51, %v2699_v60  ;;  %4473 = vst.msk [vmem:[%s9059_s1 - $0x4b] ss:$129 sm:$0x30] %vm1327_vm15, %v6374_v14   ;;  %vm1283_vm15 = vcmask 777936   ;;  %s6592_s4 = smov 48  ;;  %vm1415_vm13 = vcmask 777904   ;;  %v6639_v14 = vpop.permute.xlu1 %1472  }
 0x132   :  { %v2659_v63 = vsel %vm1606_vm12, %v2657_v56, %v2644_v61  ;;  %2704 = vrot.lane.b32.xlu0 %v2703_v62, %s5206_s7  ;;  %4462 = vst.msk [vmem:[%s9059_s1 + $0x1a] ss:$129 sm:$0x3] %vm9100_vm14, %v6376_v15   ;;  %v2738_v8 = vld [vmem:[#allocation0 - $0x59f] ss:$760 sm:%s2737_s14]   ;;  %s5208_s7 = smov 53  }
 0x133   :  { %2660 = vrot.lane.b32.xlu1 %v2659_v63, %s5207_s9  ;;  %4463 = vst.msk [vmem:[%s9059_s1 - $0x28] ss:$129 sm:$0xc] %vm9100_vm14, %v6376_v15   ;;  %s2473_s9 = smov 12  ;;  %v2740_v12 = vsel %vm592_vm0, %v2738_v8, %v2735_v7  ;;  %s5210_s12 = smov 45  }
 0x134   :  { %4464 = vst.msk [vmem:[%s9059_s1 - $0x6a] ss:$129 sm:$0x30] %vm9100_vm14, %v6376_v15   ;;  %vm1342_vm14 = vcmask 719872   ;;  %v2474_v6 = vld [vmem:[#allocation0 - $0x56f] ss:$760 sm:%s2473_s9]   ;;  %v2745_v26 = vsel %vm597_vm1, %v2743_v11, %v2740_v12 }
 0x135   :  { %4465 = vst.msk [vmem:[%s9059_s1 + $0x1a] ss:$129 sm:$0x3] %vm1283_vm15, %v6376_v15   ;;  %v2476_v9 = vsel %vm592_vm0, %v2474_v6, %v2471_v4  ;;  %s5209_s9 = smov 43   ;;  %s2897_s14 = smov 3 }
 0x136   :  { %4466 = vst.msk [vmem:[%s9059_s1 - $0x28] ss:$129 sm:$0xc] %vm1283_vm15, %v6376_v15   ;;  %v2481_v18 = vsel %vm597_vm1, %v2479_v10, %v2476_v9  ;;  %v4282_v58 = vld [vmem:[%s9058_s0 + $0xd0] sm:$0xf]  ;;  %v6879_v8 = vpop.permute.xlu0 %1736   ;;  %s2866_s21 = smov 3 }
 0x137   :  { %4467 = vst.msk [vmem:[%s9059_s1 - $0x6a] ss:$129 sm:$0x30] %vm1283_vm15, %v6376_v15   ;;  %vm1349_vm15 = vcmask 777920   ;;  %v4236_v59 = vld [vmem:[%s9058_s0 + $0x188] sm:$0xf] }
 0x138   :  { %4474 = vst.msk [vmem:[%s9059_s1 + $0x58] sm:$0x1] %vm1342_vm14, %v6395_v22   ;;  %v4331_v60 = vld [vmem:[%s9058_s0 + $0xc] sm:$0xf]  ;;  %v3002_v62 = vld [vmem:[#allocation0 - $0x5cf] ss:$760 sm:%s3001_s10]  }
 0x139   :  { %4475 = vst.msk [vmem:[%s9059_s1 + $0x117] sm:$0x2] %vm1342_vm14, %v6395_v22   ;;  %v6751_v41 = vpop.permute.xlu1 %1582   ;;  %v2679_v63 = vld [vmem:[#allocation0 + $0x1d8] sm:$0x7]   ;;  %s3045_s10 = smov 12  ;;  %s3273_s25 = smov 12 }
 0x13a   :  { %4476 = vst.msk [vmem:[%s9059_s1 + $0x1d6] sm:$0x4] %vm1342_vm14, %v6395_v22  }
 0x13b   :  { %4477 = vst.msk [vmem:[%s9059_s1 + $0x58] sm:$0x1] %vm1349_vm15, %v6395_v22  }
 0x13c   :  { %4478 = vst.msk [vmem:[%s9059_s1 + $0x117] sm:$0x2] %vm1349_vm15, %v6395_v22  }
 0x13d   :  { %4479 = vst.msk [vmem:[%s9059_s1 + $0x1d6] sm:$0x4] %vm1349_vm15, %v6395_v22   ;;  %vm1408_vm15 = vcmask 703488  }
 0x13e   :  { %131 = vst [vmem:[#allocation0 + $0x370] sm:$0xf] %v4224_v0  ;;  %v6858_v0 = vpop.permute.xlu2 %1714  }
 0x13f   :  { %511 = vst [vmem:[#allocation0 + $0x78] sm:$0xf] %v4319_v1 }
 0x140   :  { %155 = vst [vmem:[#allocation0 + $0x340] sm:$0xf] %v4230_v2  ;;  %v2943_v2 = vld [vmem:[#allocation0 + $0x1a8] sm:$0x7]  }
 0x141   :  { %535 = vst [vmem:[#allocation0 + $0x48] sm:$0xf] %v4325_v3  ;;  %v6860_v1 = vpop.permute.xlu1 %1670  }
 0x142   :  { %351 = vst [vmem:[#allocation0 + $0x1b8] sm:$0xf] %v4279_v5 }
 0x143   :  { %4486 = vst.msk [vmem:[%s9059_s1 + $0x16] ss:$129 sm:$0x3] %vm1408_vm15, %v6504_v44  }
 0x144   :  { %4487 = vst.msk [vmem:[%s9059_s1 - $0x2c] ss:$129 sm:$0xc] %vm1408_vm15, %v6504_v44  }
 0x145   :  { %4488 = vst.msk [vmem:[%s9059_s1 - $0x6e] ss:$129 sm:$0x30] %vm1408_vm15, %v6504_v44  }
 0x146   :  { %v2458_v15 = vld [vmem:[#allocation0 + $0x78] ss:$760 sm:%s6581_s29]   ;;  %v2461_v16 = vld [vmem:[#allocation0 - $0x577] ss:$760 sm:%s6583_s15]   ;;  %v2466_v17 = vld [vmem:[#allocation0 - $0xb66] ss:$760 sm:%s6592_s4]  }
 0x147   :  { %v2463_v19 = vsel %vm592_vm0, %v2461_v16, %v2458_v15  ;;  %4489 = vst.msk [vmem:[%s9059_s1 + $0x16] ss:$129 sm:$0x3] %vm1415_vm13, %v6504_v44   ;;  %s5212_s4 = smov 42   ;;  %s2781_s29 = smov 12 }
 0x148   :  { %v2468_v22 = vsel %vm597_vm1, %v2466_v17, %v2463_v19  ;;  %v2722_v23 = vld [vmem:[#allocation0 + $0x48] ss:$760 sm:%s6608_s18]   ;;  %v2725_v24 = vld [vmem:[#allocation0 - $0x5a7] ss:$760 sm:%s6616_s23]   ;;  %v2730_v25 = vld [vmem:[#allocation0 - $0xb96] ss:$760 sm:%s6618_s24]  }
 0x149   :  { %v2483_v27 = vsel %vm1760_vm10, %v2481_v18, %v2468_v22  ;;  %v2727_v28 = vsel %vm592_vm0, %v2725_v24, %v2722_v23  ;;  %v2809_v29 = vld [vmem:[#allocation0 + $0x1b8] sm:$0x7]   ;;  %4490 = vst.msk [vmem:[%s9059_s1 - $0x2c] ss:$129 sm:$0xc] %vm1415_vm13, %v6504_v44   ;;  %s2913_s18 = smov 12 }
 0x14a   :  { %2484 = vrot.lane.b32.xlu2 %v2483_v27, %s5208_s7  ;;  %v2732_v31 = vsel %vm597_vm1, %v2730_v25, %v2727_v28  ;;  %v2813_v30 = vsel %vm1452_vm11, %v2811_v20, %v2809_v29  ;;  %4491 = vst.msk [vmem:[%s9059_s1 - $0x6e] ss:$129 sm:$0x30] %vm1415_vm13, %v6504_v44   ;;  %vm1371_vm13 = vcmask 777912   ;;  %v2914_v38 = vld [vmem:[#allocation0 - $0x4ff] ss:$760 sm:%s2913_s18]  }
 0x14b   :  { %v2747_v32 = vsel %vm1496_vm4, %v2745_v26, %v2732_v31  ;;  %2814 = vrot.lane.b32.xlu0 %v2813_v30, %s5209_s9  ;;  %4480 = vst.msk [vmem:[%s9059_s1 + $0x78] sm:$0x1] %vm1364_vm5, %v6506_v45   ;;  %s2900_s23 = smov 12  ;;  %s2905_s24 = smov 48  ;;  %v2916_v44 = vsel %vm592_vm0, %v2914_v38, %v2911_v37  ;;  %v4207_v17 = vld [vmem:[%s9058_s0 + $0x1fc] sm:$0xf]  ;;  %v6989_v37 = vpop.permute.xlu1 %1758  }
 0x14c   :  { %2748 = vrot.lane.b32.xlu1 %v2747_v32, %s5210_s12  ;;  %4481 = vst.msk [vmem:[%s9059_s1 + $0x137] sm:$0x2] %vm1364_vm5, %v6506_v45   ;;  %s2998_s9 = smov 3  ;;  %s5216_s7 = smov 37   ;;  %v4302_v18 = vld [vmem:[%s9058_s0 + $0x80] sm:$0xf] }
 0x14d   :  { %4482 = vst.msk [vmem:[%s9059_s1 + $0x1f6] sm:$0x4] %vm1364_vm5, %v6506_v45   ;;  %v2999_v61 = vld [vmem:[#allocation0 + $0x20] ss:$760 sm:%s2998_s9]   ;;  %v4213_v19 = vld [vmem:[%s9058_s0 + $0x1e4] sm:$0xf] }
 0x14e   :  { %4483 = vst.msk [vmem:[%s9059_s1 + $0x78] sm:$0x1] %vm1371_vm13, %v6506_v45   ;;  %v3004_v4 = vsel %vm592_vm0, %v3002_v62, %v2999_v61  ;;  %v4308_v20 = vld [vmem:[%s9058_s0 + $0x68] sm:$0xf]  ;;  %s3042_s9 = smov 3  ;;  %s3317_s15 = smov 12 }
 0x14f   :  { %4484 = vst.msk [vmem:[%s9059_s1 + $0x137] sm:$0x2] %vm1371_vm13, %v6506_v45   ;;  %v2782_v23 = vld [vmem:[#allocation0 - $0x4e7] ss:$760 sm:%s2781_s29]   ;;  %v3043_v24 = vld [vmem:[#allocation0 + $0xd8] ss:$760 sm:%s3042_s9]  }
 0x150   :  { %4485 = vst.msk [vmem:[%s9059_s1 + $0x1f6] sm:$0x4] %vm1371_vm13, %v6506_v45   ;;  %vm1459_vm13 = vcmask 777896   ;;  %v2919_v45 = vld [vmem:[#allocation0 - $0xaee] ss:$760 sm:%s2918_s19]   ;;  %s5218_s29 = smov 34  }
 0x151   :  { %4492 = vst.msk [vmem:[%s9059_s1 + $0x35] ss:$129 sm:$0x3] %vm1452_vm11, %v6522_v57   ;;  %v2921_v53 = vsel %vm597_vm1, %v2919_v45, %v2916_v44  ;;  %v3046_v25 = vld [vmem:[#allocation0 - $0x517] ss:$760 sm:%s3045_s10]   ;;  %s7037_s19 = smov 3 }
 0x152   :  { %4493 = vst.msk [vmem:[%s9059_s1 - $0xd] ss:$129 sm:$0xc] %vm1452_vm11, %v6522_v57   ;;  %v3048_v28 = vsel %vm592_vm0, %v3046_v25, %v3043_v24  ;;  %s7078_s10 = smov 48  ;;  %s7120_s9 = smov 48 }
 0x153   :  { %4494 = vst.msk [vmem:[%s9059_s1 - $0x4f] ss:$129 sm:$0x30] %vm1452_vm11, %v6522_v57   ;;  %vm1503_vm11 = vcmask 777880   ;;  %s5224_s18 = smov 30   ;;  %s7571_s12 = smov 48 }
 0x154   :  { %4495 = vst.msk [vmem:[%s9059_s1 + $0x35] ss:$129 sm:$0x3] %vm1459_vm13, %v6522_v57  }
 0x155   :  { %4496 = vst.msk [vmem:[%s9059_s1 - $0xd] ss:$129 sm:$0xc] %vm1459_vm13, %v6522_v57  }
 0x156   :  { %4497 = vst.msk [vmem:[%s9059_s1 - $0x4f] ss:$129 sm:$0x30] %vm1459_vm13, %v6522_v57   ;;  %vm1672_vm13 = vcmask 637952   ;;  %v4276_v57 = vld [vmem:[%s9058_s0 + $0xe8] sm:$0xf] }
 0x157   :  { %235 = vst [vmem:[#allocation0 + $0x2a0] sm:$0xf] %v4250_v33 }
 0x158   :  { %259 = vst [vmem:[#allocation0 + $0x270] sm:$0xf] %v4256_v34  ;;  %v6981_v34 = vpop.permute.xlu2 %1802  }
 0x159   :  { %75 = vst [vmem:[#allocation0 + $0x3e0] sm:$0xf] %v4210_v35 }
 0x15a   :  { %455 = vst [vmem:[#allocation0 + $0xe8] sm:$0xf] %v4305_v36  ;;  %v3097_v36 = vld [vmem:[#allocation0 + $0x248] sm:$0x7]  }
 0x15b   :  { %4504 = vst.msk [vmem:[%s9059_s1 + $0x74] sm:$0x1] %vm1496_vm4, %v6637_v13  }
 0x15c   :  { %4505 = vst.msk [vmem:[%s9059_s1 + $0x133] sm:$0x2] %vm1496_vm4, %v6637_v13  }
 0x15d   :  { %4506 = vst.msk [vmem:[%s9059_s1 + $0x1f2] sm:$0x4] %vm1496_vm4, %v6637_v13   ;;  %vm1474_vm4 = vcmask 687104  }
 0x15e   :  { %v2567_v43 = vld [vmem:[#allocation0 + $0x2a0] sm:$0x7]   ;;  %4507 = vst.msk [vmem:[%s9059_s1 + $0x74] sm:$0x1] %vm1503_vm11, %v6637_v13  }
 0x15f   :  { %v2571_v47 = vsel %vm1672_vm13, %v2569_v39, %v2567_v43  ;;  %v2831_v48 = vld [vmem:[#allocation0 + $0x270] sm:$0x7]   ;;  %4508 = vst.msk [vmem:[%s9059_s1 + $0x133] sm:$0x2] %vm1503_vm11, %v6637_v13  }
 0x160   :  { %2572 = vrot.lane.b32.xlu2 %v2571_v47, %s5211_s3  ;;  %v2835_v49 = vsel %vm1408_vm15, %v2833_v42, %v2831_v48  ;;  %4509 = vst.msk [vmem:[%s9059_s1 + $0x1f2] sm:$0x4] %vm1503_vm11, %v6637_v13   ;;  %vm1481_vm15 = vcmask 777888   ;;  %vm1584_vm11 = vcmask 662528   ;;  %s2778_s3 = smov 3 }
 0x161   :  { %2836 = vrot.lane.b32.xlu1 %v2835_v49, %s5212_s4  ;;  %v2898_v50 = vld [vmem:[#allocation0 + $0xe8] ss:$760 sm:%s2897_s14]   ;;  %v2901_v51 = vld [vmem:[#allocation0 - $0x507] ss:$760 sm:%s2900_s23]   ;;  %v2906_v52 = vld [vmem:[#allocation0 - $0xaf6] ss:$760 sm:%s2905_s24]  }
 0x162   :  { %v2903_v54 = vsel %vm592_vm0, %v2901_v51, %v2898_v50  ;;  %4498 = vst.msk [vmem:[%s9059_s1 + $0x54] sm:$0x1] %vm1474_vm4, %v6639_v14   ;;  %v2779_v22 = vld [vmem:[#allocation0 + $0x108] ss:$760 sm:%s2778_s3]   ;;  %v7018_v50 = vpop.permute.xlu0 %1846   ;;  %s7044_s14 = smov 12  ;;  %s7051_s24 = smov 48 }
 0x163   :  { %v2908_v55 = vsel %vm597_vm1, %v2906_v52, %v2903_v54  ;;  %4499 = vst.msk [vmem:[%s9059_s1 + $0x113] sm:$0x2] %vm1474_vm4, %v6639_v14   ;;  %v2784_v26 = vsel %vm592_vm0, %v2782_v23, %v2779_v22  ;;  %v3204_v49 = vld [vmem:[#allocation0 + $0x170] sm:$0x7]   ;;  %v3206_v51 = vld [vmem:[#allocation0 + $0x178] sm:$0x7]  }
 0x164   :  { %v2923_v56 = vsel %vm1342_vm14, %v2921_v53, %v2908_v55  ;;  %4500 = vst.msk [vmem:[%s9059_s1 + $0x1d2] sm:$0x4] %vm1474_vm4, %v6639_v14   ;;  %vm1547_vm14 = vcmask 777872   ;;  %v4233_v53 = vld [vmem:[%s9058_s0 + $0x194] sm:$0xf]  ;;  %s7066_s4 = smov 3 }
 0x165   :  { %2924 = vrot.lane.b32.xlu0 %v2923_v56, %s5213_s11  ;;  %4501 = vst.msk [vmem:[%s9059_s1 + $0x54] sm:$0x1] %vm1481_vm15, %v6639_v14   ;;  %s3006_s11 = smov 48  ;;  %v4328_v54 = vld [vmem:[%s9058_s0 + $0x18] sm:$0xf]  ;;  %s7102_s3 = smov 3 }
 0x166   :  { %4502 = vst.msk [vmem:[%s9059_s1 + $0x113] sm:$0x2] %vm1481_vm15, %v6639_v14   ;;  %v3007_v5 = vld [vmem:[#allocation0 - $0xbbe] ss:$760 sm:%s3006_s11]   ;;  %s3129_s11 = smov 3  ;;  %s3599_s23 = smov 48 }
 0x167   :  { %4503 = vst.msk [vmem:[%s9059_s1 + $0x1d2] sm:$0x4] %vm1481_vm15, %v6639_v14   ;;  %v3009_v13 = vsel %vm597_vm1, %v3007_v5, %v3004_v4  ;;  %v4239_v55 = vld [vmem:[%s9058_s0 + $0x17c] sm:$0xf]  ;;  %v568_v56 = vld [vmem:[%s9058_s0] sm:$0xf] }
 0x168   :  { %4510 = vst.msk [vmem:[%s9059_s1 + $0x12] ss:$129 sm:$0x3] %vm1540_vm2, %v6651_v21   ;;  %v3284_v23 = vld [vmem:[#allocation0 + $0xa8] ss:$760 sm:%s7102_s3]   ;;  %s7364_s3 = smov 12 }
 0x169   :  { %4511 = vst.msk [vmem:[%s9059_s1 - $0x30] ss:$129 sm:$0xc] %vm1540_vm2, %v6651_v21  }
 0x16a   :  { %4512 = vst.msk [vmem:[%s9059_s1 - $0x72] ss:$129 sm:$0x30] %vm1540_vm2, %v6651_v21   ;;  %vm1613_vm2 = vcmask 777856  }
 0x16b   :  { %4513 = vst.msk [vmem:[%s9059_s1 + $0x12] ss:$129 sm:$0x3] %vm1547_vm14, %v6651_v21  }
 0x16c   :  { %4514 = vst.msk [vmem:[%s9059_s1 - $0x30] ss:$129 sm:$0xc] %vm1547_vm14, %v6651_v21  }
 0x16d   :  { %4515 = vst.msk [vmem:[%s9059_s1 - $0x72] ss:$129 sm:$0x30] %vm1547_vm14, %v6651_v21   ;;  %v4262_v21 = vld [vmem:[%s9058_s0 + $0x120] sm:$0xf] }
 0x16e   :  { %339 = vst [vmem:[#allocation0 + $0x1d0] sm:$0xf] %v4276_v57  ;;  %v2867_v57 = vld [vmem:[#allocation0 + $0x38] ss:$760 sm:%s2866_s21]   ;;  %s5223_s21 = smov 28  }
 0x16f   :  { %363 = vst [vmem:[#allocation0 + $0x1a0] sm:$0xf] %v4282_v58  ;;  %v2870_v58 = vld [vmem:[#allocation0 - $0x5b7] ss:$760 sm:%s2869_s27]   ;;  %s4065_s27 = smov 12 }
 0x170   :  { %179 = vst [vmem:[#allocation0 + $0x310] sm:$0xf] %v4236_v59  ;;  %v2872_v62 = vsel %vm592_vm0, %v2870_v58, %v2867_v57 }
 0x171   :  { %559 = vst [vmem:[#allocation0 + $0x18] sm:$0xf] %v4331_v60  ;;  %v3130_v60 = vld [vmem:[#allocation0 + $0x8] ss:$760 sm:%s3129_s11]   ;;  %s3335_s11 = smov 48 }
 0x172   :  { %4522 = vst.msk [vmem:[%s9059_s1 + $0x50] sm:$0x1] %vm1606_vm12, %v6749_v40  }
 0x173   :  { %4523 = vst.msk [vmem:[%s9059_s1 + $0x10f] sm:$0x2] %vm1606_vm12, %v6749_v40  }
 0x174   :  { %4524 = vst.msk [vmem:[%s9059_s1 + $0x1ce] sm:$0x4] %vm1606_vm12, %v6749_v40   ;;  %vm1591_vm12 = vcmask 777864  }
 0x175   :  { %v2677_v3 = vld [vmem:[#allocation0 + $0x1d0] sm:$0x7]   ;;  %4525 = vst.msk [vmem:[%s9059_s1 + $0x50] sm:$0x1] %vm1613_vm2, %v6749_v40  }
 0x176   :  { %v2681_v6 = vsel %vm1584_vm11, %v2679_v63, %v2677_v3  ;;  %v2941_v7 = vld [vmem:[#allocation0 + $0x1a0] sm:$0x7]   ;;  %4526 = vst.msk [vmem:[%s9059_s1 + $0x10f] sm:$0x2] %vm1613_vm2, %v6749_v40   ;;  %v7113_v3 = vpop.permute.xlu1 %1868  }
 0x177   :  { %2682 = vrot.lane.b32.xlu2 %v2681_v6, %s5214_s28  ;;  %v2945_v9 = vsel %vm1320_vm6, %v2943_v2, %v2941_v7  ;;  %4527 = vst.msk [vmem:[%s9059_s1 + $0x1ce] sm:$0x4] %vm1613_vm2, %v6749_v40   ;;  %vm3207_vm6 = vcmask 793600   ;;  %s3270_s28 = smov 3  ;;  %vm1811_vm2 = vcmask 777808   ;;  %v7111_v2 = vpop.permute.xlu2 %1890  }
 0x178   :  { %2946 = vrot.lane.b32.xlu1 %v2945_v9, %s5215_s30  ;;  %v2986_v10 = vld [vmem:[#allocation0 + $0x18] ss:$760 sm:%s2985_s16]   ;;  %v2989_v11 = vld [vmem:[#allocation0 - $0x5d7] ss:$760 sm:%s2988_s20]   ;;  %v2994_v12 = vld [vmem:[#allocation0 - $0xbc6] ss:$760 sm:%s2993_s13]   ;;  %v3208_v52 = vsel %vm3207_vm6, %v3206_v51, %v3204_v49 }
 0x179   :  { %v2991_v14 = vsel %vm592_vm0, %v2989_v11, %v2986_v10  ;;  %4516 = vst.msk [vmem:[%s9059_s1 + $0x31] ss:$129 sm:$0x3] %vm1584_vm11, %v6751_v41   ;;  %s3050_s16 = smov 48  ;;  %s3029_s20 = smov 3 }
 0x17a   :  { %v2996_v15 = vsel %vm597_vm1, %v2994_v12, %v2991_v14  ;;  %4517 = vst.msk [vmem:[%s9059_s1 - $0x11] ss:$129 sm:$0xc] %vm1584_vm11, %v6751_v41   ;;  %s3032_s13 = smov 12  ;;  %v3051_v29 = vld [vmem:[#allocation0 - $0xb06] ss:$760 sm:%s3050_s16]  }
 0x17b   :  { %v3011_v16 = vsel %vm1232_vm9, %v3009_v13, %v2996_v15  ;;  %4518 = vst.msk [vmem:[%s9059_s1 - $0x53] ss:$129 sm:$0x30] %vm1584_vm11, %v6751_v41   ;;  %vm1635_vm9 = vcmask 777848   ;;  %v3053_v42 = vsel %vm597_vm1, %v3051_v29, %v3048_v28  ;;  %s5217_s30 = smov 44   ;;  %vm9110_vm11 = vcmask 605184   ;;  %v7134_v13 = vpop.permute.xlu0 %1934  }
 0x17c   :  { %3012 = vrot.lane.b32.xlu0 %v3011_v16, %s5216_s7  ;;  %4519 = vst.msk [vmem:[%s9059_s1 + $0x31] ss:$129 sm:$0x3] %vm1591_vm12, %v6751_v41   ;;  %s2786_s7 = smov 48  ;;  %v3271_v63 = vld [vmem:[#allocation0 + $0xa0] ss:$760 sm:%s3270_s28]  }
 0x17d   :  { %4520 = vst.msk [vmem:[%s9059_s1 - $0x11] ss:$129 sm:$0xc] %vm1591_vm12, %v6751_v41   ;;  %v2787_v27 = vld [vmem:[#allocation0 - $0xad6] ss:$760 sm:%s2786_s7]   ;;  %s7109_s7 = smov 12 }
 0x17e   :  { %4521 = vst.msk [vmem:[%s9059_s1 - $0x53] ss:$129 sm:$0x30] %vm1591_vm12, %v6751_v41   ;;  %v2789_v33 = vsel %vm597_vm1, %v2787_v27, %v2784_v26  ;;  %vm9111_vm12 = vmmov %vm9110_vm11  ;;  %v3287_v24 = vld [vmem:[#allocation0 - $0x547] ss:$760 sm:%s7109_s7]   ;;  %s5222_s28 = smov 33  }
 0x17f   :  { %4528 = vst.msk [vmem:[%s9059_s1 + $0x70] sm:$0x1] %vm1628_vm3, %v6764_v46   ;;  %v3289_v26 = vsel %vm592_vm0, %v3287_v24, %v3284_v23  ;;  %v3292_v27 = vld [vmem:[#allocation0 - $0xb36] ss:$760 sm:%s7120_s9]   ;;  %s3327_s9 = smov 3  ;;  %s7371_s7 = smov 48 }
 0x180   :  { %4529 = vst.msk [vmem:[%s9059_s1 + $0x12f] sm:$0x2] %vm1628_vm3, %v6764_v46   ;;  %v3294_v29 = vsel %vm597_vm1, %v3292_v27, %v3289_v26  ;;  %v3587_v27 = vld [vmem:[#allocation0 - $0xab6] ss:$760 sm:%s7371_s7]   ;;  %s3710_s7 = smov 3  ;;  %s5247_s16 = smov 14  }
 0x181   :  { %4530 = vst.msk [vmem:[%s9059_s1 + $0x1ee] sm:$0x4] %vm1628_vm3, %v6764_v46   ;;  %vm1723_vm3 = vcmask 777832  }
 0x182   :  { %4531 = vst.msk [vmem:[%s9059_s1 + $0x70] sm:$0x1] %vm1635_vm9, %v6764_v46  }
 0x183   :  { %4532 = vst.msk [vmem:[%s9059_s1 + $0x12f] sm:$0x2] %vm1635_vm9, %v6764_v46   ;;  %v7252_v51 = vpop.permute.xlu0 %2022  }
 0x184   :  { %4533 = vst.msk [vmem:[%s9059_s1 + $0x1ee] sm:$0x4] %vm1635_vm9, %v6764_v46   ;;  %vm9112_vm9 = vmmov %vm9110_vm11 }
 0x185   :  { %63 = vst [vmem:[#allocation0 + $0x3f8] sm:$0xf] %v4207_v17 }
 0x186   :  { %443 = vst [vmem:[#allocation0 + $0x100] sm:$0xf] %v4302_v18 }
 0x187   :  { %87 = vst [vmem:[#allocation0 + $0x3c8] sm:$0xf] %v4213_v19 }
 0x188   :  { %467 = vst [vmem:[#allocation0 + $0xd0] sm:$0xf] %v4308_v20 }
 0x189   :  { %283 = vst [vmem:[#allocation0 + $0x240] sm:$0xf] %v4262_v21 }
 0x18a   :  { %4540 = vst.msk [vmem:[%s9059_s1 + $0x2d] ss:$129 sm:$0x3] %vm1716_vm7, %v6858_v0  }
 0x18b   :  { %4541 = vst.msk [vmem:[%s9059_s1 - $0x15] ss:$129 sm:$0xc] %vm1716_vm7, %v6858_v0  }
 0x18c   :  { %4542 = vst.msk [vmem:[%s9059_s1 - $0x57] ss:$129 sm:$0x30] %vm1716_vm7, %v6858_v0   ;;  %vm9106_vm7 = vcmask 752640  }
 0x18d   :  { %v2766_v31 = vld [vmem:[#allocation0 + $0x100] ss:$760 sm:%s6947_s26]   ;;  %v2769_v30 = vld [vmem:[#allocation0 - $0x4ef] ss:$760 sm:%s2768_s6]   ;;  %v2774_v32 = vld [vmem:[#allocation0 - $0xade] ss:$760 sm:%s2773_s17]  }
 0x18e   :  { %v2771_v35 = vsel %vm592_vm0, %v2769_v30, %v2766_v31  ;;  %4543 = vst.msk [vmem:[%s9059_s1 + $0x2d] ss:$129 sm:$0x3] %vm1723_vm3, %v6858_v0   ;;  %s5219_s6 = smov 36   ;;  %s2874_s26 = smov 48 }
 0x18f   :  { %v2776_v38 = vsel %vm597_vm1, %v2774_v32, %v2771_v35  ;;  %v3030_v39 = vld [vmem:[#allocation0 + $0xd0] ss:$760 sm:%s3029_s20]   ;;  %v3033_v40 = vld [vmem:[#allocation0 - $0x51f] ss:$760 sm:%s3032_s13]   ;;  %v3038_v41 = vld [vmem:[#allocation0 - $0xb0e] ss:$760 sm:%s3037_s22]  }
 0x190   :  { %v2791_v43 = vsel %vm1474_vm4, %v2789_v33, %v2776_v38  ;;  %v3035_v44 = vsel %vm592_vm0, %v3033_v40, %v3030_v39  ;;  %v3095_v45 = vld [vmem:[#allocation0 + $0x240] sm:$0x7]   ;;  %4544 = vst.msk [vmem:[%s9059_s1 - $0x15] ss:$129 sm:$0xc] %vm1723_vm3, %v6858_v0   ;;  %vm9107_vm4 = vcmask 621568  }
 0x191   :  { %2792 = vrot.lane.b32.xlu2 %v2791_v43, %s5217_s30  ;;  %v3040_v46 = vsel %vm597_vm1, %v3038_v41, %v3035_v44  ;;  %v3099_v47 = vsel %vm1144_vm8, %v3097_v36, %v3095_v45  ;;  %4545 = vst.msk [vmem:[%s9059_s1 - $0x57] ss:$129 sm:$0x30] %vm1723_vm3, %v6858_v0   ;;  %vm1679_vm8 = vcmask 777840   ;;  %vm9108_vm15 = vmmov %vm9107_vm4  ;;  %s5220_s30 = smov 31   ;;  %s3132_s20 = smov 12  ;;  %v7232_v44 = vpop.permute.xlu2 %2000   ;;  %v7234_v45 = vpop.permute.xlu1 %1978  }
 0x192   :  { %v3055_v48 = vsel %vm9106_vm7, %v3053_v42, %v3040_v46  ;;  %3100 = vrot.lane.b32.xlu0 %v3099_v47, %s5218_s29  ;;  %4534 = vst.msk [vmem:[%s9059_s1 + $0xe] ss:$129 sm:$0x3] %vm1672_vm13, %v6860_v1   ;;  %vm9109_vm14 = vmmov %vm9107_vm4  ;;  %s3137_s13 = smov 48  ;;  %v2875_v59 = vld [vmem:[#allocation0 - $0xba6] ss:$760 sm:%s2874_s26]  }
 0x193   :  { %3056 = vrot.lane.b32.xlu1 %v3055_v48, %s5219_s6  ;;  %4535 = vst.msk [vmem:[%s9059_s1 - $0x34] ss:$129 sm:$0xc] %vm1672_vm13, %v6860_v1   ;;  %s7068_s6 = smov 12  ;;  %v3133_v61 = vld [vmem:[#allocation0 - $0x5e7] ss:$760 sm:%s3132_s20]  }
 0x194   :  { %4536 = vst.msk [vmem:[%s9059_s1 - $0x76] ss:$129 sm:$0x30] %vm1672_vm13, %v6860_v1   ;;  %vm1745_vm13 = vcmask 777824   ;;  %v3138_v0 = vld [vmem:[#allocation0 - $0xbd6] ss:$760 sm:%s3137_s13]   ;;  %v3135_v9 = vsel %vm592_vm0, %v3133_v61, %v3130_v60 }
 0x195   :  { %4537 = vst.msk [vmem:[%s9059_s1 + $0xe] ss:$129 sm:$0x3] %vm1679_vm8, %v6860_v1   ;;  %vm3295_vm3 = vcmask 818176   ;;  %vm9113_vm7 = vcmask 777216   ;;  %v3140_v20 = vsel %vm597_vm1, %v3138_v0, %v3135_v9  ;;  %s3314_s29 = smov 3 }
 0x196   :  { %4538 = vst.msk [vmem:[%s9059_s1 - $0x34] ss:$129 sm:$0xc] %vm1679_vm8, %v6860_v1   ;;  %v3226_v30 = vld [vmem:[#allocation0 + $0x228] sm:$0x7]   ;;  %s3423_s20 = smov 48 }
 0x197   :  { %4539 = vst.msk [vmem:[%s9059_s1 - $0x76] ss:$129 sm:$0x30] %vm1679_vm8, %v6860_v1   ;;  %v3274_v1 = vld [vmem:[#allocation0 - $0x54f] ss:$760 sm:%s3273_s25]   ;;  %s3163_s13 = smov 12 }
 0x198   :  { %4546 = vst.msk [vmem:[%s9059_s1 + $0x4c] sm:$0x1] %vm9107_vm4, %v6879_v8   ;;  %v3276_v12 = vsel %vm592_vm0, %v3274_v1, %v3271_v63  ;;  %v3228_v32 = vld [vmem:[#allocation0 + $0x230] sm:$0x7]   ;;  %v4259_v39 = vld [vmem:[%s9058_s0 + $0x12c] sm:$0xf] }
 0x199   :  { %4547 = vst.msk [vmem:[%s9059_s1 + $0x10b] sm:$0x2] %vm9108_vm15, %v6879_v8   ;;  %v3318_v35 = vld [vmem:[#allocation0 - $0x497] ss:$760 sm:%s3317_s15]   ;;  %v3328_v38 = vld [vmem:[#allocation0 + $0x160] ss:$760 sm:%s3327_s9]   ;;  %v7309_v0 = vpop.permute.xlu1 %2066  }
 0x19a   :  { %4548 = vst.msk [vmem:[%s9059_s1 + $0x1ca] sm:$0x4] %vm9109_vm14, %v6879_v8   ;;  %3209 = vrot.lane.b32.xlu0 %v3208_v52, %s5220_s30  ;;  %s3278_s30 = smov 48  ;;  %vm1767_vm14 = vcmask 777816   ;;  %v3336_v43 = vld [vmem:[#allocation0 - $0xa7e] ss:$760 sm:%s3335_s11]  }
 0x19b   :  { %4549 = vst.msk [vmem:[%s9059_s1 + $0x4c] sm:$0x1] %vm1745_vm13, %v6879_v8   ;;  %v3279_v4 = vld [vmem:[#allocation0 - $0xb3e] ss:$760 sm:%s3278_s30]   ;;  %s5226_s9 = smov 27   ;;  %s3405_s11 = smov 12 }
 0x19c   :  { %4550 = vst.msk [vmem:[%s9059_s1 + $0x10b] sm:$0x2] %vm1745_vm13, %v6879_v8   ;;  %v3281_v22 = vsel %vm597_vm1, %v3279_v4, %v3276_v12  ;;  %v3380_v47 = vld [vmem:[#allocation0 + $0x2c8] sm:$0x7]   ;;  %v3382_v48 = vld [vmem:[#allocation0 + $0x2d0] sm:$0x7]  }
 0x19d   :  { %4551 = vst.msk [vmem:[%s9059_s1 + $0x1ca] sm:$0x4] %vm1745_vm13, %v6879_v8   ;;  %v2877_v8 = vsel %vm597_vm1, %v2875_v59, %v2872_v62  ;;  %v3296_v31 = vsel %vm3295_vm3, %v3294_v29, %v3281_v22  ;;  %v2965_v52 = vld [vmem:[#allocation0 + $0x260] sm:$0x7]   ;;  %s3173_s25 = smov 3  ;;  %s3176_s30 = smov 12 }
 0x19e   :  { %167 = vst [vmem:[#allocation0 + $0x328] sm:$0xf] %v4233_v53  ;;  %v7279_v53 = vpop.permute.xlu2 %2110   ;;  %v3406_v57 = vld [vmem:[#allocation0 - $0x567] ss:$760 sm:%s3405_s11]   ;;  %v3424_v63 = vld [vmem:[#allocation0 - $0xb4e] ss:$760 sm:%s3423_s20]  }
 0x19f   :  { %547 = vst [vmem:[#allocation0 + $0x30] sm:$0xf] %v4328_v54  ;;  %v3492_v4 = vld [vmem:[#allocation0 + $0x200] sm:$0x7]   ;;  %s5229_s11 = smov 22   ;;  %s3160_s20 = smov 3 }
 0x1a0   :  { %191 = vst [vmem:[#allocation0 + $0x2f8] sm:$0xf] %v4239_v55  ;;  %v3075_v9 = vld [vmem:[#allocation0 + $0x190] sm:$0x7]   ;;  %s3679_s26 = smov 3  ;;  %s3454_s22 = smov 48 }
 0x1a1   :  { %569 = vst [vmem:[#allocation0] sm:$0xf] %v568_v56  ;;  %v3174_v12 = vld [vmem:[#allocation0 + $0xc0] ss:$760 sm:%s3173_s25]   ;;  %s5236_s25 = smov 26   ;;  %s3806_s15 = smov 48 }
 0x1a2   :  { %4558 = vst.msk [vmem:[%s9059_s1 + $0xa] ss:$129 sm:$0x3] %vm9110_vm11, %v6981_v34   ;;  %3297 = vrot.lane.b32.xlu0 %v3296_v31, %s5223_s21  ;;  %vm9120_vm11 = vcmask 596992   ;;  %s5227_s21 = smov 38   ;;  %s4106_s17 = smov 3 }
 0x1a3   :  { %4559 = vst.msk [vmem:[%s9059_s1 - $0x38] ss:$129 sm:$0xc] %vm9111_vm12, %v6981_v34   ;;  %vm9121_vm12 = vmmov %vm9120_vm11 }
 0x1a4   :  { %4560 = vst.msk [vmem:[%s9059_s1 - $0x7a] ss:$129 sm:$0x30] %vm9112_vm9, %v6981_v34   ;;  %vm3339_vm9 = vcmask 826368   ;;  %vm9122_vm3 = vmmov %vm9120_vm11 }
 0x1a5   :  { %4561 = vst.msk [vmem:[%s9059_s1 + $0xa] ss:$129 sm:$0x3] %vm1811_vm2, %v6981_v34  }
 0x1a6   :  { %v2854_v5 = vld [vmem:[#allocation0 + $0x30] ss:$760 sm:%s7037_s19]   ;;  %v2857_v6 = vld [vmem:[#allocation0 - $0x5bf] ss:$760 sm:%s7044_s14]   ;;  %v2862_v7 = vld [vmem:[#allocation0 - $0xbae] ss:$760 sm:%s7051_s24]  }
 0x1a7   :  { %v2859_v10 = vsel %vm592_vm0, %v2857_v6, %v2854_v5  ;;  %v578_v11 = vld [vmem:[#allocation0 + $0x2f8] sm:$0x7]   ;;  %4562 = vst.msk [vmem:[%s9059_s1 - $0x38] ss:$129 sm:$0xc] %vm1811_vm2, %v6981_v34   ;;  %s3330_s24 = smov 12 }
 0x1a8   :  { %v2864_v14 = vsel %vm597_vm1, %v2862_v7, %v2859_v10  ;;  %v570_v15 = vld [vmem:[#allocation0] sm:$0x7]   ;;  %4336 = vst.msk [vmem:[%s9059_s1 + $0x81] sm:$0x1] %vm9113_vm7, %v578_v11   ;;  %v4285_v7 = vld [vmem:[%s9058_s0 + $0xc4] sm:$0xf] }
 0x1a9   :  { %v3117_v16 = vld [vmem:[#allocation0] ss:$760 sm:%s7066_s4]   ;;  %v2879_v17 = vsel %vm1364_vm5, %v2877_v8, %v2864_v14  ;;  %vm9114_vm5 = vmmov %vm9113_vm7  ;;  %v3120_v18 = vld [vmem:[#allocation0 - $0x5ef] ss:$760 sm:%s7068_s6]   ;;  %s5221_s6 = smov 41   ;;  %vm3383_vm7 = vcmask 842752   ;;  %v7347_v8 = vpop.permute.xlu0 %2132   ;;  %v7383_v14 = vpop.permute.xlu2 %2176  }
 0x1aa   :  { %572 = vst.msk [vmem:[%s9059_s1] sm:$0x1] %vm9114_vm5, %v570_v15   ;;  %v3125_v19 = vld [vmem:[#allocation0 - $0xbde] ss:$760 sm:%s7078_s10]   ;;  %2880 = vrot.lane.b32.xlu2 %v2879_v17, %s5221_s6  ;;  %vm9115_vm8 = vmmov %vm9114_vm5  ;;  %v3122_v21 = vsel %vm592_vm0, %v3120_v18, %v3117_v16  ;;  %v3331_v40 = vld [vmem:[#allocation0 - $0x48f] ss:$760 sm:%s3330_s24]  }
 0x1ab   :  { %4334 = vst.msk [vmem:[%s9059_s1 + $0xbf] sm:$0x2] %vm9115_vm8, %v570_v15   ;;  %vm9116_vm6 = vmmov %vm9114_vm5  ;;  %v3127_v25 = vsel %vm597_vm1, %v3125_v19, %v3122_v21  ;;  %v3333_v42 = vsel %vm592_vm0, %v3331_v40, %v3328_v38  ;;  %vm9123_vm8 = vcmask 580608   ;;  %s3402_s24 = smov 3  ;;  %s3410_s6 = smov 48 }
 0x1ac   :  { %4335 = vst.msk [vmem:[%s9059_s1 + $0x17e] sm:$0x4] %vm9116_vm6, %v570_v15   ;;  %vm9117_vm13 = vmmov %vm9114_vm5  ;;  %v3338_v46 = vsel %vm597_vm1, %v3336_v43, %v3333_v42  ;;  %s3415_s10 = smov 3  ;;  %v3403_v56 = vld [vmem:[#allocation0 + $0x88] ss:$760 sm:%s3402_s24]   ;;  %s5228_s24 = smov 24  }
 0x1ad   :  { %4337 = vst.msk [vmem:[%s9059_s1 + $0x140] sm:$0x2] %vm9117_vm13, %v578_v11   ;;  %vm9118_vm4 = vmmov %vm9114_vm5  ;;  %vm1899_vm5 = vcmask 777784   ;;  %v3408_v58 = vsel %vm592_vm0, %v3406_v57, %v3403_v56  ;;  %v3411_v59 = vld [vmem:[#allocation0 - $0xb56] ss:$760 sm:%s3410_s6]   ;;  %s5230_s0 = smov 21  }
 0x1ae   :  { %v3142_v28 = vsel %vm9118_vm4, %v3140_v20, %v3127_v25  ;;  %vm9119_vm15 = vmmov %vm9118_vm4  ;;  %4563 = vst.msk [vmem:[%s9059_s1 - $0x7a] ss:$129 sm:$0x30] %vm1811_vm2, %v6981_v34   ;;  %vm3229_vm2 = vcmask 801792   ;;  %v3315_v34 = vld [vmem:[#allocation0 + $0x158] ss:$760 sm:%s3314_s29]   ;;  %v3413_v61 = vsel %vm597_vm1, %v3411_v59, %v3408_v58 }
 0x1af   :  { %4338 = vst.msk [vmem:[%s9059_s1 + $0x1ff] sm:$0x4] %vm9119_vm15, %v578_v11   ;;  %3143 = vrot.lane.b32.xlu1 %v3142_v28, %s5222_s28  ;;  %v3230_v33 = vsel %vm3229_vm2, %v3228_v32, %v3226_v30  ;;  %v3320_v36 = vsel %vm592_vm0, %v3318_v35, %v3315_v34  ;;  %s5225_s29 = smov 25   ;;  %vm9124_vm6 = vmmov %vm9123_vm8  ;;  %vm1877_vm4 = vcmask 777792   ;;  %vm9126_vm15 = vcmask 588800   ;;  %s3168_s28 = smov 48  ;;  %v7416_v28 = vpop.permute.xlu1 %2154  }
 0x1b0   :  { %4552 = vst.msk [vmem:[%s9059_s1 + $0x6c] sm:$0x1] %vm1760_vm10, %v6989_v37   ;;  %vm9125_vm13 = vmmov %vm9124_vm6  ;;  %vm9127_vm2 = vcmask 736256   ;;  %v3416_v60 = vld [vmem:[#allocation0 + $0x90] ss:$760 sm:%s3415_s10]   ;;  %s5235_s19 = smov 18  }
 0x1b1   :  { %4553 = vst.msk [vmem:[%s9059_s1 + $0x12b] sm:$0x2] %vm1760_vm10, %v6989_v37   ;;  %v3161_v10 = vld [vmem:[#allocation0 + $0xb8] ss:$760 sm:%s3160_s20]   ;;  %v3164_v11 = vld [vmem:[#allocation0 - $0x537] ss:$760 sm:%s3163_s13]   ;;  %v7486_v43 = vpop.permute.xlu2 %2286  }
 0x1b2   :  { %4554 = vst.msk [vmem:[%s9059_s1 + $0x1ea] sm:$0x4] %vm1760_vm10, %v6989_v37   ;;  %vm1855_vm10 = vcmask 777800   ;;  %v3512_v15 = vld [vmem:[#allocation0 + $0x2b0] sm:$0x7]   ;;  %v3166_v23 = vsel %vm592_vm0, %v3164_v11, %v3161_v10  ;;  %s5231_s20 = smov 35  }
 0x1b3   :  { %4555 = vst.msk [vmem:[%s9059_s1 + $0x6c] sm:$0x1] %vm1767_vm14, %v6989_v37   ;;  %v3169_v16 = vld [vmem:[#allocation0 - $0xb26] ss:$760 sm:%s3168_s28]   ;;  %v3579_v19 = vld [vmem:[#allocation0 + $0x128] ss:$760 sm:%s3578_s2]  }
 0x1b4   :  { %4556 = vst.msk [vmem:[%s9059_s1 + $0x12b] sm:$0x2] %vm1767_vm14, %v6989_v37   ;;  %v3514_v18 = vld [vmem:[#allocation0 + $0x2b8] sm:$0x7]   ;;  %v3171_v31 = vsel %vm597_vm1, %v3169_v16, %v3166_v23  ;;  %v3248_v40 = vld [vmem:[#allocation0 + $0x2e0] sm:$0x7]  }
 0x1b5   :  { %4557 = vst.msk [vmem:[%s9059_s1 + $0x1ea] sm:$0x4] %vm1767_vm14, %v6989_v37   ;;  %v3323_v37 = vld [vmem:[#allocation0 - $0xa86] ss:$760 sm:%s3322_s8]   ;;  %vm3427_vm14 = vcmask 850944   ;;  %s5232_s8 = smov 19  }
 0x1b6   :  { %4564 = vst.msk [vmem:[%s9059_s1 + $0x29] ss:$129 sm:$0x3] %vm9120_vm11, %v7018_v50   ;;  %v3325_v41 = vsel %vm597_vm1, %v3323_v37, %v3320_v36  ;;  %v3582_v25 = vld [vmem:[#allocation0 - $0x4c7] ss:$760 sm:%s7364_s3]   ;;  %s3449_s13 = smov 12 }
 0x1b7   :  { %3231 = vrot.lane.b32.xlu1 %v3230_v33, %s5224_s18  ;;  %4565 = vst.msk [vmem:[%s9059_s1 - $0x19] ss:$129 sm:$0xc] %vm9121_vm12, %v7018_v50   ;;  %v3340_v49 = vsel %vm3339_vm9, %v3338_v46, %v3325_v41  ;;  %s3418_s18 = smov 12  ;;  %vm3493_vm12 = vcmask 867328   ;;  %vm1943_vm9 = vcmask 777776   ;;  %v3584_v26 = vsel %vm592_vm0, %v3582_v25, %v3579_v19 }
 0x1b8   :  { %4566 = vst.msk [vmem:[%s9059_s1 - $0x5b] ss:$129 sm:$0x30] %vm9122_vm3, %v7018_v50   ;;  %v3419_v62 = vld [vmem:[#allocation0 - $0x55f] ss:$760 sm:%s3418_s18]   ;;  %vm9130_vm3 = vcmask 572416   ;;  %v3589_v32 = vsel %vm597_vm1, %v3587_v27, %v3584_v26 }
 0x1b9   :  { %4567 = vst.msk [vmem:[%s9059_s1 + $0x29] ss:$129 sm:$0x3] %vm1855_vm10, %v7018_v50   ;;  %v3421_v1 = vsel %vm592_vm0, %v3419_v62, %v3416_v60  ;;  %s3594_s18 = smov 12  ;;  %v3600_v35 = vld [vmem:[#allocation0 - $0xaae] ss:$760 sm:%s3599_s23]  }
 0x1ba   :  { %4568 = vst.msk [vmem:[%s9059_s1 - $0x19] ss:$129 sm:$0xc] %vm1855_vm10, %v7018_v50   ;;  %v3595_v33 = vld [vmem:[#allocation0 - $0x4bf] ss:$760 sm:%s3594_s18]   ;;  %s3669_s23 = smov 12 }
 0x1bb   :  { %4569 = vst.msk [vmem:[%s9059_s1 - $0x5b] ss:$129 sm:$0x30] %vm1855_vm10, %v7018_v50   ;;  %v3384_v50 = vsel %vm3383_vm7, %v3382_v48, %v3380_v47  ;;  %vm9128_vm10 = vmmov %vm9126_vm15  ;;  %v3250_v41 = vld [vmem:[#allocation0 + $0x2e8] sm:$0x7]   ;;  %s5237_s2 = smov 16  }
 0x1bc   :  { %271 = vst [vmem:[#allocation0 + $0x258] sm:$0xf] %v4259_v39  ;;  %3385 = vrot.lane.b32.xlu0 %v3384_v50, %s5225_s29  ;;  %vm9129_vm11 = vmmov %vm9128_vm10  ;;  %v7453_v39 = vpop.permute.xlu0 %2220   ;;  %s5234_s29 = smov 29   ;;  %v3360_v46 = vld [vmem:[#allocation0 + $0x218] sm:$0x7]   ;;  %s3467_s3 = smov 48 }
 0x1bd   :  { %4576 = vst.msk [vmem:[%s9059_s1 + $0x68] sm:$0x1] %vm9123_vm8, %v7111_v2   ;;  %vm9131_vm7 = vmmov %vm9130_vm3  ;;  %vm2009_vm8 = vcmask 777760   ;;  %v3624_v47 = vld [vmem:[#allocation0 + $0x1e8] sm:$0x7]   ;;  %s7564_s14 = smov 3 }
 0x1be   :  { %4577 = vst.msk [vmem:[%s9059_s1 + $0x127] sm:$0x2] %vm9124_vm6, %v7111_v2   ;;  %vm9133_vm6 = vcmask 556032   ;;  %v3670_v50 = vld [vmem:[#allocation0 - $0x597] ss:$760 sm:%s3669_s23]   ;;  %s3726_s4 = smov 12 }
 0x1bf   :  { %3341 = vrot.lane.b32.xlu1 %v3340_v49, %s5226_s9  ;;  %4578 = vst.msk [vmem:[%s9059_s1 + $0x1e6] sm:$0x4] %vm9125_vm13, %v7111_v2   ;;  %vm9134_vm13 = vmmov %vm9133_vm6  ;;  %v3683_v57 = vld [vmem:[#allocation0 - $0x58f] ss:$760 sm:%s3682_s5]   ;;  %s3713_s5 = smov 12  ;;  %s5239_s9 = smov 15  }
 0x1c0   :  { %4579 = vst.msk [vmem:[%s9059_s1 + $0x68] sm:$0x1] %vm1899_vm5, %v7111_v2   ;;  %v3714_v11 = vld [vmem:[#allocation0 - $0x4df] ss:$760 sm:%s3713_s5]   ;;  %v3732_v19 = vld [vmem:[#allocation0 - $0xac6] ss:$760 sm:%s7571_s12]  }
 0x1c1   :  { %4580 = vst.msk [vmem:[%s9059_s1 + $0x127] sm:$0x2] %vm1899_vm5, %v7111_v2   ;;  %v3727_v16 = vld [vmem:[#allocation0 - $0x4d7] ss:$760 sm:%s3726_s4]   ;;  %s3534_s10 = smov 3  ;;  %s3542_s18 = smov 48 }
 0x1c2   :  { %4581 = vst.msk [vmem:[%s9059_s1 + $0x1e6] sm:$0x4] %vm1899_vm5, %v7111_v2   ;;  %v3490_v2 = vld [vmem:[#allocation0 + $0x1f8] sm:$0x7]   ;;  %vm9132_vm5 = vmmov %vm9130_vm3  ;;  %v3778_v23 = vld [vmem:[#allocation0 + $0x288] sm:$0x7]  }
 0x1c3   :  { %v2963_v54 = vld [vmem:[#allocation0 + $0x258] sm:$0x7]   ;;  %4570 = vst.msk [vmem:[%s9059_s1 + $0x48] sm:$0x1] %vm9126_vm15, %v7113_v3   ;;  %v3494_v6 = vsel %vm3493_vm12, %v3492_v4, %v3490_v2  ;;  %vm3515_vm15 = vcmask 875520   ;;  %s3550_s23 = smov 12 }
 0x1c4   :  { %v2967_v55 = vsel %vm9127_vm2, %v2965_v52, %v2963_v54  ;;  %4571 = vst.msk [vmem:[%s9059_s1 + $0x107] sm:$0x2] %vm9128_vm10, %v7113_v3   ;;  %3495 = vrot.lane.b32.xlu0 %v3494_v6, %s5229_s11  ;;  %s3591_s11 = smov 3  ;;  %vm9136_vm2 = vcmask 564224   ;;  %v3516_v21 = vsel %vm3515_vm15, %v3514_v18, %v3512_v15  ;;  %vm9137_vm10 = vcmask 760832   ;;  %v7547_v62 = vpop.permute.xlu0 %2308   ;;  %s3814_s12 = smov 12 }
 0x1c5   :  { %2968 = vrot.lane.b32.xlu2 %v2967_v55, %s5227_s21  ;;  %4572 = vst.msk [vmem:[%s9059_s1 + $0x1c6] sm:$0x4] %vm9129_vm11, %v7113_v3   ;;  %s3181_s21 = smov 48  ;;  %vm9138_vm11 = vmmov %vm9136_vm2  ;;  %v3592_v29 = vld [vmem:[#allocation0 + $0x130] ss:$760 sm:%s3591_s11]   ;;  %s5233_s11 = smov 32  }
 0x1c6   :  { %4573 = vst.msk [vmem:[%s9059_s1 + $0x48] sm:$0x1] %vm1877_vm4, %v7113_v3   ;;  %v3182_v17 = vld [vmem:[#allocation0 - $0xb1e] ss:$760 sm:%s3181_s21]   ;;  %vm9139_vm12 = vmmov %vm9136_vm2  ;;  %v3597_v34 = vsel %vm592_vm0, %v3595_v33, %v3592_v29  ;;  %vm3251_vm15 = vcmask 809984   ;;  %s3462_s21 = smov 12 }
 0x1c7   :  { %4574 = vst.msk [vmem:[%s9059_s1 + $0x107] sm:$0x2] %vm1877_vm4, %v7113_v3   ;;  %v3602_v36 = vsel %vm597_vm1, %v3600_v35, %v3597_v34  ;;  %v3252_v42 = vsel %vm3251_vm15, %v3250_v41, %v3248_v40  ;;  %v3680_v54 = vld [vmem:[#allocation0 + $0x60] ss:$760 sm:%s3679_s26]   ;;  %vm2185_vm15 = vcmask 777712   ;;  %s3798_s26 = smov 3 }
 0x1c8   :  { %4575 = vst.msk [vmem:[%s9059_s1 + $0x1c6] sm:$0x4] %vm1877_vm4, %v7113_v3   ;;  %v3426_v3 = vsel %vm597_vm1, %v3424_v63, %v3421_v1  ;;  %vm9135_vm4 = vmmov %vm9133_vm6  ;;  %v3685_v58 = vsel %vm592_vm0, %v3683_v57, %v3680_v54  ;;  %v3455_v2 = vld [vmem:[#allocation0 - $0xa9e] ss:$760 sm:%s3454_s22]   ;;  %v3463_v6 = vld [vmem:[#allocation0 - $0x4a7] ss:$760 sm:%s3462_s21]  }
 0x1c9   :  { %4582 = vst.msk [vmem:[%s9059_s1 + $0x6] ss:$129 sm:$0x3] %vm9130_vm3, %v7134_v13   ;;  %v3428_v5 = vsel %vm3427_vm14, %v3426_v3, %v3413_v61  ;;  %vm1987_vm14 = vcmask 777768   ;;  %vm3603_vm3 = vcmask 891904   ;;  %v7589_v3 = vpop.permute.xlu2 %2396   ;;  %s3547_s22 = smov 3 }
 0x1ca   :  { %4583 = vst.msk [vmem:[%s9059_s1 - $0x3c] ss:$129 sm:$0xc] %vm9131_vm7, %v7134_v13   ;;  %3429 = vrot.lane.b32.xlu1 %v3428_v5, %s5228_s24  ;;  %vm2031_vm7 = vcmask 777752   ;;  %v3604_v38 = vsel %vm3603_vm3, %v3602_v36, %v3589_v32  ;;  %v3724_v15 = vld [vmem:[#allocation0 + $0x118] ss:$760 sm:%s7564_s14]  }
 0x1cb   :  { %4584 = vst.msk [vmem:[%s9059_s1 - $0x7e] ss:$129 sm:$0x30] %vm9132_vm5, %v7134_v13   ;;  %vm9140_vm5 = vcmask 547840   ;;  %v3729_v18 = vsel %vm592_vm0, %v3727_v16, %v3724_v15  ;;  %v3535_v27 = vld [vmem:[#allocation0 + $0x70] ss:$760 sm:%s3534_s10]  }
 0x1cc   :  { %4585 = vst.msk [vmem:[%s9059_s1 + $0x6] ss:$129 sm:$0x3] %vm1943_vm9, %v7134_v13   ;;  %3605 = vrot.lane.b32.xlu0 %v3604_v38, %s5232_s8  ;;  %v7658_v26 = vpop.permute.xlu0 %2418   ;;  %v3551_v34 = vld [vmem:[#allocation0 - $0x577] ss:$760 sm:%s3550_s23]   ;;  %s5243_s5 = smov 10  }
 0x1cd   :  { %4586 = vst.msk [vmem:[%s9059_s1 - $0x3c] ss:$129 sm:$0xc] %vm1943_vm9, %v7134_v13   ;;  %v3646_v57 = vld [vmem:[#allocation0 + $0x2a0] sm:$0x7]   ;;  %s3990_s8 = smov 12 }
 0x1ce   :  { %4587 = vst.msk [vmem:[%s9059_s1 - $0x7e] ss:$129 sm:$0x30] %vm1943_vm9, %v7134_v13   ;;  %v3177_v13 = vld [vmem:[#allocation0 - $0x52f] ss:$760 sm:%s3176_s30]   ;;  %vm3185_vm9 = vcmask 785408  }
 0x1cf   :  { %375 = vst [vmem:[#allocation0 + $0x188] sm:$0xf] %v4285_v7  ;;  %v3179_v24 = vsel %vm592_vm0, %v3177_v13, %v3174_v12  ;;  %s3674_s30 = smov 48  ;;  %v3468_v7 = vld [vmem:[#allocation0 - $0xa96] ss:$760 sm:%s3467_s3]   ;;  %s3995_s14 = smov 48 }
 0x1d0   :  { %4594 = vst.msk [vmem:[%s9059_s1 + $0x44] sm:$0x1] %vm9133_vm6, %v7232_v44   ;;  %v3184_v30 = vsel %vm597_vm1, %v3182_v17, %v3179_v24  ;;  %vm9142_vm6 = vmmov %vm9140_vm5  ;;  %s4062_s21 = smov 3  ;;  %v4018_v15 = vld [vmem:[#allocation0 + $0x198] sm:$0x7]   ;;  %s5249_s3 = smov 4  }
 0x1d1   :  { %4595 = vst.msk [vmem:[%s9059_s1 + $0x103] sm:$0x2] %vm9134_vm13, %v7232_v44   ;;  %v3186_v37 = vsel %vm3185_vm9, %v3184_v30, %v3171_v31  ;;  %vm2119_vm13 = vcmask 777736   ;;  %v3543_v31 = vld [vmem:[#allocation0 - $0xb6e] ss:$760 sm:%s3542_s18]   ;;  %v7695_v32 = vpop.permute.xlu2 %2484   ;;  %s3977_s18 = smov 12 }
 0x1d2   :  { %4596 = vst.msk [vmem:[%s9059_s1 + $0x1c2] sm:$0x4] %vm9135_vm4, %v7232_v44   ;;  %3517 = vrot.lane.b32.xlu1 %v3516_v21, %s5230_s0  ;;  %vm9143_vm4 = vcmask 531456   ;;  %s3446_s0 = smov 3  ;;  %v3548_v30 = vld [vmem:[#allocation0 + $0x78] ss:$760 sm:%s3547_s22]  }
 0x1d3   :  { %4597 = vst.msk [vmem:[%s9059_s1 + $0x44] sm:$0x1] %vm2009_vm8, %v7232_v44   ;;  %v3447_v63 = vld [vmem:[#allocation0 + $0x140] ss:$760 sm:%s3446_s0]   ;;  %s3537_s0 = smov 12  ;;  %v3553_v36 = vsel %vm592_vm0, %v3551_v34, %v3548_v30  ;;  %s5246_s22 = smov 7  }
 0x1d4   :  { %4598 = vst.msk [vmem:[%s9059_s1 + $0x103] sm:$0x2] %vm2009_vm8, %v7232_v44   ;;  %v7762_v54 = vpop.permute.xlu0 %2528   ;;  %v4020_v16 = vld [vmem:[#allocation0 + $0x1a0] sm:$0x7]   ;;  %s3858_s24 = smov 12  ;;  %s4122_s28 = smov 12 }
 0x1d5   :  { %4599 = vst.msk [vmem:[%s9059_s1 + $0x1c2] sm:$0x4] %vm2009_vm8, %v7232_v44   ;;  %vm9141_vm8 = vmmov %vm9140_vm5  ;;  %v3622_v44 = vld [vmem:[#allocation0 + $0x1e0] sm:$0x7]   ;;  %s5250_s4 = smov 11  }
 0x1d6   :  { %v3073_v20 = vld [vmem:[#allocation0 + $0x188] sm:$0x7]   ;;  %4588 = vst.msk [vmem:[%s9059_s1 + $0x25] ss:$129 sm:$0x3] %vm9136_vm2, %v7234_v45   ;;  %vm9145_vm2 = vmmov %vm9143_vm4 }
 0x1d7   :  { %v3077_v22 = vsel %vm9137_vm10, %v3075_v9, %v3073_v20  ;;  %4589 = vst.msk [vmem:[%s9059_s1 - $0x1d] ss:$129 sm:$0xc] %vm9138_vm11, %v7234_v45   ;;  %vm3625_vm10 = vcmask 900096   ;;  %vm2075_vm11 = vcmask 777744  }
 0x1d8   :  { %3078 = vrot.lane.b32.xlu2 %v3077_v22, %s5231_s20  ;;  %4590 = vst.msk [vmem:[%s9059_s1 - $0x5f] ss:$129 sm:$0x30] %vm9139_vm12, %v7234_v45   ;;  %s3666_s20 = smov 3  ;;  %vm9146_vm12 = vcmask 539648   ;;  %v3626_v48 = vsel %vm3625_vm10, %v3624_v47, %v3622_v44  ;;  %vm2163_vm10 = vcmask 777720   ;;  %v3734_v22 = vsel %vm597_vm1, %v3732_v19, %v3729_v18 }
 0x1d9   :  { %4591 = vst.msk [vmem:[%s9059_s1 + $0x25] ss:$129 sm:$0x3] %vm1987_vm14, %v7234_v45   ;;  %vm9147_vm9 = vmmov %vm9146_vm12  ;;  %v3667_v49 = vld [vmem:[#allocation0 + $0x58] ss:$760 sm:%s3666_s20]   ;;  %s4114_s20 = smov 48 }
 0x1da   :  { %4592 = vst.msk [vmem:[%s9059_s1 - $0x1d] ss:$129 sm:$0xc] %vm1987_vm14, %v7234_v45   ;;  %vm9148_vm3 = vmmov %vm9147_vm9  ;;  %3627 = vrot.lane.b32.xlu1 %v3626_v48, %s5235_s19  ;;  %v3672_v52 = vsel %vm592_vm0, %v3670_v50, %v3667_v49  ;;  %s3718_s19 = smov 48  ;;  %v3711_v9 = vld [vmem:[#allocation0 + $0x110] ss:$760 sm:%s3710_s7]  }
 0x1db   :  { %4593 = vst.msk [vmem:[%s9059_s1 - $0x5f] ss:$129 sm:$0x30] %vm1987_vm14, %v7234_v45   ;;  %vm9144_vm14 = vmmov %vm9143_vm4  ;;  %v3358_v45 = vld [vmem:[#allocation0 + $0x210] sm:$0x7]   ;;  %s7682_s7 = smov 3 }
 0x1dc   :  { %4600 = vst.msk [vmem:[%s9059_s1 + $0x64] sm:$0x1] %vm9140_vm5, %v7252_v51   ;;  %vm3691_vm5 = vcmask 916480   ;;  %v3719_v12 = vld [vmem:[#allocation0 - $0xace] ss:$760 sm:%s3718_s19]   ;;  %s5240_s19 = smov 13  }
 0x1dd   :  { %4601 = vst.msk [vmem:[%s9059_s1 + $0x123] sm:$0x2] %vm9141_vm8, %v7252_v51   ;;  %vm2141_vm8 = vcmask 777728   ;;  %v3776_v20 = vld [vmem:[#allocation0 + $0x280] sm:$0x7]  }
 0x1de   :  { %4602 = vst.msk [vmem:[%s9059_s1 + $0x1e2] sm:$0x4] %vm9142_vm6, %v7252_v51   ;;  %vm9149_vm6 = vcmask 523264   ;;  %v3886_v50 = vld [vmem:[#allocation0 + $0x1b0] sm:$0x7]  }
 0x1df   :  { %4603 = vst.msk [vmem:[%s9059_s1 + $0x64] sm:$0x1] %vm2031_vm7, %v7252_v51   ;;  %v4066_v19 = vld [vmem:[#allocation0 - $0x5df] ss:$760 sm:%s4065_s27]  }
 0x1e0   :  { %4604 = vst.msk [vmem:[%s9059_s1 + $0x123] sm:$0x2] %vm2031_vm7, %v7252_v51   ;;  %3187 = vrot.lane.b32.xlu2 %v3186_v37, %s5233_s11  ;;  %s3687_s11 = smov 48  ;;  %v3799_v37 = vld [vmem:[#allocation0 + $0x40] ss:$760 sm:%s3798_s26]   ;;  %s5244_s26 = smov 17  }
 0x1e1   :  { %4605 = vst.msk [vmem:[%s9059_s1 + $0x1e2] sm:$0x4] %vm2031_vm7, %v7252_v51   ;;  %vm3361_vm7 = vcmask 834560   ;;  %v7511_v51 = vpop.permute.xlu1 %2264   ;;  %v3688_v59 = vld [vmem:[#allocation0 - $0xb7e] ss:$760 sm:%s3687_s11]   ;;  %s3946_s11 = smov 12 }
 0x1e2   :  { %4612 = vst.msk [vmem:[%s9059_s1 + $0x21] ss:$129 sm:$0x3] %vm9143_vm4, %v7279_v53   ;;  %v3362_v55 = vsel %vm3361_vm7, %v3360_v46, %v3358_v45  ;;  %v3690_v60 = vsel %vm597_vm1, %v3688_v59, %v3685_v58  ;;  %vm9151_vm4 = vmmov %vm9149_vm6  ;;  %v3815_v46 = vld [vmem:[#allocation0 - $0x5a7] ss:$760 sm:%s3814_s12]   ;;  %s3863_s12 = smov 48 }
 0x1e3   :  { %4613 = vst.msk [vmem:[%s9059_s1 - $0x21] ss:$129 sm:$0xc] %vm9144_vm14, %v7279_v53   ;;  %vm9152_vm14 = vcmask 506880   ;;  %v3908_v59 = vld [vmem:[#allocation0 + $0x268] sm:$0x7]  }
 0x1e4   :  { %4614 = vst.msk [vmem:[%s9059_s1 - $0x63] ss:$129 sm:$0x30] %vm9145_vm2, %v7279_v53   ;;  %vm9153_vm2 = vmmov %vm9152_vm14 }
 0x1e5   :  { %4615 = vst.msk [vmem:[%s9059_s1 + $0x21] ss:$129 sm:$0x3] %vm2119_vm13, %v7279_v53  }
 0x1e6   :  { %4616 = vst.msk [vmem:[%s9059_s1 - $0x21] ss:$129 sm:$0xc] %vm2119_vm13, %v7279_v53  }
 0x1e7   :  { %4617 = vst.msk [vmem:[%s9059_s1 - $0x63] ss:$129 sm:$0x30] %vm2119_vm13, %v7279_v53   ;;  %v3675_v53 = vld [vmem:[#allocation0 - $0xb86] ss:$760 sm:%s3674_s30]   ;;  %vm9150_vm13 = vmmov %vm9149_vm6  ;;  %s3459_s30 = smov 3 }
 0x1e8   :  { %4606 = vst.msk [vmem:[%s9059_s1 + $0x2] ss:$129 sm:$0x3] %vm9146_vm12, %v7309_v0   ;;  %3253 = vrot.lane.b32.xlu2 %v3252_v42, %s5234_s29  ;;  %v3677_v56 = vsel %vm597_vm1, %v3675_v53, %v3672_v52  ;;  %v3460_v4 = vld [vmem:[#allocation0 + $0x148] ss:$760 sm:%s3459_s30]   ;;  %vm3471_vm12 = vcmask 859136  }
 0x1e9   :  { %4607 = vst.msk [vmem:[%s9059_s1 - $0x40] ss:$129 sm:$0xc] %vm9147_vm9, %v7309_v0   ;;  %v3692_v61 = vsel %vm3691_vm5, %v3690_v60, %v3677_v56  ;;  %vm3735_vm9 = vcmask 924672   ;;  %v7624_v21 = vpop.permute.xlu1 %2352   ;;  %s3555_s30 = smov 48  ;;  %s5242_s29 = smov 12   ;;  %v7795_v56 = vpop.permute.xlu2 %2572  }
 0x1ea   :  { %4608 = vst.msk [vmem:[%s9059_s1 - $0x82] ss:$129 sm:$0x30] %vm9148_vm3, %v7309_v0   ;;  %3693 = vrot.lane.b32.xlu0 %v3692_v61, %s5237_s2  ;;  %vm9155_vm3 = vcmask 515072   ;;  %s5238_s2 = smov 23  }
 0x1eb   :  { %4609 = vst.msk [vmem:[%s9059_s1 + $0x2] ss:$129 sm:$0x3] %vm2075_vm11, %v7309_v0   ;;  %vm9156_vm7 = vmmov %vm9155_vm3  ;;  %v3556_v35 = vld [vmem:[#allocation0 - $0xb66] ss:$760 sm:%s3555_s30]   ;;  %s3982_s30 = smov 48 }
 0x1ec   :  { %4610 = vst.msk [vmem:[%s9059_s1 - $0x40] ss:$129 sm:$0xc] %vm2075_vm11, %v7309_v0   ;;  %vm9157_vm5 = vmmov %vm9155_vm3  ;;  %v3558_v38 = vsel %vm597_vm1, %v3556_v35, %v3553_v36  ;;  %v3807_v42 = vld [vmem:[#allocation0 - $0xb9e] ss:$760 sm:%s3806_s15]   ;;  %s4070_s15 = smov 48 }
 0x1ed   :  { %4611 = vst.msk [vmem:[%s9059_s1 - $0x82] ss:$129 sm:$0x30] %vm2075_vm11, %v7309_v0   ;;  %vm9154_vm11 = vmmov %vm9153_vm2  ;;  %v3450_v0 = vld [vmem:[#allocation0 - $0x4af] ss:$760 sm:%s3449_s13]   ;;  %s5241_s13 = smov 20  }
 0x1ee   :  { %4618 = vst.msk [vmem:[%s9059_s1 + $0x40] sm:$0x1] %vm9149_vm6, %v7347_v8   ;;  %v3452_v1 = vsel %vm592_vm0, %v3450_v0, %v3447_v63  ;;  %vm2229_vm6 = vcmask 777704   ;;  %v3888_v52 = vld [vmem:[#allocation0 + $0x1b8] sm:$0x7]  }
 0x1ef   :  { %4619 = vst.msk [vmem:[%s9059_s1 + $0xff] sm:$0x2] %vm9150_vm13, %v7347_v8   ;;  %v3457_v5 = vsel %vm597_vm1, %v3455_v2, %v3452_v1  ;;  %vm9158_vm13 = vcmask 498688   ;;  %v3910_v60 = vld [vmem:[#allocation0 + $0x270] sm:$0x7]  }
 0x1f0   :  { %4620 = vst.msk [vmem:[%s9059_s1 + $0x1be] sm:$0x4] %vm9151_vm4, %v7347_v8   ;;  %3363 = vrot.lane.b32.xlu2 %v3362_v55, %s5236_s25  ;;  %vm9159_vm4 = vmmov %vm9158_vm13  ;;  %v3644_v55 = vld [vmem:[#allocation0 + $0x298] sm:$0x7]   ;;  %s7981_s25 = smov 48 }
 0x1f1   :  { %4621 = vst.msk [vmem:[%s9059_s1 + $0x40] sm:$0x1] %vm2141_vm8, %v7347_v8   ;;  %v7727_v44 = vpop.permute.xlu1 %2440   ;;  %v3978_v63 = vld [vmem:[#allocation0 - $0x50f] ss:$760 sm:%s3977_s18]   ;;  %v3983_v2 = vld [vmem:[#allocation0 - $0xafe] ss:$760 sm:%s3982_s30]  }
 0x1f2   :  { %4622 = vst.msk [vmem:[%s9059_s1 + $0xff] sm:$0x2] %vm2141_vm8, %v7347_v8   ;;  %s5251_s18 = smov 3  }
 0x1f3   :  { %4623 = vst.msk [vmem:[%s9059_s1 + $0x1be] sm:$0x4] %vm2141_vm8, %v7347_v8   ;;  %v3465_v8 = vsel %vm592_vm0, %v3463_v6, %v3460_v4  ;;  %vm3779_vm8 = vcmask 941056  }
 0x1f4   :  { %4630 = vst.msk [vmem:[%s9059_s1 + $0x7f] sm:$0x1] %vm9152_vm14, %v7383_v14   ;;  %v3470_v10 = vsel %vm597_vm1, %v3468_v7, %v3465_v8  ;;  %v3780_v25 = vsel %vm3779_vm8, %v3778_v23, %v3776_v20  ;;  %vm2295_vm14 = vcmask 777688   ;;  %vm3823_vm8 = vcmask 949248   ;;  %v3996_v7 = vld [vmem:[#allocation0 - $0xaf6] ss:$760 sm:%s3995_s14]  }
 0x1f5   :  { %4631 = vst.msk [vmem:[%s9059_s1 + $0x13e] sm:$0x2] %vm9153_vm2, %v7383_v14   ;;  %v3472_v13 = vsel %vm3471_vm12, %v3470_v10, %v3457_v5  ;;  %3781 = vrot.lane.b32.xlu0 %v3780_v25, %s5240_s19  ;;  %vm9161_vm2 = vcmask 482304   ;;  %vm3559_vm12 = vcmask 883712   ;;  %v3991_v5 = vld [vmem:[#allocation0 - $0x507] ss:$760 sm:%s3990_s8]   ;;  %v7856_v10 = vpop.permute.xlu0 %2616  }
 0x1f6   :  { %4632 = vst.msk [vmem:[%s9059_s1 + $0x1fd] sm:$0x4] %vm9154_vm11, %v7383_v14   ;;  %vm9163_vm11 = vmmov %vm9161_vm2  ;;  %s7885_s19 = smov 48  ;;  %v4071_v20 = vld [vmem:[#allocation0 - $0xbce] ss:$760 sm:%s4070_s15]   ;;  %s3850_s8 = smov 48 }
 0x1f7   :  { %4633 = vst.msk [vmem:[%s9059_s1 + $0x7f] sm:$0x1] %vm2185_vm15, %v7383_v14   ;;  %s3855_s14 = smov 3  ;;  %v3851_v34 = vld [vmem:[#allocation0 - $0xae6] ss:$760 sm:%s3850_s8]   ;;  %s3930_s15 = smov 3 }
 0x1f8   :  { %4634 = vst.msk [vmem:[%s9059_s1 + $0x13e] sm:$0x2] %vm2185_vm15, %v7383_v14   ;;  %3473 = vrot.lane.b32.xlu2 %v3472_v13, %s5238_s2  ;;  %s3801_s2 = smov 12  ;;  %v3756_v13 = vld [vmem:[#allocation0 + $0x1d0] sm:$0x7]  }
 0x1f9   :  { %4635 = vst.msk [vmem:[%s9059_s1 + $0x1fd] sm:$0x4] %vm2185_vm15, %v7383_v14   ;;  %v3716_v14 = vsel %vm592_vm0, %v3714_v11, %v3711_v9  ;;  %vm9160_vm15 = vmmov %vm9159_vm4  ;;  %v7820_v0 = vpop.permute.xlu1 %2550   ;;  %v3754_v11 = vld [vmem:[#allocation0 + $0x1c8] sm:$0x7]  }
 0x1fa   :  { %4624 = vst.msk [vmem:[%s9059_s1 + $0x60] sm:$0x1] %vm9155_vm3, %v7416_v28   ;;  %v3721_v17 = vsel %vm597_vm1, %v3719_v12, %v3716_v14  ;;  %vm9164_vm3 = vcmask 490496   ;;  %v7892_v12 = vpop.permute.xlu2 %2682   ;;  %v3856_v35 = vld [vmem:[#allocation0 + $0x100] ss:$760 sm:%s3855_s14]  }
 0x1fb   :  { %4625 = vst.msk [vmem:[%s9059_s1 + $0x11f] sm:$0x2] %vm9156_vm7, %v7416_v28   ;;  %v3736_v24 = vsel %vm3735_vm9, %v3734_v22, %v3721_v17  ;;  %vm2273_vm9 = vcmask 777696   ;;  %vm9165_vm7 = vmmov %vm9164_vm3  ;;  %v4063_v17 = vld [vmem:[#allocation0 + $0x10] ss:$760 sm:%s4062_s21]   ;;  %s5253_s21 = smov 8  }
 0x1fc   :  { %4626 = vst.msk [vmem:[%s9059_s1 + $0x1de] sm:$0x4] %vm9157_vm5, %v7416_v28   ;;  %3737 = vrot.lane.b32.xlu1 %v3736_v24, %s5239_s9  ;;  %vm9166_vm5 = vmmov %vm9164_vm3  ;;  %s4078_s9 = smov 12 }
 0x1fd   :  { %4627 = vst.msk [vmem:[%s9059_s1 + $0x60] sm:$0x1] %vm2163_vm10, %v7416_v28   ;;  %v4079_v23 = vld [vmem:[#allocation0 - $0x5d7] ss:$760 sm:%s4078_s9]   ;;  %s3938_s9 = smov 48 }
 0x1fe   :  { %4628 = vst.msk [vmem:[%s9059_s1 + $0x11f] sm:$0x2] %vm2163_vm10, %v7416_v28  }
 0x1ff   :  { %4629 = vst.msk [vmem:[%s9059_s1 + $0x1de] sm:$0x4] %vm2163_vm10, %v7416_v28   ;;  %vm9162_vm10 = vmmov %vm9161_vm2  ;;  %v3538_v28 = vld [vmem:[#allocation0 - $0x57f] ss:$760 sm:%s3537_s0]   ;;  %s3819_s0 = smov 48 }
 0x200   :  { %4636 = vst.msk [vmem:[%s9059_s1 + $0x1d] ss:$129 sm:$0x3] %vm9158_vm13, %v7453_v39   ;;  %v3540_v29 = vsel %vm592_vm0, %v3538_v28, %v3535_v27  ;;  %v3820_v48 = vld [vmem:[#allocation0 - $0xb96] ss:$760 sm:%s3819_s0]   ;;  %vm2317_vm13 = vcmask 777680  }
 0x201   :  { %4637 = vst.msk [vmem:[%s9059_s1 - $0x25] ss:$129 sm:$0xc] %vm9159_vm4, %v7453_v39   ;;  %v3545_v33 = vsel %vm597_vm1, %v3543_v31, %v3540_v29  ;;  %vm9167_vm4 = vcmask 474112   ;;  %s3974_s0 = smov 3  ;;  %v7920_v24 = vpop.permute.xlu1 %2660   ;;  %v7957_v31 = vpop.permute.xlu0 %2704  }
 0x202   :  { %4638 = vst.msk [vmem:[%s9059_s1 - $0x67] ss:$129 sm:$0x30] %vm9160_vm15, %v7453_v39   ;;  %v3560_v40 = vsel %vm3559_vm12, %v3558_v38, %v3545_v33  ;;  %vm9168_vm15 = vmmov %vm9167_vm4  ;;  %v4084_v27 = vld [vmem:[#allocation0 - $0xbc6] ss:$760 sm:%s7885_s19]   ;;  %v7999_v36 = vpop.permute.xlu2 %2792   ;;  %s3943_s19 = smov 3 }
 0x203   :  { %4639 = vst.msk [vmem:[%s9059_s1 + $0x1d] ss:$129 sm:$0x3] %vm2229_vm6, %v7453_v39   ;;  %3561 = vrot.lane.b32.xlu2 %v3560_v40, %s5241_s13  ;;  %s7974_s13 = smov 3  ;;  %v3859_v38 = vld [vmem:[#allocation0 - $0x4ef] ss:$760 sm:%s3858_s24]  }
 0x204   :  { %4640 = vst.msk [vmem:[%s9059_s1 - $0x25] ss:$129 sm:$0xc] %vm2229_vm6, %v7453_v39   ;;  %v3861_v40 = vsel %vm592_vm0, %v3859_v38, %v3856_v35 }
 0x205   :  { %4641 = vst.msk [vmem:[%s9059_s1 - $0x67] ss:$129 sm:$0x30] %vm2229_vm6, %v7453_v39   ;;  %v3802_v39 = vld [vmem:[#allocation0 - $0x5af] ss:$760 sm:%s3801_s2]   ;;  %vm3889_vm6 = vcmask 965632  }
 0x206   :  { %4648 = vst.msk [vmem:[%s9059_s1 + $0x5b] sm:$0x1] %vm9161_vm2, %v7486_v43   ;;  %v3804_v41 = vsel %vm592_vm0, %v3802_v39, %v3799_v37  ;;  %v3890_v53 = vsel %vm3889_vm6, %v3888_v52, %v3886_v50  ;;  %vm2405_vm2 = vcmask 777664   ;;  %v3864_v39 = vld [vmem:[#allocation0 - $0xade] ss:$760 sm:%s3863_s12]   ;;  %s5254_s2 = smov 5  }
 0x207   :  { %4649 = vst.msk [vmem:[%s9059_s1 + $0x11a] sm:$0x2] %vm9162_vm10, %v7486_v43   ;;  %v3809_v45 = vsel %vm597_vm1, %v3807_v42, %v3804_v41  ;;  %3891 = vrot.lane.b32.xlu0 %v3890_v53, %s5243_s5  ;;  %vm9170_vm10 = vcmask 457728   ;;  %s5245_s5 = smov 9   ;;  %v4107_v41 = vld [vmem:[#allocation0 + $0xc8] ss:$760 sm:%s4106_s17]   ;;  %v3866_v42 = vsel %vm597_vm1, %v3864_v39, %v3861_v40 }
 0x208   :  { %4650 = vst.msk [vmem:[%s9059_s1 + $0x1d9] sm:$0x4] %vm9163_vm11, %v7486_v43   ;;  %vm9171_vm11 = vmmov %vm9170_vm10  ;;  %v4172_v52 = vld [vmem:[#allocation0 + $0x238] sm:$0x7]  }
 0x209   :  { %4651 = vst.msk [vmem:[%s9059_s1 + $0x5b] sm:$0x1] %vm2295_vm14, %v7486_v43   ;;  %vm9172_vm12 = vmmov %vm9170_vm10  ;;  %v8034_v53 = vpop.permute.xlu1 %2748  }
 0x20a   :  { %4652 = vst.msk [vmem:[%s9059_s1 + $0x11a] sm:$0x2] %vm2295_vm14, %v7486_v43  }
 0x20b   :  { %4653 = vst.msk [vmem:[%s9059_s1 + $0x1d9] sm:$0x4] %vm2295_vm14, %v7486_v43   ;;  %v3812_v43 = vld [vmem:[#allocation0 + $0x48] ss:$760 sm:%s7682_s7]   ;;  %vm9169_vm14 = vmmov %vm9167_vm4  ;;  %s4075_s7 = smov 3 }
 0x20c   :  { %4642 = vst.msk [vmem:[%s9059_s1 + $0x3c] ss:$129 sm:$0x3] %vm9164_vm3, %v7511_v51   ;;  %v3817_v47 = vsel %vm592_vm0, %v3815_v46, %v3812_v43  ;;  %vm3911_vm3 = vcmask 973824   ;;  %v4076_v22 = vld [vmem:[#allocation0 + $0x18] ss:$760 sm:%s4075_s7]  }
 0x20d   :  { %4643 = vst.msk [vmem:[%s9059_s1 - $0x6] ss:$129 sm:$0xc] %vm9165_vm7, %v7511_v51   ;;  %v3822_v49 = vsel %vm597_vm1, %v3820_v48, %v3817_v47  ;;  %vm2361_vm7 = vcmask 777672   ;;  %v3912_v61 = vsel %vm3911_vm3, %v3910_v60, %v3908_v59  ;;  %vm2449_vm3 = vcmask 777648   ;;  %s3933_s7 = smov 12 }
 0x20e   :  { %4644 = vst.msk [vmem:[%s9059_s1 - $0x48] ss:$129 sm:$0x30] %vm9166_vm5, %v7511_v51   ;;  %vm9173_vm5 = vcmask 465920   ;;  %v4120_v47 = vld [vmem:[#allocation0 + $0xd0] ss:$760 sm:%s7974_s13]  }
 0x20f   :  { %4645 = vst.msk [vmem:[%s9059_s1 + $0x3c] ss:$129 sm:$0x3] %vm2273_vm9, %v7511_v51   ;;  %vm9175_vm6 = vmmov %vm9173_vm5  ;;  %v4123_v48 = vld [vmem:[#allocation0 - $0x51f] ss:$760 sm:%s4122_s28]  }
 0x210   :  { %4646 = vst.msk [vmem:[%s9059_s1 - $0x6] ss:$129 sm:$0xc] %vm2273_vm9, %v7511_v51   ;;  %v4125_v50 = vsel %vm592_vm0, %v4123_v48, %v4120_v47  ;;  %v3931_v59 = vld [vmem:[#allocation0 + $0x28] ss:$760 sm:%s3930_s15]  }
 0x211   :  { %4647 = vst.msk [vmem:[%s9059_s1 - $0x48] ss:$129 sm:$0x30] %vm2273_vm9, %v7511_v51   ;;  %v3824_v51 = vsel %vm3823_vm8, %v3822_v49, %v3809_v45  ;;  %vm3647_vm9 = vcmask 908288   ;;  %vm9174_vm8 = vmmov %vm9173_vm5  ;;  %v3934_v60 = vld [vmem:[#allocation0 - $0x5c7] ss:$760 sm:%s3933_s7]  }
 0x212   :  { %4654 = vst.msk [vmem:[%s9059_s1 + $0x7b] sm:$0x1] %vm9167_vm4, %v7547_v62   ;;  %3825 = vrot.lane.b32.xlu1 %v3824_v51, %s5242_s29  ;;  %v3648_v58 = vsel %vm3647_vm9, %v3646_v57, %v3644_v55  ;;  %s3987_s29 = smov 3  ;;  %vm2427_vm4 = vcmask 777656   ;;  %v4128_v51 = vld [vmem:[#allocation0 - $0xb0e] ss:$760 sm:%s7981_s25]  }
 0x213   :  { %4655 = vst.msk [vmem:[%s9059_s1 + $0x13a] sm:$0x2] %vm9168_vm15, %v7547_v62   ;;  %3649 = vrot.lane.b32.xlu2 %v3648_v58, %s5244_s26  ;;  %v3988_v4 = vld [vmem:[#allocation0 + $0xe8] ss:$760 sm:%s3987_s29]   ;;  %vm9176_vm15 = vcmask 449536   ;;  %s3842_s29 = smov 3  ;;  %v8068_v58 = vpop.permute.xlu0 %2814  }
 0x214   :  { %4656 = vst.msk [vmem:[%s9059_s1 + $0x1f9] sm:$0x4] %vm9169_vm14, %v7547_v62   ;;  %v3993_v6 = vsel %vm592_vm0, %v3991_v5, %v3988_v4  ;;  %vm9177_vm14 = vmmov %vm9176_vm15  ;;  %v3843_v30 = vld [vmem:[#allocation0 + $0xf8] ss:$760 sm:%s3842_s29]  }
 0x215   :  { %4657 = vst.msk [vmem:[%s9059_s1 + $0x7b] sm:$0x1] %vm2317_vm13, %v7547_v62   ;;  %v3998_v8 = vsel %vm597_vm1, %v3996_v7, %v3993_v6  ;;  %v4174_v55 = vld [vmem:[#allocation0 + $0x240] sm:$0x7]   ;;  %v8133_v7 = vpop.permute.xlu1 %2836  }
 0x216   :  { %4658 = vst.msk [vmem:[%s9059_s1 + $0x13a] sm:$0x2] %vm2317_vm13, %v7547_v62  }
 0x217   :  { %4659 = vst.msk [vmem:[%s9059_s1 + $0x1f9] sm:$0x4] %vm2317_vm13, %v7547_v62   ;;  %v3975_v62 = vld [vmem:[#allocation0 + $0xe0] ss:$760 sm:%s3974_s0]   ;;  %vm3999_vm13 = vcmask 990208  }
 0x218   :  { %4666 = vst.msk [vmem:[%s9059_s1 + $0x38] ss:$129 sm:$0x3] %vm9170_vm10, %v7589_v3   ;;  %v3980_v1 = vsel %vm592_vm0, %v3978_v63, %v3975_v62  ;;  %vm2493_vm10 = vcmask 777640   ;;  %v3939_v62 = vld [vmem:[#allocation0 - $0xbb6] ss:$760 sm:%s3938_s9]  }
 0x219   :  { %4667 = vst.msk [vmem:[%s9059_s1 - $0xa] ss:$129 sm:$0xc] %vm9171_vm11, %v7589_v3   ;;  %vm9179_vm11 = vcmask 433152   ;;  %v3944_v63 = vld [vmem:[#allocation0 + $0x30] ss:$760 sm:%s3943_s19]  }
 0x21a   :  { %4668 = vst.msk [vmem:[%s9059_s1 - $0x4c] ss:$129 sm:$0x30] %vm9172_vm12, %v7589_v3   ;;  %3913 = vrot.lane.b32.xlu1 %v3912_v61, %s5245_s5  ;;  %vm9180_vm12 = vmmov %vm9179_vm11  ;;  %s3845_s5 = smov 12  ;;  %v3936_v61 = vsel %vm592_vm0, %v3934_v60, %v3931_v59  ;;  %s5255_s9 = smov 2  }
 0x21b   :  { %4669 = vst.msk [vmem:[%s9059_s1 + $0x38] ss:$129 sm:$0x3] %vm2405_vm2, %v7589_v3   ;;  %vm9181_vm9 = vmmov %vm9179_vm11 }
 0x21c   :  { %4670 = vst.msk [vmem:[%s9059_s1 - $0xa] ss:$129 sm:$0xc] %vm2405_vm2, %v7589_v3  }
 0x21d   :  { %4671 = vst.msk [vmem:[%s9059_s1 - $0x4c] ss:$129 sm:$0x30] %vm2405_vm2, %v7589_v3   ;;  %v3985_v3 = vsel %vm597_vm1, %v3983_v2, %v3980_v1  ;;  %vm9178_vm2 = vmmov %vm9177_vm14  ;;  %v3941_v1 = vsel %vm597_vm1, %v3939_v62, %v3936_v61  ;;  %v3947_v2 = vld [vmem:[#allocation0 - $0x5bf] ss:$760 sm:%s3946_s11]  }
 0x21e   :  { %4660 = vst.msk [vmem:[%s9059_s1 + $0x19] ss:$129 sm:$0x3] %vm9173_vm5, %v7624_v21   ;;  %v4000_v9 = vsel %vm3999_vm13, %v3998_v8, %v3985_v3  ;;  %vm4021_vm5 = vcmask 998400   ;;  %v3949_v3 = vsel %vm592_vm0, %v3947_v2, %v3944_v63  ;;  %v8162_v8 = vpop.permute.xlu0 %2924  }
 0x21f   :  { %4661 = vst.msk [vmem:[%s9059_s1 - $0x29] ss:$129 sm:$0xc] %vm9174_vm8, %v7624_v21   ;;  %4001 = vrot.lane.b32.xlu0 %v4000_v9, %s5246_s22  ;;  %vm4087_vm8 = vcmask 1014784   ;;  %v4022_v18 = vsel %vm4021_vm5, %v4020_v16, %v4018_v15  ;;  %s5248_s22 = smov 6   ;;  %vm3867_vm5 = vcmask 957440  }
 0x220   :  { %4662 = vst.msk [vmem:[%s9059_s1 - $0x6b] ss:$129 sm:$0x30] %vm9175_vm6, %v7624_v21   ;;  %vm9182_vm6 = vcmask 441344   ;;  %v4040_v9 = vld [vmem:[#allocation0 + $0x250] sm:$0x7]  }
 0x221   :  { %4663 = vst.msk [vmem:[%s9059_s1 + $0x19] ss:$129 sm:$0x3] %vm2361_vm7, %v7624_v21   ;;  %vm9183_vm13 = vmmov %vm9182_vm6  ;;  %v4150_v15 = vld [vmem:[#allocation0 + $0x180] sm:$0x7]  }
 0x222   :  { %4664 = vst.msk [vmem:[%s9059_s1 - $0x29] ss:$129 sm:$0xc] %vm2361_vm7, %v7624_v21   ;;  %4023 = vrot.lane.b32.xlu1 %v4022_v18, %s5248_s22 }
 0x223   :  { %4665 = vst.msk [vmem:[%s9059_s1 - $0x6b] ss:$129 sm:$0x30] %vm2361_vm7, %v7624_v21   ;;  %vm3757_vm7 = vcmask 932864   ;;  %v4068_v21 = vsel %vm592_vm0, %v4066_v19, %v4063_v17  ;;  %v4152_v17 = vld [vmem:[#allocation0 + $0x188] sm:$0x7]  }
 0x224   :  { %4672 = vst.msk [vmem:[%s9059_s1 + $0x57] sm:$0x1] %vm9176_vm15, %v7658_v26   ;;  %v3758_v14 = vsel %vm3757_vm7, %v3756_v13, %v3754_v11  ;;  %v4073_v25 = vsel %vm597_vm1, %v4071_v20, %v4068_v21  ;;  %vm2537_vm15 = vcmask 777632   ;;  %v4042_v11 = vld [vmem:[#allocation0 + $0x258] sm:$0x7]   ;;  %v2947_v13 = vpop.permute.xlu1 %2946  }
 0x225   :  { %4673 = vst.msk [vmem:[%s9059_s1 + $0x116] sm:$0x2] %vm9177_vm14, %v7658_v26   ;;  %3759 = vrot.lane.b32.xlu2 %v3758_v14, %s5247_s16  ;;  %vm9185_vm14 = vcmask 424960   ;;  %s4109_s16 = smov 12 }
 0x226   :  { %4674 = vst.msk [vmem:[%s9059_s1 + $0x1d5] sm:$0x4] %vm9178_vm2, %v7658_v26   ;;  %vm9186_vm2 = vmmov %vm9185_vm14  ;;  %v4110_v43 = vld [vmem:[#allocation0 - $0x527] ss:$760 sm:%s4109_s16]   ;;  %v3013_v14 = vpop.permute.xlu0 %3012  }
 0x227   :  { %4675 = vst.msk [vmem:[%s9059_s1 + $0x57] sm:$0x1] %vm2427_vm4, %v7658_v26   ;;  %v4112_v46 = vsel %vm592_vm0, %v4110_v43, %v4107_v41 }
 0x228   :  { %4676 = vst.msk [vmem:[%s9059_s1 + $0x116] sm:$0x2] %vm2427_vm4, %v7658_v26  }
 0x229   :  { %4677 = vst.msk [vmem:[%s9059_s1 + $0x1d5] sm:$0x4] %vm2427_vm4, %v7658_v26   ;;  %vm9184_vm4 = vmmov %vm9182_vm6  ;;  %v4081_v26 = vsel %vm592_vm0, %v4079_v23, %v4076_v22 }
 0x22a   :  { %4684 = vst.msk [vmem:[%s9059_s1 + $0x15] ss:$129 sm:$0x3] %vm9179_vm11, %v7695_v32   ;;  %v4086_v28 = vsel %vm597_vm1, %v4084_v27, %v4081_v26  ;;  %vm2581_vm11 = vcmask 777616  }
 0x22b   :  { %4685 = vst.msk [vmem:[%s9059_s1 - $0x2d] ss:$129 sm:$0xc] %vm9180_vm12, %v7695_v32   ;;  %v4088_v29 = vsel %vm4087_vm8, %v4086_v28, %v4073_v25  ;;  %vm9188_vm12 = vcmask 408576   ;;  %vm4131_vm8 = vcmask 1022976  }
 0x22c   :  { %4686 = vst.msk [vmem:[%s9059_s1 - $0x6f] ss:$129 sm:$0x30] %vm9181_vm9, %v7695_v32   ;;  %4089 = vrot.lane.b32.xlu0 %v4088_v29, %s5249_s3  ;;  %vm9189_vm9 = vmmov %vm9188_vm12  ;;  %v3057_v19 = vpop.permute.xlu1 %3056  }
 0x22d   :  { %4687 = vst.msk [vmem:[%s9059_s1 + $0x15] ss:$129 sm:$0x3] %vm2493_vm10, %v7695_v32   ;;  %vm9190_vm7 = vmmov %vm9189_vm9 }
 0x22e   :  { %4688 = vst.msk [vmem:[%s9059_s1 - $0x2d] ss:$129 sm:$0xc] %vm2493_vm10, %v7695_v32   ;;  %v3101_v20 = vpop.permute.xlu0 %3100  }
 0x22f   :  { %4689 = vst.msk [vmem:[%s9059_s1 - $0x6f] ss:$129 sm:$0x30] %vm2493_vm10, %v7695_v32   ;;  %vm9187_vm10 = vmmov %vm9186_vm2  ;;  %v3846_v32 = vld [vmem:[#allocation0 - $0x4f7] ss:$760 sm:%s3845_s5]  }
 0x230   :  { %4678 = vst.msk [vmem:[%s9059_s1 + $0x77] sm:$0x1] %vm9182_vm6, %v7727_v44   ;;  %v3848_v33 = vsel %vm592_vm0, %v3846_v32, %v3843_v30  ;;  %vm9191_vm6 = vcmask 416768   ;;  %vm3955_vm0 = vcmask 982016  }
 0x231   :  { %4679 = vst.msk [vmem:[%s9059_s1 + $0x136] sm:$0x2] %vm9183_vm13, %v7727_v44   ;;  %v3853_v37 = vsel %vm597_vm1, %v3851_v34, %v3848_v33  ;;  %vm9192_vm13 = vmmov %vm9191_vm6 }
 0x232   :  { %4680 = vst.msk [vmem:[%s9059_s1 + $0x1f5] sm:$0x4] %vm9184_vm4, %v7727_v44   ;;  %v3868_v45 = vsel %vm3867_vm5, %v3866_v42, %v3853_v37  ;;  %vm9193_vm4 = vmmov %vm9191_vm6  ;;  %vm2669_vm5 = vcmask 777600  }
 0x233   :  { %4681 = vst.msk [vmem:[%s9059_s1 + $0x77] sm:$0x1] %vm2449_vm3, %v7727_v44   ;;  %3869 = vrot.lane.b32.xlu2 %v3868_v45, %s5250_s4  ;;  %s3951_s4 = smov 48 }
 0x234   :  { %4682 = vst.msk [vmem:[%s9059_s1 + $0x136] sm:$0x2] %vm2449_vm3, %v7727_v44   ;;  %v3952_v4 = vld [vmem:[#allocation0 - $0xbae] ss:$760 sm:%s3951_s4]   ;;  %v3144_v22 = vpop.permute.xlu1 %3143  }
 0x235   :  { %4683 = vst.msk [vmem:[%s9059_s1 + $0x1f5] sm:$0x4] %vm2449_vm3, %v7727_v44   ;;  %vm2559_vm3 = vcmask 777624   ;;  %v4115_v44 = vld [vmem:[#allocation0 - $0xb16] ss:$760 sm:%s4114_s20]   ;;  %s5252_s20 = smov 1   ;;  %v3954_v5 = vsel %vm597_vm1, %v3952_v4, %v3949_v3 }
 0x236   :  { %4690 = vst.msk [vmem:[%s9059_s1 + $0x34] ss:$129 sm:$0x3] %vm9185_vm14, %v7762_v54   ;;  %v4117_v49 = vsel %vm597_vm1, %v4115_v44, %v4112_v46  ;;  %vm2625_vm14 = vcmask 777608   ;;  %v3956_v6 = vsel %vm3955_vm0, %v3954_v5, %v3941_v1  ;;  %v3210_v23 = vpop.permute.xlu0 %3209  }
 0x237   :  { %4691 = vst.msk [vmem:[%s9059_s1 - $0xe] ss:$129 sm:$0xc] %vm9186_vm2, %v7762_v54   ;;  %vm9194_vm2 = vcmask 400384  }
 0x238   :  { %4692 = vst.msk [vmem:[%s9059_s1 - $0x50] ss:$129 sm:$0x30] %vm9187_vm10, %v7762_v54   ;;  %vm9195_vm10 = vmmov %vm9194_vm2 }
 0x239   :  { %4693 = vst.msk [vmem:[%s9059_s1 + $0x34] ss:$129 sm:$0x3] %vm2537_vm15, %v7762_v54  }
 0x23a   :  { %4694 = vst.msk [vmem:[%s9059_s1 - $0xe] ss:$129 sm:$0xc] %vm2537_vm15, %v7762_v54  }
 0x23b   :  { %4695 = vst.msk [vmem:[%s9059_s1 - $0x50] ss:$129 sm:$0x30] %vm2537_vm15, %v7762_v54   ;;  %v4130_v54 = vsel %vm597_vm1, %v4128_v51, %v4125_v50  ;;  %vm4175_vm15 = vcmask 1039360   ;;  %3957 = vrot.lane.b32.xlu2 %v3956_v6, %s5253_s21 }
 0x23c   :  { %4702 = vst.msk [vmem:[%s9059_s1 + $0x73] sm:$0x1] %vm9188_vm12, %v7795_v56   ;;  %v4176_v57 = vsel %vm4175_vm15, %v4174_v55, %v4172_v52  ;;  %vm2691_vm12 = vcmask 777592   ;;  %v3232_v25 = vpop.permute.xlu1 %3231  }
 0x23d   :  { %4703 = vst.msk [vmem:[%s9059_s1 + $0x132] sm:$0x2] %vm9189_vm9, %v7795_v56   ;;  %4177 = vrot.lane.b32.xlu0 %v4176_v57, %s5252_s20  ;;  %vm9197_vm9 = vcmask 384000  }
 0x23e   :  { %4704 = vst.msk [vmem:[%s9059_s1 + $0x1f1] sm:$0x4] %vm9190_vm7, %v7795_v56   ;;  %v3298_v26 = vpop.permute.xlu0 %3297  }
 0x23f   :  { %4705 = vst.msk [vmem:[%s9059_s1 + $0x73] sm:$0x1] %vm2581_vm11, %v7795_v56  }
 0x240   :  { %4706 = vst.msk [vmem:[%s9059_s1 + $0x132] sm:$0x2] %vm2581_vm11, %v7795_v56  }
 0x241   :  { %4707 = vst.msk [vmem:[%s9059_s1 + $0x1f1] sm:$0x4] %vm2581_vm11, %v7795_v56   ;;  %v4132_v56 = vsel %vm4131_vm8, %v4130_v54, %v4117_v49  ;;  %vm9196_vm11 = vmmov %vm9194_vm2  ;;  %vm9200_vm8 = vcmask 392192  }
 0x242   :  { %4696 = vst.msk [vmem:[%s9059_s1 + $0x53] sm:$0x1] %vm9191_vm6, %v7820_v0   ;;  %4133 = vrot.lane.b32.xlu1 %v4132_v56, %s5251_s18  ;;  %vm9201_vm1 = vmmov %vm9200_vm8 }
 0x243   :  { %4697 = vst.msk [vmem:[%s9059_s1 + $0x112] sm:$0x2] %vm9192_vm13, %v7820_v0   ;;  %vm9202_vm6 = vmmov %vm9201_vm1  ;;  %vm2713_vm13 = vcmask 777584  }
 0x244   :  { %4698 = vst.msk [vmem:[%s9059_s1 + $0x1d1] sm:$0x4] %vm9193_vm4, %v7820_v0   ;;  %vm9203_vm4 = vcmask 375808   ;;  %v3342_v28 = vpop.permute.xlu1 %3341  }
 0x245   :  { %4699 = vst.msk [vmem:[%s9059_s1 + $0x53] sm:$0x1] %vm2559_vm3, %v7820_v0   ;;  %vm9204_vm15 = vmmov %vm9203_vm4 }
 0x246   :  { %4700 = vst.msk [vmem:[%s9059_s1 + $0x112] sm:$0x2] %vm2559_vm3, %v7820_v0   ;;  %v3386_v29 = vpop.permute.xlu0 %3385  }
 0x247   :  { %4701 = vst.msk [vmem:[%s9059_s1 + $0x1d1] sm:$0x4] %vm2559_vm3, %v7820_v0   ;;  %vm9198_vm3 = vmmov %vm9197_vm9  ;;  %v8103_v0 = vpop.permute.xlu2 %2880  }
 0x248   :  { %4708 = vst.msk [vmem:[%s9059_s1 + $0x11] ss:$129 sm:$0x3] %vm9194_vm2, %v7856_v10   ;;  %vm9199_vm7 = vmmov %vm9198_vm3  ;;  %vm2801_vm2 = vcmask 777568  }
 0x249   :  { %4709 = vst.msk [vmem:[%s9059_s1 - $0x31] ss:$129 sm:$0xc] %vm9195_vm10, %v7856_v10   ;;  %vm9206_vm10 = vcmask 359424  }
 0x24a   :  { %4710 = vst.msk [vmem:[%s9059_s1 - $0x73] ss:$129 sm:$0x30] %vm9196_vm11, %v7856_v10   ;;  %vm9207_vm11 = vmmov %vm9206_vm10 }
 0x24b   :  { %4711 = vst.msk [vmem:[%s9059_s1 + $0x11] ss:$129 sm:$0x3] %vm2625_vm14, %v7856_v10  }
 0x24c   :  { %4712 = vst.msk [vmem:[%s9059_s1 - $0x31] ss:$129 sm:$0xc] %vm2625_vm14, %v7856_v10   ;;  %v3430_v30 = vpop.permute.xlu1 %3429  }
 0x24d   :  { %4713 = vst.msk [vmem:[%s9059_s1 - $0x73] ss:$129 sm:$0x30] %vm2625_vm14, %v7856_v10   ;;  %vm9205_vm14 = vmmov %vm9203_vm4 }
 0x24e   :  { %4720 = vst.msk [vmem:[%s9059_s1 + $0x4f] sm:$0x1] %vm9197_vm9, %v7892_v12   ;;  %vm4043_vm9 = vcmask 1006592   ;;  %v3496_v32 = vpop.permute.xlu0 %3495  }
 0x24f   :  { %4721 = vst.msk [vmem:[%s9059_s1 + $0x10e] sm:$0x2] %vm9198_vm3, %v7892_v12   ;;  %v2969_v10 = vpop.permute.xlu2 %2968   ;;  %vm2757_vm3 = vcmask 777576  }
 0x250   :  { %4722 = vst.msk [vmem:[%s9059_s1 + $0x1cd] sm:$0x4] %vm9199_vm7, %v7892_v12   ;;  %vm9209_vm7 = vcmask 367616  }
 0x251   :  { %4723 = vst.msk [vmem:[%s9059_s1 + $0x4f] sm:$0x1] %vm2691_vm12, %v7892_v12   ;;  %vm9210_vm0 = vmmov %vm9209_vm7 }
 0x252   :  { %4724 = vst.msk [vmem:[%s9059_s1 + $0x10e] sm:$0x2] %vm2691_vm12, %v7892_v12  }
 0x253   :  { %4725 = vst.msk [vmem:[%s9059_s1 + $0x1cd] sm:$0x4] %vm2691_vm12, %v7892_v12   ;;  %vm9208_vm12 = vmmov %vm9206_vm10  ;;  %v4044_v12 = vsel %vm4043_vm9, %v4042_v11, %v4040_v9 }
 0x254   :  { %4714 = vst.msk [vmem:[%s9059_s1 + $0x30] ss:$129 sm:$0x3] %vm9200_vm8, %v7920_v24   ;;  %4045 = vrot.lane.b32.xlu2 %v4044_v12, %s5254_s2  ;;  %vm2823_vm8 = vcmask 777560   ;;  %v3518_v34 = vpop.permute.xlu1 %3517  }
 0x255   :  { %4715 = vst.msk [vmem:[%s9059_s1 - $0x12] ss:$129 sm:$0xc] %vm9201_vm1, %v7920_v24   ;;  %vm9212_vm1 = vcmask 351232  }
 0x256   :  { %4716 = vst.msk [vmem:[%s9059_s1 - $0x54] ss:$129 sm:$0x30] %vm9202_vm6, %v7920_v24   ;;  %vm9213_vm6 = vmmov %vm9212_vm1  ;;  %v3606_v35 = vpop.permute.xlu0 %3605  }
 0x257   :  { %4717 = vst.msk [vmem:[%s9059_s1 + $0x30] ss:$129 sm:$0x3] %vm2669_vm5, %v7920_v24   ;;  %v3079_v16 = vpop.permute.xlu2 %3078  }
 0x258   :  { %4718 = vst.msk [vmem:[%s9059_s1 - $0x12] ss:$129 sm:$0xc] %vm2669_vm5, %v7920_v24  }
 0x259   :  { %4719 = vst.msk [vmem:[%s9059_s1 - $0x54] ss:$129 sm:$0x30] %vm2669_vm5, %v7920_v24   ;;  %vm9211_vm5 = vmmov %vm9210_vm0 }
 0x25a   :  { %4726 = vst.msk [vmem:[%s9059_s1 + $0x6f] sm:$0x1] %vm9203_vm4, %v7957_v31   ;;  %vm2889_vm4 = vcmask 777544  }
 0x25b   :  { %4727 = vst.msk [vmem:[%s9059_s1 + $0x12e] sm:$0x2] %vm9204_vm15, %v7957_v31   ;;  %vm9215_vm15 = vcmask 334848  }
 0x25c   :  { %4728 = vst.msk [vmem:[%s9059_s1 + $0x1ed] sm:$0x4] %vm9205_vm14, %v7957_v31   ;;  %vm9216_vm14 = vmmov %vm9215_vm15  ;;  %v3628_v37 = vpop.permute.xlu1 %3627  }
 0x25d   :  { %4729 = vst.msk [vmem:[%s9059_s1 + $0x6f] sm:$0x1] %vm2713_vm13, %v7957_v31  }
 0x25e   :  { %4730 = vst.msk [vmem:[%s9059_s1 + $0x12e] sm:$0x2] %vm2713_vm13, %v7957_v31   ;;  %v3694_v38 = vpop.permute.xlu0 %3693  }
 0x25f   :  { %4731 = vst.msk [vmem:[%s9059_s1 + $0x1ed] sm:$0x4] %vm2713_vm13, %v7957_v31   ;;  %vm9214_vm13 = vmmov %vm9212_vm1  ;;  %v3188_v21 = vpop.permute.xlu2 %3187  }
 0x260   :  { %4738 = vst.msk [vmem:[%s9059_s1 + $0x2c] ss:$129 sm:$0x3] %vm9206_vm10, %v7999_v36   ;;  %vm4153_vm10 = vcmask 1031168  }
 0x261   :  { %4739 = vst.msk [vmem:[%s9059_s1 - $0x16] ss:$129 sm:$0xc] %vm9207_vm11, %v7999_v36   ;;  %v4154_v18 = vsel %vm4153_vm10, %v4152_v17, %v4150_v15  ;;  %vm2845_vm11 = vcmask 777552  }
 0x262   :  { %4740 = vst.msk [vmem:[%s9059_s1 - $0x58] ss:$129 sm:$0x30] %vm9208_vm12, %v7999_v36   ;;  %vm9218_vm12 = vcmask 343040   ;;  %4155 = vrot.lane.b32.xlu2 %v4154_v18, %s5255_s9 }
 0x263   :  { %4741 = vst.msk [vmem:[%s9059_s1 + $0x2c] ss:$129 sm:$0x3] %vm2801_vm2, %v7999_v36   ;;  %vm9219_vm9 = vmmov %vm9218_vm12 }
 0x264   :  { %4742 = vst.msk [vmem:[%s9059_s1 - $0x16] ss:$129 sm:$0xc] %vm2801_vm2, %v7999_v36  }
 0x265   :  { %4743 = vst.msk [vmem:[%s9059_s1 - $0x58] ss:$129 sm:$0x30] %vm2801_vm2, %v7999_v36   ;;  %vm9217_vm2 = vmmov %vm9216_vm14 }
 0x266   :  { %4732 = vst.msk [vmem:[%s9059_s1 + $0xd] ss:$129 sm:$0x3] %vm9209_vm7, %v8034_v53   ;;  %vm2933_vm7 = vcmask 777536  }
 0x267   :  { %4733 = vst.msk [vmem:[%s9059_s1 - $0x35] ss:$129 sm:$0xc] %vm9210_vm0, %v8034_v53   ;;  %vm9221_vm0 = vcmask 326656   ;;  %v3254_v24 = vpop.permute.xlu2 %3253   ;;  %v3782_v41 = vpop.permute.xlu0 %3781  }
 0x268   :  { %4734 = vst.msk [vmem:[%s9059_s1 - $0x77] ss:$129 sm:$0x30] %vm9211_vm5, %v8034_v53   ;;  %vm9222_vm5 = vmmov %vm9221_vm0 }
 0x269   :  { %4735 = vst.msk [vmem:[%s9059_s1 + $0xd] ss:$129 sm:$0x3] %vm2757_vm3, %v8034_v53  }
 0x26a   :  { %4736 = vst.msk [vmem:[%s9059_s1 - $0x35] ss:$129 sm:$0xc] %vm2757_vm3, %v8034_v53  }
 0x26b   :  { %4737 = vst.msk [vmem:[%s9059_s1 - $0x77] ss:$129 sm:$0x30] %vm2757_vm3, %v8034_v53   ;;  %vm9220_vm3 = vmmov %vm9219_vm9 }
 0x26c   :  { %4744 = vst.msk [vmem:[%s9059_s1 + $0x4b] sm:$0x1] %vm9212_vm1, %v8068_v58   ;;  %vm2977_vm1 = vcmask 777520  }
 0x26d   :  { %4745 = vst.msk [vmem:[%s9059_s1 + $0x10a] sm:$0x2] %vm9213_vm6, %v8068_v58   ;;  %vm9224_vm6 = vcmask 310272  }
 0x26e   :  { %4746 = vst.msk [vmem:[%s9059_s1 + $0x1c9] sm:$0x4] %vm9214_vm13, %v8068_v58   ;;  %vm9225_vm13 = vmmov %vm9224_vm6  ;;  %v3738_v40 = vpop.permute.xlu1 %3737  }
 0x26f   :  { %4747 = vst.msk [vmem:[%s9059_s1 + $0x4b] sm:$0x1] %vm2823_vm8, %v8068_v58   ;;  %v3364_v27 = vpop.permute.xlu2 %3363  }
 0x270   :  { %4748 = vst.msk [vmem:[%s9059_s1 + $0x10a] sm:$0x2] %vm2823_vm8, %v8068_v58  }
 0x271   :  { %4749 = vst.msk [vmem:[%s9059_s1 + $0x1c9] sm:$0x4] %vm2823_vm8, %v8068_v58   ;;  %vm9223_vm8 = vmmov %vm9221_vm0 }
 0x272   :  { %4756 = vst.msk [vmem:[%s9059_s1 + $0x9] ss:$129 sm:$0x3] %vm9215_vm15, %v8103_v0   ;;  %vm2955_vm15 = vcmask 777528  }
 0x273   :  { %4757 = vst.msk [vmem:[%s9059_s1 - $0x39] ss:$129 sm:$0xc] %vm9216_vm14, %v8103_v0   ;;  %vm9227_vm14 = vcmask 318464  }
 0x274   :  { %4758 = vst.msk [vmem:[%s9059_s1 - $0x7b] ss:$129 sm:$0x30] %vm9217_vm2, %v8103_v0   ;;  %vm9228_vm2 = vmmov %vm9227_vm14 }
 0x275   :  { %4759 = vst.msk [vmem:[%s9059_s1 + $0x9] ss:$129 sm:$0x3] %vm2889_vm4, %v8103_v0   ;;  %vm9229_vm10 = vmmov %vm9228_vm2 }
 0x276   :  { %4760 = vst.msk [vmem:[%s9059_s1 - $0x39] ss:$129 sm:$0xc] %vm2889_vm4, %v8103_v0  }
 0x277   :  { %4761 = vst.msk [vmem:[%s9059_s1 - $0x7b] ss:$129 sm:$0x30] %vm2889_vm4, %v8103_v0   ;;  %vm9226_vm4 = vmmov %vm9224_vm6  ;;  %v3474_v31 = vpop.permute.xlu2 %3473  }
 0x278   :  { %4750 = vst.msk [vmem:[%s9059_s1 + $0x6b] sm:$0x1] %vm9218_vm12, %v8133_v7   ;;  %vm9230_vm12 = vcmask 302080  }
 0x279   :  { %4751 = vst.msk [vmem:[%s9059_s1 + $0x12a] sm:$0x2] %vm9219_vm9, %v8133_v7   ;;  %vm9231_vm9 = vmmov %vm9230_vm12  ;;  %v3892_v44 = vpop.permute.xlu0 %3891  }
 0x27a   :  { %4752 = vst.msk [vmem:[%s9059_s1 + $0x1e9] sm:$0x4] %vm9220_vm3, %v8133_v7   ;;  %vm9232_vm3 = vmmov %vm9231_vm9 }
 0x27b   :  { %4753 = vst.msk [vmem:[%s9059_s1 + $0x6b] sm:$0x1] %vm2845_vm11, %v8133_v7  }
 0x27c   :  { %4754 = vst.msk [vmem:[%s9059_s1 + $0x12a] sm:$0x2] %vm2845_vm11, %v8133_v7  }
 0x27d   :  { %4755 = vst.msk [vmem:[%s9059_s1 + $0x1e9] sm:$0x4] %vm2845_vm11, %v8133_v7   ;;  %vm3021_vm11 = vcmask 777512  }
 0x27e   :  { %4762 = vst.msk [vmem:[%s9059_s1 + $0x28] ss:$129 sm:$0x3] %vm9221_vm0, %v8162_v8   ;;  %vm9233_vm0 = vcmask 285696  }
 0x27f   :  { %4763 = vst.msk [vmem:[%s9059_s1 - $0x1a] ss:$129 sm:$0xc] %vm9222_vm5, %v8162_v8   ;;  %vm9234_vm5 = vmmov %vm9233_vm0  ;;  %v3562_v33 = vpop.permute.xlu2 %3561  }
 0x280   :  { %4764 = vst.msk [vmem:[%s9059_s1 - $0x5c] ss:$129 sm:$0x30] %vm9223_vm8, %v8162_v8   ;;  %vm9235_vm8 = vmmov %vm9233_vm0 }
 0x281   :  { %4765 = vst.msk [vmem:[%s9059_s1 + $0x28] ss:$129 sm:$0x3] %vm2933_vm7, %v8162_v8  }
 0x282   :  { %4766 = vst.msk [vmem:[%s9059_s1 - $0x1a] ss:$129 sm:$0xc] %vm2933_vm7, %v8162_v8  }
 0x283   :  { %4767 = vst.msk [vmem:[%s9059_s1 - $0x5c] ss:$129 sm:$0x30] %vm2933_vm7, %v8162_v8   ;;  %vm3087_vm7 = vcmask 777496  }
 0x284   :  { %4774 = vst.msk [vmem:[%s9059_s1 + $0x67] sm:$0x1] %vm9224_vm6, %v2969_v10   ;;  %vm9236_vm6 = vcmask 293888   ;;  %v3826_v43 = vpop.permute.xlu1 %3825  }
 0x285   :  { %4775 = vst.msk [vmem:[%s9059_s1 + $0x126] sm:$0x2] %vm9225_vm13, %v2969_v10   ;;  %vm9237_vm13 = vmmov %vm9236_vm6 }
 0x286   :  { %4776 = vst.msk [vmem:[%s9059_s1 + $0x1e5] sm:$0x4] %vm9226_vm4, %v2969_v10   ;;  %vm9238_vm4 = vmmov %vm9236_vm6 }
 0x287   :  { %4777 = vst.msk [vmem:[%s9059_s1 + $0x67] sm:$0x1] %vm2977_vm1, %v2969_v10   ;;  %v3650_v36 = vpop.permute.xlu2 %3649  }
 0x288   :  { %4778 = vst.msk [vmem:[%s9059_s1 + $0x126] sm:$0x2] %vm2977_vm1, %v2969_v10  }
 0x289   :  { %4779 = vst.msk [vmem:[%s9059_s1 + $0x1e5] sm:$0x4] %vm2977_vm1, %v2969_v10   ;;  %vm3065_vm1 = vcmask 777504  }
 0x28a   :  { %4768 = vst.msk [vmem:[%s9059_s1 + $0x47] sm:$0x1] %vm9227_vm14, %v2947_v13   ;;  %vm9239_vm14 = vcmask 277504  }
 0x28b   :  { %4769 = vst.msk [vmem:[%s9059_s1 + $0x106] sm:$0x2] %vm9228_vm2, %v2947_v13   ;;  %vm9240_vm2 = vmmov %vm9239_vm14 }
 0x28c   :  { %4770 = vst.msk [vmem:[%s9059_s1 + $0x1c5] sm:$0x4] %vm9229_vm10, %v2947_v13   ;;  %vm9241_vm10 = vmmov %vm9240_vm2  ;;  %v3914_v46 = vpop.permute.xlu1 %3913  }
 0x28d   :  { %4771 = vst.msk [vmem:[%s9059_s1 + $0x47] sm:$0x1] %vm2955_vm15, %v2947_v13  }
 0x28e   :  { %4772 = vst.msk [vmem:[%s9059_s1 + $0x106] sm:$0x2] %vm2955_vm15, %v2947_v13  }
 0x28f   :  { %4773 = vst.msk [vmem:[%s9059_s1 + $0x1c5] sm:$0x4] %vm2955_vm15, %v2947_v13   ;;  %vm3109_vm15 = vcmask 777488   ;;  %v3760_v39 = vpop.permute.xlu2 %3759  }
 0x290   :  { %4780 = vst.msk [vmem:[%s9059_s1 + $0x5] ss:$129 sm:$0x3] %vm9230_vm12, %v3013_v14   ;;  %vm3196_vm12 = vcmask 777472  }
 0x291   :  { %4781 = vst.msk [vmem:[%s9059_s1 - $0x3d] ss:$129 sm:$0xc] %vm9231_vm9, %v3013_v14   ;;  %vm3145_vm9 = vcmask 269312   ;;  %v4002_v47 = vpop.permute.xlu0 %4001  }
 0x292   :  { %4782 = vst.msk [vmem:[%s9059_s1 - $0x7f] ss:$129 sm:$0x30] %vm9232_vm3, %v3013_v14   ;;  %vm3152_vm3 = vcmask 777480  }
 0x293   :  { %4783 = vst.msk [vmem:[%s9059_s1 + $0x5] ss:$129 sm:$0x3] %vm3021_vm11, %v3013_v14  }
 0x294   :  { %4784 = vst.msk [vmem:[%s9059_s1 - $0x3d] ss:$129 sm:$0xc] %vm3021_vm11, %v3013_v14   ;;  %v4024_v49 = vpop.permute.xlu1 %4023  }
 0x295   :  { %4785 = vst.msk [vmem:[%s9059_s1 - $0x7f] ss:$129 sm:$0x30] %vm3021_vm11, %v3013_v14   ;;  %vm3189_vm11 = vcmask 261120  }
 0x296   :  { %4792 = vst.msk [vmem:[%s9059_s1 + $0x43] sm:$0x1] %vm9233_vm0, %v3079_v16   ;;  %vm3218_vm0 = vcmask 777464  }
 0x297   :  { %4793 = vst.msk [vmem:[%s9059_s1 + $0x102] sm:$0x2] %vm9234_vm5, %v3079_v16   ;;  %vm3255_vm5 = vcmask 236544   ;;  %v3870_v42 = vpop.permute.xlu2 %3869  }
 0x298   :  { %4794 = vst.msk [vmem:[%s9059_s1 + $0x1c1] sm:$0x4] %vm9235_vm8, %v3079_v16   ;;  %vm3262_vm8 = vcmask 777448  }
 0x299   :  { %4795 = vst.msk [vmem:[%s9059_s1 + $0x43] sm:$0x1] %vm3087_vm7, %v3079_v16  }
 0x29a   :  { %4796 = vst.msk [vmem:[%s9059_s1 + $0x102] sm:$0x2] %vm3087_vm7, %v3079_v16  }
 0x29b   :  { %4797 = vst.msk [vmem:[%s9059_s1 + $0x1c1] sm:$0x4] %vm3087_vm7, %v3079_v16   ;;  %vm3211_vm7 = vcmask 252928  }
 0x29c   :  { %4786 = vst.msk [vmem:[%s9059_s1 + $0x24] ss:$129 sm:$0x3] %vm9236_vm6, %v3057_v19   ;;  %vm3240_vm6 = vcmask 777456  }
 0x29d   :  { %4787 = vst.msk [vmem:[%s9059_s1 - $0x1e] ss:$129 sm:$0xc] %vm9237_vm13, %v3057_v19   ;;  %vm3299_vm13 = vcmask 228352  }
 0x29e   :  { %4788 = vst.msk [vmem:[%s9059_s1 - $0x60] ss:$129 sm:$0x30] %vm9238_vm4, %v3057_v19   ;;  %vm3306_vm4 = vcmask 777440   ;;  %v4090_v50 = vpop.permute.xlu0 %4089  }
 0x29f   :  { %4789 = vst.msk [vmem:[%s9059_s1 + $0x24] ss:$129 sm:$0x3] %vm3065_vm1, %v3057_v19   ;;  %v3958_v45 = vpop.permute.xlu2 %3957  }
 0x2a0   :  { %4790 = vst.msk [vmem:[%s9059_s1 - $0x1e] ss:$129 sm:$0xc] %vm3065_vm1, %v3057_v19  }
 0x2a1   :  { %4791 = vst.msk [vmem:[%s9059_s1 - $0x60] ss:$129 sm:$0x30] %vm3065_vm1, %v3057_v19   ;;  %vm3233_vm1 = vcmask 244736  }
 0x2a2   :  { %4798 = vst.msk [vmem:[%s9059_s1 + $0x63] sm:$0x1] %vm9239_vm14, %v3101_v20   ;;  %vm3372_vm14 = vcmask 777424  }
 0x2a3   :  { %4799 = vst.msk [vmem:[%s9059_s1 + $0x122] sm:$0x2] %vm9240_vm2, %v3101_v20   ;;  %vm3343_vm2 = vcmask 220160  }
 0x2a4   :  { %4800 = vst.msk [vmem:[%s9059_s1 + $0x1e1] sm:$0x4] %vm9241_vm10, %v3101_v20   ;;  %vm3350_vm10 = vcmask 777432  }
 0x2a5   :  { %4801 = vst.msk [vmem:[%s9059_s1 + $0x63] sm:$0x1] %vm3109_vm15, %v3101_v20  }
 0x2a6   :  { %4802 = vst.msk [vmem:[%s9059_s1 + $0x122] sm:$0x2] %vm3109_vm15, %v3101_v20  }
 0x2a7   :  { %4803 = vst.msk [vmem:[%s9059_s1 + $0x1e1] sm:$0x4] %vm3109_vm15, %v3101_v20   ;;  %vm3365_vm15 = vcmask 211968  }
 0x2a8   :  { %4810 = vst.msk [vmem:[%s9059_s1 + $0x20] ss:$129 sm:$0x3] %vm3189_vm11, %v3188_v21  }
 0x2a9   :  { %4811 = vst.msk [vmem:[%s9059_s1 - $0x22] ss:$129 sm:$0xc] %vm3189_vm11, %v3188_v21  }
 0x2aa   :  { %4812 = vst.msk [vmem:[%s9059_s1 - $0x64] ss:$129 sm:$0x30] %vm3189_vm11, %v3188_v21   ;;  %vm3387_vm11 = vcmask 203776  }
 0x2ab   :  { %4813 = vst.msk [vmem:[%s9059_s1 + $0x20] ss:$129 sm:$0x3] %vm3196_vm12, %v3188_v21  }
 0x2ac   :  { %4814 = vst.msk [vmem:[%s9059_s1 - $0x22] ss:$129 sm:$0xc] %vm3196_vm12, %v3188_v21  }
 0x2ad   :  { %4815 = vst.msk [vmem:[%s9059_s1 - $0x64] ss:$129 sm:$0x30] %vm3196_vm12, %v3188_v21   ;;  %vm3394_vm12 = vcmask 777416  }
 0x2ae   :  { %4804 = vst.msk [vmem:[%s9059_s1 + $0x1] ss:$129 sm:$0x3] %vm3145_vm9, %v3144_v22   ;;  %v4046_v48 = vpop.permute.xlu2 %4045  }
 0x2af   :  { %4805 = vst.msk [vmem:[%s9059_s1 - $0x41] ss:$129 sm:$0xc] %vm3145_vm9, %v3144_v22   ;;  %v4178_v53 = vpop.permute.xlu0 %4177  }
 0x2b0   :  { %4806 = vst.msk [vmem:[%s9059_s1 - $0x83] ss:$129 sm:$0x30] %vm3145_vm9, %v3144_v22   ;;  %vm3475_vm9 = vcmask 187392  }
 0x2b1   :  { %4807 = vst.msk [vmem:[%s9059_s1 + $0x1] ss:$129 sm:$0x3] %vm3152_vm3, %v3144_v22  }
 0x2b2   :  { %4808 = vst.msk [vmem:[%s9059_s1 - $0x41] ss:$129 sm:$0xc] %vm3152_vm3, %v3144_v22  }
 0x2b3   :  { %4809 = vst.msk [vmem:[%s9059_s1 - $0x83] ss:$129 sm:$0x30] %vm3152_vm3, %v3144_v22   ;;  %vm3482_vm3 = vcmask 777400  }
 0x2b4   :  { %4816 = vst.msk [vmem:[%s9059_s1 + $0x3f] sm:$0x1] %vm3211_vm7, %v3210_v23   ;;  %v4134_v52 = vpop.permute.xlu1 %4133  }
 0x2b5   :  { %4817 = vst.msk [vmem:[%s9059_s1 + $0xfe] sm:$0x2] %vm3211_vm7, %v3210_v23  }
 0x2b6   :  { %4818 = vst.msk [vmem:[%s9059_s1 + $0x1bd] sm:$0x4] %vm3211_vm7, %v3210_v23   ;;  %vm3431_vm7 = vcmask 195584  }
 0x2b7   :  { %4819 = vst.msk [vmem:[%s9059_s1 + $0x3f] sm:$0x1] %vm3218_vm0, %v3210_v23  }
 0x2b8   :  { %4820 = vst.msk [vmem:[%s9059_s1 + $0xfe] sm:$0x2] %vm3218_vm0, %v3210_v23  }
 0x2b9   :  { %4821 = vst.msk [vmem:[%s9059_s1 + $0x1bd] sm:$0x4] %vm3218_vm0, %v3210_v23   ;;  %vm3438_vm0 = vcmask 777408  }
 0x2ba   :  { %4828 = vst.msk [vmem:[%s9059_s1 + $0x7e] sm:$0x1] %vm3255_vm5, %v3254_v24  }
 0x2bb   :  { %4829 = vst.msk [vmem:[%s9059_s1 + $0x13d] sm:$0x2] %vm3255_vm5, %v3254_v24  }
 0x2bc   :  { %4830 = vst.msk [vmem:[%s9059_s1 + $0x1fc] sm:$0x4] %vm3255_vm5, %v3254_v24   ;;  %vm3497_vm5 = vcmask 179200   ;;  %v4156_v51 = vpop.permute.xlu2 %4155  }
 0x2bd   :  { %4831 = vst.msk [vmem:[%s9059_s1 + $0x7e] sm:$0x1] %vm3262_vm8, %v3254_v24  }
 0x2be   :  { %4832 = vst.msk [vmem:[%s9059_s1 + $0x13d] sm:$0x2] %vm3262_vm8, %v3254_v24  }
 0x2bf   :  { %4833 = vst.msk [vmem:[%s9059_s1 + $0x1fc] sm:$0x4] %vm3262_vm8, %v3254_v24   ;;  %vm3504_vm8 = vcmask 777392  }
 0x2c0   :  { %4822 = vst.msk [vmem:[%s9059_s1 + $0x5e] sm:$0x1] %vm3233_vm1, %v3232_v25  }
 0x2c1   :  { %4823 = vst.msk [vmem:[%s9059_s1 + $0x11d] sm:$0x2] %vm3233_vm1, %v3232_v25  }
 0x2c2   :  { %4824 = vst.msk [vmem:[%s9059_s1 + $0x1dc] sm:$0x4] %vm3233_vm1, %v3232_v25   ;;  %vm3563_vm1 = vcmask 162816  }
 0x2c3   :  { %4825 = vst.msk [vmem:[%s9059_s1 + $0x5e] sm:$0x1] %vm3240_vm6, %v3232_v25  }
 0x2c4   :  { %4826 = vst.msk [vmem:[%s9059_s1 + $0x11d] sm:$0x2] %vm3240_vm6, %v3232_v25  }
 0x2c5   :  { %4827 = vst.msk [vmem:[%s9059_s1 + $0x1dc] sm:$0x4] %vm3240_vm6, %v3232_v25   ;;  %vm3570_vm6 = vcmask 777376  }
 0x2c6   :  { %4834 = vst.msk [vmem:[%s9059_s1 + $0x1c] ss:$129 sm:$0x3] %vm3299_vm13, %v3298_v26  }
 0x2c7   :  { %4835 = vst.msk [vmem:[%s9059_s1 - $0x26] ss:$129 sm:$0xc] %vm3299_vm13, %v3298_v26  }
 0x2c8   :  { %4836 = vst.msk [vmem:[%s9059_s1 - $0x68] ss:$129 sm:$0x30] %vm3299_vm13, %v3298_v26   ;;  %vm3519_vm13 = vcmask 171008  }
 0x2c9   :  { %4837 = vst.msk [vmem:[%s9059_s1 + $0x1c] ss:$129 sm:$0x3] %vm3306_vm4, %v3298_v26  }
 0x2ca   :  { %4838 = vst.msk [vmem:[%s9059_s1 - $0x26] ss:$129 sm:$0xc] %vm3306_vm4, %v3298_v26  }
 0x2cb   :  { %4839 = vst.msk [vmem:[%s9059_s1 - $0x68] ss:$129 sm:$0x30] %vm3306_vm4, %v3298_v26   ;;  %vm3526_vm4 = vcmask 777384  }
 0x2cc   :  { %4846 = vst.msk [vmem:[%s9059_s1 + $0x5a] sm:$0x1] %vm3365_vm15, %v3364_v27  }
 0x2cd   :  { %4847 = vst.msk [vmem:[%s9059_s1 + $0x119] sm:$0x2] %vm3365_vm15, %v3364_v27  }
 0x2ce   :  { %4848 = vst.msk [vmem:[%s9059_s1 + $0x1d8] sm:$0x4] %vm3365_vm15, %v3364_v27   ;;  %vm3607_vm15 = vcmask 154624  }
 0x2cf   :  { %4849 = vst.msk [vmem:[%s9059_s1 + $0x5a] sm:$0x1] %vm3372_vm14, %v3364_v27  }
 0x2d0   :  { %4850 = vst.msk [vmem:[%s9059_s1 + $0x119] sm:$0x2] %vm3372_vm14, %v3364_v27  }
 0x2d1   :  { %4851 = vst.msk [vmem:[%s9059_s1 + $0x1d8] sm:$0x4] %vm3372_vm14, %v3364_v27   ;;  %vm3614_vm14 = vcmask 777368  }
 0x2d2   :  { %4840 = vst.msk [vmem:[%s9059_s1 + $0x3b] ss:$129 sm:$0x3] %vm3343_vm2, %v3342_v28  }
 0x2d3   :  { %4841 = vst.msk [vmem:[%s9059_s1 - $0x7] ss:$129 sm:$0xc] %vm3343_vm2, %v3342_v28  }
 0x2d4   :  { %4842 = vst.msk [vmem:[%s9059_s1 - $0x49] ss:$129 sm:$0x30] %vm3343_vm2, %v3342_v28   ;;  %vm3651_vm2 = vcmask 138240  }
 0x2d5   :  { %4843 = vst.msk [vmem:[%s9059_s1 + $0x3b] ss:$129 sm:$0x3] %vm3350_vm10, %v3342_v28  }
 0x2d6   :  { %4844 = vst.msk [vmem:[%s9059_s1 - $0x7] ss:$129 sm:$0xc] %vm3350_vm10, %v3342_v28  }
 0x2d7   :  { %4845 = vst.msk [vmem:[%s9059_s1 - $0x49] ss:$129 sm:$0x30] %vm3350_vm10, %v3342_v28   ;;  %vm3658_vm10 = vcmask 777352  }
 0x2d8   :  { %4852 = vst.msk [vmem:[%s9059_s1 + $0x7a] sm:$0x1] %vm3387_vm11, %v3386_v29  }
 0x2d9   :  { %4853 = vst.msk [vmem:[%s9059_s1 + $0x139] sm:$0x2] %vm3387_vm11, %v3386_v29  }
 0x2da   :  { %4854 = vst.msk [vmem:[%s9059_s1 + $0x1f8] sm:$0x4] %vm3387_vm11, %v3386_v29   ;;  %vm3629_vm11 = vcmask 146432  }
 0x2db   :  { %4855 = vst.msk [vmem:[%s9059_s1 + $0x7a] sm:$0x1] %vm3394_vm12, %v3386_v29  }
 0x2dc   :  { %4856 = vst.msk [vmem:[%s9059_s1 + $0x139] sm:$0x2] %vm3394_vm12, %v3386_v29  }
 0x2dd   :  { %4857 = vst.msk [vmem:[%s9059_s1 + $0x1f8] sm:$0x4] %vm3394_vm12, %v3386_v29   ;;  %vm3636_vm12 = vcmask 777360  }
 0x2de   :  { %4864 = vst.msk [vmem:[%s9059_s1 + $0x37] ss:$129 sm:$0x3] %vm3475_vm9, %v3474_v31  }
 0x2df   :  { %4865 = vst.msk [vmem:[%s9059_s1 - $0xb] ss:$129 sm:$0xc] %vm3475_vm9, %v3474_v31  }
 0x2e0   :  { %4866 = vst.msk [vmem:[%s9059_s1 - $0x4d] ss:$129 sm:$0x30] %vm3475_vm9, %v3474_v31   ;;  %vm3695_vm9 = vcmask 130048  }
 0x2e1   :  { %4867 = vst.msk [vmem:[%s9059_s1 + $0x37] ss:$129 sm:$0x3] %vm3482_vm3, %v3474_v31  }
 0x2e2   :  { %4868 = vst.msk [vmem:[%s9059_s1 - $0xb] ss:$129 sm:$0xc] %vm3482_vm3, %v3474_v31  }
 0x2e3   :  { %4869 = vst.msk [vmem:[%s9059_s1 - $0x4d] ss:$129 sm:$0x30] %vm3482_vm3, %v3474_v31   ;;  %vm3702_vm3 = vcmask 777344  }
 0x2e4   :  { %4858 = vst.msk [vmem:[%s9059_s1 + $0x18] ss:$129 sm:$0x3] %vm3431_vm7, %v3430_v30  }
 0x2e5   :  { %4859 = vst.msk [vmem:[%s9059_s1 - $0x2a] ss:$129 sm:$0xc] %vm3431_vm7, %v3430_v30  }
 0x2e6   :  { %4860 = vst.msk [vmem:[%s9059_s1 - $0x6c] ss:$129 sm:$0x30] %vm3431_vm7, %v3430_v30   ;;  %vm3761_vm7 = vcmask 113664  }
 0x2e7   :  { %4861 = vst.msk [vmem:[%s9059_s1 + $0x18] ss:$129 sm:$0x3] %vm3438_vm0, %v3430_v30  }
 0x2e8   :  { %4862 = vst.msk [vmem:[%s9059_s1 - $0x2a] ss:$129 sm:$0xc] %vm3438_vm0, %v3430_v30  }
 0x2e9   :  { %4863 = vst.msk [vmem:[%s9059_s1 - $0x6c] ss:$129 sm:$0x30] %vm3438_vm0, %v3430_v30   ;;  %vm3768_vm0 = vcmask 777328  }
 0x2ea   :  { %4870 = vst.msk [vmem:[%s9059_s1 + $0x56] sm:$0x1] %vm3497_vm5, %v3496_v32  }
 0x2eb   :  { %4871 = vst.msk [vmem:[%s9059_s1 + $0x115] sm:$0x2] %vm3497_vm5, %v3496_v32  }
 0x2ec   :  { %4872 = vst.msk [vmem:[%s9059_s1 + $0x1d4] sm:$0x4] %vm3497_vm5, %v3496_v32   ;;  %vm3739_vm5 = vcmask 121856  }
 0x2ed   :  { %4873 = vst.msk [vmem:[%s9059_s1 + $0x56] sm:$0x1] %vm3504_vm8, %v3496_v32  }
 0x2ee   :  { %4874 = vst.msk [vmem:[%s9059_s1 + $0x115] sm:$0x2] %vm3504_vm8, %v3496_v32  }
 0x2ef   :  { %4875 = vst.msk [vmem:[%s9059_s1 + $0x1d4] sm:$0x4] %vm3504_vm8, %v3496_v32   ;;  %vm3746_vm8 = vcmask 777336  }
 0x2f0   :  { %4882 = vst.msk [vmem:[%s9059_s1 + $0x14] ss:$129 sm:$0x3] %vm3563_vm1, %v3562_v33  }
 0x2f1   :  { %4883 = vst.msk [vmem:[%s9059_s1 - $0x2e] ss:$129 sm:$0xc] %vm3563_vm1, %v3562_v33  }
 0x2f2   :  { %4884 = vst.msk [vmem:[%s9059_s1 - $0x70] ss:$129 sm:$0x30] %vm3563_vm1, %v3562_v33   ;;  %vm3783_vm1 = vcmask 105472  }
 0x2f3   :  { %4885 = vst.msk [vmem:[%s9059_s1 + $0x14] ss:$129 sm:$0x3] %vm3570_vm6, %v3562_v33  }
 0x2f4   :  { %4886 = vst.msk [vmem:[%s9059_s1 - $0x2e] ss:$129 sm:$0xc] %vm3570_vm6, %v3562_v33  }
 0x2f5   :  { %4887 = vst.msk [vmem:[%s9059_s1 - $0x70] ss:$129 sm:$0x30] %vm3570_vm6, %v3562_v33   ;;  %vm3790_vm6 = vcmask 777320  }
 0x2f6   :  { %4876 = vst.msk [vmem:[%s9059_s1 + $0x76] sm:$0x1] %vm3519_vm13, %v3518_v34  }
 0x2f7   :  { %4877 = vst.msk [vmem:[%s9059_s1 + $0x135] sm:$0x2] %vm3519_vm13, %v3518_v34  }
 0x2f8   :  { %4878 = vst.msk [vmem:[%s9059_s1 + $0x1f4] sm:$0x4] %vm3519_vm13, %v3518_v34   ;;  %vm3871_vm13 = vcmask 89088  }
 0x2f9   :  { %4879 = vst.msk [vmem:[%s9059_s1 + $0x76] sm:$0x1] %vm3526_vm4, %v3518_v34  }
 0x2fa   :  { %4880 = vst.msk [vmem:[%s9059_s1 + $0x135] sm:$0x2] %vm3526_vm4, %v3518_v34  }
 0x2fb   :  { %4881 = vst.msk [vmem:[%s9059_s1 + $0x1f4] sm:$0x4] %vm3526_vm4, %v3518_v34   ;;  %vm3878_vm4 = vcmask 777304  }
 0x2fc   :  { %4888 = vst.msk [vmem:[%s9059_s1 + $0x33] ss:$129 sm:$0x3] %vm3607_vm15, %v3606_v35  }
 0x2fd   :  { %4889 = vst.msk [vmem:[%s9059_s1 - $0xf] ss:$129 sm:$0xc] %vm3607_vm15, %v3606_v35  }
 0x2fe   :  { %4890 = vst.msk [vmem:[%s9059_s1 - $0x51] ss:$129 sm:$0x30] %vm3607_vm15, %v3606_v35   ;;  %vm3827_vm15 = vcmask 97280  }
 0x2ff   :  { %4891 = vst.msk [vmem:[%s9059_s1 + $0x33] ss:$129 sm:$0x3] %vm3614_vm14, %v3606_v35  }
 0x300   :  { %4892 = vst.msk [vmem:[%s9059_s1 - $0xf] ss:$129 sm:$0xc] %vm3614_vm14, %v3606_v35  }
 0x301   :  { %4893 = vst.msk [vmem:[%s9059_s1 - $0x51] ss:$129 sm:$0x30] %vm3614_vm14, %v3606_v35   ;;  %vm3834_vm14 = vcmask 777312  }
 0x302   :  { %4900 = vst.msk [vmem:[%s9059_s1 + $0x72] sm:$0x1] %vm3651_vm2, %v3650_v36  }
 0x303   :  { %4901 = vst.msk [vmem:[%s9059_s1 + $0x131] sm:$0x2] %vm3651_vm2, %v3650_v36  }
 0x304   :  { %4902 = vst.msk [vmem:[%s9059_s1 + $0x1f0] sm:$0x4] %vm3651_vm2, %v3650_v36   ;;  %vm3893_vm2 = vcmask 80896  }
 0x305   :  { %4903 = vst.msk [vmem:[%s9059_s1 + $0x72] sm:$0x1] %vm3658_vm10, %v3650_v36  }
 0x306   :  { %4904 = vst.msk [vmem:[%s9059_s1 + $0x131] sm:$0x2] %vm3658_vm10, %v3650_v36  }
 0x307   :  { %4905 = vst.msk [vmem:[%s9059_s1 + $0x1f0] sm:$0x4] %vm3658_vm10, %v3650_v36   ;;  %vm3900_vm10 = vcmask 777296  }
 0x308   :  { %4894 = vst.msk [vmem:[%s9059_s1 + $0x52] sm:$0x1] %vm3629_vm11, %v3628_v37  }
 0x309   :  { %4895 = vst.msk [vmem:[%s9059_s1 + $0x111] sm:$0x2] %vm3629_vm11, %v3628_v37  }
 0x30a   :  { %4896 = vst.msk [vmem:[%s9059_s1 + $0x1d0] sm:$0x4] %vm3629_vm11, %v3628_v37   ;;  %vm3959_vm11 = vcmask 64512  }
 0x30b   :  { %4897 = vst.msk [vmem:[%s9059_s1 + $0x52] sm:$0x1] %vm3636_vm12, %v3628_v37  }
 0x30c   :  { %4898 = vst.msk [vmem:[%s9059_s1 + $0x111] sm:$0x2] %vm3636_vm12, %v3628_v37  }
 0x30d   :  { %4899 = vst.msk [vmem:[%s9059_s1 + $0x1d0] sm:$0x4] %vm3636_vm12, %v3628_v37   ;;  %vm3966_vm12 = vcmask 777280  }
 0x30e   :  { %4906 = vst.msk [vmem:[%s9059_s1 + $0x10] ss:$129 sm:$0x3] %vm3695_vm9, %v3694_v38  }
 0x30f   :  { %4907 = vst.msk [vmem:[%s9059_s1 - $0x32] ss:$129 sm:$0xc] %vm3695_vm9, %v3694_v38  }
 0x310   :  { %4908 = vst.msk [vmem:[%s9059_s1 - $0x74] ss:$129 sm:$0x30] %vm3695_vm9, %v3694_v38   ;;  %vm3915_vm9 = vcmask 72704  }
 0x311   :  { %4909 = vst.msk [vmem:[%s9059_s1 + $0x10] ss:$129 sm:$0x3] %vm3702_vm3, %v3694_v38  }
 0x312   :  { %4910 = vst.msk [vmem:[%s9059_s1 - $0x32] ss:$129 sm:$0xc] %vm3702_vm3, %v3694_v38  }
 0x313   :  { %4911 = vst.msk [vmem:[%s9059_s1 - $0x74] ss:$129 sm:$0x30] %vm3702_vm3, %v3694_v38   ;;  %vm3922_vm3 = vcmask 777288  }
 0x314   :  { %4918 = vst.msk [vmem:[%s9059_s1 + $0x4e] sm:$0x1] %vm3761_vm7, %v3760_v39  }
 0x315   :  { %4919 = vst.msk [vmem:[%s9059_s1 + $0x10d] sm:$0x2] %vm3761_vm7, %v3760_v39  }
 0x316   :  { %4920 = vst.msk [vmem:[%s9059_s1 + $0x1cc] sm:$0x4] %vm3761_vm7, %v3760_v39   ;;  %vm4003_vm7 = vcmask 56320  }
 0x317   :  { %4921 = vst.msk [vmem:[%s9059_s1 + $0x4e] sm:$0x1] %vm3768_vm0, %v3760_v39  }
 0x318   :  { %4922 = vst.msk [vmem:[%s9059_s1 + $0x10d] sm:$0x2] %vm3768_vm0, %v3760_v39  }
 0x319   :  { %4923 = vst.msk [vmem:[%s9059_s1 + $0x1cc] sm:$0x4] %vm3768_vm0, %v3760_v39   ;;  %vm4010_vm0 = vcmask 777272  }
 0x31a   :  { %4912 = vst.msk [vmem:[%s9059_s1 + $0x2f] ss:$129 sm:$0x3] %vm3739_vm5, %v3738_v40  }
 0x31b   :  { %4913 = vst.msk [vmem:[%s9059_s1 - $0x13] ss:$129 sm:$0xc] %vm3739_vm5, %v3738_v40  }
 0x31c   :  { %4914 = vst.msk [vmem:[%s9059_s1 - $0x55] ss:$129 sm:$0x30] %vm3739_vm5, %v3738_v40   ;;  %vm4047_vm5 = vcmask 39936  }
 0x31d   :  { %4915 = vst.msk [vmem:[%s9059_s1 + $0x2f] ss:$129 sm:$0x3] %vm3746_vm8, %v3738_v40  }
 0x31e   :  { %4916 = vst.msk [vmem:[%s9059_s1 - $0x13] ss:$129 sm:$0xc] %vm3746_vm8, %v3738_v40  }
 0x31f   :  { %4917 = vst.msk [vmem:[%s9059_s1 - $0x55] ss:$129 sm:$0x30] %vm3746_vm8, %v3738_v40   ;;  %vm4054_vm8 = vcmask 777256  }
 0x320   :  { %4924 = vst.msk [vmem:[%s9059_s1 + $0x6e] sm:$0x1] %vm3783_vm1, %v3782_v41  }
 0x321   :  { %4925 = vst.msk [vmem:[%s9059_s1 + $0x12d] sm:$0x2] %vm3783_vm1, %v3782_v41  }
 0x322   :  { %4926 = vst.msk [vmem:[%s9059_s1 + $0x1ec] sm:$0x4] %vm3783_vm1, %v3782_v41   ;;  %vm4025_vm1 = vcmask 48128  }
 0x323   :  { %4927 = vst.msk [vmem:[%s9059_s1 + $0x6e] sm:$0x1] %vm3790_vm6, %v3782_v41  }
 0x324   :  { %4928 = vst.msk [vmem:[%s9059_s1 + $0x12d] sm:$0x2] %vm3790_vm6, %v3782_v41  }
 0x325   :  { %4929 = vst.msk [vmem:[%s9059_s1 + $0x1ec] sm:$0x4] %vm3790_vm6, %v3782_v41   ;;  %vm4032_vm6 = vcmask 777264  }
 0x326   :  { %4936 = vst.msk [vmem:[%s9059_s1 + $0x2b] ss:$129 sm:$0x3] %vm3871_vm13, %v3870_v42  }
 0x327   :  { %4937 = vst.msk [vmem:[%s9059_s1 - $0x17] ss:$129 sm:$0xc] %vm3871_vm13, %v3870_v42  }
 0x328   :  { %4938 = vst.msk [vmem:[%s9059_s1 - $0x59] ss:$129 sm:$0x30] %vm3871_vm13, %v3870_v42   ;;  %vm4091_vm13 = vcmask 31744  }
 0x329   :  { %4939 = vst.msk [vmem:[%s9059_s1 + $0x2b] ss:$129 sm:$0x3] %vm3878_vm4, %v3870_v42  }
 0x32a   :  { %4940 = vst.msk [vmem:[%s9059_s1 - $0x17] ss:$129 sm:$0xc] %vm3878_vm4, %v3870_v42  }
 0x32b   :  { %4941 = vst.msk [vmem:[%s9059_s1 - $0x59] ss:$129 sm:$0x30] %vm3878_vm4, %v3870_v42   ;;  %vm4098_vm4 = vcmask 777248  }
 0x32c   :  { %4930 = vst.msk [vmem:[%s9059_s1 + $0xc] ss:$129 sm:$0x3] %vm3827_vm15, %v3826_v43  }
 0x32d   :  { %4931 = vst.msk [vmem:[%s9059_s1 - $0x36] ss:$129 sm:$0xc] %vm3827_vm15, %v3826_v43  }
 0x32e   :  { %4932 = vst.msk [vmem:[%s9059_s1 - $0x78] ss:$129 sm:$0x30] %vm3827_vm15, %v3826_v43   ;;  %vm4157_vm15 = vcmask 15360  }
 0x32f   :  { %4933 = vst.msk [vmem:[%s9059_s1 + $0xc] ss:$129 sm:$0x3] %vm3834_vm14, %v3826_v43  }
 0x330   :  { %4934 = vst.msk [vmem:[%s9059_s1 - $0x36] ss:$129 sm:$0xc] %vm3834_vm14, %v3826_v43  }
 0x331   :  { %4935 = vst.msk [vmem:[%s9059_s1 - $0x78] ss:$129 sm:$0x30] %vm3834_vm14, %v3826_v43   ;;  %vm4164_vm14 = vcmask 777232  }
 0x332   :  { %4942 = vst.msk [vmem:[%s9059_s1 + $0x4a] sm:$0x1] %vm3893_vm2, %v3892_v44  }
 0x333   :  { %4943 = vst.msk [vmem:[%s9059_s1 + $0x109] sm:$0x2] %vm3893_vm2, %v3892_v44  }
 0x334   :  { %4944 = vst.msk [vmem:[%s9059_s1 + $0x1c8] sm:$0x4] %vm3893_vm2, %v3892_v44   ;;  %vm4135_vm2 = vcmask 23552  }
 0x335   :  { %4945 = vst.msk [vmem:[%s9059_s1 + $0x4a] sm:$0x1] %vm3900_vm10, %v3892_v44  }
 0x336   :  { %4946 = vst.msk [vmem:[%s9059_s1 + $0x109] sm:$0x2] %vm3900_vm10, %v3892_v44  }
 0x337   :  { %4947 = vst.msk [vmem:[%s9059_s1 + $0x1c8] sm:$0x4] %vm3900_vm10, %v3892_v44   ;;  %vm4142_vm10 = vcmask 777240  }
 0x338   :  { %4954 = vst.msk [vmem:[%s9059_s1 + $0x8] ss:$129 sm:$0x3] %vm3959_vm11, %v3958_v45  }
 0x339   :  { %4955 = vst.msk [vmem:[%s9059_s1 - $0x3a] ss:$129 sm:$0xc] %vm3959_vm11, %v3958_v45  }
 0x33a   :  { %4956 = vst.msk [vmem:[%s9059_s1 - $0x7c] ss:$129 sm:$0x30] %vm3959_vm11, %v3958_v45   ;;  %vm4179_vm11 = vcmask 7168  }
 0x33b   :  { %4957 = vst.msk [vmem:[%s9059_s1 + $0x8] ss:$129 sm:$0x3] %vm3966_vm12, %v3958_v45  }
 0x33c   :  { %4958 = vst.msk [vmem:[%s9059_s1 - $0x3a] ss:$129 sm:$0xc] %vm3966_vm12, %v3958_v45  }
 0x33d   :  { %4959 = vst.msk [vmem:[%s9059_s1 - $0x7c] ss:$129 sm:$0x30] %vm3966_vm12, %v3958_v45   ;;  %vm4186_vm12 = vcmask 777224  }
 0x33e   :  { %4948 = vst.msk [vmem:[%s9059_s1 + $0x6a] sm:$0x1] %vm3915_vm9, %v3914_v46  }
 0x33f   :  { %4949 = vst.msk [vmem:[%s9059_s1 + $0x129] sm:$0x2] %vm3915_vm9, %v3914_v46  }
 0x340   :  { %4950 = vst.msk [vmem:[%s9059_s1 + $0x1e8] sm:$0x4] %vm3915_vm9, %v3914_v46  }
 0x341   :  { %4951 = vst.msk [vmem:[%s9059_s1 + $0x6a] sm:$0x1] %vm3922_vm3, %v3914_v46  }
 0x342   :  { %4952 = vst.msk [vmem:[%s9059_s1 + $0x129] sm:$0x2] %vm3922_vm3, %v3914_v46  }
 0x343   :  { %4953 = vst.msk [vmem:[%s9059_s1 + $0x1e8] sm:$0x4] %vm3922_vm3, %v3914_v46  }
 0x344   :  { %4960 = vst.msk [vmem:[%s9059_s1 + $0x27] ss:$129 sm:$0x3] %vm4003_vm7, %v4002_v47  }
 0x345   :  { %4961 = vst.msk [vmem:[%s9059_s1 - $0x1b] ss:$129 sm:$0xc] %vm4003_vm7, %v4002_v47  }
 0x346   :  { %4962 = vst.msk [vmem:[%s9059_s1 - $0x5d] ss:$129 sm:$0x30] %vm4003_vm7, %v4002_v47  }
 0x347   :  { %4963 = vst.msk [vmem:[%s9059_s1 + $0x27] ss:$129 sm:$0x3] %vm4010_vm0, %v4002_v47  }
 0x348   :  { %4964 = vst.msk [vmem:[%s9059_s1 - $0x1b] ss:$129 sm:$0xc] %vm4010_vm0, %v4002_v47  }
 0x349   :  { %4965 = vst.msk [vmem:[%s9059_s1 - $0x5d] ss:$129 sm:$0x30] %vm4010_vm0, %v4002_v47  }
 0x34a   :  { %4972 = vst.msk [vmem:[%s9059_s1 + $0x66] sm:$0x1] %vm4047_vm5, %v4046_v48  }
 0x34b   :  { %4973 = vst.msk [vmem:[%s9059_s1 + $0x125] sm:$0x2] %vm4047_vm5, %v4046_v48  }
 0x34c   :  { %4974 = vst.msk [vmem:[%s9059_s1 + $0x1e4] sm:$0x4] %vm4047_vm5, %v4046_v48  }
 0x34d   :  { %4975 = vst.msk [vmem:[%s9059_s1 + $0x66] sm:$0x1] %vm4054_vm8, %v4046_v48  }
 0x34e   :  { %4976 = vst.msk [vmem:[%s9059_s1 + $0x125] sm:$0x2] %vm4054_vm8, %v4046_v48  }
 0x34f   :  { %4977 = vst.msk [vmem:[%s9059_s1 + $0x1e4] sm:$0x4] %vm4054_vm8, %v4046_v48  }
 0x350   :  { %4966 = vst.msk [vmem:[%s9059_s1 + $0x46] sm:$0x1] %vm4025_vm1, %v4024_v49  }
 0x351   :  { %4967 = vst.msk [vmem:[%s9059_s1 + $0x105] sm:$0x2] %vm4025_vm1, %v4024_v49  }
 0x352   :  { %4968 = vst.msk [vmem:[%s9059_s1 + $0x1c4] sm:$0x4] %vm4025_vm1, %v4024_v49  }
 0x353   :  { %4969 = vst.msk [vmem:[%s9059_s1 + $0x46] sm:$0x1] %vm4032_vm6, %v4024_v49  }
 0x354   :  { %4970 = vst.msk [vmem:[%s9059_s1 + $0x105] sm:$0x2] %vm4032_vm6, %v4024_v49  }
 0x355   :  { %4971 = vst.msk [vmem:[%s9059_s1 + $0x1c4] sm:$0x4] %vm4032_vm6, %v4024_v49  }
 0x356   :  { %4978 = vst.msk [vmem:[%s9059_s1 + $0x4] ss:$129 sm:$0x3] %vm4091_vm13, %v4090_v50  }
 0x357   :  { %4979 = vst.msk [vmem:[%s9059_s1 - $0x3e] ss:$129 sm:$0xc] %vm4091_vm13, %v4090_v50  }
 0x358   :  { %4980 = vst.msk [vmem:[%s9059_s1 - $0x80] ss:$129 sm:$0x30] %vm4091_vm13, %v4090_v50  }
 0x359   :  { %4981 = vst.msk [vmem:[%s9059_s1 + $0x4] ss:$129 sm:$0x3] %vm4098_vm4, %v4090_v50  }
 0x35a   :  { %4982 = vst.msk [vmem:[%s9059_s1 - $0x3e] ss:$129 sm:$0xc] %vm4098_vm4, %v4090_v50  }
 0x35b   :  { %4983 = vst.msk [vmem:[%s9059_s1 - $0x80] ss:$129 sm:$0x30] %vm4098_vm4, %v4090_v50  }
 0x35c   :  { %4990 = vst.msk [vmem:[%s9059_s1 + $0x42] sm:$0x1] %vm4157_vm15, %v4156_v51  }
 0x35d   :  { %4991 = vst.msk [vmem:[%s9059_s1 + $0x101] sm:$0x2] %vm4157_vm15, %v4156_v51  }
 0x35e   :  { %4992 = vst.msk [vmem:[%s9059_s1 + $0x1c0] sm:$0x4] %vm4157_vm15, %v4156_v51  }
 0x35f   :  { %4993 = vst.msk [vmem:[%s9059_s1 + $0x42] sm:$0x1] %vm4164_vm14, %v4156_v51  }
 0x360   :  { %4994 = vst.msk [vmem:[%s9059_s1 + $0x101] sm:$0x2] %vm4164_vm14, %v4156_v51  }
 0x361   :  { %4995 = vst.msk [vmem:[%s9059_s1 + $0x1c0] sm:$0x4] %vm4164_vm14, %v4156_v51  }
 0x362   :  { %4984 = vst.msk [vmem:[%s9059_s1 + $0x23] ss:$129 sm:$0x3] %vm4135_vm2, %v4134_v52  }
 0x363   :  { %4985 = vst.msk [vmem:[%s9059_s1 - $0x1f] ss:$129 sm:$0xc] %vm4135_vm2, %v4134_v52  }
 0x364   :  { %4986 = vst.msk [vmem:[%s9059_s1 - $0x61] ss:$129 sm:$0x30] %vm4135_vm2, %v4134_v52  }
 0x365   :  { %4987 = vst.msk [vmem:[%s9059_s1 + $0x23] ss:$129 sm:$0x3] %vm4142_vm10, %v4134_v52  }
 0x366   :  { %4988 = vst.msk [vmem:[%s9059_s1 - $0x1f] ss:$129 sm:$0xc] %vm4142_vm10, %v4134_v52  }
 0x367   :  { %4989 = vst.msk [vmem:[%s9059_s1 - $0x61] ss:$129 sm:$0x30] %vm4142_vm10, %v4134_v52  }
 0x368   :  { %4996 = vst.msk [vmem:[%s9059_s1 + $0x62] sm:$0x1] %vm4179_vm11, %v4178_v53  }
 0x369   :  { %4997 = vst.msk [vmem:[%s9059_s1 + $0x121] sm:$0x2] %vm4179_vm11, %v4178_v53  }
 0x36a   :  { %4998 = vst.msk [vmem:[%s9059_s1 + $0x1e0] sm:$0x4] %vm4179_vm11, %v4178_v53  }
 0x36b   :  { %4999 = vst.msk [vmem:[%s9059_s1 + $0x62] sm:$0x1] %vm4186_vm12, %v4178_v53  }
 0x36c   :  { %5000 = vst.msk [vmem:[%s9059_s1 + $0x121] sm:$0x2] %vm4186_vm12, %v4178_v53  }
 0x36d   :  { %5001 = vst.msk [vmem:[%s9059_s1 + $0x1e0] sm:$0x4] %vm4186_vm12, %v4178_v53  }

</bundles_post_ra>
